<compile_context>
chip_gen: v7x
topology: tpu7x:2x2x1
jax: 0.10.0
libtpu: 0.0.40
codegen_flags: <defaults>
</compile_context>

<pallas_src>
import jax
import jax.numpy as jnp
from jax.experimental import pallas as pl
from jax.experimental.pallas import tpu as pltpu


def basic_block_kernel(x_ref, w1_ref, b1_ref, w2_ref, b2_ref, o_ref,
                       xpad_ref, mid_ref, col_ref):
    """Fused BasicBlock forward for one batch element.

    x_ref   : (1, H, W, Cp)     f32 input (channels pre-padded to Cp lanes)
    w1_ref  : (9*Cp, Cp)        bf16 conv1 weights, BN1 scale folded,
                                row index = (kh*3+kw)*Cp + cin
    b1_ref  : (1, Cp)           f32 folded BN1 bias
    w2_ref  : (9*Cp, Cp)        bf16 conv2 weights, BN2 scale folded
    b2_ref  : (1, Cp)           f32 folded BN2 bias
    o_ref   : (1, H, W, Cp)     f32 output
    xpad_ref: (H+2, W+2, Cp)    bf16 scratch: zero-padded input
    mid_ref : (H+2, W+2, Cp)    bf16 scratch: zero-padded conv1 activation
    col_ref : (RB, W, 9*Cp)     bf16 scratch: im2col buffer for one row block
    """
    H = o_ref.shape[1]
    W = o_ref.shape[2]
    Cp = o_ref.shape[3]
    RB = col_ref.shape[0]
    n_chunks = H // RB
    bf16 = jnp.bfloat16

    # ---- zero only the 1-pixel border of the padded scratches ---------------
    # Interior is fully overwritten every grid step; re-zeroing the border per
    # step is cheap and stays correct no matter how the parallel batch axis is
    # sharded across cores (scratch is per-core and not zero-initialized).
    zrow = jnp.zeros((1, W + 2, Cp), bf16)
    zcol = jnp.zeros((H, 1, Cp), bf16)
    for pad_ref in (xpad_ref, mid_ref):
        pad_ref[0:1, :, :] = zrow
        pad_ref[H + 1:H + 2, :, :] = zrow
        pad_ref[1:1 + H, 0:1, :] = zcol
        pad_ref[1:1 + H, W + 1:W + 2, :] = zcol

    # ---- padded bf16 input image in VMEM -------------------------------------
    xpad_ref[1:1 + H, 1:1 + W, :] = x_ref[0].astype(bf16)

    # ---- hoisted weight / bias loads (constant across chunks) ----------------
    w1 = w1_ref[...]
    w2 = w2_ref[...]
    b1 = b1_ref[...]
    b2 = b2_ref[...]

    def im2col_chunk(src_ref, r0):
        # Gather the 9 taps for output rows [r0, r0+RB) into col_ref.
        # All slice starts are static Python ints; Cp-sized lane slices are
        # 128-aligned, so these are plain (cheap) VMEM copies.
        for kh in range(3):
            for kw in range(3):
                tap = kh * 3 + kw
                col_ref[:, :, tap * Cp:(tap + 1) * Cp] = (
                    src_ref[r0 + kh:r0 + kh + RB, kw:kw + W, :])

    # ---- conv1 (+ folded BN1) + ReLU  ->  mid (padded, bf16) -----------------
    for c in range(n_chunks):
        r0 = c * RB
        im2col_chunk(xpad_ref, r0)
        cols = col_ref[...].reshape(RB * W, 9 * Cp)
        acc = jnp.dot(cols, w1,
                      preferred_element_type=jnp.float32).reshape(RB, W, Cp)
        mid_ref[1 + r0:1 + r0 + RB, 1:1 + W, :] = (
            jnp.maximum(acc + b1, 0.0).astype(bf16))

    # ---- conv2 (+ folded BN2) + residual + ReLU  ->  output ------------------
    # TODO(synk): no_relu=True variant would skip this final maximum.
    for c in range(n_chunks):
        r0 = c * RB
        im2col_chunk(mid_ref, r0)
        cols = col_ref[...].reshape(RB * W, 9 * Cp)
        acc = jnp.dot(cols, w2,
                      preferred_element_type=jnp.float32).reshape(RB, W, Cp)
        residual = x_ref[0, r0:r0 + RB, :, :]          # f32, exact residual
        o_ref[0, r0:r0 + RB, :, :] = jnp.maximum(acc + b2 + residual, 0.0)


def _pick_rb(H, W, Cp):
    """Largest divisor of H such that the im2col scratch stays small and the
    matmul M-dim (RB*W) is around 256 (MXU-friendly on v6e/v7x)."""
    bytes_per_row = W * 9 * Cp * 2                    # bf16 im2col bytes / row
    row_budget = max(1, (3 * 1024 * 1024) // bytes_per_row)
    m_budget = max(1, 512 // W)                       # keep M = RB*W <= 512
    best = 1
    for cand in range(1, H + 1):
        if H % cand == 0 and cand <= row_budget and cand <= max(m_budget, 8):
            best = cand
    return best


@jax.jit
def basic_block_forward(x_nchw, w1, s1, b1, w2, s2, b2):
    """x_nchw: (N, C, H, W) f32; w*: (3,3,Cin,Cout) HWIO; s*/b*: (C,) folded BN.

    Returns (N, C, H, W) f32.  Assumes stride=1, downsample=None, Cin == Cout.
    """
    N, C, H, W = x_nchw.shape
    assert w1.shape[2] == w1.shape[3] == C, "BasicBlock with stride=1 needs Cin == Cout"

    Cp = ((C + 127) // 128) * 128          # lane-dense channel padding
    RB = _pick_rb(H, W, Cp)                # output rows per inner matmul

    # NCHW -> NHWC and channel pad (lane density); spatial pad is done in-kernel.
    x_nhwc = jnp.transpose(x_nchw, (0, 2, 3, 1)).astype(jnp.float32)
    x_cp = jnp.pad(x_nhwc, ((0, 0), (0, 0), (0, 0), (0, Cp - C)))

    def prep_w(w, s):
        # fold BN scale into conv weights (f32), pad channels, flatten to the
        # im2col weight matrix (9*Cp, Cp), cast to bf16 for the MXU.
        wf = w.astype(jnp.float32) * s.reshape(1, 1, 1, C)
        wf = jnp.pad(wf, ((0, 0), (0, 0), (0, Cp - C), (0, Cp - C)))
        return wf.reshape(9 * Cp, Cp).astype(jnp.bfloat16)

    w1m = prep_w(w1, s1)
    w2m = prep_w(w2, s2)
    b1p = jnp.pad(b1.reshape(1, C), ((0, 0), (0, Cp - C))).astype(jnp.float32)
    b2p = jnp.pad(b2.reshape(1, C), ((0, 0), (0, Cp - C))).astype(jnp.float32)

    out_nhwc = pl.pallas_call(
        basic_block_kernel,
        out_shape=jax.ShapeDtypeStruct((N, H, W, Cp), jnp.float32),
        grid_spec=pltpu.PrefetchScalarGridSpec(
            num_scalar_prefetch=0,
            grid=(N,),
            in_specs=[
                pl.BlockSpec((1, H, W, Cp), lambda n: (n, 0, 0, 0)),
                pl.BlockSpec((9 * Cp, Cp), lambda n: (0, 0)),   # resident
                pl.BlockSpec((1, Cp), lambda n: (0, 0)),        # resident
                pl.BlockSpec((9 * Cp, Cp), lambda n: (0, 0)),   # resident
                pl.BlockSpec((1, Cp), lambda n: (0, 0)),        # resident
            ],
            out_specs=pl.BlockSpec((1, H, W, Cp), lambda n: (n, 0, 0, 0)),
            scratch_shapes=[
                pltpu.VMEM((H + 2, W + 2, Cp), jnp.bfloat16),   # padded input
                pltpu.VMEM((H + 2, W + 2, Cp), jnp.bfloat16),   # padded conv1 act
                pltpu.VMEM((RB, W, 9 * Cp), jnp.bfloat16),      # im2col buffer
            ],
        ),
        compiler_params=pltpu.CompilerParams(
            dimension_semantics=("parallel",)),
    )(x_cp, w1m, b1p, w2m, b2p)

    return jnp.transpose(out_nhwc[..., :C], (0, 3, 1, 2))


def _reference_f32(x_nchw, w1, s1, b1, w2, s2, b2):
    """Pure f32 JAX reference (lax conv)."""
    x = jnp.transpose(x_nchw, (0, 2, 3, 1))
    dn = ('NHWC', 'HWIO', 'NHWC')
    o = jax.lax.conv_general_dilated(x, w1, (1, 1), 'SAME', dimension_numbers=dn)
    o = jnp.maximum(o * s1 + b1, 0.0)
    o = jax.lax.conv_general_dilated(o, w2, (1, 1), 'SAME', dimension_numbers=dn)
    o = jnp.maximum(o * s2 + b2 + x, 0.0)
    return jnp.transpose(o, (0, 3, 1, 2))


def _reference_matched(x_nchw, w1, s1, b1, w2, s2, b2):
    """Reference mirroring the kernel's numerics: BN scale folded into the
    weights, bf16 conv operands, f32 accumulation, f32 epilogue/residual."""
    x = jnp.transpose(x_nchw, (0, 2, 3, 1)).astype(jnp.float32)
    dn = ('NHWC', 'HWIO', 'NHWC')
    w1f = (w1 * s1.reshape(1, 1, 1, -1)).astype(jnp.bfloat16)
    w2f = (w2 * s2.reshape(1, 1, 1, -1)).astype(jnp.bfloat16)
    o = jax.lax.conv_general_dilated(
        x.astype(jnp.bfloat16), w1f, (1, 1), 'SAME', dimension_numbers=dn,
        preferred_element_type=jnp.float32)
    o = jnp.maximum(o + b1, 0.0)
    o = jax.lax.conv_general_dilated(
        o.astype(jnp.bfloat16), w2f, (1, 1), 'SAME', dimension_numbers=dn,
        preferred_element_type=jnp.float32)
    o = jnp.maximum(o + b2 + x, 0.0)
    return jnp.transpose(o, (0, 3, 1, 2))


if __name__ == "__main__":
    # Small shapes consistent with BasicBlock(inplanes=4, planes=4, stride=1).
    N, C, H, W = 2, 4, 16, 16
    eps = 1e-5

    key = jax.random.PRNGKey(0)
    (kx, kw1, kw2, kg1, kb1, kg2, kb2, km1, kv1, km2, kv2) = jax.random.split(key, 11)

    x = jax.random.normal(kx, (N, C, H, W), dtype=jnp.float32)

    # Conv weights, HWIO layout: (3, 3, Cin, Cout), bias=False.
    w1 = 0.1 * jax.random.normal(kw1, (3, 3, C, C), dtype=jnp.float32)
    w2 = 0.1 * jax.random.normal(kw2, (3, 3, C, C), dtype=jnp.float32)

    # BatchNorm2d params + running stats (inference mode), folded to scale/bias.
    gamma1 = 1.0 + 0.1 * jax.random.normal(kg1, (C,), dtype=jnp.float32)
    beta1 = 0.1 * jax.random.normal(kb1, (C,), dtype=jnp.float32)
    rmean1 = 0.1 * jax.random.normal(km1, (C,), dtype=jnp.float32)
    rvar1 = 1.0 + 0.1 * jnp.abs(jax.random.normal(kv1, (C,), dtype=jnp.float32))

    gamma2 = 1.0 + 0.1 * jax.random.normal(kg2, (C,), dtype=jnp.float32)
    beta2 = 0.1 * jax.random.normal(kb2, (C,), dtype=jnp.float32)
    rmean2 = 0.1 * jax.random.normal(km2, (C,), dtype=jnp.float32)
    rvar2 = 1.0 + 0.1 * jnp.abs(jax.random.normal(kv2, (C,), dtype=jnp.float32))

    s1 = gamma1 / jnp.sqrt(rvar1 + eps)
    b1 = beta1 - rmean1 * s1
    s2 = gamma2 / jnp.sqrt(rvar2 + eps)
    b2 = beta2 - rmean2 * s2

    out = basic_block_forward(x, w1, s1, b1, w2, s2, b2)
    out = jax.block_until_ready(out)
    assert out.shape == (N, C, H, W)

    ref_m = _reference_matched(x, w1, s1, b1, w2, s2, b2)
    ref_f = _reference_f32(x, w1, s1, b1, w2, s2, b2)
    err_m = float(jnp.max(jnp.abs(out - ref_m)))
    err_f = float(jnp.max(jnp.abs(out - ref_f)))
    assert err_m < 2e-3, f"mismatch vs bf16-matched reference: {err_m}"
    assert err_f < 1e-1, f"mismatch vs f32 reference: {err_f}"

    print("KERNEL_OK")
</pallas_src>

<mosaic_0001>
module attributes {stable_mosaic.version = 11 : i64} {
  func.func @basic_block_kernel(%arg0: i32, %arg1: memref<1x16x16x128xf32, #tpu.memory_space<vmem>>, %arg2: memref<1152x128xbf16, #tpu.memory_space<vmem>>, %arg3: memref<1x128xf32, #tpu.memory_space<vmem>>, %arg4: memref<1152x128xbf16, #tpu.memory_space<vmem>>, %arg5: memref<1x128xf32, #tpu.memory_space<vmem>>, %arg6: memref<1x16x16x128xf32, #tpu.memory_space<vmem>>, %arg7: memref<18x18x128xbf16, #tpu.memory_space<vmem>>, %arg8: memref<18x18x128xbf16, #tpu.memory_space<vmem>>, %arg9: memref<16x16x1152xbf16, #tpu.memory_space<vmem>>) attributes {dimension_semantics = [#tpu.dimension_semantics<parallel>], iteration_bounds = array<i64: 2>, scalar_prefetch = 0 : i64, scratch_operands = 3 : i64, tpu.core_type = #tpu.core_type<tc>, window_params = [{transform_indices = @transform_0, window_bounds = array<i64: 1, 16, 16, 128>}, {pipeline_mode = #tpu.pipeline_mode<synchronous>, transform_indices = @transform_1, window_bounds = array<i64: 1152, 128>}, {pipeline_mode = #tpu.pipeline_mode<synchronous>, transform_indices = @transform_2, window_bounds = array<i64: 1, 128>}, {pipeline_mode = #tpu.pipeline_mode<synchronous>, transform_indices = @transform_3, window_bounds = array<i64: 1152, 128>}, {pipeline_mode = #tpu.pipeline_mode<synchronous>, transform_indices = @transform_4, window_bounds = array<i64: 1, 128>}, {transform_indices = @transform_5, window_bounds = array<i64: 1, 16, 16, 128>}]} {
    %cst = arith.constant 0.000000e+00 : bf16
    %0 = vector.broadcast %cst : bf16 to vector<1x18x128xbf16>
    %cst_0 = arith.constant 0.000000e+00 : bf16
    %1 = vector.broadcast %cst_0 : bf16 to vector<16x1x128xbf16>
    %c0 = arith.constant 0 : index
    %c0_1 = arith.constant 0 : index
    %c0_2 = arith.constant 0 : index
    %2 = vector.load %arg7[%c0, %c0_1, %c0_2] : memref<18x18x128xbf16, #tpu.memory_space<vmem>>, vector<1x18x128xbf16>
    tpu.vector_store %arg7[%c0, %c0_1, %c0_2], %0 {strides = array<i32>} : memref<18x18x128xbf16, #tpu.memory_space<vmem>>, vector<1x18x128xbf16>,
    %c17 = arith.constant 17 : index
    %c0_3 = arith.constant 0 : index
    %c0_4 = arith.constant 0 : index
    %3 = vector.load %arg7[%c17, %c0_3, %c0_4] : memref<18x18x128xbf16, #tpu.memory_space<vmem>>, vector<1x18x128xbf16>
    tpu.vector_store %arg7[%c17, %c0_3, %c0_4], %0 {strides = array<i32>} : memref<18x18x128xbf16, #tpu.memory_space<vmem>>, vector<1x18x128xbf16>,
    %c1 = arith.constant 1 : index
    %c0_5 = arith.constant 0 : index
    %c0_6 = arith.constant 0 : index
    %4 = vector.load %arg7[%c1, %c0_5, %c0_6] : memref<18x18x128xbf16, #tpu.memory_space<vmem>>, vector<16x1x128xbf16>
    tpu.vector_store %arg7[%c1, %c0_5, %c0_6], %1 {strides = array<i32>} : memref<18x18x128xbf16, #tpu.memory_space<vmem>>, vector<16x1x128xbf16>,
    %c1_7 = arith.constant 1 : index
    %c17_8 = arith.constant 17 : index
    %c0_9 = arith.constant 0 : index
    %5 = vector.load %arg7[%c1_7, %c17_8, %c0_9] : memref<18x18x128xbf16, #tpu.memory_space<vmem>>, vector<16x1x128xbf16>
    tpu.vector_store %arg7[%c1_7, %c17_8, %c0_9], %1 {strides = array<i32>} : memref<18x18x128xbf16, #tpu.memory_space<vmem>>, vector<16x1x128xbf16>,
    %c0_10 = arith.constant 0 : index
    %c0_11 = arith.constant 0 : index
    %c0_12 = arith.constant 0 : index
    %6 = vector.load %arg8[%c0_10, %c0_11, %c0_12] : memref<18x18x128xbf16, #tpu.memory_space<vmem>>, vector<1x18x128xbf16>
    tpu.vector_store %arg8[%c0_10, %c0_11, %c0_12], %0 {strides = array<i32>} : memref<18x18x128xbf16, #tpu.memory_space<vmem>>, vector<1x18x128xbf16>,
    %c17_13 = arith.constant 17 : index
    %c0_14 = arith.constant 0 : index
    %c0_15 = arith.constant 0 : index
    %7 = vector.load %arg8[%c17_13, %c0_14, %c0_15] : memref<18x18x128xbf16, #tpu.memory_space<vmem>>, vector<1x18x128xbf16>
    tpu.vector_store %arg8[%c17_13, %c0_14, %c0_15], %0 {strides = array<i32>} : memref<18x18x128xbf16, #tpu.memory_space<vmem>>, vector<1x18x128xbf16>,
    %c1_16 = arith.constant 1 : index
    %c0_17 = arith.constant 0 : index
    %c0_18 = arith.constant 0 : index
    %8 = vector.load %arg8[%c1_16, %c0_17, %c0_18] : memref<18x18x128xbf16, #tpu.memory_space<vmem>>, vector<16x1x128xbf16>
    tpu.vector_store %arg8[%c1_16, %c0_17, %c0_18], %1 {strides = array<i32>} : memref<18x18x128xbf16, #tpu.memory_space<vmem>>, vector<16x1x128xbf16>,
    %c1_19 = arith.constant 1 : index
    %c17_20 = arith.constant 17 : index
    %c0_21 = arith.constant 0 : index
    %9 = vector.load %arg8[%c1_19, %c17_20, %c0_21] : memref<18x18x128xbf16, #tpu.memory_space<vmem>>, vector<16x1x128xbf16>
    tpu.vector_store %arg8[%c1_19, %c17_20, %c0_21], %1 {strides = array<i32>} : memref<18x18x128xbf16, #tpu.memory_space<vmem>>, vector<16x1x128xbf16>,
    %c0_22 = arith.constant 0 : index
    %c0_23 = arith.constant 0 : index
    %c0_24 = arith.constant 0 : index
    %c0_25 = arith.constant 0 : index
    %10 = vector.load %arg1[%c0_22, %c0_23, %c0_24, %c0_25] : memref<1x16x16x128xf32, #tpu.memory_space<vmem>>, vector<1x16x16x128xf32>
    %11 = vector.shape_cast %10 : vector<1x16x16x128xf32> to vector<16x16x128xf32>
    %12 = arith.truncf %11 : vector<16x16x128xf32> to vector<16x16x128xbf16>
    %c1_26 = arith.constant 1 : index
    %c1_27 = arith.constant 1 : index
    %c0_28 = arith.constant 0 : index
    %13 = vector.load %arg7[%c1_26, %c1_27, %c0_28] : memref<18x18x128xbf16, #tpu.memory_space<vmem>>, vector<16x16x128xbf16>
    tpu.vector_store %arg7[%c1_26, %c1_27, %c0_28], %12 {strides = array<i32>} : memref<18x18x128xbf16, #tpu.memory_space<vmem>>, vector<16x16x128xbf16>,
    %c0_29 = arith.constant 0 : index
    %c0_30 = arith.constant 0 : index
    %14 = vector.load %arg2[%c0_29, %c0_30] : memref<1152x128xbf16, #tpu.memory_space<vmem>>, vector<1152x128xbf16>
    %c0_31 = arith.constant 0 : index
    %c0_32 = arith.constant 0 : index
    %15 = vector.load %arg4[%c0_31, %c0_32] : memref<1152x128xbf16, #tpu.memory_space<vmem>>, vector<1152x128xbf16>
    %c0_33 = arith.constant 0 : index
    %c0_34 = arith.constant 0 : index
    %16 = vector.load %arg3[%c0_33, %c0_34] : memref<1x128xf32, #tpu.memory_space<vmem>>, vector<1x128xf32>
    %c0_35 = arith.constant 0 : index
    %c0_36 = arith.constant 0 : index
    %17 = vector.load %arg5[%c0_35, %c0_36] : memref<1x128xf32, #tpu.memory_space<vmem>>, vector<1x128xf32>
    %c0_37 = arith.constant 0 : index
    %c0_38 = arith.constant 0 : index
    %c0_39 = arith.constant 0 : index
    %18 = vector.load %arg7[%c0_37, %c0_38, %c0_39] : memref<18x18x128xbf16, #tpu.memory_space<vmem>>, vector<16x16x128xbf16>
    %c0_40 = arith.constant 0 : index
    %c0_41 = arith.constant 0 : index
    %c0_42 = arith.constant 0 : index
    %19 = vector.load %arg9[%c0_40, %c0_41, %c0_42] : memref<16x16x1152xbf16, #tpu.memory_space<vmem>>, vector<16x16x128xbf16>
    tpu.vector_store %arg9[%c0_40, %c0_41, %c0_42], %18 {strides = array<i32>} : memref<16x16x1152xbf16, #tpu.memory_space<vmem>>, vector<16x16x128xbf16>,
    %c0_43 = arith.constant 0 : index
    %c1_44 = arith.constant 1 : index
    %c0_45 = arith.constant 0 : index
    %20 = vector.load %arg7[%c0_43, %c1_44, %c0_45] : memref<18x18x128xbf16, #tpu.memory_space<vmem>>, vector<16x16x128xbf16>
    %c0_46 = arith.constant 0 : index
    %c0_47 = arith.constant 0 : index
    %c128 = arith.constant 128 : index
    %21 = vector.load %arg9[%c0_46, %c0_47, %c128] : memref<16x16x1152xbf16, #tpu.memory_space<vmem>>, vector<16x16x128xbf16>
    tpu.vector_store %arg9[%c0_46, %c0_47, %c128], %20 {strides = array<i32>} : memref<16x16x1152xbf16, #tpu.memory_space<vmem>>, vector<16x16x128xbf16>,
    %c0_48 = arith.constant 0 : index
    %c2 = arith.constant 2 : index
    %c0_49 = arith.constant 0 : index
    %22 = vector.load %arg7[%c0_48, %c2, %c0_49] : memref<18x18x128xbf16, #tpu.memory_space<vmem>>, vector<16x16x128xbf16>
    %c0_50 = arith.constant 0 : index
    %c0_51 = arith.constant 0 : index
    %c256 = arith.constant 256 : index
    %23 = vector.load %arg9[%c0_50, %c0_51, %c256] : memref<16x16x1152xbf16, #tpu.memory_space<vmem>>, vector<16x16x128xbf16>
    tpu.vector_store %arg9[%c0_50, %c0_51, %c256], %22 {strides = array<i32>} : memref<16x16x1152xbf16, #tpu.memory_space<vmem>>, vector<16x16x128xbf16>,
    %c1_52 = arith.constant 1 : index
    %c0_53 = arith.constant 0 : index
    %c0_54 = arith.constant 0 : index
    %24 = vector.load %arg7[%c1_52, %c0_53, %c0_54] : memref<18x18x128xbf16, #tpu.memory_space<vmem>>, vector<16x16x128xbf16>
    %c0_55 = arith.constant 0 : index
    %c0_56 = arith.constant 0 : index
    %c384 = arith.constant 384 : index
    %25 = vector.load %arg9[%c0_55, %c0_56, %c384] : memref<16x16x1152xbf16, #tpu.memory_space<vmem>>, vector<16x16x128xbf16>
    tpu.vector_store %arg9[%c0_55, %c0_56, %c384], %24 {strides = array<i32>} : memref<16x16x1152xbf16, #tpu.memory_space<vmem>>, vector<16x16x128xbf16>,
    %c1_57 = arith.constant 1 : index
    %c1_58 = arith.constant 1 : index
    %c0_59 = arith.constant 0 : index
    %26 = vector.load %arg7[%c1_57, %c1_58, %c0_59] : memref<18x18x128xbf16, #tpu.memory_space<vmem>>, vector<16x16x128xbf16>
    %c0_60 = arith.constant 0 : index
    %c0_61 = arith.constant 0 : index
    %c512 = arith.constant 512 : index
    %27 = vector.load %arg9[%c0_60, %c0_61, %c512] : memref<16x16x1152xbf16, #tpu.memory_space<vmem>>, vector<16x16x128xbf16>
    tpu.vector_store %arg9[%c0_60, %c0_61, %c512], %26 {strides = array<i32>} : memref<16x16x1152xbf16, #tpu.memory_space<vmem>>, vector<16x16x128xbf16>,
    %c1_62 = arith.constant 1 : index
    %c2_63 = arith.constant 2 : index
    %c0_64 = arith.constant 0 : index
    %28 = vector.load %arg7[%c1_62, %c2_63, %c0_64] : memref<18x18x128xbf16, #tpu.memory_space<vmem>>, vector<16x16x128xbf16>
    %c0_65 = arith.constant 0 : index
    %c0_66 = arith.constant 0 : index
    %c640 = arith.constant 640 : index
    %29 = vector.load %arg9[%c0_65, %c0_66, %c640] : memref<16x16x1152xbf16, #tpu.memory_space<vmem>>, vector<16x16x128xbf16>
    tpu.vector_store %arg9[%c0_65, %c0_66, %c640], %28 {strides = array<i32>} : memref<16x16x1152xbf16, #tpu.memory_space<vmem>>, vector<16x16x128xbf16>,
    %c2_67 = arith.constant 2 : index
    %c0_68 = arith.constant 0 : index
    %c0_69 = arith.constant 0 : index
    %30 = vector.load %arg7[%c2_67, %c0_68, %c0_69] : memref<18x18x128xbf16, #tpu.memory_space<vmem>>, vector<16x16x128xbf16>
    %c0_70 = arith.constant 0 : index
    %c0_71 = arith.constant 0 : index
    %c768 = arith.constant 768 : index
    %31 = vector.load %arg9[%c0_70, %c0_71, %c768] : memref<16x16x1152xbf16, #tpu.memory_space<vmem>>, vector<16x16x128xbf16>
    tpu.vector_store %arg9[%c0_70, %c0_71, %c768], %30 {strides = array<i32>} : memref<16x16x1152xbf16, #tpu.memory_space<vmem>>, vector<16x16x128xbf16>,
    %c2_72 = arith.constant 2 : index
    %c1_73 = arith.constant 1 : index
    %c0_74 = arith.constant 0 : index
    %32 = vector.load %arg7[%c2_72, %c1_73, %c0_74] : memref<18x18x128xbf16, #tpu.memory_space<vmem>>, vector<16x16x128xbf16>
    %c0_75 = arith.constant 0 : index
    %c0_76 = arith.constant 0 : index
    %c896 = arith.constant 896 : index
    %33 = vector.load %arg9[%c0_75, %c0_76, %c896] : memref<16x16x1152xbf16, #tpu.memory_space<vmem>>, vector<16x16x128xbf16>
    tpu.vector_store %arg9[%c0_75, %c0_76, %c896], %32 {strides = array<i32>} : memref<16x16x1152xbf16, #tpu.memory_space<vmem>>, vector<16x16x128xbf16>,
    %c2_77 = arith.constant 2 : index
    %c2_78 = arith.constant 2 : index
    %c0_79 = arith.constant 0 : index
    %34 = vector.load %arg7[%c2_77, %c2_78, %c0_79] : memref<18x18x128xbf16, #tpu.memory_space<vmem>>, vector<16x16x128xbf16>
    %c0_80 = arith.constant 0 : index
    %c0_81 = arith.constant 0 : index
    %c1024 = arith.constant 1024 : index
    %35 = vector.load %arg9[%c0_80, %c0_81, %c1024] : memref<16x16x1152xbf16, #tpu.memory_space<vmem>>, vector<16x16x128xbf16>
    tpu.vector_store %arg9[%c0_80, %c0_81, %c1024], %34 {strides = array<i32>} : memref<16x16x1152xbf16, #tpu.memory_space<vmem>>, vector<16x16x128xbf16>,
    %c0_82 = arith.constant 0 : index
    %c0_83 = arith.constant 0 : index
    %c0_84 = arith.constant 0 : index
    %36 = vector.load %arg9[%c0_82, %c0_83, %c0_84] : memref<16x16x1152xbf16, #tpu.memory_space<vmem>>, vector<16x16x1152xbf16>
    %37 = vector.shape_cast %36 : vector<16x16x1152xbf16> to vector<256x1152xbf16>
    %cst_85 = arith.constant dense<0.000000e+00> : vector<256x128xf32>
    %38 = tpu.matmul %37, %14, %cst_85 {dimension_numbers = #tpu.dot_dimension_numbers<[1], [0], [0], [1], [0, 0, 1, 1], [], []>} : vector<256x1152xbf16>, vector<1152x128xbf16>, vector<256x128xf32> -> vector<256x128xf32>
    %39 = vector.shape_cast %38 : vector<256x128xf32> to vector<16x16x128xf32>
    %40 = vector.shape_cast %16 : vector<1x128xf32> to vector<1x1x128xf32>
    %41 = vector.broadcast %40 : vector<1x1x128xf32> to vector<16x16x128xf32>
    %42 = arith.addf %39, %41 : vector<16x16x128xf32>
    %cst_86 = arith.constant 0.000000e+00 : f32
    %43 = vector.broadcast %cst_86 : f32 to vector<16x16x128xf32>
    %44 = arith.maximumf %42, %43 : vector<16x16x128xf32>
    %45 = arith.truncf %44 : vector<16x16x128xf32> to vector<16x16x128xbf16>
    %c1_87 = arith.constant 1 : index
    %c1_88 = arith.constant 1 : index
    %c0_89 = arith.constant 0 : index
    %46 = vector.load %arg8[%c1_87, %c1_88, %c0_89] : memref<18x18x128xbf16, #tpu.memory_space<vmem>>, vector<16x16x128xbf16>
    tpu.vector_store %arg8[%c1_87, %c1_88, %c0_89], %45 {strides = array<i32>} : memref<18x18x128xbf16, #tpu.memory_space<vmem>>, vector<16x16x128xbf16>,
    %c0_90 = arith.constant 0 : index
    %c0_91 = arith.constant 0 : index
    %c0_92 = arith.constant 0 : index
    %47 = vector.load %arg8[%c0_90, %c0_91, %c0_92] : memref<18x18x128xbf16, #tpu.memory_space<vmem>>, vector<16x16x128xbf16>
    %c0_93 = arith.constant 0 : index
    %c0_94 = arith.constant 0 : index
    %c0_95 = arith.constant 0 : index
    %48 = vector.load %arg9[%c0_93, %c0_94, %c0_95] : memref<16x16x1152xbf16, #tpu.memory_space<vmem>>, vector<16x16x128xbf16>
    tpu.vector_store %arg9[%c0_93, %c0_94, %c0_95], %47 {strides = array<i32>} : memref<16x16x1152xbf16, #tpu.memory_space<vmem>>, vector<16x16x128xbf16>,
    %c0_96 = arith.constant 0 : index
    %c1_97 = arith.constant 1 : index
    %c0_98 = arith.constant 0 : index
    %49 = vector.load %arg8[%c0_96, %c1_97, %c0_98] : memref<18x18x128xbf16, #tpu.memory_space<vmem>>, vector<16x16x128xbf16>
    %c0_99 = arith.constant 0 : index
    %c0_100 = arith.constant 0 : index
    %c128_101 = arith.constant 128 : index
    %50 = vector.load %arg9[%c0_99, %c0_100, %c128_101] : memref<16x16x1152xbf16, #tpu.memory_space<vmem>>, vector<16x16x128xbf16>
    tpu.vector_store %arg9[%c0_99, %c0_100, %c128_101], %49 {strides = array<i32>} : memref<16x16x1152xbf16, #tpu.memory_space<vmem>>, vector<16x16x128xbf16>,
    %c0_102 = arith.constant 0 : index
    %c2_103 = arith.constant 2 : index
    %c0_104 = arith.constant 0 : index
    %51 = vector.load %arg8[%c0_102, %c2_103, %c0_104] : memref<18x18x128xbf16, #tpu.memory_space<vmem>>, vector<16x16x128xbf16>
    %c0_105 = arith.constant 0 : index
    %c0_106 = arith.constant 0 : index
    %c256_107 = arith.constant 256 : index
    %52 = vector.load %arg9[%c0_105, %c0_106, %c256_107] : memref<16x16x1152xbf16, #tpu.memory_space<vmem>>, vector<16x16x128xbf16>
    tpu.vector_store %arg9[%c0_105, %c0_106, %c256_107], %51 {strides = array<i32>} : memref<16x16x1152xbf16, #tpu.memory_space<vmem>>, vector<16x16x128xbf16>,
    %c1_108 = arith.constant 1 : index
    %c0_109 = arith.constant 0 : index
    %c0_110 = arith.constant 0 : index
    %53 = vector.load %arg8[%c1_108, %c0_109, %c0_110] : memref<18x18x128xbf16, #tpu.memory_space<vmem>>, vector<16x16x128xbf16>
    %c0_111 = arith.constant 0 : index
    %c0_112 = arith.constant 0 : index
    %c384_113 = arith.constant 384 : index
    %54 = vector.load %arg9[%c0_111, %c0_112, %c384_113] : memref<16x16x1152xbf16, #tpu.memory_space<vmem>>, vector<16x16x128xbf16>
    tpu.vector_store %arg9[%c0_111, %c0_112, %c384_113], %53 {strides = array<i32>} : memref<16x16x1152xbf16, #tpu.memory_space<vmem>>, vector<16x16x128xbf16>,
    %c1_114 = arith.constant 1 : index
    %c1_115 = arith.constant 1 : index
    %c0_116 = arith.constant 0 : index
    %55 = vector.load %arg8[%c1_114, %c1_115, %c0_116] : memref<18x18x128xbf16, #tpu.memory_space<vmem>>, vector<16x16x128xbf16>
    %c0_117 = arith.constant 0 : index
    %c0_118 = arith.constant 0 : index
    %c512_119 = arith.constant 512 : index
    %56 = vector.load %arg9[%c0_117, %c0_118, %c512_119] : memref<16x16x1152xbf16, #tpu.memory_space<vmem>>, vector<16x16x128xbf16>
    tpu.vector_store %arg9[%c0_117, %c0_118, %c512_119], %55 {strides = array<i32>} : memref<16x16x1152xbf16, #tpu.memory_space<vmem>>, vector<16x16x128xbf16>,
    %c1_120 = arith.constant 1 : index
    %c2_121 = arith.constant 2 : index
    %c0_122 = arith.constant 0 : index
    %57 = vector.load %arg8[%c1_120, %c2_121, %c0_122] : memref<18x18x128xbf16, #tpu.memory_space<vmem>>, vector<16x16x128xbf16>
    %c0_123 = arith.constant 0 : index
    %c0_124 = arith.constant 0 : index
    %c640_125 = arith.constant 640 : index
    %58 = vector.load %arg9[%c0_123, %c0_124, %c640_125] : memref<16x16x1152xbf16, #tpu.memory_space<vmem>>, vector<16x16x128xbf16>
    tpu.vector_store %arg9[%c0_123, %c0_124, %c640_125], %57 {strides = array<i32>} : memref<16x16x1152xbf16, #tpu.memory_space<vmem>>, vector<16x16x128xbf16>,
    %c2_126 = arith.constant 2 : index
    %c0_127 = arith.constant 0 : index
    %c0_128 = arith.constant 0 : index
    %59 = vector.load %arg8[%c2_126, %c0_127, %c0_128] : memref<18x18x128xbf16, #tpu.memory_space<vmem>>, vector<16x16x128xbf16>
    %c0_129 = arith.constant 0 : index
    %c0_130 = arith.constant 0 : index
    %c768_131 = arith.constant 768 : index
    %60 = vector.load %arg9[%c0_129, %c0_130, %c768_131] : memref<16x16x1152xbf16, #tpu.memory_space<vmem>>, vector<16x16x128xbf16>
    tpu.vector_store %arg9[%c0_129, %c0_130, %c768_131], %59 {strides = array<i32>} : memref<16x16x1152xbf16, #tpu.memory_space<vmem>>, vector<16x16x128xbf16>,
    %c2_132 = arith.constant 2 : index
    %c1_133 = arith.constant 1 : index
    %c0_134 = arith.constant 0 : index
    %61 = vector.load %arg8[%c2_132, %c1_133, %c0_134] : memref<18x18x128xbf16, #tpu.memory_space<vmem>>, vector<16x16x128xbf16>
    %c0_135 = arith.constant 0 : index
    %c0_136 = arith.constant 0 : index
    %c896_137 = arith.constant 896 : index
    %62 = vector.load %arg9[%c0_135, %c0_136, %c896_137] : memref<16x16x1152xbf16, #tpu.memory_space<vmem>>, vector<16x16x128xbf16>
    tpu.vector_store %arg9[%c0_135, %c0_136, %c896_137], %61 {strides = array<i32>} : memref<16x16x1152xbf16, #tpu.memory_space<vmem>>, vector<16x16x128xbf16>,
    %c2_138 = arith.constant 2 : index
    %c2_139 = arith.constant 2 : index
    %c0_140 = arith.constant 0 : index
    %63 = vector.load %arg8[%c2_138, %c2_139, %c0_140] : memref<18x18x128xbf16, #tpu.memory_space<vmem>>, vector<16x16x128xbf16>
    %c0_141 = arith.constant 0 : index
    %c0_142 = arith.constant 0 : index
    %c1024_143 = arith.constant 1024 : index
    %64 = vector.load %arg9[%c0_141, %c0_142, %c1024_143] : memref<16x16x1152xbf16, #tpu.memory_space<vmem>>, vector<16x16x128xbf16>
    tpu.vector_store %arg9[%c0_141, %c0_142, %c1024_143], %63 {strides = array<i32>} : memref<16x16x1152xbf16, #tpu.memory_space<vmem>>, vector<16x16x128xbf16>,
    %c0_144 = arith.constant 0 : index
    %c0_145 = arith.constant 0 : index
    %c0_146 = arith.constant 0 : index
    %65 = vector.load %arg9[%c0_144, %c0_145, %c0_146] : memref<16x16x1152xbf16, #tpu.memory_space<vmem>>, vector<16x16x1152xbf16>
    %66 = vector.shape_cast %65 : vector<16x16x1152xbf16> to vector<256x1152xbf16>
    %cst_147 = arith.constant dense<0.000000e+00> : vector<256x128xf32>
    %67 = tpu.matmul %66, %15, %cst_147 {dimension_numbers = #tpu.dot_dimension_numbers<[1], [0], [0], [1], [0, 0, 1, 1], [], []>} : vector<256x1152xbf16>, vector<1152x128xbf16>, vector<256x128xf32> -> vector<256x128xf32>
    %68 = vector.shape_cast %67 : vector<256x128xf32> to vector<16x16x128xf32>
    %c0_148 = arith.constant 0 : index
    %c0_149 = arith.constant 0 : index
    %c0_150 = arith.constant 0 : index
    %c0_151 = arith.constant 0 : index
    %69 = vector.load %arg1[%c0_148, %c0_149, %c0_150, %c0_151] : memref<1x16x16x128xf32, #tpu.memory_space<vmem>>, vector<1x16x16x128xf32>
    %70 = vector.shape_cast %69 : vector<1x16x16x128xf32> to vector<16x16x128xf32>
    %71 = vector.shape_cast %17 : vector<1x128xf32> to vector<1x1x128xf32>
    %72 = vector.broadcast %71 : vector<1x1x128xf32> to vector<16x16x128xf32>
    %73 = arith.addf %68, %72 : vector<16x16x128xf32>
    %74 = arith.addf %73, %70 : vector<16x16x128xf32>
    %cst_152 = arith.constant 0.000000e+00 : f32
    %75 = vector.broadcast %cst_152 : f32 to vector<16x16x128xf32>
    %76 = arith.maximumf %74, %75 : vector<16x16x128xf32>
    %c0_153 = arith.constant 0 : index
    %c0_154 = arith.constant 0 : index
    %c0_155 = arith.constant 0 : index
    %c0_156 = arith.constant 0 : index
    %77 = vector.load %arg6[%c0_153, %c0_154, %c0_155, %c0_156] : memref<1x16x16x128xf32, #tpu.memory_space<vmem>>, vector<1x16x16x128xf32>
    %78 = vector.shape_cast %77 : vector<1x16x16x128xf32> to vector<16x16x128xf32>
    %79 = vector.shape_cast %76 : vector<16x16x128xf32> to vector<1x16x16x128xf32>
    tpu.vector_store %arg6[%c0_153, %c0_154, %c0_155, %c0_156], %79 {strides = array<i32>} : memref<1x16x16x128xf32, #tpu.memory_space<vmem>>, vector<1x16x16x128xf32>,
    return
  }
  func.func @transform_0(%arg0: i32) -> (i32, i32, i32, i32) {
    %c0_i32 = arith.constant 0 : i32
    %c0_i32_0 = arith.constant 0 : i32
    %c0_i32_1 = arith.constant 0 : i32
    %c0_i32_2 = arith.constant 0 : i32
    return %arg0, %c0_i32, %c0_i32_0, %c0_i32_1 : i32, i32, i32, i32
  }
  func.func @transform_1(%arg0: i32) -> (i32, i32) {
    %c0_i32 = arith.constant 0 : i32
    %c0_i32_0 = arith.constant 0 : i32
    %c0_i32_1 = arith.constant 0 : i32
    return %c0_i32, %c0_i32_0 : i32, i32
  }
  func.func @transform_2(%arg0: i32) -> (i32, i32) {
    %c0_i32 = arith.constant 0 : i32
    %c0_i32_0 = arith.constant 0 : i32
    %c0_i32_1 = arith.constant 0 : i32
    return %c0_i32, %c0_i32_0 : i32, i32
  }
  func.func @transform_3(%arg0: i32) -> (i32, i32) {
    %c0_i32 = arith.constant 0 : i32
    %c0_i32_0 = arith.constant 0 : i32
    %c0_i32_1 = arith.constant 0 : i32
    return %c0_i32, %c0_i32_0 : i32, i32
  }
  func.func @transform_4(%arg0: i32) -> (i32, i32) {
    %c0_i32 = arith.constant 0 : i32
    %c0_i32_0 = arith.constant 0 : i32
    %c0_i32_1 = arith.constant 0 : i32
    return %c0_i32, %c0_i32_0 : i32, i32
  }
  func.func @transform_5(%arg0: i32) -> (i32, i32, i32, i32) {
    %c0_i32 = arith.constant 0 : i32
    %c0_i32_0 = arith.constant 0 : i32
    %c0_i32_1 = arith.constant 0 : i32
    %c0_i32_2 = arith.constant 0 : i32
    return %arg0, %c0_i32, %c0_i32_0, %c0_i32_1 : i32, i32, i32, i32
  }
}

</mosaic_0001>

<bundles_post_ra>
// kernel: basic_block_forward.1
= control target key start
LH: loop header
LB: loop body
LE: loop exit
PB: predicated region body
PF: predicated region fallthrough
CT: control target
= control target key end

     0   :  { %s12158_s18 = smov 0   ;;  %s13910_s0 = inlined_call_operand.vmem [shape: f32[2,16,16,128], index: 0, kind: input, shape index: {}]   ;;  %s13911_s1 = inlined_call_operand.vmem [shape: bf16[1152,128], index: 1, kind: input, shape index: {}]   ;;  %s13912_s2 = inlined_call_operand.vmem [shape: f32[1,128], index: 2, kind: input, shape index: {}]   ;;  %s13913_s3 = inlined_call_operand.vmem [shape: bf16[1152,128], index: 3, kind: input, shape index: {}]   ;;  %s13914_s4 = inlined_call_operand.vmem [shape: f32[1,128], index: 4, kind: input, shape index: {}]   ;;  %s13915_s5 = inlined_call_operand.vmem [shape: f32[2,16,16,128], index: 5, kind: output, shape index: {}]  }
   0x1 LB: > { %s9678_s19 = sadd.s32 4294967295, %s12125_s18   ;;  %p9682_p0 = scmp.ge.s32.totalorder %s12125_s18, 1  ;;  %s12125_s18 = sphi %s12158_s18, %s15_s18  }
   0x2   : > { %p187_p1 = scmp.lt.s32.totalorder %s12125_s18, 3 }
   0x4   : > { %p188_p2 = pnand %p9682_p0, %p187_p1 }
   0x5   : > { %v11494_v0 = vld [vmem:[%s13911_s1 + $0x40] sm:$0xff] (!%p188_p2)   ;;  %v12127_v2 = vmov (!%p188_p2), 0   ;;  %v11498_v5 = vld [vmem:[%s13911_s1 + $0x48] sm:$0xff] (!%p188_p2)   ;;  %v11502_v9 = vld [vmem:[%s13911_s1 + $0x50] sm:$0xff] (!%p188_p2)   ;;  %p215_p3 = scmp.lt.s32.totalorder (!%p188_p2), %s9678_s19, 1  ;;  %vm234_vm0 = vcmask (!%p188_p2), 1040384  }
   0x6   : > { %191 = sbr.rel (%p188_p2) target bundleno = 1119 (0x45f), region = 40  ;;  %v11495_v1 = vld [vmem:[%s13911_s1 + $0xc0] sm:$0xff] (!%p188_p2)   ;;  %226 = vst [vmem:[#allocation2] sm:$0xf] (!%p188_p2), %v12127_v2  ;;  %227 = vst [vmem:[#allocation2 + $0x4] sm:$0xf] (!%p188_p2), %v12127_v2  ;;  %10445 = vmatprep.subr.bf16.mxu0 (!%p188_p2), %v11494_v0 }
   0x7   : > { %228 = vst [vmem:[#allocation2 + $0x8] sm:$0x1] (!%p188_p2), %v12127_v2  ;;  %230 = vst [vmem:[#allocation2 + $0xcc] sm:$0xf] (!%p188_p2), %v12127_v2  ;;  %v11496_v3 = vld [vmem:[%s13911_s1] sm:$0xff] (!%p188_p2)   ;;  %10557 = vmatprep.subr.bf16.mxu1 (!%p188_p2), %v11495_v1  ;;  %v11499_v6 = vld [vmem:[%s13911_s1 + $0xc8] sm:$0xff] (!%p188_p2)  }
   0x8   : > { %231 = vst [vmem:[#allocation2 + $0xd0] sm:$0xf] (!%p188_p2), %v12127_v2  ;;  %232 = vst [vmem:[#allocation2 + $0xd4] sm:$0x1] (!%p188_p2), %v12127_v2  ;;  %v11497_v4 = vld [vmem:[%s13911_s1 + $0x80] sm:$0xff] (!%p188_p2)   ;;  %10446 = vmatpush3.bf16.msra.mxu0 (!%p188_p2), %v11496_v3  ;;  %v11500_v7 = vld [vmem:[%s13911_s1 + $0x8] sm:$0xff] (!%p188_p2)  }
   0x9   : > { %335 = vst [vmem:[#allocation3] sm:$0xf] (!%p188_p2), %v12127_v2  ;;  %336 = vst [vmem:[#allocation3 + $0x4] sm:$0xf] (!%p188_p2), %v12127_v2  ;;  %10558 = vmatpush3.bf16.msra.mxu1 (!%p188_p2), %v11497_v4  ;;  %10447 = vmatprep.subr.bf16.mxu0 (!%p188_p2), %v11498_v5  ;;  %v11501_v8 = vld [vmem:[%s13911_s1 + $0x88] sm:$0xff] (!%p188_p2)   ;;  %v11503_v10 = vld [vmem:[%s13911_s1 + $0xd0] sm:$0xff] (!%p188_p2)  }
   0xa   : > { %337 = vst [vmem:[#allocation3 + $0x8] sm:$0x1] (!%p188_p2), %v12127_v2  ;;  %339 = vst [vmem:[#allocation3 + $0xcc] sm:$0xf] (!%p188_p2), %v12127_v2  ;;  %10559 = vmatprep.subr.bf16.mxu1 (!%p188_p2), %v11499_v6  ;;  %v11504_v11 = vld [vmem:[%s13911_s1 + $0x10] sm:$0xff] (!%p188_p2)   ;;  %v11506_v13 = vld [vmem:[%s13911_s1 + $0x58] sm:$0xff] (!%p188_p2)  }
   0xb   : > { %340 = vst [vmem:[#allocation3 + $0xd0] sm:$0xf] (!%p188_p2), %v12127_v2  ;;  %341 = vst [vmem:[#allocation3 + $0xd4] sm:$0x1] (!%p188_p2), %v12127_v2  ;;  %v11505_v12 = vld [vmem:[%s13911_s1 + $0x90] sm:$0xff] (!%p188_p2)   ;;  %v11507_v14 = vld [vmem:[%s13911_s1 + $0xd8] sm:$0xff] (!%p188_p2)  }
   0xc   : > { %10448 = vmatpush3.bf16.msra.mxu0 (!%p188_p2), %v11500_v7  ;;  %v11508_v15 = vld [vmem:[%s13911_s1 + $0x18] sm:$0xff] (!%p188_p2)   ;;  %v11510_v17 = vld [vmem:[%s13911_s1 + $0x60] sm:$0xff] (!%p188_p2)   ;;  %v11514_v21 = vld [vmem:[%s13911_s1 + $0x68] sm:$0xff] (!%p188_p2)   ;;  %vm1613_vm1 = vsmask.f32 (!%p188_p2), 7424  ;;  %vm889_vm5 = vcmask (!%p188_p2), 1043456  }
   0xd   : > { %10560 = vmatpush3.bf16.msra.mxu1 %v11501_v8  ;;  %10449 = vmatprep.subr.bf16.mxu0 %v11502_v9  ;;  %v11509_v16 = vld [vmem:[%s13911_s1 + $0x98] sm:$0xff]   ;;  %v11511_v18 = vld [vmem:[%s13911_s1 + $0xe0] sm:$0xff]   ;;  %v11515_v22 = vld [vmem:[%s13911_s1 + $0xe8] sm:$0xff]   ;;  %s13925_s19 = smov (!%p215_p3, %s9678_s19), 1  ;;  %vm235_vm2 = vsmask.f32 256 }
   0xe   : > { %10561 = vmatprep.subr.bf16.mxu1 %v11503_v10  ;;  %v11512_v19 = vld [vmem:[%s13911_s1 + $0x20] sm:$0xff]   ;;  %v11516_v23 = vld [vmem:[%s13911_s1 + $0x28] sm:$0xff]   ;;  %v11518_v25 = vld [vmem:[%s13911_s1 + $0x70] sm:$0xff]   ;;  %s10379_s9 = sshll.u32 %s13925_s19, 8  ;;  %vm285_vm3 = vsmask.f32 7938 }
   0xf   : > { %v11513_v20 = vld [vmem:[%s13911_s1 + $0xa0] sm:$0xff]   ;;  %v11517_v24 = vld [vmem:[%s13911_s1 + $0xa8] sm:$0xff]   ;;  %v11519_v26 = vld [vmem:[%s13911_s1 + $0xf0] sm:$0xff]   ;;  %s12274_s16 = scalar_lea.vmem %s13910_s0, %s10379_s9  ;;  %vm567_vm6 = vsmask.f32 4368  ;;  %vm2014_vm10 = vcmask 1046528   ;;  %s13786_s20 = scalar_lea.vmem %s13915_s5, %s10379_s9 }
  0x10   : > { %10450 = vmatpush3.bf16.msra.mxu0 %v11504_v11  ;;  %v11520_v27 = vld [vmem:[%s13911_s1 + $0x30] sm:$0xff]   ;;  %v11522_v29 = vld [vmem:[%s13911_s1 + $0x78] sm:$0xff]   ;;  %v11526_v33 = vld [vmem:[#allocation2] sm:$0xff]  }
  0x11   : > { %10562 = vmatpush3.bf16.msra.mxu1 %v11505_v12  ;;  %10451 = vmatprep.subr.bf16.mxu0 %v11506_v13  ;;  %v11521_v28 = vld [vmem:[%s13911_s1 + $0xb0] sm:$0xff]   ;;  %v11523_v30 = vld [vmem:[%s13911_s1 + $0xf8] sm:$0xff]   ;;  %v11527_v34 = vld [vmem:[#allocation2 + $0x8] ss:$0 sps:$4 sm:$0x11]   ;;  %v1615_v36 = vshrl.u32 %v11526_v33, 16 }
  0x12   : > { %10563 = vmatprep.subr.bf16.mxu1 %v11507_v14  ;;  %v11524_v31 = vld [vmem:[%s13911_s1 + $0x38] sm:$0xff]   ;;  %v237_v35 = vld [vmem:[#allocation2 + $0xc] sm:$0x1]  ;;  %v1617_v37 = vshll.u32 %v11526_v33, 16  ;;  %v1622_v38 = vshll.u32 %v11527_v34, 16  ;;  %vm12278_vm4 = vmand %vm234_vm0, %vm235_vm2 }
  0x13   : > { %v11525_v32 = vld [vmem:[%s13911_s1 + $0xb8] sm:$0xff]   ;;  %v439_v40 = vld [vmem:[%s12274_s16] sm:$0xff]  ;;  %v440_v41 = vld [vmem:[%s12274_s16 + $0x8] sm:$0xff]  ;;  %v238_v42 = vsel %vm12278_vm4, 0, %v237_v35 }
  0x14   : > { %10452 = vmatpush3.bf16.msra.mxu0 %v11508_v15  ;;  %v10381_v43 = vpack.c.bf16 %v439_v40, %v439_v40  ;;  %v10382_v44 = vpack.c.bf16 %v440_v41, %v440_v41  ;;  %v1619_v45 = vrot.slane %v1617_v37, 1  ;;  %v1624_v46 = vrot.slane %v1622_v38, 1  ;;  %239 = vst [vmem:[#allocation2 + $0xc] sm:$0x1] %v238_v42  ;;  %v11529_v47 = vld [vmem:[#allocation2] sm:$0xff]   ;;  %vm12288_vm7 = vmand %vm234_vm0, %vm285_vm3  ;;  %v441_v7 = vld [vmem:[%s12274_s16 + $0x10] sm:$0xff] }
  0x15   : > { %10564 = vmatpush3.bf16.msra.mxu1 %v11509_v16  ;;  %10453 = vmatprep.subr.bf16.mxu0 %v11510_v17  ;;  %v12292_v54 = vld [vmem:[#allocation2] sm:$0xfe]   ;;  %vm12295_vm8 = vmor %vm235_vm2, %vm567_vm6  ;;  %v12305_v60 = vld [vmem:[#allocation2 + $0x8] ss:$0 sps:$4 sm:$0x11]   ;;  %v10383_v12 = vpack.c.bf16 %v441_v7, %v441_v7 }
  0x16   : > { %10565 = vmatprep.subr.bf16.mxu1 %v11511_v18  ;;  %v570_v49 = vshrl.u32 %v10381_v43, 16  ;;  %v573_v50 = vshll.u32 %v10381_v43, 16  ;;  %v578_v51 = vshrl.u32 %v10382_v44, 16  ;;  %v581_v52 = vshll.u32 %v10382_v44, 16  ;;  %v11532_v58 = vld [vmem:[%s13911_s1 + $0x140] sm:$0xff]   ;;  %vm12313_vm9 = vmand %vm889_vm5, %vm285_vm3  ;;  %v442_v8 = vld [vmem:[%s12274_s16 + $0x18] sm:$0xff] }
  0x17   : > { %v1620_v53 = vor.u32 %v1619_v45, %v1615_v36  ;;  %v11533_v61 = vld [vmem:[%s13911_s1 + $0x100] sm:$0xff]   ;;  %v2015_v2 = vrot.slane %v12292_v54, 1  ;;  %v287_v3 = vld [vmem:[#allocation2 + $0x14] sm:$0x1]  ;;  %v240_v6 = vld [vmem:[#allocation2 + $0x18] sm:$0x1]  ;;  %v10384_v13 = vpack.c.bf16 %v442_v8, %v442_v8 }
  0x18   : > { %10454 = vmatpush3.bf16.msra.mxu0 %v11512_v19  ;;  %v572_v56 = vrot.slane %v570_v49, 7  ;;  %v12299_v57 = vrot.slane %v578_v51, 7  ;;  %v288_v5 = vsel %vm12288_vm7, 0, %v287_v3  ;;  %v241_v11 = vsel %vm12278_vm4, 0, %v240_v6  ;;  %v290_v14 = vld [vmem:[#allocation2 + $0x20] sm:$0x1] }
  0x19   : > { %10566 = vmatpush3.bf16.msra.mxu1 %v11513_v20  ;;  %10455 = vmatprep.subr.bf16.mxu0 %v11514_v21  ;;  %v1625_v59 = vsel %vm1613_vm1, %v1620_v53, %v1624_v46  ;;  %289 = vst [vmem:[#allocation2 + $0x14] sm:$0x1] %v288_v5  ;;  %v443_v15 = vld [vmem:[%s12274_s16 + $0x20] sm:$0xff]  ;;  %242 = vst [vmem:[#allocation2 + $0x18] sm:$0x1] %v241_v11  ;;  %v291_v17 = vsel %vm12288_vm7, 0, %v290_v14 }
  0x1a   : > { %10567 = vmatprep.subr.bf16.mxu1 %v11515_v22  ;;  %4304 = vmatprep.mubr.bf16.mxu0 %v1625_v59  ;;  %v575_v62 = vor.u32 %v573_v50, %v572_v56  ;;  %v576_v63 = vrot.slane %v572_v56, 4  ;;  %v583_v0 = vor.u32 %v581_v52, %v12299_v57  ;;  %v585_v4 = vrot.slane %v12299_v57, 4  ;;  %v243_v18 = vld [vmem:[#allocation2 + $0x24] sm:$0x1]  ;;  %v444_v19 = vld [vmem:[%s12274_s16 + $0x28] sm:$0xff]  ;;  %v445_v33 = vld [vmem:[%s12274_s16 + $0x30] sm:$0xff] }
  0x1b   : > { %v891_v10 = vld [vmem:[#allocation2 + $0xc] sm:$0xf]  ;;  %v10385_v20 = vpack.c.bf16 %v443_v15, %v443_v15  ;;  %v587_v21 = vshrl.u32 %v10383_v12, 16  ;;  %v590_v22 = vshll.u32 %v10383_v12, 16  ;;  %292 = vst [vmem:[#allocation2 + $0x20] sm:$0x1] %v291_v17  ;;  %v12346_v50 = vpack.c.bf16 %v445_v33, %v445_v33 }
  0x1c   : > { %10456 = vmatpush3.bf16.msra.mxu0 %v11516_v23  ;;  %v584_v9 = vsel %vm12295_vm8, %v576_v63, %v583_v0  ;;  %v892_v16 = vsel %vm12313_vm9, %v575_v62, %v891_v10  ;;  %v595_v23 = vshrl.u32 %v10384_v13, 16  ;;  %v293_v37 = vld [vmem:[#allocation2 + $0x2c] sm:$0x1]  ;;  %v246_v43 = vld [vmem:[#allocation2 + $0x30] sm:$0x1]  ;;  %v446_v44 = vld [vmem:[%s12274_s16 + $0x38] sm:$0xff] }
  0x1d   : > { %10568 = vmatpush3.bf16.msra.mxu1 %v11517_v24  ;;  %10457 = vmatprep.subr.bf16.mxu0 %v11518_v25  ;;  %894 = vst [vmem:[#allocation2 + $0x10] sm:$0xf] %v584_v9  ;;  %893 = vst [vmem:[#allocation2 + $0xc] sm:$0xf] %v892_v16  ;;  %v598_v24 = vshll.u32 %v10384_v13, 16  ;;  %v2016_v25 = vrot.slane %v12305_v60, 1  ;;  %v10388_v60 = vpack.c.bf16 %v446_v44, %v446_v44 }
  0x1e   : > { %10569 = vmatprep.subr.bf16.mxu1 %v11519_v26  ;;  %v244_v26 = vsel %vm12278_vm4, 0, %v243_v18  ;;  %v607_v42 = vshll.u32 %v10385_v20, 16  ;;  %v294_v49 = vsel %vm12288_vm7, 0, %v293_v37  ;;  %v247_v63 = vsel %vm12278_vm4, 0, %v246_v43  ;;  %v296_v0 = vld [vmem:[#allocation2 + $0x38] sm:$0x1] }
  0x1f   : > { %245 = vst [vmem:[#allocation2 + $0x24] sm:$0x1] %v244_v26  ;;  %v2017_v51 = vsel %vm2014_vm10, %v2015_v2, %v2016_v25  ;;  %295 = vst [vmem:[#allocation2 + $0x2c] sm:$0x1] %v294_v49  ;;  %v621_v3 = vshrl.u32 %v12346_v50, 16  ;;  %v629_v12 = vshrl.u32 %v10388_v60, 16 }
  0x20   : > { %10458 = vmatpush3.bf16.msra.mxu0 %v11520_v27  ;;  %v10386_v27 = vpack.c.bf16 %v444_v19, %v444_v19  ;;  %v895_v45 = vld [vmem:[#allocation2 + $0x14] sm:$0x1]  ;;  %v898_v54 = vld [vmem:[#allocation2 + $0x18] sm:$0xf]  ;;  %248 = vst [vmem:[#allocation2 + $0x30] sm:$0x1] %v247_v63 }
  0x21   : > { %10570 = vmatpush3.bf16.msra.mxu1 %v11521_v28  ;;  %10459 = vmatprep.subr.bf16.mxu0 %v11522_v29  ;;  %v604_v28 = vshrl.u32 %v10385_v20, 16  ;;  %v11546_v29 = vld [vmem:[%s13911_s1 + $0x148] sm:$0xff]   ;;  %v896_v52 = vsel %vm12278_vm4, %v585_v4, %v895_v45  ;;  %v623_v11 = vrot.slane %v621_v3, 7  ;;  %v624_v15 = vshll.u32 %v12346_v50, 16  ;;  %v249_v17 = vld [vmem:[#allocation2 + $0x3c] sm:$0x1] }
  0x22   : > { %10571 = vmatprep.subr.bf16.mxu1 %v11523_v30  ;;  %v589_v30 = vrot.slane %v587_v21, 7  ;;  %v612_v35 = vshrl.u32 %v10386_v27, 16  ;;  %v615_v36 = vshll.u32 %v10386_v27, 16  ;;  %897 = vst [vmem:[#allocation2 + $0x14] sm:$0x1] %v896_v52  ;;  %v632_v16 = vshll.u32 %v10388_v60, 16 }
  0x23   : > { %v606_v34 = vrot.slane %v604_v28, 7  ;;  %v902_v6 = vld [vmem:[#allocation2 + $0x20] sm:$0x1]  ;;  %v11560_v19 = vld [vmem:[%s13911_s1 + $0x150] sm:$0xff]   ;;  %v627_v21 = vrot.slane %v623_v11, 4  ;;  %v250_v27 = vsel %vm12278_vm4, 0, %v249_v17 }
  0x24   : > { %10460 = vmatpush3.bf16.msra.mxu0 %v11524_v31  ;;  %v597_v31 = vrot.slane %v595_v23, 7  ;;  %v592_v38 = vor.u32 %v590_v22, %v589_v30  ;;  %v593_v40 = vrot.slane %v589_v30, 4  ;;  %v11528_v56 = vld [vmem:[#allocation2 + $0xc] sm:$0xff]   ;;  %v447_v18 = vld [vmem:[%s12274_s16 + $0x40] sm:$0xff]  ;;  %v12369_v22 = vrot.slane %v629_v12, 7  ;;  %v11889_v48 = vld [vmem:[%s13913_s3 + $0x118] sm:$0xff]  }
  0x25   : > { %10572 = vmatpush3.bf16.msra.mxu1 %v11525_v32  ;;  %10669 = vmatprep.subr.bf16.mxu0 %v11532_v58  ;;  %v11547_v32 = vld [vmem:[%s13911_s1 + $0x108] sm:$0xff]   ;;  %v610_v46 = vrot.slane %v606_v34, 4  ;;  %v609_v62 = vor.u32 %v607_v42, %v606_v34  ;;  %v297_v23 = vsel %vm12288_vm7, 0, %v296_v0  ;;  %251 = vst [vmem:[#allocation2 + $0x3c] sm:$0x1] %v250_v27  ;;  %v450_v27 = vld [vmem:[%s12274_s16 + $0x58] sm:$0xff] }
  0x26   : > { %v600_v41 = vor.u32 %v598_v24, %v597_v31  ;;  %v602_v57 = vrot.slane %v597_v31, 4  ;;  %v899_v58 = vsel %vm12313_vm9, %v592_v38, %v898_v54  ;;  %4465 = vmatprep.mubr.bf16.mxu1 %v11528_v56  ;;  %v11538_v8 = vld [vmem:[#allocation2 + $0xc] sm:$0xfe]   ;;  %v905_v10 = vld [vmem:[#allocation2 + $0x24] sm:$0xf]  ;;  %v634_v30 = vor.u32 %v632_v16, %v12369_v22 }
  0x27   : > { %4305 = vmatmul.mubr.bf16.vlgmr.msra.gmra.mrb[0].mxu0 %v11529_v47  ;;  %v614_v47 = vrot.slane %v612_v35, 7  ;;  %900 = vst [vmem:[#allocation2 + $0x18] sm:$0xf] %v899_v58  ;;  %v906_v14 = vsel %vm12313_vm9, %v609_v62, %v905_v10  ;;  %v909_v20 = vld [vmem:[#allocation2 + $0x2c] sm:$0x1]  ;;  %v11561_v24 = vld [vmem:[%s13911_s1 + $0x110] sm:$0xff]   ;;  %v10389_v38 = vpack.c.bf16 %v447_v18, %v447_v18  ;;  %v626_v58 = vor.u32 %v624_v15, %v623_v11 }
  0x28   : > { %10670 = vmatpush3.bf16.msra.mxu0 %v11533_v61  ;;  %v601_v53 = vsel %vm12295_vm8, %v593_v40, %v600_v41  ;;  %v11534_v61 = vld [vmem:[#allocation2 + $0xc] sm:$0xff]   ;;  %4466 = vmatmul.mubr.bf16.vlgmr.msra.gmra.mrb[0].mxu1 %v2017_v51  ;;  %v903_v9 = vsel %vm12278_vm4, %v602_v57, %v902_v6  ;;  %907 = vst [vmem:[#allocation2 + $0x24] sm:$0xf] %v906_v14  ;;  %298 = vst [vmem:[#allocation2 + $0x38] sm:$0x1] %v297_v23  ;;  %v636_v37 = vrot.slane %v12369_v22, 4 }
  0x29   : > { %10671 = vmatprep.subr.bf16.mxu0 %v11546_v29  ;;  %901 = vst [vmem:[#allocation2 + $0x1c] sm:$0xf] %v601_v53  ;;  %v617_v59 = vor.u32 %v615_v36, %v614_v47  ;;  %v1627_v4 = vshrl.u32 %v11534_v61, 16  ;;  %v1629_v5 = vshll.u32 %v11534_v61, 16  ;;  %v619_v7 = vrot.slane %v614_v47, 4  ;;  %v11537_v33 = vld [vmem:[#allocation2 + $0xc] sm:$0xff]  }
  0x2a   : > { %904 = vst [vmem:[#allocation2 + $0x20] sm:$0x1] %v903_v9  ;;  %v11535_v25 = vld [vmem:[#allocation2 + $0x14] ss:$0 sps:$4 sm:$0x11]   ;;  %v2018_v29 = vrot.slane %v11538_v8, 1  ;;  %v635_v36 = vsel %vm12295_vm8, %v627_v21, %v634_v30 }
  0x2b   : > { %v618_v2 = vsel %vm12295_vm8, %v610_v46, %v617_v59  ;;  %v1631_v13 = vrot.slane %v1629_v5, 1  ;;  %v910_v26 = vsel %vm12278_vm4, %v619_v7, %v909_v20  ;;  %v11539_v34 = vld [vmem:[#allocation2 + $0x14] ss:$0 sps:$4 sm:$0x11]   ;;  %915 = vst [vmem:[#allocation2 + $0x34] sm:$0xf] %v635_v36 }
  0x2c   : > { %10672 = vmatpush3.bf16.msra.mxu0 %v11547_v32  ;;  %908 = vst [vmem:[#allocation2 + $0x28] sm:$0xf] %v618_v2  ;;  %911 = vst [vmem:[#allocation2 + $0x2c] sm:$0x1] %v910_v26  ;;  %v1634_v32 = vshll.u32 %v11535_v25, 16  ;;  %v2019_v41 = vrot.slane %v11539_v34, 1 }
  0x2d   : > { %10673 = vmatprep.subr.bf16.mxu0 %v11560_v19  ;;  %v1632_v31 = vor.u32 %v1631_v13, %v1627_v4  ;;  %v448_v50 = vld [vmem:[%s12274_s16 + $0x48] sm:$0xff]  ;;  %v638_v51 = vshrl.u32 %v10389_v38, 16  ;;  %v912_v4 = vld [vmem:[#allocation2 + $0x30] sm:$0xf]  ;;  %v641_v18 = vshll.u32 %v10389_v38, 16 }
  0x2e   : > { %v1636_v40 = vrot.slane %v1634_v32, 1  ;;  %v2020_v45 = vsel %vm2014_vm10, %v2018_v29, %v2019_v41  ;;  %v10390_v5 = vpack.c.bf16 %v448_v50, %v448_v50  ;;  %v913_v9 = vsel %vm12313_vm9, %v626_v58, %v912_v4  ;;  %v449_v19 = vld [vmem:[%s12274_s16 + $0x50] sm:$0xff]  ;;  %v299_v32 = vld [vmem:[#allocation2 + $0x44] sm:$0x1] }
  0x2f   : > { %914 = vst [vmem:[#allocation2 + $0x30] sm:$0xf] %v913_v9  ;;  %v916_v14 = vld [vmem:[#allocation2 + $0x38] sm:$0x1]  ;;  %v640_v17 = vrot.slane %v638_v51, 7 }
  0x30   : > { %v11536_v28 = vld [vmem:[#allocation2 + $0x18] sm:$0xff]   ;;  %10674 = vmatpush3.bf16.msra.mxu0 %v11561_v24  ;;  %v1637_v44 = vsel %vm1613_vm1, %v1632_v31, %v1636_v40  ;;  %v917_v16 = vsel %vm12278_vm4, %v636_v37, %v916_v14  ;;  %v646_v22 = vshrl.u32 %v10390_v5, 16  ;;  %v649_v23 = vshll.u32 %v10390_v5, 16  ;;  %v302_v58 = vld [vmem:[#allocation2 + $0x50] sm:$0x1] }
  0x31   : > { %4473 = vmatprep.mubr.bf16.mxu1 %v11536_v28  ;;  %v11540_v35 = vld [vmem:[#allocation2 + $0x18] sm:$0xff]   ;;  %v11541_v42 = vld [vmem:[#allocation2 + $0x20] ss:$0 sps:$4 sm:$0x11]   ;;  %4312 = vmatprep.mubr.bf16.mxu0 %v1637_v44  ;;  %918 = vst [vmem:[#allocation2 + $0x38] sm:$0x1] %v917_v16  ;;  %v643_v26 = vor.u32 %v641_v18, %v640_v17  ;;  %v10391_v28 = vpack.c.bf16 %v449_v19, %v449_v19 }
  0x32   : > { %v1639_v43 = vshrl.u32 %v11540_v35, 16  ;;  %v1641_v46 = vshll.u32 %v11540_v35, 16  ;;  %4474 = vmatmul.mubr.bf16.gmra.mrb[4].mxu1 %v2020_v45  ;;  %v1646_v49 = vshll.u32 %v11541_v42, 16  ;;  %4313 = vmatmul.mubr.bf16.gmra.mrb[4].mxu0 %v11537_v33  ;;  %v11544_v53 = vld [vmem:[#allocation2 + $0x18] sm:$0xfe]   ;;  %v644_v29 = vrot.slane %v640_v17, 4 }
  0x33   : > { %v11542_v47 = vld [vmem:[#allocation2 + $0x24] sm:$0xff]   ;;  %v11545_v57 = vld [vmem:[#allocation2 + $0x20] ss:$0 sps:$4 sm:$0x11]   ;;  %v11543_v60 = vld [vmem:[#allocation2 + $0x18] sm:$0xff]   ;;  %v2021_v61 = vrot.slane %v11544_v53, 1  ;;  %v10392_v45 = vpack.c.bf16 %v450_v27, %v450_v27 }
  0x34   : > { %v1643_v52 = vrot.slane %v1641_v46, 1  ;;  %4481 = vmatprep.mubr.bf16.mxu1 %v11542_v47  ;;  %v11548_v54 = vld [vmem:[#allocation2 + $0x24] sm:$0xff]   ;;  %v1648_v56 = vrot.slane %v1646_v49, 1  ;;  %v2022_v62 = vrot.slane %v11545_v57, 1  ;;  %v919_v24 = vld [vmem:[#allocation2 + $0x3c] sm:$0xf] }
  0x35   : > { %v11549_v63 = vld [vmem:[#allocation2 + $0x2c] ss:$0 sps:$4 sm:$0x11]   ;;  %v1651_v0 = vshrl.u32 %v11548_v54, 16  ;;  %v1653_v2 = vshll.u32 %v11548_v54, 16  ;;  %v11551_v25 = vld [vmem:[#allocation2 + $0x24] sm:$0xff]   ;;  %v920_v31 = vsel %vm12313_vm9, %v643_v26, %v919_v24 }
  0x36   : > { %v1644_v59 = vor.u32 %v1643_v52, %v1639_v43  ;;  %v2023_v6 = vsel %vm2014_vm10, %v2021_v61, %v2022_v62  ;;  %v1658_v8 = vshll.u32 %v11549_v63, 16  ;;  %v11552_v10 = vld [vmem:[#allocation2 + $0x24] sm:$0xfe]   ;;  %v11553_v13 = vld [vmem:[#allocation2 + $0x2c] ss:$0 sps:$4 sm:$0x11]  }
  0x37   : > { %v1655_v7 = vrot.slane %v1653_v2, 1  ;;  %v2024_v15 = vrot.slane %v11552_v10, 1  ;;  %v2025_v21 = vrot.slane %v11553_v13, 1  ;;  %v648_v30 = vrot.slane %v646_v22, 7  ;;  %v451_v33 = vld [vmem:[%s12274_s16 + $0x60] sm:$0xff]  ;;  %v11550_v34 = vld [vmem:[#allocation2 + $0x30] sm:$0xff]  }
  0x38   : > { %v1649_v3 = vsel %vm1613_vm1, %v1644_v59, %v1648_v56  ;;  %v1660_v12 = vrot.slane %v1658_v8, 1  ;;  %921 = vst [vmem:[#allocation2 + $0x3c] sm:$0xf] %v920_v31  ;;  %v11554_v37 = vld [vmem:[#allocation2 + $0x30] sm:$0xff]   ;;  %v300_v40 = vsel %vm12288_vm7, 0, %v299_v32  ;;  %v655_v41 = vshrl.u32 %v10391_v28, 16 }
  0x39   : > { %4320 = vmatprep.mubr.bf16.mxu0 %v1649_v3  ;;  %v1656_v11 = vor.u32 %v1655_v7, %v1651_v0  ;;  %v2026_v35 = vsel %vm2014_vm10, %v2024_v15, %v2025_v21  ;;  %v651_v36 = vor.u32 %v649_v23, %v648_v30  ;;  %v653_v38 = vrot.slane %v648_v30, 4  ;;  %v11558_v43 = vld [vmem:[#allocation2 + $0x30] sm:$0xfe]   ;;  %301 = vst [vmem:[#allocation2 + $0x44] sm:$0x1] %v300_v40  ;;  %v452_v49 = vld [vmem:[%s12274_s16 + $0x68] sm:$0xff] }
  0x3a   : > { %4482 = vmatmul.mubr.bf16.gmra.mrb[8].mxu1 %v2023_v6  ;;  %4321 = vmatmul.mubr.bf16.gmra.mrb[8].mxu0 %v11543_v60  ;;  %v252_v44 = vld [vmem:[#allocation2 + $0x48] sm:$0x1]  ;;  %v11555_v46 = vld [vmem:[#allocation2 + $0x38] ss:$0 sps:$4 sm:$0x11]   ;;  %v1663_v47 = vshrl.u32 %v11554_v37, 16  ;;  %v10393_v52 = vpack.c.bf16 %v451_v33, %v451_v33  ;;  %v10394_v6 = vpack.c.bf16 %v452_v49, %v452_v49 }
  0x3b   : > { %v1661_v20 = vsel %vm1613_vm1, %v1656_v11, %v1660_v12  ;;  %4489 = vmatprep.mubr.bf16.mxu1 %v11550_v34  ;;  %v652_v42 = vsel %vm12295_vm8, %v644_v29, %v651_v36  ;;  %v1665_v50 = vshll.u32 %v11554_v37, 16  ;;  %v11559_v51 = vld [vmem:[#allocation2 + $0x38] ss:$0 sps:$4 sm:$0x11]   ;;  %v1670_v53 = vshll.u32 %v11555_v46, 16  ;;  %v11557_v60 = vld [vmem:[#allocation2 + $0x30] sm:$0xff]  }
  0x3c   : > { %4328 = vmatprep.mubr.bf16.mxu0 %v1661_v20  ;;  %922 = vst [vmem:[#allocation2 + $0x40] sm:$0xf] %v652_v42  ;;  %v2027_v54 = vrot.slane %v11558_v43, 1  ;;  %v253_v56 = vsel %vm12278_vm4, 0, %v252_v44  ;;  %v657_v57 = vrot.slane %v655_v41, 7  ;;  %v2028_v61 = vrot.slane %v11559_v51, 1 }
  0x3d   : > { %v1667_v59 = vrot.slane %v1665_v50, 1  ;;  %254 = vst [vmem:[#allocation2 + $0x48] sm:$0x1] %v253_v56  ;;  %v658_v62 = vshll.u32 %v10391_v28, 16  ;;  %v663_v63 = vshrl.u32 %v10392_v45, 16  ;;  %v1672_v2 = vrot.slane %v1670_v53, 1 }
  0x3e   : > { %v255_v0 = vld [vmem:[#allocation2 + $0x54] sm:$0x1]  ;;  %v661_v3 = vrot.slane %v657_v57, 4  ;;  %v11574_v7 = vld [vmem:[%s13911_s1 + $0x158] sm:$0xff]   ;;  %v666_v9 = vshll.u32 %v10392_v45, 16  ;;  %v303_v10 = vsel %vm12288_vm7, 0, %v302_v58  ;;  %v2029_v15 = vsel %vm2014_vm10, %v2027_v54, %v2028_v61 }
  0x3f   : > { %v1668_v4 = vor.u32 %v1667_v59, %v1663_v47  ;;  %v665_v5 = vrot.slane %v663_v63, 7  ;;  %v256_v11 = vsel %vm12278_vm4, 0, %v255_v0  ;;  %v672_v12 = vshrl.u32 %v10393_v52, 16  ;;  %304 = vst [vmem:[#allocation2 + $0x50] sm:$0x1] %v303_v10  ;;  %10675 = vmatprep.subr.bf16.mxu0 %v11574_v7  ;;  %v11575_v34 = vld [vmem:[%s13911_s1 + $0x118] sm:$0xff]  }
  0x40   : > { %v923_v8 = vld [vmem:[#allocation2 + $0x44] sm:$0x1]  ;;  %v660_v17 = vor.u32 %v658_v62, %v657_v57  ;;  %257 = vst [vmem:[#allocation2 + $0x54] sm:$0x1] %v256_v11  ;;  %v675_v22 = vshll.u32 %v10393_v52, 16  ;;  %v680_v24 = vshrl.u32 %v10394_v6, 16  ;;  %10676 = vmatpush3.bf16.msra.mxu0 %v11575_v34 }
  0x41   : > { %v1673_v13 = vsel %vm1613_vm1, %v1668_v4, %v1672_v2  ;;  %v924_v16 = vsel %vm12278_vm4, %v653_v38, %v923_v8  ;;  %v668_v19 = vor.u32 %v666_v9, %v665_v5  ;;  %v670_v20 = vrot.slane %v665_v5, 4  ;;  %v453_v36 = vld [vmem:[%s12274_s16 + $0x70] sm:$0xff]  ;;  %v305_v40 = vld [vmem:[#allocation2 + $0x5c] sm:$0x1]  ;;  %v258_v41 = vld [vmem:[#allocation2 + $0x60] sm:$0x1] }
  0x42   : > { %4329 = vmatmul.mubr.bf16.gmra.mrb[12].mxu0 %v11551_v25  ;;  %4490 = vmatmul.mubr.bf16.gmra.mrb[12].mxu1 %v2026_v35  ;;  %925 = vst [vmem:[#allocation2 + $0x44] sm:$0x1] %v924_v16  ;;  %v674_v21 = vrot.slane %v672_v12, 7  ;;  %v683_v25 = vshll.u32 %v10394_v6, 16  ;;  %v682_v33 = vrot.slane %v680_v24, 7  ;;  %v454_v42 = vld [vmem:[%s12274_s16 + $0x78] sm:$0xff]  ;;  %v10395_v43 = vpack.c.bf16 %v453_v36, %v453_v36 }
  0x43   : > { %v11556_v14 = vld [vmem:[#allocation2 + $0x3c] sm:$0xff]   ;;  %4336 = vmatprep.mubr.bf16.mxu0 %v1673_v13  ;;  %v669_v28 = vsel %vm12295_vm8, %v661_v3, %v668_v19  ;;  %v306_v46 = vsel %vm12288_vm7, 0, %v305_v40  ;;  %v259_v47 = vsel %vm12278_vm4, 0, %v258_v41  ;;  %v10396_v49 = vpack.c.bf16 %v454_v42, %v454_v42  ;;  %v308_v0 = vld [vmem:[#allocation2 + $0x68] sm:$0x1] }
  0x44   : > { %v11562_v18 = vld [vmem:[#allocation2 + $0x3c] sm:$0xff]   ;;  %4497 = vmatprep.mubr.bf16.mxu1 %v11556_v14  ;;  %v926_v29 = vld [vmem:[#allocation2 + $0x48] sm:$0xf]  ;;  %929 = vst [vmem:[#allocation2 + $0x4c] sm:$0xf] %v669_v28  ;;  %v677_v31 = vor.u32 %v675_v22, %v674_v21  ;;  %v678_v32 = vrot.slane %v674_v21, 4  ;;  %v685_v38 = vor.u32 %v683_v25, %v682_v33 }
  0x45   : > { %v11566_v23 = vld [vmem:[#allocation2 + $0x3c] sm:$0xfe]   ;;  %v1675_v26 = vshrl.u32 %v11562_v18, 16  ;;  %v1677_v27 = vshll.u32 %v11562_v18, 16  ;;  %v927_v30 = vsel %vm12313_vm9, %v660_v17, %v926_v29  ;;  %307 = vst [vmem:[#allocation2 + $0x5c] sm:$0x1] %v306_v46 }
  0x46   : > { %928 = vst [vmem:[#allocation2 + $0x48] sm:$0xf] %v927_v30  ;;  %v2030_v37 = vrot.slane %v11566_v23, 1  ;;  %v930_v44 = vld [vmem:[#allocation2 + $0x50] sm:$0x1]  ;;  %v686_v52 = vsel %vm12295_vm8, %v678_v32, %v685_v38  ;;  %v689_v54 = vshrl.u32 %v10395_v43, 16 }
  0x47   : > { %v1679_v35 = vrot.slane %v1677_v27, 1  ;;  %v933_v45 = vld [vmem:[#allocation2 + $0x54] sm:$0xf]  ;;  %v931_v51 = vsel %vm12278_vm4, %v670_v20, %v930_v44  ;;  %260 = vst [vmem:[#allocation2 + $0x60] sm:$0x1] %v259_v47  ;;  %v687_v58 = vrot.slane %v682_v33, 4 }
  0x48   : > { %v934_v53 = vsel %vm12313_vm9, %v677_v31, %v933_v45  ;;  %932 = vst [vmem:[#allocation2 + $0x50] sm:$0x1] %v931_v51  ;;  %936 = vst [vmem:[#allocation2 + $0x58] sm:$0xf] %v686_v52  ;;  %v691_v61 = vrot.slane %v689_v54, 7  ;;  %v697_v62 = vshrl.u32 %v10396_v49, 16 }
  0x49   : > { %v11563_v50 = vld [vmem:[#allocation2 + $0x44] ss:$0 sps:$4 sm:$0x11]   ;;  %v1680_v56 = vor.u32 %v1679_v35, %v1675_v26  ;;  %935 = vst [vmem:[#allocation2 + $0x54] sm:$0xf] %v934_v53  ;;  %v700_v63 = vshll.u32 %v10396_v49, 16 }
  0x4a   : > { %4337 = vmatmul.mubr.bf16.gmra.mrb[16].mxu0 %v11557_v60  ;;  %4498 = vmatmul.mubr.bf16.gmra.mrb[16].mxu1 %v2029_v15  ;;  %v11567_v57 = vld [vmem:[#allocation2 + $0x44] ss:$0 sps:$4 sm:$0x11]   ;;  %v1682_v59 = vshll.u32 %v11563_v50, 16  ;;  %v11565_v60 = vld [vmem:[#allocation2 + $0x3c] sm:$0xff]   ;;  %v309_v3 = vsel %vm12288_vm7, 0, %v308_v0 }
  0x4b   : > { %v2031_v2 = vrot.slane %v11567_v57, 1  ;;  %310 = vst [vmem:[#allocation2 + $0x68] sm:$0x1] %v309_v3  ;;  %v692_v8 = vshll.u32 %v10395_v43, 16  ;;  %v695_v10 = vrot.slane %v691_v61, 4  ;;  %v699_v11 = vrot.slane %v697_v62, 7 }
  0x4c   : > { %v1684_v4 = vrot.slane %v1682_v59, 1  ;;  %v937_v15 = vld [vmem:[#allocation2 + $0x5c] sm:$0x1]  ;;  %v455_v36 = vld [vmem:[%s12274_s16 + $0x80] sm:$0xff]  ;;  %v261_v44 = vld [vmem:[#allocation2 + $0x6c] sm:$0x1] }
  0x4d   : > { %v11564_v5 = vld [vmem:[#allocation2 + $0x48] sm:$0xff]   ;;  %v2032_v6 = vsel %vm2014_vm10, %v2030_v37, %v2031_v2  ;;  %v938_v18 = vsel %vm12278_vm4, %v687_v58, %v937_v15  ;;  %v702_v19 = vor.u32 %v700_v63, %v699_v11  ;;  %v694_v22 = vor.u32 %v692_v8, %v691_v61 }
  0x4e   : > { %v11568_v7 = vld [vmem:[#allocation2 + $0x48] sm:$0xff]   ;;  %v1685_v9 = vsel %vm1613_vm1, %v1680_v56, %v1684_v4  ;;  %4505 = vmatprep.mubr.bf16.mxu1 %v11564_v5  ;;  %939 = vst [vmem:[#allocation2 + $0x5c] sm:$0x1] %v938_v18  ;;  %v704_v29 = vrot.slane %v699_v11, 4  ;;  %v940_v32 = vld [vmem:[#allocation2 + $0x60] sm:$0xf]  ;;  %v10397_v41 = vpack.c.bf16 %v455_v36, %v455_v36 }
  0x4f   : > { %4344 = vmatprep.mubr.bf16.mxu0 %v1685_v9  ;;  %v1687_v12 = vshrl.u32 %v11568_v7, 16  ;;  %v1689_v13 = vshll.u32 %v11568_v7, 16  ;;  %v11572_v14 = vld [vmem:[#allocation2 + $0x48] sm:$0xfe]   ;;  %v703_v26 = vsel %vm12295_vm8, %v695_v10, %v702_v19  ;;  %v941_v35 = vsel %vm12313_vm9, %v694_v22, %v940_v32  ;;  %v11588_v10 = vld [vmem:[%s13911_s1 + $0x160] sm:$0xff]  }
  0x50   : > { %v11569_v16 = vld [vmem:[#allocation2 + $0x50] ss:$0 sps:$4 sm:$0x11]   ;;  %v11570_v17 = vld [vmem:[#allocation2 + $0x54] sm:$0xff]   ;;  %v2033_v21 = vrot.slane %v11572_v14, 1  ;;  %v11571_v24 = vld [vmem:[#allocation2 + $0x48] sm:$0xff]   ;;  %10677 = vmatprep.subr.bf16.mxu0 %v11588_v10 }
  0x51   : > { %v1691_v20 = vrot.slane %v1689_v13, 1  ;;  %v1694_v23 = vshll.u32 %v11569_v16, 16  ;;  %v11573_v25 = vld [vmem:[#allocation2 + $0x50] ss:$0 sps:$4 sm:$0x11]   ;;  %v11576_v28 = vld [vmem:[#allocation2 + $0x54] sm:$0xff]  }
  0x52   : > { %4506 = vmatmul.mubr.bf16.gmra.mrb[20].mxu1 %v2032_v6  ;;  %4345 = vmatmul.mubr.bf16.gmra.mrb[20].mxu0 %v11565_v60  ;;  %943 = vst [vmem:[#allocation2 + $0x64] sm:$0xf] %v703_v26  ;;  %v2034_v31 = vrot.slane %v11573_v25, 1  ;;  %v1699_v33 = vshrl.u32 %v11576_v28, 16  ;;  %v1701_v34 = vshll.u32 %v11576_v28, 16  ;;  %v456_v45 = vld [vmem:[%s12274_s16 + $0x88] sm:$0xff] }
  0x53   : > { %4513 = vmatprep.mubr.bf16.mxu1 %v11570_v17  ;;  %v1692_v27 = vor.u32 %v1691_v20, %v1687_v12  ;;  %v1696_v30 = vrot.slane %v1694_v23, 1  ;;  %942 = vst [vmem:[#allocation2 + $0x60] sm:$0xf] %v941_v35  ;;  %v11580_v40 = vld [vmem:[#allocation2 + $0x54] sm:$0xfe]   ;;  %v10398_v50 = vpack.c.bf16 %v456_v45, %v456_v45  ;;  %v262_v52 = vsel %vm12278_vm4, 0, %v261_v44 }
  0x54   : > { %v2035_v38 = vsel %vm2014_vm10, %v2033_v21, %v2034_v31  ;;  %v1703_v42 = vrot.slane %v1701_v34, 1  ;;  %v944_v43 = vld [vmem:[#allocation2 + $0x68] sm:$0x1]  ;;  %v2036_v47 = vrot.slane %v11580_v40, 1  ;;  %v11579_v56 = vld [vmem:[#allocation2 + $0x54] sm:$0xff]   ;;  %v706_v57 = vshrl.u32 %v10397_v41, 16 }
  0x55   : > { %v1697_v37 = vsel %vm1613_vm1, %v1692_v27, %v1696_v30  ;;  %v11577_v46 = vld [vmem:[#allocation2 + $0x5c] ss:$0 sps:$4 sm:$0x11]   ;;  %v945_v49 = vsel %vm12278_vm4, %v704_v29, %v944_v43  ;;  %263 = vst [vmem:[#allocation2 + $0x6c] sm:$0x1] %v262_v52  ;;  %v709_v59 = vshll.u32 %v10397_v41, 16 }
  0x56   : > { %4352 = vmatprep.mubr.bf16.mxu0 %v1697_v37  ;;  %v11581_v51 = vld [vmem:[#allocation2 + $0x5c] ss:$0 sps:$4 sm:$0x11]   ;;  %946 = vst [vmem:[#allocation2 + $0x68] sm:$0x1] %v945_v49  ;;  %v1704_v53 = vor.u32 %v1703_v42, %v1699_v33  ;;  %v1706_v54 = vshll.u32 %v11577_v46, 16 }
  0x57   : > { %v2037_v58 = vrot.slane %v11581_v51, 1  ;;  %v714_v60 = vshrl.u32 %v10398_v50, 16  ;;  %v717_v61 = vshll.u32 %v10398_v50, 16  ;;  %v708_v63 = vrot.slane %v706_v57, 7  ;;  %v11589_v22 = vld [vmem:[%s13911_s1 + $0x120] sm:$0xff]   ;;  %v457_v30 = vld [vmem:[%s12274_s16 + $0x90] sm:$0xff] }
  0x58   : > { %v1708_v62 = vrot.slane %v1706_v54, 1  ;;  %v311_v25 = vld [vmem:[#allocation2 + $0x74] sm:$0x1]  ;;  %v264_v26 = vld [vmem:[#allocation2 + $0x78] sm:$0x1]  ;;  %10678 = vmatpush3.bf16.msra.mxu0 %v11589_v22  ;;  %v10399_v34 = vpack.c.bf16 %v457_v30, %v457_v30  ;;  %v460_v42 = vld [vmem:[%s12274_s16 + $0xa8] sm:$0xff] }
  0x59   : > { %v2038_v2 = vsel %vm2014_vm10, %v2036_v47, %v2037_v58  ;;  %v12456_v3 = vrot.slane %v714_v60, 7  ;;  %v711_v6 = vor.u32 %v709_v59, %v708_v63  ;;  %v712_v7 = vrot.slane %v708_v63, 4  ;;  %v458_v31 = vld [vmem:[%s12274_s16 + $0x98] sm:$0xff]  ;;  %v314_v32 = vld [vmem:[#allocation2 + $0x80] sm:$0x1]  ;;  %v11602_v44 = vld [vmem:[%s13911_s1 + $0x168] sm:$0xff]  }
  0x5a   : > { %4514 = vmatmul.mubr.bf16.gmra.mrb[24].mxu1 %v2035_v38  ;;  %4353 = vmatmul.mubr.bf16.gmra.mrb[24].mxu0 %v11571_v24  ;;  %v11578_v0 = vld [vmem:[#allocation2 + $0x60] sm:$0xff]   ;;  %v1709_v4 = vsel %vm1613_vm1, %v1704_v53, %v1708_v62  ;;  %v312_v28 = vsel %vm12288_vm7, 0, %v311_v25  ;;  %v265_v29 = vsel %vm12278_vm4, 0, %v264_v26  ;;  %v10400_v35 = vpack.c.bf16 %v458_v31, %v458_v31  ;;  %v320_v22 = vld [vmem:[#allocation2 + $0x98] sm:$0x1] }
  0x5b   : > { %v11582_v5 = vld [vmem:[#allocation2 + $0x60] sm:$0xff]   ;;  %4360 = vmatprep.mubr.bf16.mxu0 %v1709_v4  ;;  %4521 = vmatprep.mubr.bf16.mxu1 %v11578_v0  ;;  %v719_v8 = vor.u32 %v717_v61, %v12456_v3  ;;  %v721_v12 = vrot.slane %v12456_v3, 4  ;;  %313 = vst [vmem:[#allocation2 + $0x74] sm:$0x1] %v312_v28  ;;  %266 = vst [vmem:[#allocation2 + $0x78] sm:$0x1] %v265_v29  ;;  %v10402_v58 = vpack.c.bf16 %v460_v42, %v460_v42 }
  0x5c   : > { %v11586_v9 = vld [vmem:[#allocation2 + $0x60] sm:$0xfe]   ;;  %v1711_v13 = vshrl.u32 %v11582_v5, 16  ;;  %v1713_v14 = vshll.u32 %v11582_v5, 16  ;;  %v947_v16 = vld [vmem:[#allocation2 + $0x6c] sm:$0xf]  ;;  %10679 = vmatprep.subr.bf16.mxu0 %v11602_v44 }
  0x5d   : > { %v11583_v11 = vld [vmem:[#allocation2 + $0x68] ss:$0 sps:$4 sm:$0x11]   ;;  %v720_v15 = vsel %vm12295_vm8, %v712_v7, %v719_v8  ;;  %v948_v18 = vsel %vm12313_vm9, %v711_v6, %v947_v16  ;;  %v11585_v21 = vld [vmem:[#allocation2 + $0x60] sm:$0xff]   ;;  %v2039_v24 = vrot.slane %v11586_v9, 1  ;;  %v315_v36 = vsel %vm12288_vm7, 0, %v314_v32 }
  0x5e   : > { %v1718_v17 = vshll.u32 %v11583_v11, 16  ;;  %950 = vst [vmem:[#allocation2 + $0x70] sm:$0xf] %v720_v15  ;;  %v11587_v19 = vld [vmem:[#allocation2 + $0x68] ss:$0 sps:$4 sm:$0x11]  }
  0x5f   : > { %v1715_v20 = vrot.slane %v1713_v14, 1  ;;  %949 = vst [vmem:[#allocation2 + $0x6c] sm:$0xf] %v948_v18  ;;  %v2040_v33 = vrot.slane %v11587_v19, 1  ;;  %v267_v37 = vld [vmem:[#allocation2 + $0x84] sm:$0x1] }
  0x60   : > { %v1720_v23 = vrot.slane %v1718_v17, 1  ;;  %v459_v38 = vld [vmem:[%s12274_s16 + $0xa0] sm:$0xff]  ;;  %316 = vst [vmem:[#allocation2 + $0x80] sm:$0x1] %v315_v36  ;;  %v268_v41 = vsel %vm12278_vm4, 0, %v267_v37  ;;  %v723_v45 = vshrl.u32 %v10399_v34, 16 }
  0x61   : > { %v1716_v27 = vor.u32 %v1715_v20, %v1711_v13  ;;  %v10401_v43 = vpack.c.bf16 %v459_v38, %v459_v38  ;;  %v726_v46 = vshll.u32 %v10399_v34, 16  ;;  %v731_v47 = vshrl.u32 %v10400_v35, 16  ;;  %269 = vst [vmem:[#allocation2 + $0x84] sm:$0x1] %v268_v41  ;;  %v317_v17 = vld [vmem:[#allocation2 + $0x8c] sm:$0x1] }
  0x62   : > { %4361 = vmatmul.mubr.bf16.gmra.mrb[28].mxu0 %v11579_v56  ;;  %4522 = vmatmul.mubr.bf16.gmra.mrb[28].mxu1 %v2038_v2  ;;  %v734_v49 = vshll.u32 %v10400_v35, 16  ;;  %v2041_v51 = vsel %vm2014_vm10, %v2039_v24, %v2040_v33  ;;  %v725_v52 = vrot.slane %v723_v45, 7  ;;  %v951_v60 = vld [vmem:[#allocation2 + $0x74] sm:$0x1]  ;;  %v11603_v2 = vld [vmem:[%s13911_s1 + $0x128] sm:$0xff]   ;;  %v748_v15 = vshrl.u32 %v10402_v58, 16 }
  0x63   : > { %v1721_v40 = vsel %vm1613_vm1, %v1716_v27, %v1720_v23  ;;  %v733_v54 = vrot.slane %v731_v47, 7  ;;  %v740_v59 = vshrl.u32 %v10401_v43, 16  ;;  %v743_v0 = vshll.u32 %v10401_v43, 16  ;;  %v954_v5 = vld [vmem:[#allocation2 + $0x78] sm:$0xf]  ;;  %10680 = vmatpush3.bf16.msra.mxu0 %v11603_v2  ;;  %v11616_v36 = vld [vmem:[%s13911_s1 + $0x170] sm:$0xff]  }
  0x64   : > { %4368 = vmatprep.mubr.bf16.mxu0 %v1721_v40  ;;  %v728_v56 = vor.u32 %v726_v46, %v725_v52  ;;  %v729_v57 = vrot.slane %v725_v52, 4  ;;  %v952_v4 = vsel %vm12278_vm4, %v721_v12, %v951_v60  ;;  %v461_v12 = vld [vmem:[%s12274_s16 + $0xb0] sm:$0xff]  ;;  %v751_v16 = vshll.u32 %v10402_v58, 16  ;;  %v462_v20 = vld [vmem:[%s12274_s16 + $0xb8] sm:$0xff]  ;;  %v11618_v42 = vld [vmem:[%s13911_s1 + $0x1c0] sm:$0xff]   ;;  %10681 = vmatprep.subr.bf16.mxu0 %v11616_v36 }
  0x65   : > { %v736_v62 = vor.u32 %v734_v49, %v733_v54  ;;  %v738_v63 = vrot.slane %v733_v54, 4  ;;  %953 = vst [vmem:[#allocation2 + $0x74] sm:$0x1] %v952_v4  ;;  %v742_v14 = vrot.slane %v740_v59, 7  ;;  %v318_v18 = vsel %vm12288_vm7, 0, %v317_v17  ;;  %v11617_v37 = vld [vmem:[%s13911_s1 + $0x130] sm:$0xff]   ;;  %10781 = vmatprep.subr.bf16.mxu1 %v11618_v42 }
  0x66   : > { %v11584_v50 = vld [vmem:[#allocation2 + $0x6c] sm:$0xff]   ;;  %v955_v10 = vsel %vm12313_vm9, %v728_v56, %v954_v5  ;;  %v12513_v25 = vrot.slane %v748_v15, 7  ;;  %319 = vst [vmem:[#allocation2 + $0x8c] sm:$0x1] %v318_v18  ;;  %v273_v27 = vld [vmem:[#allocation2 + $0x9c] sm:$0x1]  ;;  %v10404_v29 = vpack.c.bf16 %v462_v20, %v462_v20 }
  0x67   : > { %v12488_v53 = vld [vmem:[#allocation2 + $0x6c] sm:$0xff]   ;;  %4529 = vmatprep.mubr.bf16.mxu1 %v11584_v50  ;;  %v958_v7 = vld [vmem:[#allocation2 + $0x80] sm:$0x1]  ;;  %v737_v9 = vsel %vm12295_vm8, %v729_v57, %v736_v62  ;;  %956 = vst [vmem:[#allocation2 + $0x78] sm:$0xf] %v955_v10  ;;  %v745_v23 = vor.u32 %v743_v0, %v742_v14  ;;  %v746_v24 = vrot.slane %v742_v14, 4  ;;  %10682 = vmatpush3.bf16.msra.mxu0 %v11617_v37 }
  0x68   : > { %v1725_v61 = vshll.u32 %v12488_v53, 16  ;;  %v12498_v6 = vld [vmem:[#allocation2 + $0x6c] sm:$0xfe]   ;;  %v1723_v8 = vshrl.u32 %v12488_v53, 16  ;;  %v959_v3 = vsel %vm12278_vm4, %v738_v63, %v958_v7  ;;  %v961_v11 = vld [vmem:[#allocation2 + $0x84] sm:$0xf]  ;;  %v753_v32 = vor.u32 %v751_v16, %v12513_v25 }
  0x69   : > { %957 = vst [vmem:[#allocation2 + $0x7c] sm:$0xf] %v737_v9  ;;  %960 = vst [vmem:[#allocation2 + $0x80] sm:$0x1] %v959_v3  ;;  %v270_v19 = vld [vmem:[#allocation2 + $0x90] sm:$0x1]  ;;  %v962_v33 = vsel %vm12313_vm9, %v745_v23, %v961_v11 }
  0x6a   : > { %4369 = vmatmul.mubr.bf16.gmra.mrb[32].mxu0 %v11585_v21  ;;  %4530 = vmatmul.mubr.bf16.gmra.mrb[32].mxu1 %v2041_v51  ;;  %v1727_v13 = vrot.slane %v1725_v61, 1  ;;  %v12511_v21 = vpack.c.bf16 %v461_v12, %v461_v12  ;;  %v271_v26 = vsel %vm12278_vm4, 0, %v270_v19  ;;  %v2042_v28 = vrot.slane %v12498_v6, 1  ;;  %963 = vst [vmem:[#allocation2 + $0x84] sm:$0xf] %v962_v33  ;;  %v11619_v45 = vld [vmem:[%s13911_s1 + $0x180] sm:$0xff]  }
  0x6b   : > { %272 = vst [vmem:[#allocation2 + $0x90] sm:$0x1] %v271_v26  ;;  %v321_v31 = vsel %vm12288_vm7, 0, %v320_v22  ;;  %v274_v35 = vsel %vm12278_vm4, 0, %v273_v27  ;;  %v755_v38 = vrot.slane %v12513_v25, 4  ;;  %v765_v41 = vshrl.u32 %v10404_v29, 16  ;;  %10782 = vmatpush3.bf16.msra.mxu1 %v11619_v45 }
  0x6c   : > { %v757_v30 = vshrl.u32 %v12511_v21, 16  ;;  %v760_v34 = vshll.u32 %v12511_v21, 16  ;;  %322 = vst [vmem:[#allocation2 + $0x98] sm:$0x1] %v321_v31  ;;  %275 = vst [vmem:[#allocation2 + $0x9c] sm:$0x1] %v274_v35  ;;  %v754_v44 = vsel %vm12295_vm8, %v746_v24, %v753_v32  ;;  %v1728_v49 = vor.u32 %v1727_v13, %v1723_v8 }
  0x6d   : > { %v11591_v43 = vld [vmem:[#allocation2 + $0x74] ss:$0 sps:$4 sm:$0x11]   ;;  %964 = vst [vmem:[#allocation2 + $0x88] sm:$0xf] %v754_v44  ;;  %v768_v47 = vshll.u32 %v10404_v29, 16 }
  0x6e   : > { %v759_v40 = vrot.slane %v757_v30, 7  ;;  %v1730_v50 = vshll.u32 %v11591_v43, 16  ;;  %v11593_v51 = vld [vmem:[#allocation2 + $0x6c] sm:$0xff]   ;;  %v11595_v52 = vld [vmem:[#allocation2 + $0x74] ss:$0 sps:$4 sm:$0x11]  }
  0x6f   : > { %v2043_v54 = vrot.slane %v11595_v52, 1  ;;  %v767_v59 = vrot.slane %v765_v41, 7  ;;  %v463_v60 = vld [vmem:[%s12274_s16 + $0xc0] sm:$0xff]  ;;  %v464_v2 = vld [vmem:[%s12274_s16 + $0xc8] sm:$0xff] }
  0x70   : > { %v11592_v46 = vld [vmem:[#allocation2 + $0x78] sm:$0xff]   ;;  %v1732_v53 = vrot.slane %v1730_v50, 1  ;;  %v11597_v57 = vld [vmem:[#allocation2 + $0x80] ss:$0 sps:$4 sm:$0x11]   ;;  %v763_v58 = vrot.slane %v759_v40, 4  ;;  %v762_v10 = vor.u32 %v760_v34, %v759_v40  ;;  %v10405_v18 = vpack.c.bf16 %v463_v60, %v463_v60 }
  0x71   : > { %4537 = vmatprep.mubr.bf16.mxu1 %v11592_v46  ;;  %v11596_v56 = vld [vmem:[#allocation2 + $0x78] sm:$0xff]   ;;  %v2044_v62 = vsel %vm2014_vm10, %v2042_v28, %v2043_v54  ;;  %v1742_v4 = vshll.u32 %v11597_v57, 16  ;;  %v770_v5 = vor.u32 %v768_v47, %v767_v59  ;;  %v772_v6 = vrot.slane %v767_v59, 4  ;;  %v11601_v11 = vld [vmem:[#allocation2 + $0x80] ss:$0 sps:$4 sm:$0x11]  }
  0x72   : > { %v1733_v61 = vsel %vm1613_vm1, %v1728_v49, %v1732_v53  ;;  %v1735_v63 = vshrl.u32 %v11596_v56, 16  ;;  %v1737_v0 = vshll.u32 %v11596_v56, 16  ;;  %4538 = vmatmul.mubr.bf16.gmra.mrb[36].mxu1 %v2044_v62  ;;  %v11600_v9 = vld [vmem:[#allocation2 + $0x78] sm:$0xfe]   ;;  %v965_v12 = vld [vmem:[#allocation2 + $0x8c] sm:$0x1]  ;;  %v10406_v21 = vpack.c.bf16 %v464_v2, %v464_v2 }
  0x73   : > { %4376 = vmatprep.mubr.bf16.mxu0 %v1733_v61  ;;  %v1744_v3 = vrot.slane %v1742_v4, 1  ;;  %v771_v13 = vsel %vm12295_vm8, %v763_v58, %v770_v5  ;;  %v2045_v15 = vrot.slane %v11600_v9, 1  ;;  %v966_v16 = vsel %vm12278_vm4, %v755_v38, %v965_v12  ;;  %v968_v20 = vld [vmem:[#allocation2 + $0x90] sm:$0xf]  ;;  %v11599_v23 = vld [vmem:[#allocation2 + $0x78] sm:$0xff]   ;;  %v11620_v34 = vld [vmem:[%s13911_s1 + $0x1c8] sm:$0xff]  }
  0x74   : > { %4377 = vmatmul.mubr.bf16.gmra.mrb[36].mxu0 %v11593_v51  ;;  %v1739_v7 = vrot.slane %v1737_v0, 1  ;;  %v11598_v8 = vld [vmem:[#allocation2 + $0x84] sm:$0xff]   ;;  %971 = vst [vmem:[#allocation2 + $0x94] sm:$0xf] %v771_v13  ;;  %v2046_v19 = vrot.slane %v11601_v11, 1  ;;  %v969_v25 = vsel %vm12313_vm9, %v762_v10, %v968_v20  ;;  %v774_v32 = vshrl.u32 %v10405_v18, 16  ;;  %10783 = vmatprep.subr.bf16.mxu1 %v11620_v34 }
  0x75   : > { %4545 = vmatprep.mubr.bf16.mxu1 %v11598_v8  ;;  %v11604_v17 = vld [vmem:[#allocation2 + $0x84] sm:$0xff]   ;;  %967 = vst [vmem:[#allocation2 + $0x8c] sm:$0x1] %v966_v16  ;;  %970 = vst [vmem:[#allocation2 + $0x90] sm:$0xf] %v969_v25  ;;  %v777_v33 = vshll.u32 %v10405_v18, 16 }
  0x76   : > { %v1740_v14 = vor.u32 %v1739_v7, %v1735_v63  ;;  %v1749_v24 = vshll.u32 %v11604_v17, 16  ;;  %v2047_v26 = vsel %vm2014_vm10, %v2045_v15, %v2046_v19  ;;  %v1747_v27 = vshrl.u32 %v11604_v17, 16  ;;  %v972_v28 = vld [vmem:[#allocation2 + $0x98] sm:$0x1]  ;;  %v11608_v30 = vld [vmem:[#allocation2 + $0x84] sm:$0xfe]  }
  0x77   : > { %v973_v31 = vsel %vm12278_vm4, %v772_v6, %v972_v28  ;;  %v782_v35 = vshrl.u32 %v10406_v21, 16  ;;  %v785_v36 = vshll.u32 %v10406_v21, 16  ;;  %v975_v37 = vld [vmem:[#allocation2 + $0x9c] sm:$0xf]  ;;  %v776_v38 = vrot.slane %v774_v32, 7  ;;  %v465_v40 = vld [vmem:[%s12274_s16 + $0xd0] sm:$0xff] }
  0x78   : > { %v1745_v22 = vsel %vm1613_vm1, %v1740_v14, %v1744_v3  ;;  %v1751_v29 = vrot.slane %v1749_v24, 1  ;;  %974 = vst [vmem:[#allocation2 + $0x98] sm:$0x1] %v973_v31  ;;  %v11624_v42 = vld [vmem:[%s13911_s1 + $0x188] sm:$0xff]   ;;  %v2048_v47 = vrot.slane %v11608_v30, 1  ;;  %v10407_v50 = vpack.c.bf16 %v465_v40, %v465_v40  ;;  %v466_v2 = vld [vmem:[%s12274_s16 + $0xd8] sm:$0xff] }
  0x79   : > { %4384 = vmatprep.mubr.bf16.mxu0 %v1745_v22  ;;  %v12560_v41 = vrot.slane %v782_v35, 7  ;;  %v779_v44 = vor.u32 %v777_v33, %v776_v38  ;;  %v780_v45 = vrot.slane %v776_v38, 4  ;;  %10784 = vmatpush3.bf16.msra.mxu1 %v11624_v42  ;;  %v11607_v54 = vld [vmem:[#allocation2 + $0x84] sm:$0xff]   ;;  %v10408_v3 = vpack.c.bf16 %v466_v2, %v466_v2  ;;  %v11628_v30 = vld [vmem:[%s13911_s1 + $0x1d0] sm:$0xff]   ;;  %v11630_v40 = vld [vmem:[%s13911_s1 + $0x1d8] sm:$0xff]  }
  0x7a   : > { %4546 = vmatmul.mubr.bf16.gmra.mrb[40].mxu1 %v2047_v26  ;;  %v1752_v51 = vor.u32 %v1751_v29, %v1747_v27  ;;  %v791_v4 = vshrl.u32 %v10407_v50, 16  ;;  %v323_v15 = vld [vmem:[#allocation2 + $0xa4] sm:$0x1]  ;;  %v276_v22 = vld [vmem:[#allocation2 + $0xa8] sm:$0x1]  ;;  %v794_v26 = vshll.u32 %v10407_v50, 16  ;;  %10785 = vmatprep.subr.bf16.mxu1 %v11628_v30 }
  0x7b   : > { %v787_v49 = vor.u32 %v785_v36, %v12560_v41  ;;  %v976_v56 = vsel %vm12313_vm9, %v779_v44, %v975_v37  ;;  %v324_v19 = vsel %vm12288_vm7, 0, %v323_v15  ;;  %v802_v24 = vshll.u32 %v10408_v3, 16  ;;  %v11629_v36 = vld [vmem:[%s13911_s1 + $0x190] sm:$0xff]   ;;  %v11640_v2 = vld [vmem:[%s13911_s1 + $0x1e0] sm:$0xff]   ;;  %v329_v30 = vld [vmem:[#allocation2 + $0xbc] sm:$0x1] }
  0x7c   : > { %4385 = vmatmul.mubr.bf16.gmra.mrb[40].mxu0 %v11599_v23  ;;  %v11605_v43 = vld [vmem:[#allocation2 + $0x8c] ss:$0 sps:$4 sm:$0x11]   ;;  %v11606_v53 = vld [vmem:[#allocation2 + $0x90] sm:$0xff]   ;;  %977 = vst [vmem:[#allocation2 + $0x9c] sm:$0xf] %v976_v56 }
  0x7d   : > { %v11609_v46 = vld [vmem:[#allocation2 + $0x8c] ss:$0 sps:$4 sm:$0x11]   ;;  %v1754_v52 = vshll.u32 %v11605_v43, 16  ;;  %v11610_v58 = vld [vmem:[#allocation2 + $0x90] sm:$0xff]   ;;  %v788_v59 = vsel %vm12295_vm8, %v780_v45, %v787_v49  ;;  %4553 = vmatprep.mubr.bf16.mxu1 %v11606_v53  ;;  %v793_v11 = vrot.slane %v791_v4, 7  ;;  %10786 = vmatpush3.bf16.msra.mxu1 %v11629_v36 }
  0x7e   : > { %v2049_v57 = vrot.slane %v11609_v46, 1  ;;  %978 = vst [vmem:[#allocation2 + $0xa0] sm:$0xf] %v788_v59  ;;  %v1759_v63 = vshrl.u32 %v11610_v58, 16  ;;  %v1761_v0 = vshll.u32 %v11610_v58, 16  ;;  %v11613_v20 = vld [vmem:[#allocation2 + $0x90] sm:$0xff]   ;;  %10787 = vmatprep.subr.bf16.mxu1 %v11630_v40 }
  0x7f   : > { %v1756_v60 = vrot.slane %v1754_v52, 1  ;;  %v11611_v61 = vld [vmem:[#allocation2 + $0x98] ss:$0 sps:$4 sm:$0x11]   ;;  %v11614_v8 = vld [vmem:[#allocation2 + $0x90] sm:$0xfe]   ;;  %v796_v34 = vor.u32 %v794_v26, %v793_v11 }
  0x80   : > { %v2050_v62 = vsel %vm2014_vm10, %v2048_v47, %v2049_v57  ;;  %v1766_v6 = vshll.u32 %v11611_v61, 16  ;;  %v1763_v7 = vrot.slane %v1761_v0, 1  ;;  %v11615_v9 = vld [vmem:[#allocation2 + $0x98] ss:$0 sps:$4 sm:$0x11]   ;;  %v2051_v13 = vrot.slane %v11614_v8, 1 }
  0x81   : > { %v1757_v5 = vsel %vm1613_vm1, %v1752_v51, %v1756_v60  ;;  %v2052_v14 = vrot.slane %v11615_v9, 1  ;;  %325 = vst [vmem:[#allocation2 + $0xa4] sm:$0x1] %v324_v19  ;;  %v799_v23 = vshrl.u32 %v10408_v3, 16  ;;  %v277_v25 = vsel %vm12278_vm4, 0, %v276_v22  ;;  %v467_v46 = vld [vmem:[%s12274_s16 + $0xe0] sm:$0xff] }
  0x82   : > { %4554 = vmatmul.mubr.bf16.gmra.mrb[44].mxu1 %v2050_v62  ;;  %4392 = vmatprep.mubr.bf16.mxu0 %v1757_v5  ;;  %v1768_v10 = vrot.slane %v1766_v6, 1  ;;  %v1764_v12 = vor.u32 %v1763_v7, %v1759_v63  ;;  %278 = vst [vmem:[#allocation2 + $0xa8] sm:$0x1] %v277_v25  ;;  %v797_v28 = vrot.slane %v793_v11, 4  ;;  %v789_v31 = vrot.slane %v12560_v41, 4  ;;  %v468_v47 = vld [vmem:[%s12274_s16 + $0xe8] sm:$0xff] }
  0x83   : > { %v2053_v18 = vsel %vm2014_vm10, %v2051_v13, %v2052_v14  ;;  %v12582_v29 = vrot.slane %v799_v23, 7  ;;  %v326_v41 = vld [vmem:[#allocation2 + $0xb0] sm:$0x1]  ;;  %v279_v45 = vld [vmem:[#allocation2 + $0xb4] sm:$0x1]  ;;  %v10409_v52 = vpack.c.bf16 %v467_v46, %v467_v46  ;;  %v10410_v53 = vpack.c.bf16 %v468_v47, %v468_v47  ;;  %v11638_v61 = vld [vmem:[%s13911_s1 + $0x178] sm:$0xff]  }
  0x84   : > { %4393 = vmatmul.mubr.bf16.gmra.mrb[44].mxu0 %v11607_v54  ;;  %v1769_v16 = vsel %vm1613_vm1, %v1764_v12, %v1768_v10  ;;  %v327_v44 = vsel %vm12288_vm7, 0, %v326_v41  ;;  %v280_v51 = vsel %vm12278_vm4, 0, %v279_v45  ;;  %v11634_v54 = vld [vmem:[%s13911_s1 + $0x198] sm:$0xff]   ;;  %10683 = vmatprep.subr.bf16.mxu0 %v11638_v61  ;;  %v11641_v4 = vld [vmem:[%s13911_s1 + $0x1a0] sm:$0xff]   ;;  %v11642_v10 = vld [vmem:[%s13911_s1 + $0x1e8] sm:$0xff]  }
  0x85   : > { %v11612_v17 = vld [vmem:[#allocation2 + $0x9c] sm:$0xff]   ;;  %4400 = vmatprep.mubr.bf16.mxu0 %v1769_v16  ;;  %v804_v32 = vor.u32 %v802_v24, %v12582_v29  ;;  %v806_v43 = vrot.slane %v12582_v29, 4  ;;  %328 = vst [vmem:[#allocation2 + $0xb0] sm:$0x1] %v327_v44  ;;  %281 = vst [vmem:[#allocation2 + $0xb4] sm:$0x1] %v280_v51  ;;  %10788 = vmatpush3.bf16.msra.mxu1 %v11634_v54 }
  0x86   : > { %v12577_v21 = vld [vmem:[#allocation2 + $0x9c] sm:$0xff]   ;;  %4561 = vmatprep.mubr.bf16.mxu1 %v11612_v17  ;;  %v808_v57 = vshrl.u32 %v10409_v52, 16  ;;  %v811_v58 = vshll.u32 %v10409_v52, 16  ;;  %v816_v59 = vshrl.u32 %v10410_v53, 16  ;;  %v819_v60 = vshll.u32 %v10410_v53, 16  ;;  %10789 = vmatprep.subr.bf16.mxu1 %v11640_v2  ;;  %v469_v12 = vld [vmem:[%s12274_s16 + $0xf0] sm:$0xff] }
  0x87   : > { %v1773_v27 = vshll.u32 %v12577_v21, 16  ;;  %v1771_v33 = vshrl.u32 %v12577_v21, 16  ;;  %v805_v35 = vsel %vm12295_vm8, %v797_v28, %v804_v32  ;;  %v11626_v50 = vld [vmem:[#allocation2 + $0x9c] sm:$0xfe]   ;;  %v10411_v24 = vpack.c.bf16 %v469_v12, %v469_v12  ;;  %v11646_v41 = vld [vmem:[%s13911_s1 + $0x1a8] sm:$0xff]   ;;  %v11650_v45 = vld [vmem:[%s13911_s1 + $0x1f0] sm:$0xff]  }
  0x88   : > { %v979_v37 = vld [vmem:[#allocation2 + $0xa4] sm:$0x1]  ;;  %985 = vst [vmem:[#allocation2 + $0xac] sm:$0xf] %v805_v35  ;;  %v11639_v62 = vld [vmem:[%s13911_s1 + $0x138] sm:$0xff]   ;;  %v810_v63 = vrot.slane %v808_v57, 7 }
  0x89   : > { %v1775_v38 = vrot.slane %v1773_v27, 1  ;;  %v980_v42 = vsel %vm12278_vm4, %v789_v31, %v979_v37  ;;  %v982_v49 = vld [vmem:[#allocation2 + $0xa8] sm:$0xf]  ;;  %v12618_v0 = vrot.slane %v816_v59, 7  ;;  %10684 = vmatpush3.bf16.msra.mxu0 %v11639_v62  ;;  %v2054_v5 = vrot.slane %v11626_v50, 1  ;;  %10790 = vmatpush3.bf16.msra.mxu1 %v11641_v4  ;;  %v11625_v22 = vld [vmem:[#allocation2 + $0x9c] sm:$0xff]  }
  0x8a   : > { %4562 = vmatmul.mubr.bf16.gmra.mrb[48].mxu1 %v2053_v18  ;;  %981 = vst [vmem:[#allocation2 + $0xa4] sm:$0x1] %v980_v42  ;;  %v983_v56 = vsel %vm12313_vm9, %v796_v34, %v982_v49  ;;  %v814_v6 = vrot.slane %v810_v63, 4  ;;  %v813_v9 = vor.u32 %v811_v58, %v810_v63  ;;  %10791 = vmatprep.subr.bf16.mxu1 %v11642_v10  ;;  %v282_v34 = vld [vmem:[#allocation2 + $0xc0] sm:$0x1]  ;;  %v470_v35 = vld [vmem:[%s12274_s16 + $0xf8] sm:$0xff] }
  0x8b   : > { %984 = vst [vmem:[#allocation2 + $0xa8] sm:$0xf] %v983_v56  ;;  %v821_v7 = vor.u32 %v819_v60, %v12618_v0  ;;  %v1776_v13 = vor.u32 %v1775_v38, %v1771_v33  ;;  %v823_v27 = vrot.slane %v12618_v0, 4  ;;  %v330_v33 = vsel %vm12288_vm7, 0, %v329_v30  ;;  %v11651_v47 = vld [vmem:[%s13911_s1 + $0x1b0] sm:$0xff]   ;;  %v11652_v10 = vld [vmem:[%s13911_s1 + $0x1f8] sm:$0xff]  }
  0x8c   : > { %4401 = vmatmul.mubr.bf16.gmra.mrb[48].mxu0 %v11613_v20  ;;  %v986_v16 = vld [vmem:[#allocation2 + $0xb0] sm:$0x1]  ;;  %v989_v20 = vld [vmem:[#allocation2 + $0xb4] sm:$0xf]  ;;  %331 = vst [vmem:[#allocation2 + $0xbc] sm:$0x1] %v330_v33  ;;  %v10412_v37 = vpack.c.bf16 %v470_v35, %v470_v35 }
  0x8d   : > { %v822_v11 = vsel %vm12295_vm8, %v814_v6, %v821_v7  ;;  %v987_v18 = vsel %vm12278_vm4, %v806_v43, %v986_v16  ;;  %v990_v23 = vsel %vm12313_vm9, %v813_v9, %v989_v20  ;;  %v283_v36 = vsel %vm12278_vm4, 0, %v282_v34  ;;  %10792 = vmatpush3.bf16.msra.mxu1 %v11646_v41  ;;  %v11655_v12 = vld [vmem:[%s13911_s1 + $0x1b8] sm:$0xff]   ;;  %v11654_v16 = vld [vmem:[#allocation2 + $0x14] ss:$0 sps:$4 sm:$0x11]  }
  0x8e   : > { %992 = vst [vmem:[#allocation2 + $0xb8] sm:$0xf] %v822_v11  ;;  %988 = vst [vmem:[#allocation2 + $0xb0] sm:$0x1] %v987_v18  ;;  %v825_v38 = vshrl.u32 %v10411_v24, 16  ;;  %v828_v40 = vshll.u32 %v10411_v24, 16  ;;  %10793 = vmatprep.subr.bf16.mxu1 %v11650_v45 }
  0x8f   : > { %991 = vst [vmem:[#allocation2 + $0xb4] sm:$0xf] %v990_v23  ;;  %284 = vst [vmem:[#allocation2 + $0xc0] sm:$0x1] %v283_v36  ;;  %v833_v44 = vshrl.u32 %v10412_v37, 16  ;;  %v836_v50 = vshll.u32 %v10412_v37, 16 }
  0x90   : > { %v827_v43 = vrot.slane %v825_v38, 7  ;;  %v11660_v36 = vld [vmem:[#allocation2 + $0x20] ss:$0 sps:$4 sm:$0x11]   ;;  %v11662_v45 = vld [vmem:[#allocation2 + $0x18] sm:$0xfe]  }
  0x91   : > { %v11622_v8 = vld [vmem:[#allocation2 + $0xa4] ss:$0 sps:$4 sm:$0x11]   ;;  %v12654_v59 = vrot.slane %v833_v44, 7  ;;  %10794 = vmatpush3.bf16.msra.mxu1 %v11651_v47 }
  0x92   : > { %v11627_v3 = vld [vmem:[#allocation2 + $0xa4] ss:$0 sps:$4 sm:$0x11]   ;;  %v1778_v14 = vshll.u32 %v11622_v8, 16  ;;  %v11623_v15 = vld [vmem:[#allocation2 + $0xa8] sm:$0xff]   ;;  %v830_v54 = vor.u32 %v828_v40, %v827_v43  ;;  %v831_v58 = vrot.slane %v827_v43, 4  ;;  %10795 = vmatprep.subr.bf16.mxu1 %v11652_v10 }
  0x93   : > { %v2055_v17 = vrot.slane %v11627_v3, 1  ;;  %v11631_v19 = vld [vmem:[#allocation2 + $0xa8] sm:$0xff]   ;;  %4569 = vmatprep.mubr.bf16.mxu1 %v11623_v15  ;;  %v993_v62 = vld [vmem:[#allocation2 + $0xbc] sm:$0x1]  ;;  %v838_v2 = vor.u32 %v836_v50, %v12654_v59 }
  0x94   : > { %v1780_v21 = vrot.slane %v1778_v14, 1  ;;  %v1785_v26 = vshll.u32 %v11631_v19, 16  ;;  %v11636_v28 = vld [vmem:[#allocation2 + $0xa8] sm:$0xfe]   ;;  %v1783_v31 = vshrl.u32 %v11631_v19, 16  ;;  %v994_v63 = vsel %vm12278_vm4, %v823_v27, %v993_v62  ;;  %v11658_v27 = vld [vmem:[%s13911_s1 + $0x200] sm:$0xff]  }
  0x95   : > { %v2056_v25 = vsel %vm2014_vm10, %v2054_v5, %v2055_v17  ;;  %v2057_v42 = vrot.slane %v11636_v28, 1  ;;  %v11632_v46 = vld [vmem:[#allocation2 + $0xb0] ss:$0 sps:$4 sm:$0x11]   ;;  %v11635_v56 = vld [vmem:[#allocation2 + $0xa8] sm:$0xff]   ;;  %v839_v11 = vsel %vm12295_vm8, %v831_v58, %v838_v2  ;;  %10796 = vmatpush3.bf16.msra.mxu1 %v11655_v12  ;;  %11389 = vmatprep.subr.bf16.mxu0 %v11658_v27 }
  0x96   : > { %v1781_v29 = vsel %vm1613_vm1, %v1776_v13, %v1780_v21  ;;  %4570 = vmatmul.mubr.bf16.gmra.mrb[52].mxu1 %v2056_v25  ;;  %v1787_v32 = vrot.slane %v1785_v26, 1  ;;  %v11633_v49 = vld [vmem:[#allocation2 + $0xb4] sm:$0xff]   ;;  %v1790_v52 = vshll.u32 %v11632_v46, 16  ;;  %v11637_v53 = vld [vmem:[#allocation2 + $0xb0] ss:$0 sps:$4 sm:$0x11]  }
  0x97   : > { %4408 = vmatprep.mubr.bf16.mxu0 %v1781_v29  ;;  %4577 = vmatprep.mubr.bf16.mxu1 %v11633_v49  ;;  %v11643_v57 = vld [vmem:[#allocation2 + $0xb4] sm:$0xff]   ;;  %v2058_v61 = vrot.slane %v11637_v53, 1  ;;  %v996_v4 = vld [vmem:[#allocation2 + $0xc0] sm:$0xf]  ;;  %995 = vst [vmem:[#allocation2 + $0xbc] sm:$0x1] %v994_v63 }
  0x98   : > { %4409 = vmatmul.mubr.bf16.gmra.mrb[52].mxu0 %v11625_v22  ;;  %v1788_v51 = vor.u32 %v1787_v32, %v1783_v31  ;;  %v1792_v60 = vrot.slane %v1790_v52, 1  ;;  %v1797_v0 = vshll.u32 %v11643_v57, 16  ;;  %v1795_v7 = vshrl.u32 %v11643_v57, 16  ;;  %v11648_v9 = vld [vmem:[#allocation2 + $0xb4] sm:$0xfe]   ;;  %v11656_v14 = vld [vmem:[#allocation2 + $0xc] sm:$0xff]  }
  0x99   : > { %v2059_v6 = vsel %vm2014_vm10, %v2057_v42, %v2058_v61  ;;  %v997_v8 = vsel %vm12313_vm9, %v830_v54, %v996_v4  ;;  %999 = vst [vmem:[#allocation2 + $0xc4] sm:$0xf] %v839_v11  ;;  %v2060_v13 = vrot.slane %v11648_v9, 1  ;;  %v11653_v15 = vld [vmem:[#allocation2 + $0xc] sm:$0xfe]   ;;  %v2416_v17 = vshrl.u32 %v11656_v14, 16 }
  0x9a   : > { %v1793_v5 = vsel %vm1613_vm1, %v1788_v51, %v1792_v60  ;;  %v1799_v3 = vrot.slane %v1797_v0, 1  ;;  %998 = vst [vmem:[#allocation2 + $0xc0] sm:$0xf] %v997_v8  ;;  %v2815_v18 = vrot.slane %v11653_v15, 1  ;;  %v2418_v19 = vshll.u32 %v11656_v14, 16  ;;  %v11647_v25 = vld [vmem:[#allocation2 + $0xb4] sm:$0xff]  }
  0x9b   : > { %4416 = vmatprep.mubr.bf16.mxu0 %v1793_v5  ;;  %v2816_v21 = vrot.slane %v11654_v16, 1  ;;  %v11657_v29 = vld [vmem:[#allocation2 + $0x14] ss:$0 sps:$4 sm:$0x11]   ;;  %v11659_v31 = vld [vmem:[#allocation2 + $0x18] sm:$0xff]   ;;  %v3224_v42 = vshll.u32 %v11660_v36, 16 }
  0x9c   : > { %v1800_v22 = vor.u32 %v1799_v3, %v1795_v7  ;;  %v2420_v26 = vrot.slane %v2418_v19, 1  ;;  %v2423_v33 = vshll.u32 %v11657_v29, 16  ;;  %v3217_v38 = vshrl.u32 %v11659_v31, 16  ;;  %v11664_v46 = vld [vmem:[#allocation2 + $0x18] sm:$0xff]   ;;  %v11666_v58 = vld [vmem:[#allocation2 + $0x24] sm:$0xff]  }
  0x9d   : > { %v2817_v35 = vsel %vm2014_vm10, %v2815_v18, %v2816_v21  ;;  %v3219_v40 = vshll.u32 %v11659_v31, 16  ;;  %v3226_v47 = vrot.slane %v3224_v42, 1  ;;  %v11661_v49 = vld [vmem:[#allocation2 + $0x18] sm:$0xff]   ;;  %v11663_v50 = vld [vmem:[#allocation2 + $0x20] ss:$0 sps:$4 sm:$0x11]  }
  0x9e   : > { %4578 = vmatmul.mubr.bf16.gmra.mrb[56].mxu1 %v2059_v6  ;;  %v11644_v20 = vld [vmem:[#allocation2 + $0xbc] ss:$0 sps:$4 sm:$0x11]   ;;  %v2425_v41 = vrot.slane %v2423_v33, 1  ;;  %v2421_v43 = vor.u32 %v2420_v26, %v2416_v17  ;;  %v2818_v52 = vrot.slane %v11662_v45, 1  ;;  %v2428_v53 = vshrl.u32 %v11664_v46, 16 }
  0x9f   : > { %v1802_v23 = vshll.u32 %v11644_v20, 16  ;;  %v11649_v28 = vld [vmem:[#allocation2 + $0xbc] ss:$0 sps:$4 sm:$0x11]   ;;  %v3221_v44 = vrot.slane %v3219_v40, 1  ;;  %v2819_v54 = vrot.slane %v11663_v50, 1 }
  0xa0   : > { %4417 = vmatmul.mubr.bf16.gmra.mrb[56].mxu0 %v11635_v56  ;;  %v2061_v32 = vrot.slane %v11649_v28, 1  ;;  %v11665_v56 = vld [vmem:[#allocation2 + $0x20] ss:$0 sps:$4 sm:$0x11]   ;;  %v2430_v57 = vshll.u32 %v11664_v46, 16  ;;  %v2426_v60 = vsel %vm1613_vm1, %v2421_v43, %v2425_v41  ;;  %v3229_v4 = vshrl.u32 %v11666_v58, 16 }
  0xa1   : > { %v11645_v24 = vld [vmem:[#allocation2 + $0xc0] sm:$0xff]   ;;  %v1804_v30 = vrot.slane %v1802_v23, 1  ;;  %v3222_v51 = vor.u32 %v3221_v44, %v3217_v38  ;;  %v2820_v62 = vsel %vm2014_vm10, %v2818_v52, %v2819_v54  ;;  %v2435_v0 = vshll.u32 %v11665_v56, 16  ;;  %v11667_v2 = vld [vmem:[#allocation2 + $0x2c] ss:$0 sps:$4 sm:$0x11]  }
  0xa2   : > { %4585 = vmatprep.mubr.bf16.mxu1 %v11645_v24  ;;  %v2062_v37 = vsel %vm2014_vm10, %v2060_v13, %v2061_v32  ;;  %v2432_v63 = vrot.slane %v2430_v57, 1  ;;  %v3231_v5 = vshll.u32 %v11666_v58, 16  ;;  %v3236_v7 = vshll.u32 %v11667_v2, 16  ;;  %v11669_v10 = vld [vmem:[#allocation2 + $0x24] sm:$0xfe]   ;;  %v11674_v26 = vld [vmem:[#allocation2 + $0x30] sm:$0xff]  }
  0xa3   : > { %v1805_v34 = vsel %vm1613_vm1, %v1800_v22, %v1804_v30  ;;  %v3227_v61 = vsel %vm1613_vm1, %v3222_v51, %v3226_v47  ;;  %v2437_v6 = vrot.slane %v2435_v0, 1  ;;  %v11671_v3 = vld [vmem:[#allocation2 + $0x24] sm:$0xff]   ;;  %v11670_v13 = vld [vmem:[#allocation2 + $0x2c] ss:$0 sps:$4 sm:$0x11]   ;;  %v2821_v15 = vrot.slane %v11669_v10, 1 }
  0xa4   : > { %4424 = vmatprep.mubr.bf16.mxu0 %v1805_v34  ;;  %v2433_v8 = vor.u32 %v2432_v63, %v2428_v53  ;;  %v3233_v9 = vrot.slane %v3231_v5, 1  ;;  %v3238_v11 = vrot.slane %v3236_v7, 1  ;;  %v11668_v12 = vld [vmem:[#allocation2 + $0x24] sm:$0xff]   ;;  %v2440_v16 = vshrl.u32 %v11671_v3, 16  ;;  %v11679_v33 = vld [vmem:[#allocation2 + $0x30] sm:$0xff]   ;;  %v11686_v57 = vld [vmem:[#allocation2 + $0x3c] sm:$0xff]  }
  0xa5   : > { %v2822_v17 = vrot.slane %v11670_v13, 1  ;;  %v11672_v18 = vld [vmem:[#allocation2 + $0x2c] ss:$0 sps:$4 sm:$0x11]   ;;  %v2442_v19 = vshll.u32 %v11671_v3, 16  ;;  %v3241_v30 = vshrl.u32 %v11674_v26, 16 }
  0xa6   : > { %4586 = vmatmul.mubr.bf16.gmra.mrb[60].mxu1 %v2062_v37  ;;  %v3234_v14 = vor.u32 %v3233_v9, %v3229_v4  ;;  %v11673_v20 = vld [vmem:[%s13911_s1 + $0x208] sm:$0xff]   ;;  %v2438_v21 = vsel %vm1613_vm1, %v2433_v8, %v2437_v6  ;;  %v3243_v31 = vshll.u32 %v11674_v26, 16  ;;  %v11677_v34 = vld [vmem:[#allocation2 + $0x30] sm:$0xfe]   ;;  %v2452_v40 = vshrl.u32 %v11679_v33, 16  ;;  %v11683_v4 = vld [vmem:[#allocation2 + $0x3c] sm:$0xff]  }
  0xa7   : > { %4787 = vmatprep.mubr.bf16.mxu1 %v3227_v61  ;;  %v2823_v23 = vsel %vm2014_vm10, %v2821_v15, %v2822_v17  ;;  %v2444_v24 = vrot.slane %v2442_v19, 1  ;;  %v11676_v37 = vld [vmem:[#allocation2 + $0x30] sm:$0xff]   ;;  %v11678_v38 = vld [vmem:[#allocation2 + $0x38] ss:$0 sps:$4 sm:$0x11]   ;;  %v2824_v41 = vrot.slane %v11677_v34, 1 }
  0xa8   : > { %4425 = vmatmul.mubr.bf16.gmra.mrb[60].mxu0 %v11647_v25  ;;  %v3239_v22 = vsel %vm1613_vm1, %v3234_v14, %v3238_v11  ;;  %v2447_v25 = vshll.u32 %v11672_v18, 16  ;;  %v2454_v42 = vshll.u32 %v11679_v33, 16  ;;  %v2825_v45 = vrot.slane %v11678_v38, 1  ;;  %v11680_v46 = vld [vmem:[#allocation2 + $0x38] ss:$0 sps:$4 sm:$0x11]  }
  0xa9   : > { %4626 = vmatprep.mubr.bf16.mxu0 %v2817_v35  ;;  %v2445_v29 = vor.u32 %v2444_v24, %v2440_v16  ;;  %v3245_v35 = vrot.slane %v3243_v31, 1  ;;  %v2459_v52 = vshll.u32 %v11680_v46, 16  ;;  %v11682_v53 = vld [vmem:[#allocation2 + $0x44] ss:$0 sps:$4 sm:$0x11]   ;;  %v2464_v0 = vshrl.u32 %v11686_v57, 16 }
  0xaa   : > { %v2449_v28 = vrot.slane %v2447_v25, 1  ;;  %v2456_v47 = vrot.slane %v2454_v42, 1  ;;  %v2826_v51 = vsel %vm2014_vm10, %v2824_v41, %v2825_v45  ;;  %v3260_v61 = vshll.u32 %v11682_v53, 16  ;;  %v11684_v63 = vld [vmem:[#allocation2 + $0x3c] sm:$0xfe]   ;;  %v11688_v13 = vld [vmem:[%s13911_s1 + $0x210] sm:$0xff]  }
  0xab   : > { %v3246_v44 = vor.u32 %v3245_v35, %v3241_v30  ;;  %v11685_v5 = vld [vmem:[#allocation2 + $0x44] ss:$0 sps:$4 sm:$0x11]   ;;  %v2827_v7 = vrot.slane %v11684_v63, 1  ;;  %v2466_v8 = vshll.u32 %v11686_v57, 16  ;;  %v11689_v16 = vld [vmem:[#allocation2 + $0x48] sm:$0xff]  }
  0xac   : > { %v2450_v43 = vsel %vm1613_vm1, %v2445_v29, %v2449_v28  ;;  %v2457_v58 = vor.u32 %v2456_v47, %v2452_v40  ;;  %v3262_v2 = vrot.slane %v3260_v61, 1  ;;  %v2828_v10 = vrot.slane %v11685_v5, 1  ;;  %v11687_v3 = vld [vmem:[#allocation2 + $0x44] ss:$0 sps:$4 sm:$0x11]   ;;  %v11696_v24 = vld [vmem:[#allocation2 + $0x54] sm:$0xff]  }
  0xad   : > { %v2471_v15 = vshll.u32 %v11687_v3, 16  ;;  %v11690_v17 = vld [vmem:[#allocation2 + $0x50] ss:$0 sps:$4 sm:$0x11]   ;;  %v11691_v26 = vld [vmem:[#allocation2 + $0x48] sm:$0xff]   ;;  %v11704_v5 = vld [vmem:[#allocation2 + $0x60] sm:$0xff]  }
  0xae   : > { %4788 = vmatmul.mubr.bf16.vlgmr.msra.gmra.mrb[64].mxu1 %v11661_v49  ;;  %v11681_v49 = vld [vmem:[#allocation2 + $0x3c] sm:$0xff]   ;;  %v2829_v14 = vsel %vm2014_vm10, %v2827_v7, %v2828_v10  ;;  %v11693_v30 = vld [vmem:[#allocation2 + $0x50] ss:$0 sps:$4 sm:$0x11]   ;;  %v3289_v10 = vshrl.u32 %v11704_v5, 16  ;;  %v3291_v3 = vshll.u32 %v11704_v5, 16 }
  0xaf   : > { %4795 = vmatprep.mubr.bf16.mxu1 %v3239_v22  ;;  %v3253_v54 = vshrl.u32 %v11681_v49, 16  ;;  %v3255_v56 = vshll.u32 %v11681_v49, 16  ;;  %v2473_v19 = vrot.slane %v2471_v15, 1  ;;  %v11694_v22 = vld [vmem:[#allocation2 + $0x48] sm:$0xff]   ;;  %v2831_v35 = vrot.slane %v11693_v30, 1 }
  0xb0   : > { %4627 = vmatmul.mubr.bf16.vlgmr.msra.gmra.mrb[64].mxu0 %v2426_v60  ;;  %v2461_v60 = vrot.slane %v2459_v52, 1  ;;  %v2476_v28 = vshrl.u32 %v11694_v22, 16  ;;  %v2478_v34 = vshll.u32 %v11694_v22, 16  ;;  %v11697_v42 = vld [vmem:[#allocation2 + $0x5c] ss:$0 sps:$4 sm:$0x11]  }
  0xb1   : > { %11390 = vmatpush3.bf16.msra.mxu0 %v11658_v27  ;;  %4634 = vmatprep.mubr.bf16.mxu0 %v2820_v62  ;;  %v11675_v27 = vld [vmem:[#allocation2 + $0x38] ss:$0 sps:$4 sm:$0x11]   ;;  %v3257_v62 = vrot.slane %v3255_v56, 1  ;;  %v3284_v49 = vshll.u32 %v11697_v42, 16 }
  0xb2   : > { %11391 = vmatprep.subr.bf16.mxu0 %v11673_v20  ;;  %v3248_v32 = vshll.u32 %v11675_v27, 16  ;;  %v2462_v9 = vsel %vm1613_vm1, %v2457_v58, %v2461_v60  ;;  %v11692_v27 = vld [vmem:[#allocation2 + $0x48] sm:$0xfe]   ;;  %v2480_v38 = vrot.slane %v2478_v34, 1  ;;  %v11699_v52 = vld [vmem:[#allocation2 + $0x54] sm:$0xfe]  }
  0xb3   : > { %v3258_v6 = vor.u32 %v3257_v62, %v3253_v54  ;;  %v2830_v33 = vrot.slane %v11692_v27, 1  ;;  %v3286_v54 = vrot.slane %v3284_v49, 1  ;;  %v11700_v56 = vld [vmem:[#allocation2 + $0x5c] ss:$0 sps:$4 sm:$0x11]   ;;  %v2833_v58 = vrot.slane %v11699_v52, 1 }
  0xb4   : > { %v3250_v36 = vrot.slane %v3248_v32, 1  ;;  %v2481_v45 = vor.u32 %v2480_v38, %v2476_v28  ;;  %v11702_v60 = vld [vmem:[#allocation2 + $0x5c] ss:$0 sps:$4 sm:$0x11]   ;;  %v2834_v62 = vrot.slane %v11700_v56, 1  ;;  %v11713_v38 = vld [vmem:[#allocation2 + $0x6c] sm:$0xff]  }
  0xb5   : > { %11392 = vmatpush3.bf16.msra.mxu0 %v11673_v20  ;;  %v3263_v11 = vsel %vm1613_vm1, %v3258_v6, %v3262_v2  ;;  %v3265_v20 = vshrl.u32 %v11689_v16, 16  ;;  %v2832_v40 = vsel %vm2014_vm10, %v2830_v33, %v2831_v35  ;;  %v11703_v2 = vld [vmem:[%s13911_s1 + $0x218] sm:$0xff]   ;;  %v11707_v15 = vld [vmem:[#allocation2 + $0x60] sm:$0xfe]  }
  0xb6   : > { %4796 = vmatmul.mubr.bf16.gmra.mrb[68].mxu1 %v11668_v12  ;;  %v3251_v50 = vsel %vm1613_vm1, %v3246_v44, %v3250_v36  ;;  %v2468_v12 = vrot.slane %v2466_v8, 1  ;;  %11393 = vmatprep.subr.bf16.mxu0 %v11688_v13  ;;  %v11695_v36 = vld [vmem:[#allocation2 + $0x50] ss:$0 sps:$4 sm:$0x11]   ;;  %v3279_v44 = vshll.u32 %v11696_v24, 16  ;;  %v2835_v6 = vsel %vm2014_vm10, %v2833_v58, %v2834_v62 }
  0xb7   : > { %4803 = vmatprep.mubr.bf16.mxu1 %v3251_v50  ;;  %v2483_v41 = vshll.u32 %v11695_v36, 16  ;;  %v11701_v50 = vld [vmem:[#allocation2 + $0x54] sm:$0xff]   ;;  %v2836_v22 = vrot.slane %v11707_v15, 1  ;;  %v11710_v27 = vld [vmem:[#allocation2 + $0x68] ss:$0 sps:$4 sm:$0x11]  }
  0xb8   : > { %4635 = vmatmul.mubr.bf16.gmra.mrb[68].mxu0 %v2438_v21  ;;  %v2469_v18 = vor.u32 %v2468_v12, %v2464_v0  ;;  %v3267_v21 = vshll.u32 %v11689_v16, 16  ;;  %v3281_v47 = vrot.slane %v3279_v44, 1  ;;  %v2488_v63 = vshrl.u32 %v11701_v50, 16  ;;  %v11708_v16 = vld [vmem:[#allocation2 + $0x68] ss:$0 sps:$4 sm:$0x11]  }
  0xb9   : > { %4642 = vmatprep.mubr.bf16.mxu0 %v2823_v23  ;;  %v3272_v23 = vshll.u32 %v11690_v17, 16  ;;  %11394 = vmatpush3.bf16.msra.mxu0 %v11688_v13  ;;  %v2485_v46 = vrot.slane %v2483_v41, 1  ;;  %v2490_v0 = vshll.u32 %v11701_v50, 16  ;;  %v3293_v12 = vrot.slane %v3291_v3, 1  ;;  %v11709_v17 = vld [vmem:[#allocation2 + $0x60] sm:$0xff]  }
  0xba   : > { %v3269_v25 = vrot.slane %v3267_v21, 1  ;;  %v2474_v31 = vsel %vm1613_vm1, %v2469_v18, %v2473_v19  ;;  %11395 = vmatprep.subr.bf16.mxu0 %v11703_v2  ;;  %v11711_v21 = vld [vmem:[#allocation2 + $0x6c] sm:$0xff]   ;;  %v11712_v33 = vld [vmem:[#allocation2 + $0x74] ss:$0 sps:$4 sm:$0x11]  }
  0xbb   : > { %v3274_v29 = vrot.slane %v3272_v23, 1  ;;  %v2486_v57 = vsel %vm1613_vm1, %v2481_v45, %v2485_v46  ;;  %v2492_v7 = vrot.slane %v2490_v0, 1  ;;  %v3294_v19 = vor.u32 %v3293_v12, %v3289_v10  ;;  %v11714_v41 = vld [vmem:[#allocation2 + $0x6c] sm:$0xfe]   ;;  %v11718_v46 = vld [vmem:[%s13911_s1 + $0x220] sm:$0xff]  }
  0xbc   : > { %v3270_v32 = vor.u32 %v3269_v25, %v3265_v20  ;;  %v2837_v23 = vrot.slane %v11708_v16, 1  ;;  %v2502_v25 = vshll.u32 %v11709_v17, 16  ;;  %v3301_v28 = vshrl.u32 %v11711_v21, 16  ;;  %v11715_v42 = vld [vmem:[#allocation2 + $0x74] ss:$0 sps:$4 sm:$0x11]  }
  0xbd   : > { %11396 = vmatpush3.bf16.msra.mxu0 %v11703_v2  ;;  %v2840_v49 = vrot.slane %v11715_v42, 1  ;;  %v11720_v62 = vld [vmem:[#allocation2 + $0x80] ss:$0 sps:$4 sm:$0x11]   ;;  %v11724_v2 = vld [vmem:[#allocation2 + $0x78] sm:$0xff]  }
  0xbe   : > { %4804 = vmatmul.mubr.bf16.gmra.mrb[72].mxu1 %v11676_v37  ;;  %v3275_v37 = vsel %vm1613_vm1, %v3270_v32, %v3274_v29  ;;  %v2838_v29 = vsel %vm2014_vm10, %v2836_v22, %v2837_v23  ;;  %v2504_v30 = vrot.slane %v2502_v25, 1  ;;  %v2507_v32 = vshll.u32 %v11710_v27, 16  ;;  %11397 = vmatprep.subr.bf16.mxu0 %v11718_v46  ;;  %v11725_v16 = vld [vmem:[#allocation2 + $0x80] ss:$0 sps:$4 sm:$0x11]  }
  0xbf   : > { %4811 = vmatprep.mubr.bf16.mxu1 %v3263_v11  ;;  %v2493_v11 = vor.u32 %v2492_v7, %v2488_v63  ;;  %v3320_v5 = vshll.u32 %v11720_v62, 16  ;;  %v2524_v10 = vshrl.u32 %v11724_v2, 16  ;;  %v2526_v12 = vshll.u32 %v11724_v2, 16  ;;  %v11739_v62 = vld [vmem:[#allocation2 + $0x90] sm:$0xff]  }
  0xc0   : > { %4643 = vmatmul.mubr.bf16.gmra.mrb[72].mxu0 %v2450_v43  ;;  %v3277_v43 = vshrl.u32 %v11696_v24, 16  ;;  %v2500_v24 = vshrl.u32 %v11709_v17, 16  ;;  %v2509_v36 = vrot.slane %v2507_v32, 1  ;;  %v2531_v22 = vshll.u32 %v11725_v16, 16  ;;  %v11729_v32 = vld [vmem:[#allocation2 + $0x84] sm:$0xfe]  }
  0xc1   : > { %4650 = vmatprep.mubr.bf16.mxu0 %v2826_v51  ;;  %v11698_v51 = vld [vmem:[#allocation2 + $0x54] sm:$0xff]   ;;  %11398 = vmatpush3.bf16.msra.mxu0 %v11718_v46  ;;  %v2528_v17 = vrot.slane %v2526_v12, 1 }
  0xc2   : > { %v3282_v53 = vor.u32 %v3281_v47, %v3277_v43  ;;  %v2505_v34 = vor.u32 %v2504_v30, %v2500_v24  ;;  %v11716_v43 = vld [vmem:[#allocation2 + $0x6c] sm:$0xff]   ;;  %v2839_v47 = vrot.slane %v11714_v41, 1  ;;  %v2533_v27 = vrot.slane %v2531_v22, 1 }
  0xc3   : > { %v2512_v50 = vshrl.u32 %v11716_v43, 16 }
  0xc4   : > { %v3287_v61 = vsel %vm1613_vm1, %v3282_v53, %v3286_v54  ;;  %v2510_v44 = vsel %vm1613_vm1, %v2505_v34, %v2509_v36  ;;  %v11717_v53 = vld [vmem:[#allocation2 + $0x74] ss:$0 sps:$4 sm:$0x11]   ;;  %v11719_v54 = vld [vmem:[#allocation2 + $0x78] sm:$0xff]   ;;  %v2841_v56 = vsel %vm2014_vm10, %v2839_v47, %v2840_v49 }
  0xc5   : > { %v2519_v58 = vshll.u32 %v11717_v53, 16  ;;  %v3315_v63 = vshll.u32 %v11719_v54, 16  ;;  %v11730_v34 = vld [vmem:[#allocation2 + $0x8c] ss:$0 sps:$4 sm:$0x11]  }
  0xc6   : > { %4812 = vmatmul.mubr.bf16.gmra.mrb[76].mxu1 %v11683_v4  ;;  %v2495_v4 = vshll.u32 %v11702_v60, 16  ;;  %v3313_v60 = vshrl.u32 %v11719_v54, 16  ;;  %v11735_v47 = vld [vmem:[#allocation2 + $0x98] ss:$0 sps:$4 sm:$0x11]  }
  0xc7   : > { %4819 = vmatprep.mubr.bf16.mxu1 %v3275_v37  ;;  %v3308_v37 = vshll.u32 %v11712_v33, 16  ;;  %v2521_v0 = vrot.slane %v2519_v58, 1  ;;  %v3344_v53 = vshll.u32 %v11735_v47, 16  ;;  %v11736_v58 = vld [vmem:[#allocation2 + $0x90] sm:$0xff]  }
  0xc8   : > { %4651 = vmatmul.mubr.bf16.gmra.mrb[76].mxu0 %v2462_v9  ;;  %v2497_v8 = vrot.slane %v2495_v4, 1  ;;  %v11705_v9 = vld [vmem:[#allocation2 + $0x68] ss:$0 sps:$4 sm:$0x11]   ;;  %v3317_v4 = vrot.slane %v3315_v63, 1 }
  0xc9   : > { %4658 = vmatprep.mubr.bf16.mxu0 %v2829_v14  ;;  %v3296_v13 = vshll.u32 %v11705_v9, 16  ;;  %v11706_v14 = vld [vmem:[#allocation2 + $0x60] sm:$0xff]   ;;  %v3310_v45 = vrot.slane %v3308_v37, 1  ;;  %v2845_v37 = vrot.slane %v11729_v32, 1 }
  0xca   : > { %v2498_v18 = vsel %vm1613_vm1, %v2493_v11, %v2497_v8  ;;  %v11722_v8 = vld [vmem:[#allocation2 + $0x78] sm:$0xfe]   ;;  %v11723_v9 = vld [vmem:[#allocation2 + $0x80] ss:$0 sps:$4 sm:$0x11]   ;;  %v3318_v3 = vor.u32 %v3317_v4, %v3313_v60  ;;  %v3322_v11 = vrot.slane %v3320_v5, 1 }
  0xcb   : > { %v3298_v20 = vrot.slane %v3296_v13, 1  ;;  %v2842_v13 = vrot.slane %v11722_v8, 1 }
  0xcc   : > { %v3323_v15 = vsel %vm1613_vm1, %v3318_v3, %v3322_v11  ;;  %v11737_v3 = vld [vmem:[#allocation2 + $0x90] sm:$0xfe]  }
  0xce   : > { %4820 = vmatmul.mubr.bf16.gmra.mrb[80].mxu1 %v11691_v26  ;;  %v3299_v26 = vsel %vm1613_vm1, %v3294_v19, %v3298_v20  ;;  %v11726_v19 = vld [vmem:[#allocation2 + $0x84] sm:$0xff]   ;;  %v11727_v20 = vld [vmem:[#allocation2 + $0x8c] ss:$0 sps:$4 sm:$0x11]  }
  0xcf   : > { %4827 = vmatprep.mubr.bf16.mxu1 %v3287_v61  ;;  %v3325_v23 = vshrl.u32 %v11726_v19, 16  ;;  %v3327_v24 = vshll.u32 %v11726_v19, 16  ;;  %v3332_v25 = vshll.u32 %v11727_v20, 16  ;;  %v11740_v20 = vld [vmem:[#allocation2 + $0x98] ss:$0 sps:$4 sm:$0x11]  }
  0xd0   : > { %4659 = vmatmul.mubr.bf16.gmra.mrb[80].mxu0 %v2474_v31  ;;  %v3303_v31 = vshll.u32 %v11711_v21, 16  ;;  %v2529_v21 = vor.u32 %v2528_v17, %v2524_v10  ;;  %v2848_v17 = vrot.slane %v11737_v3, 1 }
  0xd1   : > { %4666 = vmatprep.mubr.bf16.mxu0 %v2832_v40  ;;  %v3334_v30 = vrot.slane %v3332_v25, 1  ;;  %v2555_v25 = vshll.u32 %v11740_v20, 16 }
  0xd2   : > { %v3305_v35 = vrot.slane %v3303_v31, 1  ;;  %v11728_v31 = vld [vmem:[#allocation2 + $0x84] sm:$0xff]   ;;  %v2534_v33 = vsel %vm1613_vm1, %v2529_v21, %v2533_v27 }
  0xd3   : > { %v2557_v32 = vrot.slane %v2555_v25, 1 }
  0xd4   : > { %v3306_v40 = vor.u32 %v3305_v35, %v3301_v28  ;;  %v11733_v28 = vld [vmem:[%s13911_s1 + $0x228] sm:$0xff]  }
  0xd5   : > { %11399 = vmatprep.subr.bf16.mxu0 %v11733_v28 }
  0xd6   : > { %4828 = vmatmul.mubr.bf16.gmra.mrb[84].mxu1 %v11698_v51  ;;  %v2514_v51 = vshll.u32 %v11716_v43, 16  ;;  %v3311_v52 = vsel %vm1613_vm1, %v3306_v40, %v3310_v45  ;;  %11400 = vmatpush3.bf16.msra.mxu0 %v11733_v28  ;;  %v2846_v40 = vrot.slane %v11730_v34, 1 }
  0xd7   : > { %4835 = vmatprep.mubr.bf16.mxu1 %v3299_v26  ;;  %v11731_v26 = vld [vmem:[#allocation2 + $0x84] sm:$0xff]  }
  0xd8   : > { %4667 = vmatmul.mubr.bf16.gmra.mrb[84].mxu0 %v2486_v57  ;;  %v2516_v57 = vrot.slane %v2514_v51, 1  ;;  %v2536_v35 = vshrl.u32 %v11731_v26, 16  ;;  %v2538_v41 = vshll.u32 %v11731_v26, 16  ;;  %v2847_v45 = vsel %vm2014_vm10, %v2845_v37, %v2846_v40  ;;  %v11742_v26 = vld [vmem:[#allocation2 + $0xa4] ss:$0 sps:$4 sm:$0x11]  }
  0xd9   : > { %4674 = vmatprep.mubr.bf16.mxu0 %v2835_v6  ;;  %v11721_v6 = vld [vmem:[#allocation2 + $0x78] sm:$0xff]   ;;  %v3356_v34 = vshll.u32 %v11742_v26, 16 }
  0xda   : > { %v2517_v61 = vor.u32 %v2516_v57, %v2512_v50  ;;  %v2540_v46 = vrot.slane %v2538_v41, 1  ;;  %v11746_v40 = vld [vmem:[#allocation2 + $0x9c] sm:$0xff]  }
  0xdc   : > { %v2522_v7 = vsel %vm1613_vm1, %v2517_v61, %v2521_v0  ;;  %v3346_v0 = vrot.slane %v3344_v53, 1  ;;  %v2560_v53 = vshrl.u32 %v11746_v40, 16 }
  0xde   : > { %4836 = vmatmul.mubr.bf16.gmra.mrb[88].mxu1 %v11706_v14  ;;  %v2843_v14 = vrot.slane %v11723_v9, 1 }
  0xdf   : > { %4843 = vmatprep.mubr.bf16.mxu1 %v3311_v52  ;;  %v2541_v52 = vor.u32 %v2540_v46, %v2536_v35  ;;  %v11743_v35 = vld [vmem:[#allocation2 + $0x9c] sm:$0xff]   ;;  %v3358_v46 = vrot.slane %v3356_v34, 1 }
  0xe0   : > { %4675 = vmatmul.mubr.bf16.gmra.mrb[88].mxu0 %v2498_v18  ;;  %v2844_v18 = vsel %vm2014_vm10, %v2842_v13, %v2843_v14  ;;  %v11738_v13 = vld [vmem:[#allocation2 + $0x98] ss:$0 sps:$4 sm:$0x11]   ;;  %v2548_v14 = vshrl.u32 %v11739_v62, 16 }
  0xe1   : > { %4682 = vmatprep.mubr.bf16.mxu0 %v2838_v29  ;;  %v3329_v29 = vrot.slane %v3327_v24, 1  ;;  %v2849_v19 = vrot.slane %v11738_v13, 1 }
  0xe3   : > { %v3330_v36 = vor.u32 %v3329_v29, %v3325_v23  ;;  %v2850_v24 = vsel %vm2014_vm10, %v2848_v17, %v2849_v19 }
  0xe5   : > { %v3335_v42 = vsel %vm1613_vm1, %v3330_v36, %v3334_v30 }
  0xe6   : > { %4844 = vmatmul.mubr.bf16.gmra.mrb[92].mxu1 %v11713_v38  ;;  %v11732_v38 = vld [vmem:[#allocation2 + $0x8c] ss:$0 sps:$4 sm:$0x11]  }
  0xe7   : > { %4851 = vmatprep.mubr.bf16.mxu1 %v3323_v15  ;;  %v2543_v43 = vshll.u32 %v11732_v38, 16 }
  0xe8   : > { %4683 = vmatmul.mubr.bf16.gmra.mrb[92].mxu0 %v2510_v44  ;;  %v11734_v44 = vld [vmem:[#allocation2 + $0x90] sm:$0xff]  }
  0xe9   : > { %4690 = vmatprep.mubr.bf16.mxu0 %v2841_v56  ;;  %v2545_v49 = vrot.slane %v2543_v43, 1  ;;  %v3337_v50 = vshrl.u32 %v11734_v44, 16  ;;  %v3339_v51 = vshll.u32 %v11734_v44, 16 }
  0xeb   : > { %v3341_v57 = vrot.slane %v3339_v51, 1  ;;  %v2546_v63 = vsel %vm1613_vm1, %v2541_v52, %v2545_v49  ;;  %v11745_v52 = vld [vmem:[#allocation2 + $0xa4] ss:$0 sps:$4 sm:$0x11]  }
  0xed   : > { %v3342_v8 = vor.u32 %v3341_v57, %v3337_v50  ;;  %v11744_v50 = vld [vmem:[#allocation2 + $0x9c] sm:$0xfe]  }
  0xee   : > { %4852 = vmatmul.mubr.bf16.gmra.mrb[96].mxu1 %v11721_v6  ;;  %v2851_v57 = vrot.slane %v11744_v50, 1 }
  0xef   : > { %4859 = vmatprep.mubr.bf16.mxu1 %v3335_v42  ;;  %v3347_v16 = vsel %vm1613_vm1, %v3342_v8, %v3346_v0  ;;  %v11748_v0 = vld [vmem:[%s13911_s1 + $0x230] sm:$0xff]  }
  0xf0   : > { %4691 = vmatmul.mubr.bf16.gmra.mrb[96].mxu0 %v2522_v7  ;;  %v11741_v7 = vld [vmem:[#allocation2 + $0x9c] sm:$0xff]   ;;  %11401 = vmatprep.subr.bf16.mxu0 %v11748_v0 }
  0xf1   : > { %4698 = vmatprep.mubr.bf16.mxu0 %v2844_v18  ;;  %v2550_v18 = vshll.u32 %v11739_v62, 16  ;;  %v3349_v23 = vshrl.u32 %v11741_v7, 16  ;;  %v3351_v27 = vshll.u32 %v11741_v7, 16  ;;  %v11750_v7 = vld [vmem:[#allocation2 + $0xb0] ss:$0 sps:$4 sm:$0x11]   ;;  %11402 = vmatpush3.bf16.msra.mxu0 %v11748_v0 }
  0xf3   : > { %v2552_v22 = vrot.slane %v2550_v18, 1  ;;  %v11751_v18 = vld [vmem:[#allocation2 + $0xa8] sm:$0xff]  }
  0xf5   : > { %v2553_v29 = vor.u32 %v2552_v22, %v2548_v14  ;;  %v11754_v14 = vld [vmem:[#allocation2 + $0xa8] sm:$0xff]  }
  0xf6   : > { %4860 = vmatmul.mubr.bf16.gmra.mrb[100].mxu1 %v11728_v31 }
  0xf7   : > { %4867 = vmatprep.mubr.bf16.mxu1 %v3347_v16  ;;  %v2558_v44 = vsel %vm1613_vm1, %v2553_v29, %v2557_v32  ;;  %v11752_v32 = vld [vmem:[#allocation2 + $0xa8] sm:$0xfe]  }
  0xf8   : > { %4699 = vmatmul.mubr.bf16.gmra.mrb[100].mxu0 %v2534_v33  ;;  %v3353_v33 = vrot.slane %v3351_v27, 1  ;;  %v2572_v27 = vshrl.u32 %v11754_v14, 16 }
  0xf9   : > { %4706 = vmatprep.mubr.bf16.mxu0 %v2847_v45 }
  0xfa   : > { %v10461_v54 = vpop.f32.mrb[0].mxu0  ;;  %v3354_v45 = vor.u32 %v3353_v33, %v3349_v23  ;;  %v11753_v33 = vld [vmem:[#allocation2 + $0xb0] ss:$0 sps:$4 sm:$0x11]  }
  0xfb   : > { %v10573_v56 = vpop.f32.mrb[0].mxu1  ;;  %v10462_v60 = vpop.f32.mrb[1].mxu0 }
  0xfc   : > { %v10574_v61 = vpop.f32.mrb[1].mxu1  ;;  %v10463_v2 = vadd.f32 %v10462_v60, %v10461_v54  ;;  %v10464_v5 = vpop.f32.mrb[2].mxu0  ;;  %v2852_v60 = vrot.slane %v11745_v52, 1 }
  0xfd   : > { %v10575_v4 = vadd.f32 %v10574_v61, %v10573_v56  ;;  %v10576_v6 = vpop.f32.mrb[2].mxu1  ;;  %v10465_v9 = vpop.f32.mrb[3].mxu0  ;;  %v3359_v56 = vsel %vm1613_vm1, %v3354_v45, %v3358_v46  ;;  %v11747_v61 = vld [vmem:[#allocation2 + $0xa4] ss:$0 sps:$4 sm:$0x11]  }
  0xfe   : > { %v10577_v10 = vpop.f32.mrb[3].mxu1  ;;  %v10466_v11 = vadd.f32 %v10465_v9, %v10464_v5  ;;  %4868 = vmatmul.mubr.bf16.gmra.mrb[104].mxu1 %v11736_v58  ;;  %v2562_v58 = vshll.u32 %v11746_v40, 16  ;;  %v11749_v5 = vld [vmem:[#allocation2 + $0xa8] sm:$0xff]   ;;  %v11755_v40 = vld [vmem:[#allocation2 + $0xb0] ss:$0 sps:$4 sm:$0x11]  }
  0xff   : > { %v10578_v12 = vadd.f32 %v10577_v10, %v10576_v6  ;;  %v12723_v15 = vadd.f32 %v10575_v4, %v10463_v2  ;;  %4875 = vmatprep.mubr.bf16.mxu1 %v3359_v56  ;;  %v2853_v2 = vsel %vm2014_vm10, %v2851_v57, %v2852_v60  ;;  %v2567_v4 = vshll.u32 %v11747_v61, 16  ;;  %v11757_v46 = vld [vmem:[#allocation2 + $0xbc] ss:$0 sps:$4 sm:$0x11]  }
 0x100   : > { %4707 = vmatmul.mubr.bf16.gmra.mrb[104].mxu0 %v2546_v63  ;;  %v2564_v63 = vrot.slane %v2562_v58, 1  ;;  %v3361_v9 = vshrl.u32 %v11749_v5, 16  ;;  %v3363_v10 = vshll.u32 %v11749_v5, 16  ;;  %v2579_v45 = vshll.u32 %v11755_v40, 16  ;;  %v11758_v58 = vld [vmem:[#allocation2 + $0xb4] sm:$0xff]  }
 0x101   : > { %v12726_v21 = vadd.f32 %v10578_v12, %v10466_v11  ;;  %4714 = vmatprep.mubr.bf16.mxu0 %v2850_v24  ;;  %v2569_v8 = vrot.slane %v2567_v4, 1  ;;  %v3368_v11 = vshll.u32 %v11750_v7, 16  ;;  %v3380_v52 = vshll.u32 %v11757_v46, 16 }
 0x102   : > { %v2565_v6 = vor.u32 %v2564_v63, %v2560_v53  ;;  %v3365_v17 = vrot.slane %v3363_v10, 1  ;;  %v11761_v63 = vld [vmem:[#allocation2 + $0xb4] sm:$0xff]  }
 0x103   : > { %v3370_v23 = vrot.slane %v3368_v11, 1  ;;  %v11759_v11 = vld [vmem:[#allocation2 + $0xb4] sm:$0xfe]  }
 0x104   : > { %v2570_v16 = vsel %vm1613_vm1, %v2565_v6, %v2569_v8  ;;  %v3366_v29 = vor.u32 %v3365_v17, %v3361_v9  ;;  %v11763_v8 = vld [vmem:[%s13911_s1 + $0x238] sm:$0xff]  }
 0x105   : > { %v10467_v28 = vpop.f32.mrb[4].mxu0  ;;  %v10579_v30 = vpop.f32.mrb[4].mxu1  ;;  %11403 = vmatprep.subr.bf16.mxu0 %v11763_v8 }
 0x106   : > { %v10468_v31 = vpop.f32.mrb[5].mxu0  ;;  %v10580_v37 = vpop.f32.mrb[5].mxu1  ;;  %4876 = vmatmul.mubr.bf16.gmra.mrb[108].mxu1 %v11743_v35  ;;  %11404 = vmatpush3.bf16.msra.mxu0 %v11763_v8 }
 0x107   : > { %v10469_v36 = vadd.f32 %v10468_v31, %v10467_v28  ;;  %v10470_v38 = vpop.f32.mrb[6].mxu0  ;;  %v10581_v41 = vadd.f32 %v10580_v37, %v10579_v30  ;;  %v10582_v42 = vpop.f32.mrb[6].mxu1  ;;  %v11756_v28 = vld [vmem:[#allocation2 + $0xb4] sm:$0xff]   ;;  %v2854_v37 = vrot.slane %v11752_v32, 1 }
 0x108   : > { %v10471_v43 = vpop.f32.mrb[7].mxu0  ;;  %v10583_v49 = vpop.f32.mrb[7].mxu1  ;;  %4715 = vmatmul.mubr.bf16.gmra.mrb[108].mxu0 %v2558_v44 }
 0x109   : > { %v10472_v47 = vadd.f32 %v10471_v43, %v10470_v38  ;;  %v10584_v51 = vadd.f32 %v10583_v49, %v10582_v42  ;;  %v12730_v54 = vadd.f32 %v10581_v41, %v10469_v36  ;;  %4722 = vmatprep.mubr.bf16.mxu0 %v2853_v2  ;;  %v3371_v36 = vsel %vm1613_vm1, %v3366_v29, %v3370_v23 }
 0x10a   : > { %v2855_v38 = vrot.slane %v11753_v33, 1  ;;  %v2574_v41 = vshll.u32 %v11754_v14, 16  ;;  %4883 = vmatprep.mubr.bf16.mxu1 %v3371_v36  ;;  %v3375_v49 = vshll.u32 %v11756_v28, 16  ;;  %v3382_v2 = vrot.slane %v3380_v52, 1 }
 0x10b   : > { %v12733_v62 = vadd.f32 %v10584_v51, %v10472_v47  ;;  %v3373_v47 = vshrl.u32 %v11756_v28, 16  ;;  %v2581_v51 = vrot.slane %v2579_v45, 1  ;;  %v11760_v14 = vld [vmem:[#allocation2 + $0xbc] ss:$0 sps:$4 sm:$0x11]   ;;  %v2586_v23 = vshll.u32 %v11761_v63, 16 }
 0x10c   : > { %v2856_v43 = vsel %vm2014_vm10, %v2854_v37, %v2855_v38  ;;  %v2576_v44 = vrot.slane %v2574_v41, 1  ;;  %v3377_v57 = vrot.slane %v3375_v49, 1  ;;  %v840_v45 = vrot.slane %v12654_v59, 4 }
 0x10d   : > { %v10473_v3 = vpop.f32.mrb[8].mxu0  ;;  %v10585_v12 = vpop.f32.mrb[8].mxu1  ;;  %v2588_v28 = vrot.slane %v2586_v23, 1  ;;  %v11775_v23 = vld [vmem:[#allocation2 + $0x20] ss:$0 sps:$4 sm:$0x11]  }
 0x10e   : > { %v10474_v13 = vpop.f32.mrb[9].mxu0  ;;  %v10586_v20 = vpop.f32.mrb[9].mxu1  ;;  %4884 = vmatmul.mubr.bf16.gmra.mrb[112].mxu1 %v11751_v18  ;;  %v2577_v50 = vor.u32 %v2576_v44, %v2572_v27  ;;  %v3378_v9 = vor.u32 %v3377_v57, %v3373_v47 }
 0x10f   : > { %v10475_v19 = vadd.f32 %v10474_v13, %v10473_v3  ;;  %v10476_v22 = vpop.f32.mrb[10].mxu0  ;;  %v10587_v24 = vadd.f32 %v10586_v20, %v10585_v12  ;;  %v10588_v25 = vpop.f32.mrb[10].mxu1  ;;  %v11762_v20 = vld [vmem:[#allocation2 + $0xbc] ss:$0 sps:$4 sm:$0x11]  }
 0x110   : > { %4723 = vmatmul.mubr.bf16.gmra.mrb[112].mxu0 %v2570_v16  ;;  %v10477_v26 = vpop.f32.mrb[11].mxu0  ;;  %v10589_v31 = vpop.f32.mrb[11].mxu1  ;;  %v2582_v0 = vsel %vm1613_vm1, %v2577_v50, %v2581_v51  ;;  %v2584_v16 = vshrl.u32 %v11761_v63, 16  ;;  %v3383_v18 = vsel %vm1613_vm1, %v3378_v9, %v3382_v2  ;;  %v12763_v50 = vld [vmem:[#allocation2 + $0xc0] sm:$0xff]   ;;  %v11771_v51 = vld [vmem:[#allocation2 + $0xcc] sm:$0xff]  }
 0x111   : > { %v10478_v30 = vadd.f32 %v10477_v26, %v10476_v22  ;;  %v10590_v34 = vadd.f32 %v10589_v31, %v10588_v25  ;;  %v12740_v35 = vadd.f32 %v10587_v24, %v10475_v19  ;;  %4730 = vmatprep.mubr.bf16.mxu0 %v2856_v43  ;;  %v2857_v19 = vrot.slane %v11759_v11, 1  ;;  %4891 = vmatprep.mubr.bf16.mxu1 %v3383_v18  ;;  %v332_v26 = vld [vmem:[#allocation2 + $0xc8] sm:$0x1]  ;;  %v12758_v31 = vld [vmem:[#allocation2 + $0xc0] sm:$0xff]  }
 0x112   : > { %v2858_v22 = vrot.slane %v11760_v14, 1  ;;  %v2591_v25 = vshll.u32 %v11762_v20, 16  ;;  %v333_v29 = vsel %vm12288_vm7, 0, %v332_v26  ;;  %v2589_v32 = vor.u32 %v2588_v28, %v2584_v16  ;;  %v11807_v14 = vld [vmem:[%s13913_s3] sm:$0xff]  }
 0x113   : > { %v12743_v42 = vadd.f32 %v10590_v34, %v10478_v30  ;;  %334 = vst [vmem:[#allocation2 + $0xc8] sm:$0x1] %v333_v29  ;;  %v3387_v46 = vshll.u32 %v12758_v31, 16  ;;  %v3385_v57 = vshrl.u32 %v12758_v31, 16  ;;  %v2598_v2 = vshll.u32 %v12763_v50, 16 }
 0x114   : > { %v2859_v27 = vsel %vm2014_vm10, %v2857_v19, %v2858_v22  ;;  %v2593_v30 = vrot.slane %v2591_v25, 1  ;;  %v11774_v19 = vld [vmem:[#allocation2 + $0x18] sm:$0xfe]   ;;  %v2596_v28 = vshrl.u32 %v12763_v50, 16  ;;  %v3397_v31 = vshrl.u32 %v11771_v51, 16 }
 0x115   : > { %v10479_v53 = vpop.f32.mrb[12].mxu0  ;;  %v10591_v56 = vpop.f32.mrb[12].mxu1  ;;  %v2600_v29 = vrot.slane %v2598_v2, 1 }
 0x116   : > { %v10480_v60 = vpop.f32.mrb[13].mxu0  ;;  %v10592_v61 = vpop.f32.mrb[13].mxu1  ;;  %4892 = vmatmul.mubr.bf16.gmra.mrb[116].mxu1 %v11758_v58  ;;  %v2594_v38 = vsel %vm1613_vm1, %v2589_v32, %v2593_v30  ;;  %v11772_v58 = vld [vmem:[#allocation2 + $0xd4] ss:$0 sps:$4 sm:$0x11]  }
 0x117   : > { %v10481_v4 = vadd.f32 %v10480_v60, %v10479_v53  ;;  %v10593_v5 = vadd.f32 %v10592_v61, %v10591_v56  ;;  %v10482_v6 = vpop.f32.mrb[14].mxu0  ;;  %v10594_v7 = vpop.f32.mrb[14].mxu1  ;;  %v12768_v61 = vld [vmem:[#allocation2 + $0xc0] sm:$0xfe]  }
 0x118   : > { %4731 = vmatmul.mubr.bf16.gmra.mrb[116].mxu0 %v2582_v0  ;;  %v10483_v10 = vpop.f32.mrb[15].mxu0  ;;  %v10595_v3 = vpop.f32.mrb[15].mxu1  ;;  %v3389_v0 = vrot.slane %v3387_v46, 1 }
 0x119   : > { %v10484_v12 = vadd.f32 %v10483_v10, %v10482_v6  ;;  %v10596_v13 = vadd.f32 %v10595_v3, %v10594_v7  ;;  %v12750_v17 = vadd.f32 %v10593_v5, %v10481_v4  ;;  %4738 = vmatprep.mubr.bf16.mxu0 %v2859_v27  ;;  %v3399_v4 = vshll.u32 %v11771_v51, 16  ;;  %v11806_v7 = vld [vmem:[%s13913_s3 + $0x40] sm:$0xff]  }
 0x11a   : > { %v1000_v60 = vld [vmem:[#allocation2 + $0xc8] sm:$0x1]  ;;  %v3404_v10 = vshll.u32 %v11772_v58, 16  ;;  %10917 = vmatprep.subr.bf16.mxu1 %v11806_v7  ;;  %v2860_v27 = vrot.slane %v12768_v61, 1  ;;  %v11766_v58 = vld [vmem:[#allocation2 + $0xc0] sm:$0xff]  }
 0x11b   : > { %v12753_v24 = vadd.f32 %v10596_v13, %v10484_v12  ;;  %v1001_v59 = vsel %vm12278_vm4, %v840_v45, %v1000_v60  ;;  %10918 = vmatpush3.bf16.msra.mxu1 %v11807_v14  ;;  %v3401_v32 = vrot.slane %v3399_v4, 1  ;;  %v11808_v45 = vld [vmem:[%s13913_s3 + $0x48] sm:$0xff]  }
 0x11c   : > { %1002 = vst [vmem:[#allocation2 + $0xc8] sm:$0x1] %v1001_v59  ;;  %10919 = vmatprep.subr.bf16.mxu1 %v11808_v45 }
 0x11d   : > { %v10485_v33 = vpop.f32.mrb[16].mxu0  ;;  %v10597_v34 = vpop.f32.mrb[16].mxu1  ;;  %v3402_v61 = vor.u32 %v3401_v32, %v3397_v31 }
 0x11e   : > { %v10486_v36 = vpop.f32.mrb[17].mxu0  ;;  %v10598_v37 = vpop.f32.mrb[17].mxu1 }
 0x11f   : > { %v10487_v40 = vadd.f32 %v10486_v36, %v10485_v33  ;;  %v10599_v41 = vadd.f32 %v10598_v37, %v10597_v34  ;;  %v10488_v43 = vpop.f32.mrb[18].mxu0  ;;  %v10600_v44 = vpop.f32.mrb[18].mxu1  ;;  %v3406_v33 = vrot.slane %v3404_v10, 1 }
 0x120   : > { %4739 = vmatmul.mubr.bf16.gmra.mrb[120].mxu0 %v2594_v38  ;;  %v10489_v47 = vpop.f32.mrb[19].mxu0  ;;  %v10601_v49 = vpop.f32.mrb[19].mxu1  ;;  %v3616_v38 = vrot.slane %v11774_v19, 1 }
 0x121   : > { %v10490_v52 = vadd.f32 %v10489_v47, %v10488_v43  ;;  %v10602_v53 = vadd.f32 %v10601_v49, %v10600_v44  ;;  %v12765_v56 = vadd.f32 %v10599_v41, %v10487_v40  ;;  %v3617_v47 = vrot.slane %v11775_v23, 1 }
 0x123   : > { %v12770_v63 = vadd.f32 %v10602_v53, %v10490_v52  ;;  %v11765_v46 = vld [vmem:[#allocation2 + $0xc8] ss:$0 sps:$4 sm:$0x11]   ;;  %v3390_v52 = vor.u32 %v3389_v0, %v3385_v57  ;;  %v3407_v0 = vsel %vm1613_vm1, %v3402_v61, %v3406_v33 }
 0x124   : > { %v11768_v49 = vld [vmem:[#allocation2 + $0xc8] ss:$0 sps:$4 sm:$0x11]   ;;  %v3392_v53 = vshll.u32 %v11765_v46, 16  ;;  %v11773_v46 = vld [vmem:[#allocation2 + $0xcc] sm:$0xff]  }
 0x125   : > { %v10491_v5 = vpop.f32.mrb[20].mxu0  ;;  %v10603_v6 = vpop.f32.mrb[20].mxu1  ;;  %v11770_v60 = vld [vmem:[#allocation2 + $0xc8] ss:$0 sps:$4 sm:$0x11]   ;;  %v2861_v2 = vrot.slane %v11768_v49, 1 }
 0x126   : > { %v10492_v8 = vpop.f32.mrb[21].mxu0  ;;  %v10604_v9 = vpop.f32.mrb[21].mxu1  ;;  %v2603_v7 = vshll.u32 %v11770_v60, 16  ;;  %v11781_v49 = vld [vmem:[#allocation2 + $0x44] ss:$0 sps:$4 sm:$0x11]  }
 0x127   : > { %v10493_v3 = vadd.f32 %v10492_v8, %v10491_v5  ;;  %v10605_v11 = vadd.f32 %v10604_v9, %v10603_v6  ;;  %v10494_v12 = vpop.f32.mrb[22].mxu0  ;;  %v10606_v13 = vpop.f32.mrb[22].mxu1  ;;  %v3394_v5 = vrot.slane %v3392_v53, 1  ;;  %v2601_v6 = vor.u32 %v2600_v29, %v2596_v28  ;;  %v11776_v8 = vld [vmem:[#allocation2 + $0x24] sm:$0xfe]  }
 0x128   : > { %v10495_v16 = vpop.f32.mrb[23].mxu0  ;;  %v10607_v18 = vpop.f32.mrb[23].mxu1  ;;  %v2862_v10 = vsel %vm2014_vm10, %v2860_v27, %v2861_v2  ;;  %v2605_v57 = vrot.slane %v2603_v7, 1  ;;  %v11809_v28 = vld [vmem:[%s13913_s3 + $0x8] sm:$0xff]   ;;  %v3619_v32 = vrot.slane %v11776_v8, 1 }
 0x129   : > { %v10496_v20 = vadd.f32 %v10495_v16, %v10494_v12  ;;  %v10608_v22 = vadd.f32 %v10607_v18, %v10606_v13  ;;  %v12781_v26 = vadd.f32 %v10605_v11, %v10493_v3  ;;  %v11777_v3 = vld [vmem:[#allocation2 + $0x2c] ss:$0 sps:$4 sm:$0x11]   ;;  %v3395_v12 = vsel %vm1613_vm1, %v3390_v52, %v3394_v5  ;;  %4746 = vmatprep.mubr.bf16.mxu0 %v2862_v10  ;;  %v11778_v13 = vld [vmem:[#allocation2 + $0x30] sm:$0xfe]  }
 0x12a   : > { %4899 = vmatprep.mubr.bf16.mxu1 %v3395_v12  ;;  %v3618_v16 = vsel %vm2014_vm10, %v3616_v38, %v3617_v47  ;;  %v11779_v18 = vld [vmem:[#allocation2 + $0x38] ss:$0 sps:$4 sm:$0x11]   ;;  %v3620_v33 = vrot.slane %v11777_v3, 1  ;;  %10920 = vmatpush3.bf16.msra.mxu1 %v11809_v28  ;;  %v11780_v47 = vld [vmem:[#allocation2 + $0x3c] sm:$0xfe]  }
 0x12b   : > { %v12785_v37 = vadd.f32 %v10608_v22, %v10496_v20  ;;  %4900 = vmatmul.mubr.bf16.gmra.mrb[120].mxu1 %v11766_v58  ;;  %v2606_v22 = vsel %vm1613_vm1, %v2601_v6, %v2605_v57  ;;  %v11782_v52 = vld [vmem:[#allocation2 + $0x48] sm:$0xfe]   ;;  %v11783_v53 = vld [vmem:[#allocation2 + $0x50] ss:$0 sps:$4 sm:$0x11]   ;;  %v3626_v12 = vrot.slane %v11781_v49, 1 }
 0x12c   : > { %4747 = vmatmul.mubr.bf16.gmra.mrb[124].mxu0 %v2606_v22  ;;  %4907 = vmatprep.mubr.bf16.mxu1 %v3407_v0  ;;  %v3621_v61 = vsel %vm2014_vm10, %v3619_v32, %v3620_v33  ;;  %v3628_v57 = vrot.slane %v11782_v52, 1  ;;  %v3629_v0 = vrot.slane %v11783_v53, 1  ;;  %v11784_v32 = vld [vmem:[#allocation2 + $0x54] sm:$0xfe]  }
 0x12d   : > { %v10497_v25 = vpop.f32.mrb[24].mxu0  ;;  %v10609_v30 = vpop.f32.mrb[24].mxu1  ;;  %11405 = vmatprep.mubr.bf16.mxu0 %v3618_v16 }
 0x12e   : > { %v10498_v34 = vpop.f32.mrb[25].mxu0  ;;  %v10610_v36 = vpop.f32.mrb[25].mxu1 }
 0x12f   : > { %v10499_v40 = vadd.f32 %v10498_v34, %v10497_v25  ;;  %v10611_v41 = vadd.f32 %v10610_v36, %v10609_v30  ;;  %v10500_v43 = vpop.f32.mrb[26].mxu0  ;;  %v10612_v44 = vpop.f32.mrb[26].mxu1 }
 0x130   : > { %v10501_v50 = vpop.f32.mrb[27].mxu0  ;;  %v10613_v4 = vpop.f32.mrb[27].mxu1 }
 0x131   : > { %v12790_v51 = vadd.f32 %v10611_v41, %v10499_v40  ;;  %v10502_v59 = vadd.f32 %v10501_v50, %v10500_v43  ;;  %v10614_v9 = vadd.f32 %v10613_v4, %v10612_v44  ;;  %v3622_v40 = vrot.slane %v11778_v13, 1 }
 0x132   : > { %v3623_v41 = vrot.slane %v11779_v18, 1  ;;  %v11785_v18 = vld [vmem:[#allocation2 + $0x5c] ss:$0 sps:$4 sm:$0x11]  }
 0x133   : > { %v12795_v14 = vadd.f32 %v10614_v9, %v10502_v59  ;;  %4908 = vmatmul.mubr.bf16.gmra.mrb[124].mxu1 %v11773_v46  ;;  %v3632_v52 = vrot.slane %v11785_v18, 1 }
 0x134   : > { %v3624_v4 = vsel %vm2014_vm10, %v3622_v40, %v3623_v41  ;;  %11406 = vmatmul.mubr.bf16.vlgmr.msra.gmra.mrb[128].mxu0 %v3621_v61 }
 0x135   : > { %v10503_v11 = vpop.f32.mrb[28].mxu0  ;;  %v10615_v19 = vpop.f32.mrb[28].mxu1  ;;  %11409 = vmatprep.mubr.bf16.mxu0 %v3624_v4 }
 0x136   : > { %v10504_v20 = vpop.f32.mrb[29].mxu0  ;;  %v10616_v25 = vpop.f32.mrb[29].mxu1 }
 0x137   : > { %v10505_v23 = vadd.f32 %v10504_v20, %v10503_v11  ;;  %v10506_v27 = vpop.f32.mrb[30].mxu0  ;;  %v10617_v29 = vadd.f32 %v10616_v25, %v10615_v19  ;;  %v10618_v30 = vpop.f32.mrb[30].mxu1  ;;  %v3625_v11 = vrot.slane %v11780_v47, 1  ;;  %v11787_v25 = vld [vmem:[#allocation2 + $0x68] ss:$0 sps:$4 sm:$0x11]  }
 0x138   : > { %v10507_v31 = vpop.f32.mrb[31].mxu0  ;;  %v10619_v36 = vpop.f32.mrb[31].mxu1 }
 0x139   : > { %v10508_v34 = vadd.f32 %v10507_v31, %v10506_v27  ;;  %v10620_v43 = vadd.f32 %v10619_v36, %v10618_v30  ;;  %v12802_v45 = vadd.f32 %v10617_v29, %v10505_v23  ;;  %v11810_v23 = vld [vmem:[%s13913_s3 + $0x50] sm:$0xff]   ;;  %v3627_v36 = vsel %vm2014_vm10, %v3625_v11, %v3626_v12  ;;  %v11790_v11 = vld [vmem:[#allocation2 + $0x78] sm:$0xfe]  }
 0x13a   : > { %v11811_v31 = vld [vmem:[%s13913_s3 + $0x10] sm:$0xff]   ;;  %10921 = vmatprep.subr.bf16.mxu1 %v11810_v23 }
 0x13b   : > { %v12804_v60 = vadd.f32 %v10620_v43, %v10508_v34  ;;  %10922 = vmatpush3.bf16.msra.mxu1 %v11811_v31 }
 0x13c   : > { %11410 = vmatmul.mubr.bf16.gmra.mrb[132].mxu0 %v3627_v36 }
 0x13d   : > { %v10509_v38 = vpop.f32.mrb[32].mxu0  ;;  %v10621_v44 = vpop.f32.mrb[32].mxu1 }
 0x13e   : > { %v10510_v50 = vpop.f32.mrb[33].mxu0  ;;  %v10622_v59 = vpop.f32.mrb[33].mxu1 }
 0x13f   : > { %v10511_v58 = vadd.f32 %v10510_v50, %v10509_v38  ;;  %v10512_v2 = vpop.f32.mrb[34].mxu0  ;;  %v10623_v5 = vadd.f32 %v10622_v59, %v10621_v44  ;;  %v10624_v6 = vpop.f32.mrb[34].mxu1  ;;  %v11786_v38 = vld [vmem:[#allocation2 + $0x60] sm:$0xfe]   ;;  %v3630_v44 = vsel %vm2014_vm10, %v3628_v57, %v3629_v0  ;;  %v3631_v50 = vrot.slane %v11784_v32, 1 }
 0x140   : > { %v10513_v7 = vpop.f32.mrb[35].mxu0  ;;  %v10625_v9 = vpop.f32.mrb[35].mxu1  ;;  %11413 = vmatprep.mubr.bf16.mxu0 %v3630_v44  ;;  %v3634_v61 = vrot.slane %v11786_v38, 1  ;;  %v3635_v59 = vrot.slane %v11787_v25, 1  ;;  %v11812_v38 = vld [vmem:[%s13913_s3 + $0x58] sm:$0xff]  }
 0x141   : > { %v10514_v8 = vadd.f32 %v10513_v7, %v10512_v2  ;;  %v12808_v10 = vadd.f32 %v10623_v5, %v10511_v58  ;;  %v10626_v3 = vadd.f32 %v10625_v9, %v10624_v6  ;;  %v11789_v2 = vld [vmem:[#allocation2 + $0x74] ss:$0 sps:$4 sm:$0x11]   ;;  %v3633_v18 = vsel %vm2014_vm10, %v3631_v50, %v3632_v52  ;;  %10923 = vmatprep.subr.bf16.mxu1 %v11812_v38 }
 0x142   : > { %v3636_v25 = vsel %vm2014_vm10, %v3634_v61, %v3635_v59  ;;  %v3638_v31 = vrot.slane %v11789_v2, 1  ;;  %v11794_v61 = vld [vmem:[#allocation2 + $0x90] sm:$0xfe]   ;;  %v11795_v2 = vld [vmem:[#allocation2 + $0x98] ss:$0 sps:$4 sm:$0x11]  }
 0x143   : > { %v12810_v19 = vadd.f32 %v10626_v3, %v10514_v8  ;;  %v11788_v8 = vld [vmem:[#allocation2 + $0x6c] sm:$0xfe]  }
 0x144   : > { %11414 = vmatmul.mubr.bf16.gmra.mrb[136].mxu0 %v3633_v18 }
 0x145   : > { %v10627_v16 = vpop.f32.mrb[36].mxu1  ;;  %11417 = vmatprep.mubr.bf16.mxu0 %v3636_v25 }
 0x146   : > { %v10628_v22 = vpop.f32.mrb[37].mxu1 }
 0x147   : > { %v10515_v13 = vpop.f32.mrb[36].mxu0  ;;  %v10629_v28 = vadd.f32 %v10628_v22, %v10627_v16  ;;  %v10630_v30 = vpop.f32.mrb[38].mxu1 }
 0x148   : > { %v10516_v20 = vpop.f32.mrb[37].mxu0  ;;  %v10631_v34 = vpop.f32.mrb[39].mxu1 }
 0x149   : > { %v10517_v27 = vadd.f32 %v10516_v20, %v10515_v13  ;;  %v10518_v29 = vpop.f32.mrb[38].mxu0  ;;  %v10632_v43 = vadd.f32 %v10631_v34, %v10630_v30  ;;  %v11791_v13 = vld [vmem:[#allocation2 + $0x80] ss:$0 sps:$4 sm:$0x11]   ;;  %v12827_v20 = vld [vmem:[#allocation2 + $0x84] sm:$0xfe]  }
 0x14a   : > { %v10519_v33 = vpop.f32.mrb[39].mxu0 }
 0x14b   : > { %v12819_v40 = vadd.f32 %v10629_v28, %v10517_v27  ;;  %v10520_v41 = vadd.f32 %v10519_v33, %v10518_v29  ;;  %v3637_v27 = vrot.slane %v11788_v8, 1  ;;  %v11793_v28 = vld [vmem:[#allocation2 + $0x8c] ss:$0 sps:$4 sm:$0x11]  }
 0x14d   : > { %v12822_v47 = vadd.f32 %v10632_v43, %v10520_v41  ;;  %v10633_v49 = vpop.f32.mrb[40].mxu1  ;;  %v3640_v41 = vrot.slane %v11790_v11, 1  ;;  %v11796_v11 = vld [vmem:[#allocation2 + $0x9c] sm:$0xfe]  }
 0x14e   : > { %v10634_v58 = vpop.f32.mrb[41].mxu1 }
 0x14f   : > { %v10521_v46 = vpop.f32.mrb[40].mxu0  ;;  %v10635_v5 = vadd.f32 %v10634_v58, %v10633_v49  ;;  %v10636_v7 = vpop.f32.mrb[42].mxu1  ;;  %v3641_v49 = vrot.slane %v11791_v13, 1  ;;  %v3643_v58 = vrot.slane %v12827_v20, 1 }
 0x150   : > { %v10522_v53 = vpop.f32.mrb[41].mxu0  ;;  %v10637_v3 = vpop.f32.mrb[43].mxu1 }
 0x151   : > { %v10523_v4 = vadd.f32 %v10522_v53, %v10521_v46  ;;  %v10524_v6 = vpop.f32.mrb[42].mxu0  ;;  %v10638_v0 = vadd.f32 %v10637_v3, %v10636_v7  ;;  %v11813_v46 = vld [vmem:[%s13913_s3 + $0x18] sm:$0xff]   ;;  %v11797_v7 = vld [vmem:[#allocation2 + $0xa4] ss:$0 sps:$4 sm:$0x11]   ;;  %v3639_v3 = vsel %vm2014_vm10, %v3637_v27, %v3638_v31  ;;  %v3642_v20 = vsel %vm2014_vm10, %v3640_v41, %v3641_v49 }
 0x152   : > { %v10525_v9 = vpop.f32.mrb[43].mxu0  ;;  %10924 = vmatpush3.bf16.msra.mxu1 %v11813_v46  ;;  %11418 = vmatmul.mubr.bf16.gmra.mrb[140].mxu0 %v3639_v3  ;;  %v3647_v27 = vrot.slane %v11795_v2, 1  ;;  %v3649_v31 = vrot.slane %v11796_v11, 1  ;;  %v11803_v46 = vld [vmem:[#allocation2 + $0xc8] ss:$0 sps:$4 sm:$0x11]  }
 0x153   : > { %v12824_v12 = vadd.f32 %v10635_v5, %v10523_v4  ;;  %v10526_v57 = vadd.f32 %v10525_v9, %v10524_v6  ;;  %v3644_v6 = vrot.slane %v11793_v28, 1  ;;  %11421 = vmatprep.mubr.bf16.mxu0 %v3642_v20  ;;  %v11815_v20 = vld [vmem:[%s13913_s3 + $0x20] sm:$0xff]  }
 0x155   : > { %v12829_v22 = vadd.f32 %v10638_v0, %v10526_v57  ;;  %v10639_v23 = vpop.f32.mrb[44].mxu1  ;;  %v11799_v57 = vld [vmem:[#allocation2 + $0xb0] ss:$0 sps:$4 sm:$0x11]  }
 0x156   : > { %v10640_v30 = vpop.f32.mrb[45].mxu1  ;;  %v3653_v49 = vrot.slane %v11799_v57, 1 }
 0x157   : > { %v10527_v16 = vpop.f32.mrb[44].mxu0  ;;  %v10641_v33 = vadd.f32 %v10640_v30, %v10639_v23  ;;  %v10642_v36 = vpop.f32.mrb[46].mxu1  ;;  %v11798_v23 = vld [vmem:[#allocation2 + $0xa8] sm:$0xfe]   ;;  %v11800_v30 = vld [vmem:[#allocation2 + $0xb4] sm:$0xfe]  }
 0x158   : > { %v10528_v29 = vpop.f32.mrb[45].mxu0  ;;  %v10643_v44 = vpop.f32.mrb[47].mxu1  ;;  %v3652_v41 = vrot.slane %v11798_v23, 1  ;;  %v11804_v23 = vld [vmem:[#allocation2 + $0xcc] sm:$0xfe]  }
 0x159   : > { %v10529_v32 = vadd.f32 %v10528_v29, %v10527_v16  ;;  %v10530_v34 = vpop.f32.mrb[46].mxu0  ;;  %v10644_v53 = vadd.f32 %v10643_v44, %v10642_v36  ;;  %v11801_v36 = vld [vmem:[#allocation2 + $0xbc] ss:$0 sps:$4 sm:$0x11]   ;;  %v3650_v44 = vrot.slane %v11797_v7, 1 }
 0x15a   : > { %v10531_v43 = vpop.f32.mrb[47].mxu0 }
 0x15b   : > { %v12838_v50 = vadd.f32 %v10641_v33, %v10529_v32  ;;  %v10532_v52 = vadd.f32 %v10531_v43, %v10530_v34  ;;  %v3646_v34 = vrot.slane %v11794_v61, 1  ;;  %v11802_v43 = vld [vmem:[#allocation2 + $0xc0] sm:$0xfe]   ;;  %v3659_v61 = vrot.slane %v11803_v46, 1 }
 0x15d   : > { %v12841_v4 = vadd.f32 %v10644_v53, %v10532_v52  ;;  %v10645_v5 = vpop.f32.mrb[48].mxu1  ;;  %v3655_v52 = vrot.slane %v11800_v30, 1  ;;  %v3656_v53 = vrot.slane %v11801_v36, 1  ;;  %v3651_v30 = vsel %vm2014_vm10, %v3649_v31, %v3650_v44 }
 0x15e   : > { %v10646_v9 = vpop.f32.mrb[49].mxu1  ;;  %v3661_v36 = vrot.slane %v11804_v23, 1 }
 0x15f   : > { %v10533_v59 = vpop.f32.mrb[48].mxu0  ;;  %v10647_v13 = vadd.f32 %v10646_v9, %v10645_v5  ;;  %v10648_v18 = vpop.f32.mrb[50].mxu1  ;;  %v3648_v5 = vsel %vm2014_vm10, %v3646_v34, %v3647_v27  ;;  %v11805_v34 = vld [vmem:[#allocation2 + $0xd4] ss:$0 sps:$4 sm:$0x11]  }
 0x160   : > { %v10534_v8 = vpop.f32.mrb[49].mxu0  ;;  %v10649_v29 = vpop.f32.mrb[51].mxu1 }
 0x161   : > { %v10535_v0 = vadd.f32 %v10534_v8, %v10533_v59  ;;  %v10536_v16 = vpop.f32.mrb[50].mxu0  ;;  %v10650_v33 = vadd.f32 %v10649_v29, %v10648_v18  ;;  %v3645_v59 = vsel %vm2014_vm10, %v3643_v58, %v3644_v6  ;;  %v3658_v8 = vrot.slane %v11802_v43, 1  ;;  %v11814_v58 = vld [vmem:[%s13913_s3 + $0x60] sm:$0xff]  }
 0x162   : > { %v10537_v25 = vpop.f32.mrb[51].mxu0  ;;  %11422 = vmatmul.mubr.bf16.gmra.mrb[144].mxu0 %v3645_v59  ;;  %10925 = vmatprep.subr.bf16.mxu1 %v11814_v58 }
 0x163   : > { %v12845_v32 = vadd.f32 %v10647_v13, %v10535_v0  ;;  %v10538_v28 = vadd.f32 %v10537_v25, %v10536_v16  ;;  %11425 = vmatprep.mubr.bf16.mxu0 %v3648_v5  ;;  %10926 = vmatpush3.bf16.msra.mxu1 %v11815_v20  ;;  %v3660_v44 = vsel %vm2014_vm10, %v3658_v8, %v3659_v61 }
 0x165   : > { %v12847_v38 = vadd.f32 %v10650_v33, %v10538_v28  ;;  %v3654_v28 = vsel %vm2014_vm10, %v3652_v41, %v3653_v49  ;;  %v3662_v41 = vrot.slane %v11805_v34, 1 }
 0x169   : > { %v10651_v9 = vpop.f32.mrb[52].mxu1 }
 0x16a   : > { %v10652_v3 = vpop.f32.mrb[53].mxu1  ;;  %11426 = vmatmul.mubr.bf16.gmra.mrb[148].mxu0 %v3651_v30 }
 0x16b   : > { %v10539_v2 = vpop.f32.mrb[52].mxu0  ;;  %v10653_v11 = vadd.f32 %v10652_v3, %v10651_v9  ;;  %v10654_v0 = vpop.f32.mrb[54].mxu1  ;;  %11429 = vmatprep.mubr.bf16.mxu0 %v3654_v28  ;;  %v3657_v3 = vsel %vm2014_vm10, %v3655_v52, %v3656_v53  ;;  %v11817_v52 = vld [vmem:[%s13913_s3 + $0x28] sm:$0xff]   ;;  %v3663_v53 = vsel %vm2014_vm10, %v3661_v36, %v3662_v41 }
 0x16c   : > { %v10540_v13 = vpop.f32.mrb[53].mxu0  ;;  %v10655_v7 = vpop.f32.mrb[55].mxu1 }
 0x16d   : > { %v10541_v16 = vadd.f32 %v10540_v13, %v10539_v2  ;;  %v10542_v18 = vpop.f32.mrb[54].mxu0  ;;  %v10656_v57 = vadd.f32 %v10655_v7, %v10654_v0 }
 0x16e   : > { %v10543_v6 = vpop.f32.mrb[55].mxu0 }
 0x16f   : > { %v12857_v25 = vadd.f32 %v10653_v11, %v10541_v16  ;;  %v10544_v29 = vadd.f32 %v10543_v6, %v10542_v18  ;;  %v11816_v18 = vld [vmem:[%s13913_s3 + $0x68] sm:$0xff]  }
 0x170   : > { %10927 = vmatprep.subr.bf16.mxu1 %v11816_v18 }
 0x171   : > { %v12861_v33 = vadd.f32 %v10656_v57, %v10544_v29  ;;  %v10657_v27 = vpop.f32.mrb[56].mxu1  ;;  %10928 = vmatpush3.bf16.msra.mxu1 %v11817_v52 }
 0x172   : > { %v10658_v46 = vpop.f32.mrb[57].mxu1  ;;  %11430 = vmatmul.mubr.bf16.gmra.mrb[152].mxu0 %v3657_v3 }
 0x173   : > { %v10545_v43 = vpop.f32.mrb[56].mxu0  ;;  %v10659_v5 = vadd.f32 %v10658_v46, %v10657_v27  ;;  %v10660_v9 = vpop.f32.mrb[58].mxu1  ;;  %11433 = vmatprep.mubr.bf16.mxu0 %v3660_v44 }
 0x174   : > { %v10546_v59 = vpop.f32.mrb[57].mxu0  ;;  %v10661_v31 = vpop.f32.mrb[59].mxu1 }
 0x175   : > { %v10547_v2 = vadd.f32 %v10546_v59, %v10545_v43  ;;  %v10548_v11 = vpop.f32.mrb[58].mxu0  ;;  %v10662_v0 = vadd.f32 %v10661_v31, %v10660_v9 }
 0x176   : > { %v10549_v49 = vpop.f32.mrb[59].mxu0 }
 0x177   : > { %v12865_v13 = vadd.f32 %v10659_v5, %v10547_v2  ;;  %v10550_v7 = vadd.f32 %v10549_v49, %v10548_v11 }
 0x179   : > { %v12867_v16 = vadd.f32 %v10662_v0, %v10550_v7  ;;  %v10663_v61 = vpop.f32.mrb[60].mxu1 }
 0x17a   : > { %11434 = vmatmul.mubr.bf16.gmra.mrb[156].mxu0 %v3663_v53  ;;  %v10664_v58 = vpop.f32.mrb[61].mxu1 }
 0x17b   : > { %v10551_v8 = vpop.f32.mrb[60].mxu0  ;;  %v10665_v20 = vadd.f32 %v10664_v58, %v10663_v61  ;;  %v10666_v29 = vpop.f32.mrb[62].mxu1 }
 0x17c   : > { %v10552_v57 = vpop.f32.mrb[61].mxu0  ;;  %v10667_v28 = vpop.f32.mrb[63].mxu1 }
 0x17d   : > { %v10553_v6 = vadd.f32 %v10552_v57, %v10551_v8  ;;  %v10554_v23 = vpop.f32.mrb[62].mxu0  ;;  %v10668_v43 = vadd.f32 %v10667_v28, %v10666_v29 }
 0x17e   : > { %v10555_v30 = vpop.f32.mrb[63].mxu0 }
 0x17f   : > { %v12876_v34 = vadd.f32 %v10665_v20, %v10553_v6  ;;  %v10556_v27 = vadd.f32 %v10555_v30, %v10554_v23 }
 0x181   : > { %v12878_v46 = vadd.f32 %v10668_v43, %v10556_v27  ;;  %v10797_v59 = vpop.f32.mrb[64].mxu1 }
 0x182   : > { %v10798_v9 = vpop.f32.mrb[65].mxu1 }
 0x183   : > { %v10685_v36 = vpop.f32.mrb[64].mxu0  ;;  %v10799_v11 = vadd.f32 %v10798_v9, %v10797_v59  ;;  %v10800_v31 = vpop.f32.mrb[66].mxu1 }
 0x184   : > { %v10686_v5 = vpop.f32.mrb[65].mxu0  ;;  %v10801_v41 = vpop.f32.mrb[67].mxu1 }
 0x185   : > { %v10687_v3 = vadd.f32 %v10686_v5, %v10685_v36  ;;  %v10688_v2 = vpop.f32.mrb[66].mxu0  ;;  %v10802_v7 = vadd.f32 %v10801_v41, %v10800_v31 }
 0x186   : > { %v10689_v44 = vpop.f32.mrb[67].mxu0 }
 0x187   : > { %v4629_v49 = vadd.f32 %v10687_v3, %v12723_v15  ;;  %v10690_v0 = vadd.f32 %v10689_v44, %v10688_v2 }
 0x189   : > { %v4632_v18 = vadd.f32 %v10690_v0, %v12726_v21  ;;  %v12882_v52 = vadd.f32 %v10799_v11, %v4629_v49  ;;  %v10803_v8 = vpop.f32.mrb[68].mxu1 }
 0x18a   : > { %v10804_v58 = vpop.f32.mrb[69].mxu1 }
 0x18b   : > { %v10691_v53 = vpop.f32.mrb[68].mxu0  ;;  %v12884_v61 = vadd.f32 %v10802_v7, %v4632_v18  ;;  %v10805_v23 = vadd.f32 %v10804_v58, %v10803_v8  ;;  %v10806_v29 = vpop.f32.mrb[70].mxu1  ;;  %v11821_v18 = vld [vmem:[%s13913_s3 + $0x80] sm:$0xff]   ;;  %v11819_v58 = vld [vmem:[%s13913_s3 + $0x30] sm:$0xff]  }
 0x18c   : > { %v10692_v57 = vpop.f32.mrb[69].mxu0  ;;  %v10807_v28 = vpop.f32.mrb[71].mxu1 }
 0x18d   : > { %v10693_v6 = vadd.f32 %v10692_v57, %v10691_v53  ;;  %v10694_v20 = vpop.f32.mrb[70].mxu0  ;;  %v10808_v43 = vadd.f32 %v10807_v28, %v10806_v29  ;;  %v11818_v57 = vld [vmem:[%s13913_s3 + $0x70] sm:$0xff]   ;;  %v11823_v29 = vld [vmem:[%s13913_s3 + $0x88] sm:$0xff]  }
 0x18e   : > { %v10695_v30 = vpop.f32.mrb[71].mxu0  ;;  %10929 = vmatprep.subr.bf16.mxu1 %v11818_v57 }
 0x18f   : > { %v4637_v15 = vadd.f32 %v10693_v6, %v12730_v54  ;;  %v10696_v27 = vadd.f32 %v10695_v30, %v10694_v20  ;;  %v11820_v54 = vld [vmem:[%s13913_s3 + $0xc0] sm:$0xff]   ;;  %10930 = vmatpush3.bf16.msra.mxu1 %v11819_v58 }
 0x190   : > { %11029 = vmatprep.subr.bf16.mxu0 %v11820_v54 }
 0x191   : > { %v4640_v21 = vadd.f32 %v10696_v27, %v12733_v62  ;;  %v12888_v36 = vadd.f32 %v10805_v23, %v4637_v15  ;;  %v10809_v3 = vpop.f32.mrb[72].mxu1  ;;  %11030 = vmatpush3.bf16.msra.mxu0 %v11821_v18  ;;  %v11822_v23 = vld [vmem:[%s13913_s3 + $0xc8] sm:$0xff]   ;;  %v394_v18 = vld [vmem:[#allocation3 + $0x20] sm:$0x1] }
 0x192   : > { %v10810_v31 = vpop.f32.mrb[73].mxu1  ;;  %11031 = vmatprep.subr.bf16.mxu0 %v11822_v23 }
 0x193   : > { %v10697_v59 = vpop.f32.mrb[72].mxu0  ;;  %v12890_v5 = vadd.f32 %v10808_v43, %v4640_v21  ;;  %v10811_v41 = vadd.f32 %v10810_v31, %v10809_v3  ;;  %v10812_v49 = vpop.f32.mrb[74].mxu1 }
 0x194   : > { %v10698_v9 = vpop.f32.mrb[73].mxu0  ;;  %v10813_v7 = vpop.f32.mrb[75].mxu1 }
 0x195   : > { %v10699_v2 = vadd.f32 %v10698_v9, %v10697_v59  ;;  %v10700_v11 = vpop.f32.mrb[74].mxu0  ;;  %v10814_v53 = vadd.f32 %v10813_v7, %v10812_v49  ;;  %11032 = vmatpush3.bf16.msra.mxu0 %v11823_v29  ;;  %v11826_v29 = vld [vmem:[%s13913_s3 + $0xd8] sm:$0xff]  }
 0x196   : > { %v10701_v44 = vpop.f32.mrb[75].mxu0 }
 0x197   : > { %v4645_v0 = vadd.f32 %v10699_v2, %v12740_v35  ;;  %v10702_v62 = vadd.f32 %v10701_v44, %v10700_v11  ;;  %v346_v35 = vld [vmem:[#allocation3 + $0x18] sm:$0x1] }
 0x198   : > { %v347_v20 = vsel %vm12278_vm4, 0, %v346_v35  ;;  %v11824_v2 = vld [vmem:[%s13913_s3 + $0xd0] sm:$0xff]  }
 0x199   : > { %v4648_v8 = vadd.f32 %v10702_v62, %v12743_v42  ;;  %v12906_v6 = vadd.f32 %v10811_v41, %v4645_v0  ;;  %348 = vst [vmem:[#allocation3 + $0x18] sm:$0x1] %v347_v20  ;;  %v10815_v15 = vpop.f32.mrb[76].mxu1  ;;  %v11825_v41 = vld [vmem:[%s13913_s3 + $0x90] sm:$0xff]   ;;  %11033 = vmatprep.subr.bf16.mxu0 %v11824_v2  ;;  %v343_v0 = vld [vmem:[#allocation3 + $0xc] sm:$0x1] }
 0x19a   : > { %v10816_v21 = vpop.f32.mrb[77].mxu1  ;;  %11034 = vmatpush3.bf16.msra.mxu0 %v11825_v41  ;;  %v344_v7 = vsel %vm12278_vm4, 0, %v343_v0  ;;  %v352_v2 = vld [vmem:[#allocation3 + $0x30] sm:$0x1]  ;;  %v11830_v41 = vld [vmem:[%s13913_s3 + $0xe0] sm:$0xff]  }
 0x19b   : > { %v10703_v42 = vpop.f32.mrb[76].mxu0  ;;  %v12916_v30 = vadd.f32 %v10814_v53, %v4648_v8  ;;  %v10817_v9 = vadd.f32 %v10816_v21, %v10815_v15  ;;  %v10818_v3 = vpop.f32.mrb[78].mxu1  ;;  %345 = vst [vmem:[#allocation3 + $0xc] sm:$0x1] %v344_v7  ;;  %v391_v8 = vld [vmem:[#allocation3 + $0x14] sm:$0x1]  ;;  %11035 = vmatprep.subr.bf16.mxu0 %v11826_v29 }
 0x19c   : > { %v10704_v28 = vpop.f32.mrb[77].mxu0  ;;  %v10819_v44 = vpop.f32.mrb[79].mxu1  ;;  %v11831_v0 = vld [vmem:[%s13913_s3 + $0xa0] sm:$0xff]  }
 0x19d   : > { %v10705_v27 = vadd.f32 %v10704_v28, %v10703_v42  ;;  %v10706_v43 = vpop.f32.mrb[78].mxu0  ;;  %v10820_v49 = vadd.f32 %v10819_v44, %v10818_v3  ;;  %v349_v44 = vld [vmem:[#allocation3 + $0x24] sm:$0x1]  ;;  %v397_v29 = vld [vmem:[#allocation3 + $0x2c] sm:$0x1] }
 0x19e   : > { %v10707_v59 = vpop.f32.mrb[79].mxu0 }
 0x19f   : > { %v4653_v11 = vadd.f32 %v10705_v27, %v12750_v17  ;;  %v10708_v31 = vadd.f32 %v10707_v59, %v10706_v43  ;;  %v395_v17 = vsel %vm12288_vm7, 0, %v394_v18  ;;  %v11827_v43 = vld [vmem:[%s13913_s3 + $0x98] sm:$0xff]  }
 0x1a0   : > { %396 = vst [vmem:[#allocation3 + $0x20] sm:$0x1] %v395_v17  ;;  %11036 = vmatpush3.bf16.msra.mxu0 %v11827_v43 }
 0x1a1   : > { %v4656_v54 = vadd.f32 %v10708_v31, %v12753_v24  ;;  %v12926_v62 = vadd.f32 %v10817_v9, %v4653_v11  ;;  %v10821_v35 = vpop.f32.mrb[80].mxu1  ;;  %v392_v24 = vsel %vm12288_vm7, 0, %v391_v8  ;;  %v353_v31 = vsel %vm12278_vm4, 0, %v352_v2  ;;  %11037 = vmatprep.subr.bf16.mxu0 %v11830_v41  ;;  %v11828_v2 = vld [vmem:[%s13913_s3 + $0x78] sm:$0xff]   ;;  %v11835_v41 = vld [vmem:[%s13913_s3 + $0xb0] sm:$0xff]  }
 0x1a2   : > { %v10822_v42 = vpop.f32.mrb[81].mxu1  ;;  %393 = vst [vmem:[#allocation3 + $0x14] sm:$0x1] %v392_v24  ;;  %354 = vst [vmem:[#allocation3 + $0x30] sm:$0x1] %v353_v31  ;;  %v11832_v24 = vld [vmem:[%s13913_s3 + $0xe8] sm:$0xff]   ;;  %10931 = vmatprep.subr.bf16.mxu1 %v11828_v2 }
 0x1a3   : > { %v10709_v53 = vpop.f32.mrb[80].mxu0  ;;  %v12932_v57 = vadd.f32 %v10820_v49, %v4656_v54  ;;  %v10823_v15 = vadd.f32 %v10822_v42, %v10821_v35  ;;  %v10824_v27 = vpop.f32.mrb[82].mxu1  ;;  %v400_v54 = vld [vmem:[#allocation3 + $0x38] sm:$0x1] }
 0x1a4   : > { %v10710_v58 = vpop.f32.mrb[81].mxu0  ;;  %v10825_v9 = vpop.f32.mrb[83].mxu1  ;;  %v401_v7 = vsel %vm12288_vm7, 0, %v400_v54  ;;  %11038 = vmatpush3.bf16.msra.mxu0 %v11831_v0  ;;  %v11837_v0 = vld [vmem:[#allocation3 + $0x8] ss:$0 sps:$4 sm:$0x11]  }
 0x1a5   : > { %v10711_v20 = vadd.f32 %v10710_v58, %v10709_v53  ;;  %v10712_v23 = vpop.f32.mrb[82].mxu0  ;;  %v10826_v3 = vadd.f32 %v10825_v9, %v10824_v27  ;;  %402 = vst [vmem:[#allocation3 + $0x38] sm:$0x1] %v401_v7  ;;  %11039 = vmatprep.subr.bf16.mxu0 %v11832_v24 }
 0x1a6   : > { %v10713_v28 = vpop.f32.mrb[83].mxu0 }
 0x1a7   : > { %v4661_v21 = vadd.f32 %v10711_v20, %v12765_v56  ;;  %v10714_v59 = vadd.f32 %v10713_v28, %v10712_v23  ;;  %v350_v56 = vsel %vm12278_vm4, 0, %v349_v44  ;;  %v11833_v28 = vld [vmem:[%s13913_s3 + $0xa8] sm:$0xff]   ;;  %v11829_v44 = vld [vmem:[%s13913_s3 + $0x38] sm:$0xff]  }
 0x1a8   : > { %351 = vst [vmem:[#allocation3 + $0x24] sm:$0x1] %v350_v56  ;;  %11040 = vmatpush3.bf16.msra.mxu0 %v11833_v28  ;;  %v358_v56 = vld [vmem:[#allocation3 + $0x48] sm:$0x1]  ;;  %10932 = vmatpush3.bf16.msra.mxu1 %v11829_v44 }
 0x1a9   : > { %v4664_v11 = vadd.f32 %v10714_v59, %v12770_v63  ;;  %v12949_v49 = vadd.f32 %v10823_v15, %v4661_v21  ;;  %v10827_v17 = vpop.f32.mrb[84].mxu1  ;;  %v398_v21 = vsel %vm12288_vm7, 0, %v397_v29  ;;  %v11836_v59 = vld [vmem:[#allocation3] sm:$0xff]  }
 0x1aa   : > { %v10828_v35 = vpop.f32.mrb[85].mxu1  ;;  %399 = vst [vmem:[#allocation3 + $0x2c] sm:$0x1] %v398_v21  ;;  %v5998_v31 = vshll.u32 %v11836_v59, 16 }
 0x1ab   : > { %v10715_v63 = vpop.f32.mrb[84].mxu0  ;;  %v12958_v18 = vadd.f32 %v10826_v3, %v4664_v11  ;;  %v10829_v23 = vadd.f32 %v10828_v35, %v10827_v17  ;;  %v10830_v42 = vpop.f32.mrb[86].mxu1  ;;  %v355_v17 = vld [vmem:[#allocation3 + $0x3c] sm:$0x1] }
 0x1ac   : > { %v10716_v53 = vpop.f32.mrb[85].mxu0  ;;  %v10831_v43 = vpop.f32.mrb[87].mxu1 }
 0x1ad   : > { %v10717_v8 = vadd.f32 %v10716_v53, %v10715_v63  ;;  %v10718_v58 = vpop.f32.mrb[86].mxu0  ;;  %v10832_v9 = vadd.f32 %v10831_v43, %v10830_v42  ;;  %v359_v53 = vsel %vm12278_vm4, 0, %v358_v56  ;;  %v6000_v42 = vrot.slane %v5998_v31, 1  ;;  %v11840_v56 = vld [vmem:[%s13913_s3 + $0xb8] sm:$0xff]  }
 0x1ae   : > { %v10719_v20 = vpop.f32.mrb[87].mxu0  ;;  %360 = vst [vmem:[#allocation3 + $0x48] sm:$0x1] %v359_v53  ;;  %v6003_v43 = vshll.u32 %v11837_v0, 16  ;;  %v364_v53 = vld [vmem:[#allocation3 + $0x60] sm:$0x1] }
 0x1af   : > { %v4669_v15 = vadd.f32 %v10717_v8, %v12781_v26  ;;  %v10720_v27 = vadd.f32 %v10719_v20, %v10718_v58  ;;  %v11834_v26 = vld [vmem:[%s13913_s3 + $0xf0] sm:$0xff]   ;;  %v5996_v8 = vshrl.u32 %v11836_v59, 16  ;;  %v356_v20 = vsel %vm12278_vm4, 0, %v355_v17 }
 0x1b0   : > { %11041 = vmatprep.subr.bf16.mxu0 %v11834_v26  ;;  %357 = vst [vmem:[#allocation3 + $0x3c] sm:$0x1] %v356_v20  ;;  %v11838_v26 = vld [vmem:[%s13913_s3 + $0xf8] sm:$0xff]  }
 0x1b1   : > { %v4672_v3 = vadd.f32 %v10720_v27, %v12785_v37  ;;  %v12973_v11 = vadd.f32 %v10829_v23, %v4669_v15  ;;  %v10833_v7 = vpop.f32.mrb[88].mxu1  ;;  %11042 = vmatpush3.bf16.msra.mxu0 %v11835_v41  ;;  %v406_v23 = vld [vmem:[#allocation3 + $0x50] sm:$0x1]  ;;  %v6001_v2 = vor.u32 %v6000_v42, %v5996_v8  ;;  %v6005_v41 = vrot.slane %v6003_v43, 1 }
 0x1b2   : > { %v10834_v24 = vpop.f32.mrb[89].mxu1  ;;  %v407_v27 = vsel %vm12288_vm7, 0, %v406_v23  ;;  %11043 = vmatprep.subr.bf16.mxu0 %v11838_v26  ;;  %v361_v23 = vld [vmem:[#allocation3 + $0x54] sm:$0x1] }
 0x1b3   : > { %v10721_v37 = vpop.f32.mrb[88].mxu0  ;;  %v12984_v54 = vadd.f32 %v10832_v9, %v4672_v3  ;;  %v10835_v28 = vadd.f32 %v10834_v24, %v10833_v7  ;;  %v10836_v15 = vpop.f32.mrb[90].mxu1  ;;  %408 = vst [vmem:[#allocation3 + $0x50] sm:$0x1] %v407_v27  ;;  %v403_v3 = vld [vmem:[#allocation3 + $0x44] sm:$0x1] }
 0x1b4   : > { %v10722_v63 = vpop.f32.mrb[89].mxu0  ;;  %v10837_v9 = vpop.f32.mrb[91].mxu1  ;;  %v404_v44 = vsel %vm12288_vm7, 0, %v403_v3 }
 0x1b5   : > { %v10723_v58 = vadd.f32 %v10722_v63, %v10721_v37  ;;  %v10724_v35 = vpop.f32.mrb[90].mxu0  ;;  %v10838_v31 = vadd.f32 %v10837_v9, %v10836_v15  ;;  %v11839_v37 = vld [vmem:[#allocation3] sm:$0xff]   ;;  %405 = vst [vmem:[#allocation3 + $0x44] sm:$0x1] %v404_v44  ;;  %v6006_v63 = vsel %vm1613_vm1, %v6001_v2, %v6005_v41  ;;  %11044 = vmatpush3.bf16.msra.mxu0 %v11840_v56  ;;  %v362_v15 = vsel %vm12278_vm4, 0, %v361_v23 }
 0x1b6   : > { %v10725_v29 = vpop.f32.mrb[91].mxu0  ;;  %8684 = vmatprep.mubr.bf16.mxu1 %v6006_v63  ;;  %363 = vst [vmem:[#allocation3 + $0x54] sm:$0x1] %v362_v15  ;;  %v409_v2 = vld [vmem:[#allocation3 + $0x5c] sm:$0x1] }
 0x1b7   : > { %v4677_v21 = vadd.f32 %v10723_v58, %v12790_v51  ;;  %v10726_v59 = vadd.f32 %v10725_v29, %v10724_v35  ;;  %v365_v35 = vsel %vm12278_vm4, 0, %v364_v53  ;;  %8685 = vmatmul.mubr.bf16.vlgmr.msra.gmra.mrb[128].mxu1 %v11839_v37  ;;  %v410_v44 = vsel %vm12288_vm7, 0, %v409_v2  ;;  %v418_v23 = vld [vmem:[#allocation3 + $0x80] sm:$0x1] }
 0x1b8   : > { %366 = vst [vmem:[#allocation3 + $0x60] sm:$0x1] %v365_v35  ;;  %411 = vst [vmem:[#allocation3 + $0x5c] sm:$0x1] %v410_v44 }
 0x1b9   : > { %v4680_v51 = vadd.f32 %v10726_v59, %v12795_v14  ;;  %v13002_v0 = vadd.f32 %v10835_v28, %v4677_v21  ;;  %v10839_v58 = vpop.f32.mrb[92].mxu1  ;;  %v412_v59 = vld [vmem:[#allocation3 + $0x68] sm:$0x1] }
 0x1ba   : > { %v10840_v20 = vpop.f32.mrb[93].mxu1  ;;  %v413_v3 = vsel %vm12288_vm7, 0, %v412_v59  ;;  %v11842_v59 = vld [vmem:[%s13913_s3 + $0x140] sm:$0xff]  }
 0x1bb   : > { %v10727_v7 = vpop.f32.mrb[92].mxu0  ;;  %v13005_v17 = vadd.f32 %v10838_v31, %v4680_v51  ;;  %v10841_v29 = vadd.f32 %v10840_v20, %v10839_v58  ;;  %v10842_v28 = vpop.f32.mrb[94].mxu1  ;;  %414 = vst [vmem:[#allocation3 + $0x68] sm:$0x1] %v413_v3  ;;  %v367_v20 = vld [vmem:[#allocation3 + $0x6c] sm:$0x1]  ;;  %11141 = vmatprep.subr.bf16.mxu1 %v11842_v59 }
 0x1bc   : > { %v10728_v8 = vpop.f32.mrb[93].mxu0  ;;  %v10843_v21 = vpop.f32.mrb[95].mxu1 }
 0x1bd   : > { %v10729_v24 = vadd.f32 %v10728_v8, %v10727_v7  ;;  %v10730_v14 = vpop.f32.mrb[94].mxu0  ;;  %v10844_v9 = vadd.f32 %v10843_v21, %v10842_v28  ;;  %v370_v7 = vld [vmem:[#allocation3 + $0x78] sm:$0x1]  ;;  %v419_v28 = vsel %vm12288_vm7, 0, %v418_v23 }
 0x1be   : > { %v10731_v42 = vpop.f32.mrb[95].mxu0  ;;  %420 = vst [vmem:[#allocation3 + $0x80] sm:$0x1] %v419_v28 }
 0x1bf   : > { %v4685_v27 = vadd.f32 %v10729_v24, %v12802_v45  ;;  %v10732_v43 = vadd.f32 %v10731_v42, %v10730_v14 }
 0x1c1   : > { %v4688_v26 = vadd.f32 %v10732_v43, %v12804_v60  ;;  %v13015_v31 = vadd.f32 %v10841_v29, %v4685_v27  ;;  %v10845_v63 = vpop.f32.mrb[96].mxu1  ;;  %v371_v60 = vsel %vm12278_vm4, 0, %v370_v7  ;;  %v368_v29 = vsel %vm12278_vm4, 0, %v367_v20 }
 0x1c2   : > { %v10846_v8 = vpop.f32.mrb[97].mxu1  ;;  %372 = vst [vmem:[#allocation3 + $0x78] sm:$0x1] %v371_v60  ;;  %369 = vst [vmem:[#allocation3 + $0x6c] sm:$0x1] %v368_v29 }
 0x1c3   : > { %v10733_v41 = vpop.f32.mrb[96].mxu0  ;;  %v13019_v45 = vadd.f32 %v10844_v9, %v4688_v26  ;;  %v10847_v24 = vadd.f32 %v10846_v8, %v10845_v63  ;;  %v10848_v14 = vpop.f32.mrb[98].mxu1  ;;  %v11845_v9 = vld [vmem:[%s13913_s3 + $0x100] sm:$0xff]  }
 0x1c4   : > { %v10734_v37 = vpop.f32.mrb[97].mxu0  ;;  %v10849_v42 = vpop.f32.mrb[99].mxu1  ;;  %11142 = vmatpush3.bf16.msra.mxu1 %v11845_v9 }
 0x1c5   : > { %v10735_v56 = vadd.f32 %v10734_v37, %v10733_v41  ;;  %v10736_v51 = vpop.f32.mrb[98].mxu0  ;;  %v10850_v27 = vadd.f32 %v10849_v42, %v10848_v14 }
 0x1c6   : > { %v10737_v53 = vpop.f32.mrb[99].mxu0 }
 0x1c7   : > { %v4693_v58 = vadd.f32 %v10735_v56, %v12808_v10  ;;  %v10738_v35 = vadd.f32 %v10737_v53, %v10736_v51  ;;  %v415_v10 = vld [vmem:[#allocation3 + $0x74] sm:$0x1] }
 0x1c8   : > { %v416_v3 = vsel %vm12288_vm7, 0, %v415_v10 }
 0x1c9   : > { %v4696_v15 = vadd.f32 %v10738_v35, %v12810_v19  ;;  %v13029_v43 = vadd.f32 %v10847_v24, %v4693_v58  ;;  %417 = vst [vmem:[#allocation3 + $0x74] sm:$0x1] %v416_v3  ;;  %v10851_v41 = vpop.f32.mrb[100].mxu1 }
 0x1ca   : > { %v10852_v63 = vpop.f32.mrb[101].mxu1 }
 0x1cb   : > { %v10739_v21 = vpop.f32.mrb[100].mxu0  ;;  %v13039_v2 = vadd.f32 %v10850_v27, %v4696_v15  ;;  %v10853_v7 = vadd.f32 %v10852_v63, %v10851_v41  ;;  %v10854_v53 = vpop.f32.mrb[102].mxu1  ;;  %v376_v15 = vld [vmem:[#allocation3 + $0x90] sm:$0x1] }
 0x1cc   : > { %v10740_v19 = vpop.f32.mrb[101].mxu0  ;;  %v10855_v60 = vpop.f32.mrb[103].mxu1 }
 0x1cd   : > { %v10741_v26 = vadd.f32 %v10740_v19, %v10739_v21  ;;  %v10742_v44 = vpop.f32.mrb[102].mxu0  ;;  %v10856_v58 = vadd.f32 %v10855_v60, %v10854_v53 }
 0x1ce   : > { %v10743_v37 = vpop.f32.mrb[103].mxu0 }
 0x1cf   : > { %v4701_v56 = vadd.f32 %v10741_v26, %v12819_v40  ;;  %v10744_v51 = vadd.f32 %v10743_v37, %v10742_v44 }
 0x1d1   : > { %v4704_v8 = vadd.f32 %v10744_v51, %v12822_v47  ;;  %v13043_v35 = vadd.f32 %v10853_v7, %v4701_v56  ;;  %v10857_v29 = vpop.f32.mrb[104].mxu1  ;;  %v377_v47 = vsel %vm12278_vm4, 0, %v376_v15 }
 0x1d2   : > { %v10858_v10 = vpop.f32.mrb[105].mxu1  ;;  %378 = vst [vmem:[#allocation3 + $0x90] sm:$0x1] %v377_v47 }
 0x1d3   : > { %v10745_v24 = vpop.f32.mrb[104].mxu0  ;;  %v13045_v20 = vadd.f32 %v10856_v58, %v4704_v8  ;;  %v10859_v21 = vadd.f32 %v10858_v10, %v10857_v29  ;;  %v10860_v59 = vpop.f32.mrb[106].mxu1 }
 0x1d4   : > { %v10746_v14 = vpop.f32.mrb[105].mxu0  ;;  %v10861_v3 = vpop.f32.mrb[107].mxu1 }
 0x1d5   : > { %v10747_v23 = vadd.f32 %v10746_v14, %v10745_v24  ;;  %v10748_v42 = vpop.f32.mrb[106].mxu0  ;;  %v10862_v19 = vadd.f32 %v10861_v3, %v10860_v59  ;;  %v373_v24 = vld [vmem:[#allocation3 + $0x84] sm:$0x1] }
 0x1d6   : > { %v10749_v28 = vpop.f32.mrb[107].mxu0 }
 0x1d7   : > { %v4709_v40 = vadd.f32 %v10747_v23, %v12824_v12  ;;  %v10750_v27 = vadd.f32 %v10749_v28, %v10748_v42  ;;  %v374_v42 = vsel %vm12278_vm4, 0, %v373_v24  ;;  %v430_v24 = vld [vmem:[#allocation3 + $0xb0] sm:$0x1] }
 0x1d8   : > { %375 = vst [vmem:[#allocation3 + $0x84] sm:$0x1] %v374_v42 }
 0x1d9   : > { %v4712_v9 = vadd.f32 %v10750_v27, %v12829_v22  ;;  %v13051_v26 = vadd.f32 %v10859_v21, %v4709_v40  ;;  %v10863_v51 = vpop.f32.mrb[108].mxu1  ;;  %v424_v22 = vld [vmem:[#allocation3 + $0x98] sm:$0x1]  ;;  %v11856_v40 = vld [vmem:[%s13913_s3 + $0x148] sm:$0xff]   ;;  %v382_v21 = vld [vmem:[#allocation3 + $0xa8] sm:$0x1] }
 0x1da   : > { %v10864_v8 = vpop.f32.mrb[109].mxu1  ;;  %v425_v29 = vsel %vm12288_vm7, 0, %v424_v22  ;;  %11143 = vmatprep.subr.bf16.mxu1 %v11856_v40 }
 0x1db   : > { %v10751_v44 = vpop.f32.mrb[108].mxu0  ;;  %v13053_v41 = vadd.f32 %v10862_v19, %v4712_v9  ;;  %v10865_v60 = vadd.f32 %v10864_v8, %v10863_v51  ;;  %v10866_v58 = vpop.f32.mrb[110].mxu1  ;;  %426 = vst [vmem:[#allocation3 + $0x98] sm:$0x1] %v425_v29  ;;  %v383_v9 = vsel %vm12278_vm4, 0, %v382_v21 }
 0x1dc   : > { %v10752_v37 = vpop.f32.mrb[109].mxu0  ;;  %v10867_v23 = vpop.f32.mrb[111].mxu1  ;;  %384 = vst [vmem:[#allocation3 + $0xa8] sm:$0x1] %v383_v9 }
 0x1dd   : > { %v10753_v56 = vadd.f32 %v10752_v37, %v10751_v44  ;;  %v10754_v12 = vpop.f32.mrb[110].mxu0  ;;  %v10868_v28 = vadd.f32 %v10867_v23, %v10866_v58  ;;  %v427_v23 = vld [vmem:[#allocation3 + $0xa4] sm:$0x1] }
 0x1de   : > { %v10755_v63 = vpop.f32.mrb[111].mxu0 }
 0x1df   : > { %v4717_v7 = vadd.f32 %v10753_v56, %v12838_v50  ;;  %v10756_v53 = vadd.f32 %v10755_v63, %v10754_v12  ;;  %v421_v50 = vld [vmem:[#allocation3 + $0x8c] sm:$0x1] }
 0x1e0   : > { %v422_v47 = vsel %vm12288_vm7, 0, %v421_v50 }
 0x1e1   : > { %v4720_v14 = vadd.f32 %v10756_v53, %v12841_v4  ;;  %v13061_v15 = vadd.f32 %v10865_v60, %v4717_v7  ;;  %v11861_v4 = vld [vmem:[%s13913_s3 + $0x108] sm:$0xff]   ;;  %423 = vst [vmem:[#allocation3 + $0x8c] sm:$0x1] %v422_v47  ;;  %v10869_v12 = vpop.f32.mrb[112].mxu1  ;;  %v379_v7 = vld [vmem:[#allocation3 + $0x9c] sm:$0x1] }
 0x1e2   : > { %11144 = vmatpush3.bf16.msra.mxu1 %v11861_v4  ;;  %v10870_v63 = vpop.f32.mrb[113].mxu1  ;;  %v380_v60 = vsel %vm12278_vm4, 0, %v379_v7 }
 0x1e3   : > { %v10757_v27 = vpop.f32.mrb[112].mxu0  ;;  %v13069_v10 = vadd.f32 %v10868_v28, %v4720_v14  ;;  %v10871_v53 = vadd.f32 %v10870_v63, %v10869_v12  ;;  %v10872_v8 = vpop.f32.mrb[114].mxu1  ;;  %381 = vst [vmem:[#allocation3 + $0x9c] sm:$0x1] %v380_v60  ;;  %v385_v60 = vld [vmem:[#allocation3 + $0xb4] sm:$0x1] }
 0x1e4   : > { %v10758_v59 = vpop.f32.mrb[113].mxu0  ;;  %v10873_v58 = vpop.f32.mrb[115].mxu1 }
 0x1e5   : > { %v10759_v3 = vadd.f32 %v10758_v59, %v10757_v27  ;;  %v10760_v19 = vpop.f32.mrb[114].mxu0  ;;  %v10874_v22 = vadd.f32 %v10873_v58, %v10872_v8  ;;  %v388_v27 = vld [vmem:[#allocation3 + $0xc0] sm:$0x1] }
 0x1e6   : > { %v10761_v44 = vpop.f32.mrb[115].mxu0  ;;  %v389_v9 = vsel %vm12278_vm4, 0, %v388_v27 }
 0x1e7   : > { %v4725_v37 = vadd.f32 %v10759_v3, %v12845_v32  ;;  %v10762_v56 = vadd.f32 %v10761_v44, %v10760_v19  ;;  %v431_v32 = vsel %vm12288_vm7, 0, %v430_v24  ;;  %390 = vst [vmem:[#allocation3 + $0xc0] sm:$0x1] %v389_v9  ;;  %v386_v24 = vsel %vm12278_vm4, 0, %v385_v60 }
 0x1e8   : > { %432 = vst [vmem:[#allocation3 + $0xb0] sm:$0x1] %v431_v32  ;;  %v433_v32 = vld [vmem:[#allocation3 + $0xbc] sm:$0x1]  ;;  %387 = vst [vmem:[#allocation3 + $0xb4] sm:$0x1] %v386_v24 }
 0x1e9   : > { %v4728_v51 = vadd.f32 %v10762_v56, %v12847_v38  ;;  %v13079_v14 = vadd.f32 %v10871_v53, %v4725_v37  ;;  %v428_v38 = vsel %vm12288_vm7, 0, %v427_v23  ;;  %v10875_v21 = vpop.f32.mrb[116].mxu1  ;;  %v13130_v24 = vld [vmem:[%s13912_s2] ss:$0 sm:$0xff] }
 0x1ea   : > { %429 = vst [vmem:[#allocation3 + $0xa4] sm:$0x1] %v428_v38  ;;  %v10876_v3 = vpop.f32.mrb[117].mxu1  ;;  %v434_v38 = vsel %vm12288_vm7, 0, %v433_v32 }
 0x1eb   : > { %v10763_v42 = vpop.f32.mrb[116].mxu0  ;;  %v13085_v28 = vadd.f32 %v10874_v22, %v4728_v51  ;;  %v10877_v44 = vadd.f32 %v10876_v3, %v10875_v21  ;;  %v10878_v37 = vpop.f32.mrb[118].mxu1  ;;  %v436_v22 = vld [vmem:[#allocation3 + $0xc8] sm:$0x1]  ;;  %435 = vst [vmem:[#allocation3 + $0xbc] sm:$0x1] %v434_v38 }
 0x1ec   : > { %v10764_v29 = vpop.f32.mrb[117].mxu0  ;;  %v10879_v56 = vpop.f32.mrb[119].mxu1 }
 0x1ed   : > { %v10765_v50 = vadd.f32 %v10764_v29, %v10763_v42  ;;  %v10766_v40 = vpop.f32.mrb[118].mxu0  ;;  %v10880_v12 = vadd.f32 %v10879_v56, %v10878_v37  ;;  %v437_v42 = vsel %vm12288_vm7, 0, %v436_v22  ;;  %v11870_v29 = vld [vmem:[%s13913_s3 + $0x150] sm:$0xff]   ;;  %v11843_v22 = vld [vmem:[#allocation3] sm:$0xfe]  }
 0x1ee   : > { %v10767_v4 = vpop.f32.mrb[119].mxu0  ;;  %438 = vst [vmem:[#allocation3 + $0xc8] sm:$0x1] %v437_v42  ;;  %11145 = vmatprep.subr.bf16.mxu1 %v11870_v29 }
 0x1ef   : > { %v4733_v47 = vadd.f32 %v10765_v50, %v12857_v25  ;;  %v10768_v59 = vadd.f32 %v10767_v4, %v10766_v40  ;;  %v11875_v50 = vld [vmem:[%s13913_s3 + $0x110] sm:$0xff]   ;;  %v11884_v40 = vld [vmem:[%s13913_s3 + $0x158] sm:$0xff]  }
 0x1f0   : > { %11146 = vmatpush3.bf16.msra.mxu1 %v11875_v50 }
 0x1f1   : > { %v4736_v19 = vadd.f32 %v10768_v59, %v12861_v33  ;;  %v13091_v51 = vadd.f32 %v10877_v44, %v4733_v47  ;;  %11147 = vmatprep.subr.bf16.mxu1 %v11884_v40 }
 0x1f3   : > { %v10769_v63 = vpop.f32.mrb[120].mxu0  ;;  %v13093_v7 = vadd.f32 %v10880_v12, %v4736_v19  ;;  %v11897_v12 = vld [vmem:[%s13913_s3 + $0x1c0] sm:$0xff]  }
 0x1f4   : > { %v10770_v53 = vpop.f32.mrb[121].mxu0  ;;  %11148 = vmatpush3.bf16.msra.mxu1 %v11889_v48  ;;  %11253 = vmatprep.subr.bf16.mxu0 %v11897_v12 }
 0x1f5   : > { %v10771_v25 = vadd.f32 %v10770_v53, %v10769_v63  ;;  %v10772_v8 = vpop.f32.mrb[122].mxu0  ;;  %v11900_v63 = vld [vmem:[%s13913_s3 + $0x160] sm:$0xff]  }
 0x1f6   : > { %v10773_v58 = vpop.f32.mrb[123].mxu0  ;;  %11149 = vmatprep.subr.bf16.mxu1 %v11900_v63 }
 0x1f7   : > { %v4741_v33 = vadd.f32 %v10771_v25, %v12865_v13  ;;  %v10774_v23 = vadd.f32 %v10773_v58, %v10772_v8 }
 0x1f9   : > { %v4744_v13 = vadd.f32 %v10774_v23, %v12867_v16  ;;  %v11844_v23 = vld [vmem:[#allocation3 + $0x8] ss:$0 sps:$4 sm:$0x11]  }
 0x1fe   : > { %v10881_v4 = vpop.f32.mrb[120].mxu1 }
 0x1ff   : > { %v10882_v27 = vpop.f32.mrb[121].mxu1  ;;  %v10775_v47 = vpop.f32.mrb[124].mxu0 }
 0x200   : > { %v10883_v21 = vadd.f32 %v10882_v27, %v10881_v4  ;;  %v10884_v59 = vpop.f32.mrb[122].mxu1  ;;  %v10776_v9 = vpop.f32.mrb[125].mxu0 }
 0x201   : > { %v10885_v3 = vpop.f32.mrb[123].mxu1  ;;  %v10777_v16 = vadd.f32 %v10776_v9, %v10775_v47  ;;  %v10778_v19 = vpop.f32.mrb[126].mxu0  ;;  %v6395_v9 = vrot.slane %v11843_v22, 1 }
 0x202   : > { %v10886_v44 = vadd.f32 %v10885_v3, %v10884_v59  ;;  %v10779_v37 = vpop.f32.mrb[127].mxu0  ;;  %v13115_v56 = vadd.f32 %v10883_v21, %v4741_v33  ;;  %v6396_v3 = vrot.slane %v11844_v23, 1 }
 0x203   : > { %v4749_v53 = vadd.f32 %v10777_v16, %v12876_v34  ;;  %v10780_v25 = vadd.f32 %v10779_v37, %v10778_v19 }
 0x204   : > { %v13124_v8 = vadd.f32 %v10886_v44, %v4744_v13 }
 0x205   : > { %v4752_v60 = vadd.f32 %v10780_v25, %v12878_v46  ;;  %v11905_v46 = vld [vmem:[%s13913_s3 + $0x120] sm:$0xff]  }
 0x206   : > { %v10887_v58 = vpop.f32.mrb[124].mxu1  ;;  %11150 = vmatpush3.bf16.msra.mxu1 %v11905_v46 }
 0x207   : > { %v10888_v32 = vpop.f32.mrb[125].mxu1  ;;  %v11407_v33 = vpop.f32.mrb[128].mxu0 }
 0x208   : > { %v10889_v42 = vadd.f32 %v10888_v32, %v10887_v58  ;;  %v10890_v38 = vpop.f32.mrb[126].mxu1  ;;  %v4959_v34 = vadd.f32 %v11407_v33, %v12888_v36  ;;  %v4950_v29 = vpop.f32.mrb[129].mxu0  ;;  %v13148_v58 = vsel %vm2014_vm10, %v6395_v9, %v6396_v3 }
 0x209   : > { %v10891_v50 = vpop.f32.mrb[127].mxu1  ;;  %v4951_v13 = vadd.f32 %v4950_v29, %v12882_v52  ;;  %v11408_v40 = vpop.f32.mrb[130].mxu0 }
 0x20a   : > { %v10892_v48 = vadd.f32 %v10891_v50, %v10890_v38  ;;  %v5085_v4 = vadd.f32 %v13130_v24, %v4959_v34  ;;  %v4962_v27 = vadd.f32 %v11408_v40, %v12890_v5  ;;  %v4953_v47 = vpop.f32.mrb[131].mxu0  ;;  %v13139_v21 = vadd.f32 %v10889_v42, %v4749_v53 }
 0x20b   : > { %v5083_v59 = vadd.f32 %v13130_v24, %v4951_v13  ;;  %v4954_v36 = vadd.f32 %v4953_v47, %v12884_v61 }
 0x20c   : > { %v5117_v52 = vmax.f32 %v5085_v4, 0.0  ;;  %v5086_v16 = vadd.f32 %v13130_v24, %v4962_v27  ;;  %v13144_v19 = vadd.f32 %v10892_v48, %v4752_v60  ;;  %v5570_v4 = vld [vmem:[#allocation3 + $0x18] sm:$0xf] }
 0x20d   : > { %v5115_v44 = vmax.f32 %v5083_v59, 0.0  ;;  %v5084_v37 = vadd.f32 %v13130_v24, %v4954_v36 }
 0x20e   : > { %v10415_v12 = vpack.c.bf16 %v5117_v52, %v5117_v52  ;;  %v5118_v5 = vmax.f32 %v5086_v16, 0.0 }
 0x20f   : > { %v10413_v63 = vpack.c.bf16 %v5115_v44, %v5115_v44  ;;  %v5116_v53 = vmax.f32 %v5084_v37, 0.0  ;;  %v11411_v25 = vpop.f32.mrb[132].mxu0 }
 0x210   : > { %v5261_v61 = vshrl.u32 %v10415_v12, 16  ;;  %v5264_v22 = vshll.u32 %v10415_v12, 16  ;;  %v10416_v32 = vpack.c.bf16 %v5118_v5, %v5118_v5  ;;  %v4975_v33 = vadd.f32 %v11411_v25, %v12926_v62  ;;  %v4966_v23 = vpop.f32.mrb[133].mxu0  ;;  %v11916_v62 = vld [vmem:[%s13913_s3 + $0x168] sm:$0xff]   ;;  %v5574_v12 = vld [vmem:[#allocation3 + $0x20] sm:$0x1] }
 0x211   : > { %v5244_v42 = vshrl.u32 %v10413_v63, 16  ;;  %v5247_v60 = vshll.u32 %v10413_v63, 16  ;;  %v10414_v38 = vpack.c.bf16 %v5116_v53, %v5116_v53  ;;  %v4967_v34 = vadd.f32 %v4966_v23, %v12906_v6  ;;  %v11412_v29 = vpop.f32.mrb[134].mxu0  ;;  %v5563_v6 = vld [vmem:[#allocation3 + $0xc] sm:$0xf]  ;;  %11151 = vmatprep.subr.bf16.mxu1 %v11916_v62  ;;  %v11921_v62 = vld [vmem:[%s13913_s3 + $0x128] sm:$0xff]  }
 0x212   : > { %v5263_v50 = vrot.slane %v5261_v61, 7  ;;  %v5269_v13 = vshrl.u32 %v10416_v32, 16  ;;  %v5272_v40 = vshll.u32 %v10416_v32, 16  ;;  %v5089_v46 = vadd.f32 %v13130_v24, %v4975_v33  ;;  %v4969_v48 = vpop.f32.mrb[135].mxu0  ;;  %v5567_v32 = vld [vmem:[#allocation3 + $0x14] sm:$0x1]  ;;  %11152 = vmatpush3.bf16.msra.mxu1 %v11921_v62 }
 0x213   : > { %v5246_v27 = vrot.slane %v5244_v42, 7  ;;  %v5252_v47 = vshrl.u32 %v10414_v38, 16  ;;  %v5255_v59 = vshll.u32 %v10414_v38, 16  ;;  %v5087_v36 = vadd.f32 %v13130_v24, %v4967_v34 }
 0x214   : > { %v5266_v9 = vor.u32 %v5264_v22, %v5263_v50  ;;  %v5267_v3 = vrot.slane %v5263_v50, 4  ;;  %v5271_v52 = vrot.slane %v5269_v13, 7  ;;  %v5121_v16 = vmax.f32 %v5089_v46, 0.0 }
 0x215   : > { %v5249_v44 = vor.u32 %v5247_v60, %v5246_v27  ;;  %v5250_v37 = vrot.slane %v5246_v27, 4  ;;  %v5254_v5 = vrot.slane %v5252_v47, 7  ;;  %v5119_v63 = vmax.f32 %v5087_v36, 0.0 }
 0x216   : > { %v5571_v53 = vsel %vm12313_vm9, %v5266_v9, %v5570_v4  ;;  %v5274_v25 = vor.u32 %v5272_v40, %v5271_v52  ;;  %v5276_v61 = vrot.slane %v5271_v52, 4  ;;  %v10419_v33 = vpack.c.bf16 %v5121_v16, %v5121_v16 }
 0x217   : > { %5572 = vst [vmem:[#allocation3 + $0x18] sm:$0xf] %v5571_v53  ;;  %v5564_v22 = vsel %vm12313_vm9, %v5249_v44, %v5563_v6  ;;  %v5257_v23 = vor.u32 %v5255_v59, %v5254_v5  ;;  %v5259_v42 = vrot.slane %v5254_v5, 4  ;;  %v10417_v38 = vpack.c.bf16 %v5119_v63, %v5119_v63  ;;  %v11415_v60 = vpop.f32.mrb[136].mxu0  ;;  %v5584_v44 = vld [vmem:[#allocation3 + $0x30] sm:$0xf] }
 0x218   : > { %5565 = vst [vmem:[#allocation3 + $0xc] sm:$0xf] %v5564_v22  ;;  %v5275_v34 = vsel %vm12295_vm8, %v5267_v3, %v5274_v25  ;;  %v5575_v50 = vsel %vm12278_vm4, %v5276_v61, %v5574_v12  ;;  %v5295_v13 = vshrl.u32 %v10419_v33, 16  ;;  %v5298_v40 = vshll.u32 %v10419_v33, 16  ;;  %v4982_v46 = vpop.f32.mrb[137].mxu0 }
 0x219   : > { %5573 = vst [vmem:[#allocation3 + $0x1c] sm:$0xf] %v5275_v34  ;;  %5576 = vst [vmem:[#allocation3 + $0x20] sm:$0x1] %v5575_v50  ;;  %v5258_v4 = vsel %vm12295_vm8, %v5250_v37, %v5257_v23  ;;  %v5568_v27 = vsel %vm12278_vm4, %v5259_v42, %v5567_v32  ;;  %v5278_v47 = vshrl.u32 %v10417_v38, 16  ;;  %v5281_v59 = vshll.u32 %v10417_v38, 16 }
 0x21a   : > { %v11416_v36 = vpop.f32.mrb[138].mxu0  ;;  %5566 = vst [vmem:[#allocation3 + $0x10] sm:$0xf] %v5258_v4  ;;  %5569 = vst [vmem:[#allocation3 + $0x14] sm:$0x1] %v5568_v27  ;;  %v13172_v9 = vrot.slane %v5295_v13, 7  ;;  %v4978_v3 = vadd.f32 %v11412_v29, %v12932_v57  ;;  %v4970_v6 = vadd.f32 %v4969_v48, %v12916_v30  ;;  %v4991_v52 = vadd.f32 %v11415_v60, %v12973_v11 }
 0x21b   : > { %v4985_v16 = vpop.f32.mrb[139].mxu0  ;;  %v13177_v37 = vrot.slane %v5278_v47, 7  ;;  %v4983_v12 = vadd.f32 %v4982_v46, %v12949_v49  ;;  %v4994_v5 = vadd.f32 %v11416_v36, %v12984_v54  ;;  %v5577_v57 = vld [vmem:[#allocation3 + $0x24] sm:$0xf]  ;;  %v11898_v4 = vld [vmem:[%s13913_s3 + $0x180] sm:$0xff]  }
 0x21c   : > { %v4986_v63 = vadd.f32 %v4985_v16, %v12958_v18  ;;  %v5300_v53 = vor.u32 %v5298_v40, %v13172_v9  ;;  %v5301_v25 = vrot.slane %v13172_v9, 4  ;;  %v5090_v30 = vadd.f32 %v13130_v24, %v4978_v3 }
 0x21d   : > { %v5088_v11 = vadd.f32 %v13130_v24, %v4970_v6  ;;  %v5283_v29 = vor.u32 %v5281_v59, %v13177_v37  ;;  %v5284_v48 = vrot.slane %v13177_v37, 4  ;;  %v5093_v49 = vadd.f32 %v13130_v24, %v4991_v52  ;;  %v11913_v6 = vld [vmem:[%s13913_s3 + $0x1c8] sm:$0xff]  }
 0x21e   : > { %v5091_v54 = vadd.f32 %v13130_v24, %v4983_v12  ;;  %v5585_v18 = vsel %vm12313_vm9, %v5300_v53, %v5584_v44  ;;  %v5122_v61 = vmax.f32 %v5090_v30, 0.0  ;;  %v5094_v33 = vadd.f32 %v13130_v24, %v4994_v5  ;;  %v5581_v53 = vld [vmem:[#allocation3 + $0x2c] sm:$0x1] }
 0x21f   : > { %v5120_v32 = vmax.f32 %v5088_v11, 0.0  ;;  %5586 = vst [vmem:[#allocation3 + $0x30] sm:$0xf] %v5585_v18  ;;  %v5578_v22 = vsel %vm12313_vm9, %v5283_v29, %v5577_v57  ;;  %v5125_v23 = vmax.f32 %v5093_v49, 0.0  ;;  %v5092_v38 = vadd.f32 %v13130_v24, %v4986_v63  ;;  %v5588_v63 = vld [vmem:[#allocation3 + $0x38] sm:$0x1] }
 0x220   : > { %v5123_v42 = vmax.f32 %v5091_v54, 0.0  ;;  %5579 = vst [vmem:[#allocation3 + $0x24] sm:$0xf] %v5578_v22  ;;  %v10420_v34 = vpack.c.bf16 %v5122_v61, %v5122_v61  ;;  %v5126_v13 = vmax.f32 %v5094_v33, 0.0  ;;  %v11846_v5 = vld [vmem:[#allocation3 + $0x18] sm:$0xff]  }
 0x221   : > { %v10418_v50 = vpack.c.bf16 %v5120_v32, %v5120_v32  ;;  %v10423_v27 = vpack.c.bf16 %v5125_v23, %v5125_v23  ;;  %v5124_v59 = vmax.f32 %v5092_v38, 0.0  ;;  %v11841_v3 = vld [vmem:[#allocation3 + $0xc] sm:$0xff]   ;;  %v5598_v54 = vld [vmem:[#allocation3 + $0x48] sm:$0xf]  ;;  %v5591_v22 = vld [vmem:[#allocation3 + $0x3c] sm:$0xf] }
 0x222   : > { %v10421_v47 = vpack.c.bf16 %v5123_v42, %v5123_v42  ;;  %v5303_v52 = vshrl.u32 %v10420_v34, 16  ;;  %v5306_v16 = vshll.u32 %v10420_v34, 16  ;;  %8845 = vmatprep.mubr.bf16.mxu0 %v11841_v3  ;;  %v10424_v18 = vpack.c.bf16 %v5126_v13, %v5126_v13  ;;  %v11914_v38 = vld [vmem:[%s13913_s3 + $0x188] sm:$0xff]  }
 0x223   : > { %v5289_v44 = vshll.u32 %v10418_v50, 16  ;;  %v5329_v57 = vshrl.u32 %v10423_v27, 16  ;;  %v5332_v30 = vshll.u32 %v10423_v27, 16  ;;  %v13206_v61 = vpack.c.bf16 %v5124_v59, %v5124_v59  ;;  %8846 = vmatmul.mubr.bf16.vlgmr.msra.gmra.mrb[160].mxu0 %v13148_v58 }
 0x224   : > { %v5312_v11 = vshrl.u32 %v10421_v47, 16  ;;  %v5315_v29 = vshll.u32 %v10421_v47, 16  ;;  %8853 = vmatprep.mubr.bf16.mxu0 %v11846_v5  ;;  %11254 = vmatpush3.bf16.msra.mxu0 %v11898_v4  ;;  %v11929_v4 = vld [vmem:[%s13913_s3 + $0x1d0] sm:$0xff]  }
 0x225   : > { %v11419_v60 = vpop.f32.mrb[140].mxu0  ;;  %v13209_v32 = vrot.slane %v5329_v57, 7  ;;  %11255 = vmatprep.subr.bf16.mxu0 %v11913_v6  ;;  %v5323_v5 = vshll.u32 %v13206_v61, 16 }
 0x226   : > { %v5007_v40 = vadd.f32 %v11419_v60, %v13015_v31  ;;  %v4998_v46 = vpop.f32.mrb[141].mxu0  ;;  %v5286_v31 = vshrl.u32 %v10418_v50, 16  ;;  %v13211_v33 = vrot.slane %v5312_v11, 7 }
 0x227   : > { %v4999_v36 = vadd.f32 %v4998_v46, %v13002_v0  ;;  %v13201_v62 = vpop.f32.mrb[142].mxu0  ;;  %v5305_v0 = vrot.slane %v5303_v52, 7  ;;  %v5334_v58 = vor.u32 %v5332_v30, %v13209_v32  ;;  %v5335_v46 = vrot.slane %v13209_v32, 4  ;;  %v11932_v30 = vld [vmem:[%s13913_s3 + $0x170] sm:$0xff]   ;;  %v5595_v32 = vld [vmem:[#allocation3 + $0x44] sm:$0x1] }
 0x228   : > { %v5001_v12 = vpop.f32.mrb[143].mxu0  ;;  %v5288_v49 = vrot.slane %v5286_v31, 7  ;;  %v5097_v23 = vadd.f32 %v13130_v24, %v5007_v40  ;;  %v5317_v27 = vor.u32 %v5315_v29, %v13211_v33  ;;  %v5318_v40 = vrot.slane %v13211_v33, 4  ;;  %11256 = vmatpush3.bf16.msra.mxu0 %v11914_v38  ;;  %11153 = vmatprep.subr.bf16.mxu1 %v11932_v30 }
 0x229   : > { %v5095_v42 = vadd.f32 %v13130_v24, %v4999_v36  ;;  %v5308_v60 = vor.u32 %v5306_v16, %v5305_v0  ;;  %v5310_v34 = vrot.slane %v5305_v0, 4  ;;  %v5599_v9 = vsel %vm12313_vm9, %v5334_v58, %v5598_v54  ;;  %11257 = vmatprep.subr.bf16.mxu0 %v11929_v4  ;;  %v11937_v54 = vld [vmem:[%s13913_s3 + $0x130] sm:$0xff]  }
 0x22a   : > { %v5291_v50 = vor.u32 %v5289_v44, %v5288_v49  ;;  %v5293_v13 = vrot.slane %v5288_v49, 4  ;;  %v5337_v16 = vshrl.u32 %v10424_v18, 16  ;;  %v5340_v31 = vshll.u32 %v10424_v18, 16  ;;  %5600 = vst [vmem:[#allocation3 + $0x48] sm:$0xf] %v5599_v9  ;;  %11154 = vmatpush3.bf16.msra.mxu1 %v11937_v54 }
 0x22b   : > { %v5309_v59 = vsel %vm12295_vm8, %v5301_v25, %v5308_v60  ;;  %v5589_v36 = vsel %vm12278_vm4, %v5310_v34, %v5588_v63  ;;  %v5592_v25 = vsel %vm12313_vm9, %v5317_v27, %v5591_v22  ;;  %v5320_v44 = vshrl.u32 %v13206_v61, 16  ;;  %v5602_v18 = vld [vmem:[#allocation3 + $0x50] sm:$0x1] }
 0x22c   : > { %v5292_v3 = vsel %vm12295_vm8, %v5284_v48, %v5291_v50  ;;  %v5582_v6 = vsel %vm12278_vm4, %v5293_v13, %v5581_v53  ;;  %5587 = vst [vmem:[#allocation3 + $0x34] sm:$0xf] %v5309_v59  ;;  %5590 = vst [vmem:[#allocation3 + $0x38] sm:$0x1] %v5589_v36  ;;  %v11930_v48 = vld [vmem:[%s13913_s3 + $0x190] sm:$0xff]   ;;  %v5129_v63 = vmax.f32 %v5097_v23, 0.0  ;;  %v5010_v29 = vadd.f32 %v13201_v62, %v13019_v45 }
 0x22d   : > { %5580 = vst [vmem:[#allocation3 + $0x28] sm:$0xf] %v5292_v3  ;;  %5583 = vst [vmem:[#allocation3 + $0x2c] sm:$0x1] %v5582_v6  ;;  %v5127_v53 = vmax.f32 %v5095_v42, 0.0  ;;  %v5339_v11 = vrot.slane %v5337_v16, 7  ;;  %v5002_v0 = vadd.f32 %v5001_v12, %v13005_v17  ;;  %11258 = vmatpush3.bf16.msra.mxu0 %v11930_v48 }
 0x22e   : > { %5593 = vst [vmem:[#allocation3 + $0x3c] sm:$0xf] %v5592_v25  ;;  %v5322_v61 = vrot.slane %v5320_v44, 7  ;;  %v10427_v33 = vpack.c.bf16 %v5129_v63, %v5129_v63  ;;  %v5098_v45 = vadd.f32 %v13130_v24, %v5010_v29  ;;  %v5605_v36 = vld [vmem:[#allocation3 + $0x54] sm:$0xf]  ;;  %v13280_v29 = vld [vmem:[#allocation3 + $0xc] sm:$0xff]  }
 0x22f   : > { %v10425_v22 = vpack.c.bf16 %v5127_v53, %v5127_v53  ;;  %v5342_v42 = vor.u32 %v5340_v31, %v5339_v11  ;;  %v5344_v38 = vrot.slane %v5339_v11, 4  ;;  %v5096_v17 = vadd.f32 %v13130_v24, %v5002_v0 }
 0x230   : > { %v5327_v62 = vrot.slane %v5322_v61, 4  ;;  %v5363_v12 = vshrl.u32 %v10427_v33, 16  ;;  %v5366_v60 = vshll.u32 %v10427_v33, 16  ;;  %v5130_v3 = vmax.f32 %v5098_v45, 0.0 }
 0x231   : > { %v5343_v34 = vsel %vm12295_vm8, %v5335_v46, %v5342_v42  ;;  %v5603_v50 = vsel %vm12278_vm4, %v5344_v38, %v5602_v18  ;;  %v5346_v13 = vshrl.u32 %v10425_v22, 16  ;;  %v5349_v58 = vshll.u32 %v10425_v22, 16 }
 0x232   : > { %5601 = vst [vmem:[#allocation3 + $0x4c] sm:$0xf] %v5343_v34  ;;  %5604 = vst [vmem:[#allocation3 + $0x50] sm:$0x1] %v5603_v50  ;;  %v5596_v4 = vsel %vm12278_vm4, %v5327_v62, %v5595_v32  ;;  %v5365_v59 = vrot.slane %v5363_v12, 7  ;;  %v10428_v48 = vpack.c.bf16 %v5130_v3, %v5130_v3  ;;  %v13290_v34 = vld [vmem:[#allocation3 + $0x18] sm:$0xff]  }
 0x233   : > { %5597 = vst [vmem:[#allocation3 + $0x44] sm:$0x1] %v5596_v4  ;;  %v5348_v6 = vrot.slane %v5346_v13, 7  ;;  %v5616_v32 = vld [vmem:[#allocation3 + $0x68] sm:$0x1] }
 0x234   : > { %v5368_v31 = vor.u32 %v5366_v60, %v5365_v59  ;;  %v5374_v54 = vshll.u32 %v10428_v48, 16  ;;  %v11848_v12 = vld [vmem:[#allocation3 + $0x14] ss:$0 sps:$4 sm:$0x11]   ;;  %v6008_v60 = vshrl.u32 %v13280_v29, 16 }
 0x235   : > { %v11423_v47 = vpop.f32.mrb[144].mxu0  ;;  %v5351_v63 = vor.u32 %v5349_v58, %v5348_v6  ;;  %v5352_v53 = vrot.slane %v5348_v6, 4  ;;  %v5626_v13 = vld [vmem:[#allocation3 + $0x78] sm:$0xf] }
 0x236   : > { %v5014_v52 = vpop.f32.mrb[145].mxu0  ;;  %v5023_v49 = vadd.f32 %v11423_v47, %v13043_v35  ;;  %v5325_v35 = vor.u32 %v5323_v5, %v5322_v61  ;;  %v11851_v6 = vld [vmem:[#allocation3 + $0x20] ss:$0 sps:$4 sm:$0x11]  }
 0x237   : > { %v11424_v37 = vpop.f32.mrb[146].mxu0  ;;  %v5015_v23 = vadd.f32 %v5014_v52, %v13029_v43  ;;  %v5612_v43 = vld [vmem:[#allocation3 + $0x60] sm:$0xf]  ;;  %v5128_v52 = vmax.f32 %v5096_v17, 0.0  ;;  %v5606_v61 = vsel %vm12313_vm9, %v5351_v63, %v5605_v36 }
 0x238   : > { %v13246_v57 = vpop.f32.mrb[147].mxu0  ;;  %v5326_v47 = vsel %vm12295_vm8, %v5318_v40, %v5325_v35  ;;  %v5101_v9 = vadd.f32 %v13130_v24, %v5023_v49  ;;  %v5369_v40 = vrot.slane %v5365_v59, 4  ;;  %v5026_v44 = vadd.f32 %v11424_v37, %v13045_v20  ;;  %5607 = vst [vmem:[#allocation3 + $0x54] sm:$0xf] %v5606_v61 }
 0x239   : > { %5594 = vst [vmem:[#allocation3 + $0x40] sm:$0xf] %v5326_v47  ;;  %v5099_v25 = vadd.f32 %v13130_v24, %v5015_v23  ;;  %v10426_v30 = vpack.c.bf16 %v5128_v52, %v5128_v52  ;;  %v5613_v0 = vsel %vm12313_vm9, %v5368_v31, %v5612_v43  ;;  %v5371_v49 = vshrl.u32 %v10428_v48, 16  ;;  %v5609_v23 = vld [vmem:[#allocation3 + $0x5c] sm:$0x1] }
 0x23a   : > { %v5133_v11 = vmax.f32 %v5101_v9, 0.0  ;;  %5614 = vst [vmem:[#allocation3 + $0x60] sm:$0xf] %v5613_v0  ;;  %v5102_v38 = vadd.f32 %v13130_v24, %v5026_v44  ;;  %v5018_v45 = vadd.f32 %v13246_v57, %v13039_v2  ;;  %v5619_v2 = vld [vmem:[#allocation3 + $0x6c] sm:$0xf] }
 0x23b   : > { %v5131_v18 = vmax.f32 %v5099_v25, 0.0  ;;  %v5354_v20 = vshrl.u32 %v10426_v30, 16  ;;  %v5357_v37 = vshll.u32 %v10426_v30, 16  ;;  %v5373_v22 = vrot.slane %v5371_v49, 7  ;;  %v11852_v0 = vld [vmem:[#allocation3 + $0xc] sm:$0xfe]  }
 0x23c   : > { %v10431_v33 = vpack.c.bf16 %v5133_v11, %v5133_v11  ;;  %v5134_v57 = vmax.f32 %v5102_v38, 0.0  ;;  %v5100_v48 = vadd.f32 %v13130_v24, %v5018_v45 }
 0x23d   : > { %v13265_v27 = vpop.f32.mrb[148].mxu0  ;;  %v10429_v42 = vpack.c.bf16 %v5131_v18, %v5131_v18  ;;  %v5356_v17 = vrot.slane %v5354_v20, 7  ;;  %v5376_v50 = vor.u32 %v5374_v54, %v5373_v22  ;;  %v5378_v43 = vrot.slane %v5373_v22, 4  ;;  %v11853_v20 = vld [vmem:[#allocation3 + $0x14] ss:$0 sps:$4 sm:$0x11]  }
 0x23e   : > { %v13271_v46 = vpop.f32.mrb[149].mxu0  ;;  %v5397_v35 = vshrl.u32 %v10431_v33, 16  ;;  %v5400_v62 = vshll.u32 %v10431_v33, 16  ;;  %v10432_v61 = vpack.c.bf16 %v5134_v57, %v5134_v57  ;;  %v6015_v33 = vshll.u32 %v11848_v12, 16 }
 0x23f   : > { %v13275_v16 = vpop.f32.mrb[150].mxu0  ;;  %v5380_v58 = vshrl.u32 %v10429_v42, 16  ;;  %v5383_v47 = vshll.u32 %v10429_v42, 16  ;;  %v5359_v59 = vor.u32 %v5357_v37, %v5356_v17  ;;  %v5361_v36 = vrot.slane %v5356_v17, 4  ;;  %v5630_v17 = vld [vmem:[#allocation3 + $0x80] sm:$0x1] }
 0x240   : > { %v13278_v5 = vpop.f32.mrb[151].mxu0  ;;  %v13294_v3 = vrot.slane %v5397_v35, 7  ;;  %v5377_v9 = vsel %vm12295_vm8, %v5369_v40, %v5376_v50  ;;  %v5617_v25 = vsel %vm12278_vm4, %v5378_v43, %v5616_v32  ;;  %v5132_v32 = vmax.f32 %v5100_v48, 0.0 }
 0x241   : > { %v13302_v31 = vrot.slane %v5380_v58, 7  ;;  %5615 = vst [vmem:[#allocation3 + $0x64] sm:$0xf] %v5377_v9  ;;  %5618 = vst [vmem:[#allocation3 + $0x68] sm:$0x1] %v5617_v25  ;;  %v5360_v63 = vsel %vm12295_vm8, %v5352_v53, %v5359_v59  ;;  %v5610_v30 = vsel %vm12278_vm4, %v5361_v36, %v5609_v23  ;;  %v6010_v37 = vshll.u32 %v13280_v29, 16 }
 0x242   : > { %v5402_v11 = vor.u32 %v5400_v62, %v13294_v3  ;;  %v5403_v40 = vrot.slane %v13294_v3, 4  ;;  %5608 = vst [vmem:[#allocation3 + $0x58] sm:$0xf] %v5360_v63  ;;  %5611 = vst [vmem:[#allocation3 + $0x5c] sm:$0x1] %v5610_v30  ;;  %v6020_v22 = vshrl.u32 %v13290_v34, 16  ;;  %v10430_v45 = vpack.c.bf16 %v5132_v32, %v5132_v32 }
 0x243   : > { %v5385_v54 = vor.u32 %v5383_v47, %v13302_v31  ;;  %v5386_v18 = vrot.slane %v13302_v31, 4  ;;  %v5405_v42 = vshrl.u32 %v10432_v61, 16  ;;  %v5408_v38 = vshll.u32 %v10432_v61, 16  ;;  %v5623_v59 = vld [vmem:[#allocation3 + $0x74] sm:$0x1]  ;;  %v11849_v63 = vld [vmem:[#allocation3 + $0xc] sm:$0xff]  }
 0x244   : > { %v5627_v53 = vsel %vm12313_vm9, %v5402_v11, %v5626_v13  ;;  %v6012_v35 = vrot.slane %v6010_v37, 1  ;;  %v6017_v62 = vrot.slane %v6015_v33, 1  ;;  %v6022_v50 = vshll.u32 %v13290_v34, 16  ;;  %v13324_v13 = vld [vmem:[#allocation3 + $0x24] sm:$0xff]  }
 0x245   : > { %v13292_v4 = vpop.f32.mrb[152].mxu0  ;;  %5628 = vst [vmem:[#allocation3 + $0x78] sm:$0xf] %v5627_v53  ;;  %v5620_v23 = vsel %vm12313_vm9, %v5385_v54, %v5619_v2  ;;  %v6027_v43 = vshll.u32 %v11851_v6, 16  ;;  %v5407_v29 = vrot.slane %v5405_v42, 7  ;;  %v5388_v12 = vshrl.u32 %v10430_v45, 16 }
 0x246   : > { %v13296_v52 = vpop.f32.mrb[153].mxu0  ;;  %5621 = vst [vmem:[#allocation3 + $0x6c] sm:$0xf] %v5620_v23  ;;  %v5391_v58 = vshll.u32 %v10430_v45, 16  ;;  %v6398_v47 = vrot.slane %v11852_v0, 1  ;;  %v6013_v36 = vor.u32 %v6012_v35, %v6008_v60  ;;  %v6024_v3 = vrot.slane %v6022_v50, 1 }
 0x247   : > { %v13305_v44 = vpop.f32.mrb[154].mxu0  ;;  %v6029_v2 = vrot.slane %v6027_v43, 1  ;;  %v6399_v57 = vrot.slane %v11853_v20, 1  ;;  %v11858_v9 = vld [vmem:[#allocation3 + $0x2c] ss:$0 sps:$4 sm:$0x11]   ;;  %v5410_v25 = vor.u32 %v5408_v38, %v5407_v29  ;;  %v5039_v34 = vadd.f32 %v13265_v27, %v13061_v15 }
 0x248   : > { %v13313_v49 = vpop.f32.mrb[155].mxu0  ;;  %v5412_v31 = vrot.slane %v5407_v29, 4  ;;  %v5390_v48 = vrot.slane %v5388_v12, 7  ;;  %v11859_v6 = vld [vmem:[#allocation3 + $0x18] sm:$0xfe]   ;;  %v6018_v54 = vsel %vm1613_vm1, %v6013_v36, %v6017_v62  ;;  %v6025_v0 = vor.u32 %v6024_v3, %v6020_v22  ;;  %v11854_v61 = vld [vmem:[#allocation3 + $0x24] sm:$0xff]  }
 0x249   : > { %v11860_v30 = vld [vmem:[#allocation3 + $0x20] ss:$0 sps:$4 sm:$0x11]   ;;  %v6400_v60 = vsel %vm2014_vm10, %v6398_v47, %v6399_v57  ;;  %v5031_v32 = vadd.f32 %v13271_v46, %v13051_v26  ;;  %v5411_v53 = vsel %vm12295_vm8, %v5403_v40, %v5410_v25  ;;  %8692 = vmatprep.mubr.bf16.mxu1 %v6018_v54  ;;  %v5105_v26 = vadd.f32 %v13130_v24, %v5039_v34  ;;  %v11855_v36 = vld [vmem:[#allocation3 + $0x18] sm:$0xff]   ;;  %v11862_v3 = vld [vmem:[#allocation3 + $0x30] sm:$0xff]  }
 0x24a   : > { %v5631_v15 = vsel %vm12278_vm4, %v5412_v31, %v5630_v17  ;;  %v5393_v27 = vor.u32 %v5391_v58, %v5390_v48  ;;  %v5395_v37 = vrot.slane %v5390_v48, 4  ;;  %8854 = vmatmul.mubr.bf16.gmra.mrb[164].mxu0 %v6400_v60  ;;  %5629 = vst [vmem:[#allocation3 + $0x7c] sm:$0xf] %v5411_v53  ;;  %8693 = vmatmul.mubr.bf16.gmra.mrb[132].mxu1 %v11849_v63  ;;  %v6032_v40 = vshrl.u32 %v13324_v13, 16  ;;  %v5640_v54 = vld [vmem:[#allocation3 + $0x90] sm:$0xf] }
 0x24b   : > { %5632 = vst [vmem:[#allocation3 + $0x80] sm:$0x1] %v5631_v15  ;;  %v6030_v22 = vsel %vm1613_vm1, %v6025_v0, %v6029_v2  ;;  %8861 = vmatprep.mubr.bf16.mxu0 %v11854_v61  ;;  %v5103_v46 = vadd.f32 %v13130_v24, %v5031_v32  ;;  %v5042_v45 = vadd.f32 %v13275_v16, %v13069_v10  ;;  %v5137_v35 = vmax.f32 %v5105_v26, 0.0  ;;  %v5633_v60 = vld [vmem:[#allocation3 + $0x84] sm:$0xf] }
 0x24c   : > { %v5394_v42 = vsel %vm12295_vm8, %v5386_v18, %v5393_v27  ;;  %v5624_v38 = vsel %vm12278_vm4, %v5395_v37, %v5623_v59  ;;  %8700 = vmatprep.mubr.bf16.mxu1 %v6030_v22  ;;  %v5034_v17 = vadd.f32 %v13278_v5, %v13053_v41  ;;  %v6034_v50 = vshll.u32 %v13324_v13, 16 }
 0x24d   : > { %v13328_v11 = vpop.f32.mrb[156].mxu0  ;;  %5622 = vst [vmem:[#allocation3 + $0x70] sm:$0xf] %v5394_v42  ;;  %5625 = vst [vmem:[#allocation3 + $0x74] sm:$0x1] %v5624_v38  ;;  %v5135_v62 = vmax.f32 %v5103_v46, 0.0  ;;  %v5106_v29 = vadd.f32 %v13130_v24, %v5042_v45  ;;  %v10435_v47 = vpack.c.bf16 %v5137_v35, %v5137_v35  ;;  %v5055_v13 = vadd.f32 %v13292_v4, %v13091_v51 }
 0x24e   : > { %v13334_v20 = vpop.f32.mrb[157].mxu0  ;;  %v6039_v43 = vshll.u32 %v11858_v9, 16  ;;  %v5104_v18 = vadd.f32 %v13130_v24, %v5034_v17  ;;  %v6401_v12 = vrot.slane %v11859_v6, 1  ;;  %v6402_v58 = vrot.slane %v11860_v30, 1  ;;  %v5644_v46 = vld [vmem:[#allocation3 + $0x98] sm:$0x1] }
 0x24f   : > { %v13340_v33 = vpop.f32.mrb[158].mxu0  ;;  %v10433_v59 = vpack.c.bf16 %v5135_v62, %v5135_v62  ;;  %v6036_v10 = vrot.slane %v6034_v50, 1  ;;  %v5138_v41 = vmax.f32 %v5106_v29, 0.0  ;;  %v5431_v57 = vshrl.u32 %v10435_v47, 16  ;;  %v5637_v38 = vld [vmem:[#allocation3 + $0x8c] sm:$0x1] }
 0x250   : > { %v13346_v23 = vpop.f32.mrb[159].mxu0  ;;  %v6041_v16 = vrot.slane %v6039_v43, 1  ;;  %v5136_v5 = vmax.f32 %v5104_v18, 0.0  ;;  %v6403_v2 = vsel %vm2014_vm10, %v6401_v12, %v6402_v58  ;;  %v5434_v9 = vshll.u32 %v10435_v47, 16  ;;  %v11863_v35 = vld [vmem:[#allocation3 + $0x24] sm:$0xff]   ;;  %v11864_v62 = vld [vmem:[#allocation3 + $0x30] sm:$0xff]  }
 0x251   : > { %v5414_v25 = vshrl.u32 %v10433_v59, 16  ;;  %v5417_v31 = vshll.u32 %v10433_v59, 16  ;;  %v10436_v48 = vpack.c.bf16 %v5138_v41, %v5138_v41  ;;  %v6037_v34 = vor.u32 %v6036_v10, %v6032_v40  ;;  %v11865_v50 = vld [vmem:[#allocation3 + $0x38] ss:$0 sps:$4 sm:$0x11]  }
 0x252   : > { %v10434_v63 = vpack.c.bf16 %v5136_v5, %v5136_v5  ;;  %8862 = vmatmul.mubr.bf16.gmra.mrb[168].mxu0 %v6403_v2  ;;  %v5109_v6 = vadd.f32 %v13130_v24, %v5055_v13  ;;  %v5433_v30 = vrot.slane %v5431_v57, 7  ;;  %8701 = vmatmul.mubr.bf16.gmra.mrb[136].mxu1 %v11855_v36  ;;  %v5047_v61 = vadd.f32 %v13296_v52, %v13079_v14  ;;  %v11866_v41 = vld [vmem:[#allocation3 + $0x24] sm:$0xfe]   ;;  %v11867_v13 = vld [vmem:[#allocation3 + $0x2c] ss:$0 sps:$4 sm:$0x11]  }
 0x253   : > { %v5416_v0 = vrot.slane %v5414_v25, 7  ;;  %8869 = vmatprep.mubr.bf16.mxu0 %v11862_v3  ;;  %v5058_v51 = vadd.f32 %v13305_v44, %v13093_v7  ;;  %v5439_v4 = vshrl.u32 %v10436_v48, 16  ;;  %v5442_v32 = vshll.u32 %v10436_v48, 16  ;;  %v5654_v57 = vld [vmem:[#allocation3 + $0xa8] sm:$0xf] }
 0x254   : > { %v5422_v53 = vshrl.u32 %v10434_v63, 16  ;;  %v5425_v15 = vshll.u32 %v10434_v63, 16  ;;  %v5436_v27 = vor.u32 %v5434_v9, %v5433_v30  ;;  %v5437_v37 = vrot.slane %v5433_v30, 4  ;;  %v13387_v9 = vld [vmem:[%s13912_s2] ss:$0 sm:$0xff] }
 0x255   : > { %v5419_v22 = vor.u32 %v5417_v31, %v5416_v0  ;;  %v5420_v26 = vrot.slane %v5416_v0, 4  ;;  %v5441_v40 = vrot.slane %v5439_v4, 7  ;;  %v6042_v45 = vsel %vm1613_vm1, %v6037_v34, %v6041_v16  ;;  %v5647_v0 = vld [vmem:[#allocation3 + $0x9c] sm:$0xf] }
 0x256   : > { %v5424_v42 = vrot.slane %v5422_v53, 7  ;;  %v5141_v17 = vmax.f32 %v5109_v6, 0.0  ;;  %v5641_v14 = vsel %vm12313_vm9, %v5436_v27, %v5640_v54  ;;  %8708 = vmatprep.mubr.bf16.mxu1 %v6042_v45  ;;  %v5107_v52 = vadd.f32 %v13130_v24, %v5047_v61 }
 0x257   : > { %v5634_v7 = vsel %vm12313_vm9, %v5419_v22, %v5633_v60  ;;  %v5110_v44 = vadd.f32 %v13130_v24, %v5058_v51  ;;  %5642 = vst [vmem:[#allocation3 + $0x90] sm:$0xf] %v5641_v14  ;;  %v5444_v43 = vor.u32 %v5442_v32, %v5441_v40  ;;  %v5446_v29 = vrot.slane %v5441_v40, 4  ;;  %v11868_v14 = vld [vmem:[#allocation3 + $0x3c] sm:$0xff]  }
 0x258   : > { %5635 = vst [vmem:[#allocation3 + $0x84] sm:$0xf] %v5634_v7  ;;  %v5427_v18 = vor.u32 %v5425_v15, %v5424_v42  ;;  %v5429_v12 = vrot.slane %v5424_v42, 4  ;;  %v10439_v58 = vpack.c.bf16 %v5141_v17, %v5141_v17  ;;  %v5139_v47 = vmax.f32 %v5107_v52, 0.0  ;;  %v11871_v7 = vld [vmem:[#allocation3 + $0x3c] sm:$0xff]  }
 0x259   : > { %v5142_v59 = vmax.f32 %v5110_v44, 0.0  ;;  %v5050_v36 = vadd.f32 %v13313_v49, %v13085_v28  ;;  %v5445_v10 = vsel %vm12295_vm8, %v5437_v37, %v5444_v43  ;;  %v5645_v24 = vsel %vm12278_vm4, %v5446_v29, %v5644_v46  ;;  %v5658_v37 = vld [vmem:[#allocation3 + $0xb0] sm:$0x1]  ;;  %v11872_v52 = vld [vmem:[#allocation3 + $0x44] ss:$0 sps:$4 sm:$0x11]  }
 0x25a   : > { %v5428_v16 = vsel %vm12295_vm8, %v5420_v26, %v5427_v18  ;;  %v5638_v3 = vsel %vm12278_vm4, %v5429_v12, %v5637_v38  ;;  %5643 = vst [vmem:[#allocation3 + $0x94] sm:$0xf] %v5445_v10  ;;  %5646 = vst [vmem:[#allocation3 + $0x98] sm:$0x1] %v5645_v24  ;;  %v5465_v5 = vshrl.u32 %v10439_v58, 16  ;;  %v5468_v2 = vshll.u32 %v10439_v58, 16  ;;  %8709 = vmatmul.mubr.bf16.gmra.mrb[140].mxu1 %v11863_v35 }
 0x25b   : > { %5636 = vst [vmem:[#allocation3 + $0x88] sm:$0xf] %v5428_v16  ;;  %5639 = vst [vmem:[#allocation3 + $0x8c] sm:$0x1] %v5638_v3  ;;  %v10437_v28 = vpack.c.bf16 %v5139_v47, %v5139_v47  ;;  %v10440_v49 = vpack.c.bf16 %v5142_v59, %v5142_v59  ;;  %v5108_v25 = vadd.f32 %v13387_v9, %v5050_v36  ;;  %v6044_v31 = vshrl.u32 %v11864_v62, 16  ;;  %v11869_v43 = vld [vmem:[#allocation3 + $0x30] sm:$0xff]  }
 0x25c   : > { %v6046_v48 = vshll.u32 %v11864_v62, 16  ;;  %v6051_v63 = vshll.u32 %v11865_v50, 16  ;;  %v5467_v34 = vrot.slane %v5465_v5, 7  ;;  %v6404_v46 = vrot.slane %v11866_v41, 1  ;;  %v5651_v36 = vld [vmem:[#allocation3 + $0xa4] sm:$0x1] }
 0x25d   : > { %v5448_v6 = vshrl.u32 %v10437_v28, 16  ;;  %v5451_v30 = vshll.u32 %v10437_v28, 16  ;;  %v5473_v54 = vshrl.u32 %v10440_v49, 16  ;;  %v5476_v60 = vshll.u32 %v10440_v49, 16  ;;  %v11873_v41 = vld [vmem:[#allocation3 + $0x30] sm:$0xfe]  }
 0x25e   : > { %v5140_v61 = vmax.f32 %v5108_v25, 0.0  ;;  %v6048_v51 = vrot.slane %v6046_v48, 1  ;;  %v6053_v4 = vrot.slane %v6051_v63, 1  ;;  %v5470_v32 = vor.u32 %v5468_v2, %v5467_v34 }
 0x25f   : > { %v5471_v53 = vrot.slane %v5467_v34, 4  ;;  %v5450_v15 = vrot.slane %v5448_v6, 7  ;;  %v5475_v27 = vrot.slane %v5473_v54, 7  ;;  %v6405_v40 = vrot.slane %v11867_v13, 1 }
 0x260   : > { %v10438_v22 = vpack.c.bf16 %v5140_v61, %v5140_v61  ;;  %v6049_v26 = vor.u32 %v6048_v51, %v6044_v31  ;;  %v5655_v42 = vsel %vm12313_vm9, %v5470_v32, %v5654_v57  ;;  %v5071_v58 = vadd.f32 %v13328_v11, %v13139_v21  ;;  %v13416_v31 = vld [vmem:[#allocation3 + $0x48] sm:$0xff]   ;;  %v11877_v32 = vld [vmem:[#allocation3 + $0x3c] sm:$0xff]  }
 0x261   : > { %v5453_v38 = vor.u32 %v5451_v30, %v5450_v15  ;;  %v5454_v45 = vrot.slane %v5450_v15, 4  ;;  %v5478_v17 = vor.u32 %v5476_v60, %v5475_v27  ;;  %5656 = vst [vmem:[#allocation3 + $0xa8] sm:$0xf] %v5655_v42  ;;  %v5480_v44 = vrot.slane %v5475_v27, 4  ;;  %v5668_v15 = vld [vmem:[#allocation3 + $0xc0] sm:$0xf] }
 0x262   : > { %v5456_v35 = vshrl.u32 %v10438_v22, 16  ;;  %v5459_v62 = vshll.u32 %v10438_v22, 16  ;;  %v6054_v50 = vsel %vm1613_vm1, %v6049_v26, %v6053_v4  ;;  %v6406_v12 = vsel %vm2014_vm10, %v6404_v46, %v6405_v40  ;;  %v5661_v40 = vld [vmem:[#allocation3 + $0xb4] sm:$0xf]  ;;  %v5672_v42 = vld [vmem:[#allocation3 + $0xc8] sm:$0x1] }
 0x263   : > { %v5648_v29 = vsel %vm12313_vm9, %v5453_v38, %v5647_v0  ;;  %v5479_v18 = vsel %vm12295_vm8, %v5471_v53, %v5478_v17  ;;  %8716 = vmatprep.mubr.bf16.mxu1 %v6054_v50  ;;  %v5659_v47 = vsel %vm12278_vm4, %v5480_v44, %v5658_v37  ;;  %8870 = vmatmul.mubr.bf16.gmra.mrb[172].mxu0 %v6406_v12  ;;  %v6056_v11 = vshrl.u32 %v11871_v7, 16  ;;  %v11879_v53 = vld [vmem:[#allocation3 + $0x50] ss:$0 sps:$4 sm:$0x11]  }
 0x264   : > { %5649 = vst [vmem:[#allocation3 + $0x9c] sm:$0xf] %v5648_v29  ;;  %5657 = vst [vmem:[#allocation3 + $0xac] sm:$0xf] %v5479_v18  ;;  %v5458_v59 = vrot.slane %v5456_v35, 7  ;;  %v5063_v10 = vadd.f32 %v13334_v20, %v13115_v56  ;;  %v5074_v24 = vadd.f32 %v13340_v33, %v13144_v19  ;;  %8717 = vmatmul.mubr.bf16.gmra.mrb[144].mxu1 %v11869_v43  ;;  %8877 = vmatprep.mubr.bf16.mxu0 %v11868_v14  ;;  %v11876_v14 = vld [vmem:[#allocation3 + $0x48] sm:$0xff]  }
 0x265   : > { %5660 = vst [vmem:[#allocation3 + $0xb0] sm:$0x1] %v5659_v47  ;;  %v5113_v16 = vadd.f32 %v13387_v9, %v5071_v58  ;;  %v5066_v21 = vadd.f32 %v13346_v23, %v13124_v8  ;;  %v6058_v3 = vshll.u32 %v11871_v7, 16  ;;  %v11874_v20 = vld [vmem:[#allocation3 + $0x38] ss:$0 sps:$4 sm:$0x11]  }
 0x266   : > { %v5461_v5 = vor.u32 %v5459_v62, %v5458_v59  ;;  %v5463_v2 = vrot.slane %v5458_v59, 4  ;;  %v5111_v28 = vadd.f32 %v13387_v9, %v5063_v10  ;;  %v5114_v56 = vadd.f32 %v13387_v9, %v5074_v24  ;;  %v11880_v7 = vld [vmem:[#allocation3 + $0x3c] sm:$0xfe]   ;;  %v5665_v35 = vld [vmem:[#allocation3 + $0xbc] sm:$0x1]  ;;  %v11885_v29 = vld [vmem:[#allocation3 + $0x54] sm:$0xff]  }
 0x267   : > { %v5145_v49 = vmax.f32 %v5113_v16, 0.0  ;;  %v5112_v19 = vadd.f32 %v13387_v9, %v5066_v21  ;;  %v6060_v33 = vrot.slane %v6058_v3, 1  ;;  %v6063_v13 = vshll.u32 %v11872_v52, 16  ;;  %v11881_v43 = vld [vmem:[#allocation3 + $0x44] ss:$0 sps:$4 sm:$0x11]  }
 0x268   : > { %v5462_v57 = vsel %vm12295_vm8, %v5454_v45, %v5461_v5  ;;  %v5652_v8 = vsel %vm12278_vm4, %v5463_v2, %v5651_v36  ;;  %v5143_v23 = vmax.f32 %v5111_v28, 0.0  ;;  %v5146_v25 = vmax.f32 %v5114_v56, 0.0  ;;  %v11886_v59 = vld [vmem:[#allocation3 + $0x5c] ss:$0 sps:$4 sm:$0x11]  }
 0x269   : > { %5650 = vst [vmem:[#allocation3 + $0xa0] sm:$0xf] %v5462_v57  ;;  %5653 = vst [vmem:[#allocation3 + $0xa4] sm:$0x1] %v5652_v8  ;;  %v10443_v48 = vpack.c.bf16 %v5145_v49, %v5145_v49  ;;  %v5144_v63 = vmax.f32 %v5112_v19, 0.0  ;;  %v6061_v34 = vor.u32 %v6060_v33, %v6056_v11  ;;  %v6065_v6 = vrot.slane %v6063_v13, 1 }
 0x26a   : > { %v10441_v30 = vpack.c.bf16 %v5143_v23, %v5143_v23  ;;  %v10444_v9 = vpack.c.bf16 %v5146_v25, %v5146_v25  ;;  %v6407_v54 = vrot.slane %v11873_v41, 1  ;;  %v6408_v0 = vrot.slane %v11874_v20, 1  ;;  %v11892_v20 = vld [vmem:[#allocation3 + $0x60] sm:$0xff]   ;;  %v11887_v23 = vld [vmem:[#allocation3 + $0x48] sm:$0xfe]  }
 0x26b   : > { %v5499_v60 = vshrl.u32 %v10443_v48, 16  ;;  %v5502_v61 = vshll.u32 %v10443_v48, 16  ;;  %v10442_v51 = vpack.c.bf16 %v5144_v63, %v5144_v63  ;;  %v6066_v4 = vsel %vm1613_vm1, %v6061_v34, %v6065_v6  ;;  %v11888_v25 = vld [vmem:[#allocation3 + $0x50] ss:$0 sps:$4 sm:$0x11]   ;;  %v11883_v48 = vld [vmem:[#allocation3 + $0x48] sm:$0xff]  }
 0x26c   : > { %v5482_v27 = vshrl.u32 %v10441_v30, 16  ;;  %v5485_v37 = vshll.u32 %v10441_v30, 16  ;;  %v5507_v22 = vshrl.u32 %v10444_v9, 16  ;;  %v5510_v26 = vshll.u32 %v10444_v9, 16  ;;  %8724 = vmatprep.mubr.bf16.mxu1 %v6066_v4  ;;  %v11882_v34 = vld [vmem:[#allocation3 + $0x54] sm:$0xff]   ;;  %v11901_v9 = vld [vmem:[#allocation3 + $0x6c] sm:$0xff]  }
 0x26d   : > { %v5501_v46 = vrot.slane %v5499_v60, 7  ;;  %v5490_v38 = vshrl.u32 %v10442_v51, 16  ;;  %v5493_v45 = vshll.u32 %v10442_v51, 16  ;;  %v6409_v17 = vsel %vm2014_vm10, %v6407_v54, %v6408_v0  ;;  %8725 = vmatmul.mubr.bf16.gmra.mrb[148].mxu1 %v11877_v32  ;;  %v11893_v63 = vld [vmem:[#allocation3 + $0x68] ss:$0 sps:$4 sm:$0x11]  }
 0x26e   : > { %v5484_v52 = vrot.slane %v5482_v27, 7  ;;  %v5509_v44 = vrot.slane %v5507_v22, 7  ;;  %8878 = vmatmul.mubr.bf16.gmra.mrb[176].mxu0 %v6409_v17  ;;  %v6068_v62 = vshrl.u32 %v13416_v31, 16  ;;  %v6070_v50 = vshll.u32 %v13416_v31, 16  ;;  %v11890_v22 = vld [vmem:[#allocation3 + $0x60] sm:$0xff]  }
 0x26f   : > { %v5504_v18 = vor.u32 %v5502_v61, %v5501_v46  ;;  %v5505_v12 = vrot.slane %v5501_v46, 4  ;;  %v5492_v58 = vrot.slane %v5490_v38, 7  ;;  %8885 = vmatprep.mubr.bf16.mxu0 %v11876_v14  ;;  %v6075_v47 = vshll.u32 %v11879_v53, 16  ;;  %v11902_v27 = vld [vmem:[#allocation3 + $0x74] ss:$0 sps:$4 sm:$0x11]  }
 0x270   : > { %v5487_v36 = vor.u32 %v5485_v37, %v5484_v52  ;;  %v5488_v10 = vrot.slane %v5484_v52, 4  ;;  %v5512_v24 = vor.u32 %v5510_v26, %v5509_v44  ;;  %v5514_v16 = vrot.slane %v5509_v44, 4  ;;  %v11891_v26 = vld [vmem:[#allocation3 + $0x54] sm:$0xff]   ;;  %v11895_v38 = vld [vmem:[#allocation3 + $0x5c] ss:$0 sps:$4 sm:$0x11]  }
 0x271   : > { %v5669_v21 = vsel %vm12313_vm9, %v5504_v18, %v5668_v15  ;;  %v5495_v11 = vor.u32 %v5493_v45, %v5492_v58  ;;  %v5497_v3 = vrot.slane %v5492_v58, 4  ;;  %v6072_v41 = vrot.slane %v6070_v50, 1  ;;  %v11908_v45 = vld [vmem:[#allocation3 + $0x78] sm:$0xff]   ;;  %v11899_v50 = vld [vmem:[#allocation3 + $0x60] sm:$0xff]  }
 0x272   : > { %5670 = vst [vmem:[#allocation3 + $0xc0] sm:$0xf] %v5669_v21  ;;  %v5662_v5 = vsel %vm12313_vm9, %v5487_v36, %v5661_v40  ;;  %v5513_v2 = vsel %vm12295_vm8, %v5505_v12, %v5512_v24  ;;  %v5673_v28 = vsel %vm12278_vm4, %v5514_v16, %v5672_v42  ;;  %v6077_v56 = vrot.slane %v6075_v47, 1  ;;  %v11894_v40 = vld [vmem:[#allocation3 + $0x54] sm:$0xfe]   ;;  %v11917_v36 = vld [vmem:[#allocation3 + $0x84] sm:$0xff]  }
 0x273   : > { %5663 = vst [vmem:[#allocation3 + $0xb4] sm:$0xf] %v5662_v5  ;;  %5671 = vst [vmem:[#allocation3 + $0xc4] sm:$0xf] %v5513_v2  ;;  %v5496_v49 = vsel %vm12295_vm8, %v5488_v10, %v5495_v11  ;;  %v5666_v19 = vsel %vm12278_vm4, %v5497_v3, %v5665_v35  ;;  %v6073_v33 = vor.u32 %v6072_v41, %v6068_v62  ;;  %v6410_v1 = vrot.slane %v11880_v7, 1  ;;  %v11906_v2 = vld [vmem:[#allocation3 + $0x78] sm:$0xff]  }
 0x274   : > { %5674 = vst [vmem:[#allocation3 + $0xc8] sm:$0x1] %v5673_v28  ;;  %5664 = vst [vmem:[#allocation3 + $0xb8] sm:$0xf] %v5496_v49  ;;  %v6411_v13 = vrot.slane %v11881_v43, 1  ;;  %v6082_v57 = vshll.u32 %v11885_v29, 16 }
 0x275   : > { %5667 = vst [vmem:[#allocation3 + $0xbc] sm:$0x1] %v5666_v19  ;;  %v6087_v8 = vshll.u32 %v11886_v59, 16  ;;  %v6078_v31 = vsel %vm1613_vm1, %v6073_v33, %v6077_v56  ;;  %v6080_v6 = vshrl.u32 %v11885_v29, 16  ;;  %v6094_v30 = vshll.u32 %v11892_v20, 16  ;;  %v11896_v29 = vld [vmem:[#allocation3 + $0x6c] sm:$0xff]  }
 0x276   : > { %8732 = vmatprep.mubr.bf16.mxu1 %v6078_v31  ;;  %v6412_v55 = vsel %vm2014_vm10, %v6410_v1, %v6411_v13  ;;  %v6084_v39 = vrot.slane %v6082_v57, 1  ;;  %v6092_v61 = vshrl.u32 %v11892_v20, 16  ;;  %v6099_v51 = vshll.u32 %v11893_v63, 16  ;;  %v11903_v12 = vld [vmem:[#allocation3 + $0x60] sm:$0xfe]   ;;  %v11907_v28 = vld [vmem:[#allocation3 + $0x6c] sm:$0xff]  }
 0x277   : > { %8886 = vmatmul.mubr.bf16.gmra.mrb[180].mxu0 %v6412_v55  ;;  %8733 = vmatmul.mubr.bf16.gmra.mrb[152].mxu1 %v11883_v48  ;;  %v6089_v0 = vrot.slane %v6087_v8, 1  ;;  %v6096_v60 = vrot.slane %v6094_v30, 1  ;;  %v6413_v32 = vrot.slane %v11887_v23, 1  ;;  %v6414_v53 = vrot.slane %v11888_v25, 1  ;;  %v11910_v33 = vld [vmem:[#allocation3 + $0x6c] sm:$0xfe]  }
 0x278   : > { %8893 = vmatprep.mubr.bf16.mxu0 %v11882_v34  ;;  %v6085_v54 = vor.u32 %v6084_v39, %v6080_v6  ;;  %v6106_v37 = vshll.u32 %v11901_v9, 16  ;;  %v6101_v46 = vrot.slane %v6099_v51, 1  ;;  %v6111_v7 = vshll.u32 %v11902_v27, 16  ;;  %v11909_v58 = vld [vmem:[#allocation3 + $0x80] ss:$0 sps:$4 sm:$0x11]  }
 0x279   : > { %v6097_v15 = vor.u32 %v6096_v60, %v6092_v61  ;;  %v6415_v42 = vsel %vm2014_vm10, %v6413_v32, %v6414_v53  ;;  %v6416_v52 = vrot.slane %v11894_v40, 1  ;;  %v6104_v44 = vshrl.u32 %v11901_v9, 16  ;;  %v11904_v59 = vld [vmem:[#allocation3 + $0x68] ss:$0 sps:$4 sm:$0x11]   ;;  %v11924_v57 = vld [vmem:[#allocation3 + $0x90] sm:$0xff]  }
 0x27a   : > { %v6090_v4 = vsel %vm1613_vm1, %v6085_v54, %v6089_v0  ;;  %v6108_v14 = vrot.slane %v6106_v37, 1  ;;  %v6417_v35 = vrot.slane %v11895_v38, 1  ;;  %v6118_v62 = vshll.u32 %v11908_v45, 16  ;;  %v11918_v56 = vld [vmem:[#allocation3 + $0x8c] ss:$0 sps:$4 sm:$0x11]  }
 0x27b   : > { %8740 = vmatprep.mubr.bf16.mxu1 %v6090_v4  ;;  %v6102_v17 = vsel %vm1613_vm1, %v6097_v15, %v6101_v46  ;;  %v6113_v18 = vrot.slane %v6111_v7, 1  ;;  %v6116_v16 = vshrl.u32 %v11908_v45, 16  ;;  %v6123_v21 = vshll.u32 %v11909_v58, 16  ;;  %v11911_v49 = vld [vmem:[#allocation3 + $0x74] ss:$0 sps:$4 sm:$0x11]  }
 0x27c   : > { %v6109_v43 = vor.u32 %v6108_v14, %v6104_v44  ;;  %v6418_v47 = vsel %vm2014_vm10, %v6416_v52, %v6417_v35  ;;  %v6120_v24 = vrot.slane %v6118_v62, 1  ;;  %v6419_v11 = vrot.slane %v11903_v12, 1  ;;  %v11945_v55 = vld [vmem:[%s13913_s3 + $0x1d8] sm:$0xff]   ;;  %v11919_v6 = vld [vmem:[#allocation3 + $0x78] sm:$0xfe]   ;;  %v11922_v38 = vld [vmem:[#allocation3 + $0x90] sm:$0xff]  }
 0x27d   : > { %v6420_v3 = vrot.slane %v11904_v59, 1  ;;  %v6130_v41 = vshll.u32 %v11917_v36, 16  ;;  %v6125_v20 = vrot.slane %v6123_v21, 1  ;;  %v6128_v8 = vshrl.u32 %v11917_v36, 16  ;;  %v11912_v34 = vld [vmem:[#allocation3 + $0x84] sm:$0xff]   ;;  %v11915_v54 = vld [vmem:[#allocation3 + $0x78] sm:$0xff]   ;;  %11259 = vmatprep.subr.bf16.mxu0 %v11945_v55 }
 0x27e   : > { %v6114_v10 = vsel %vm1613_vm1, %v6109_v43, %v6113_v18  ;;  %v6121_v5 = vor.u32 %v6120_v24, %v6116_v16  ;;  %v6135_v23 = vshll.u32 %v11918_v56, 16  ;;  %v6422_v25 = vrot.slane %v11910_v33, 1  ;;  %v11920_v39 = vld [vmem:[#allocation3 + $0x80] ss:$0 sps:$4 sm:$0x11]   ;;  %v11923_v46 = vld [vmem:[#allocation3 + $0x84] sm:$0xff]  }
 0x27f   : > { %8894 = vmatmul.mubr.bf16.gmra.mrb[184].mxu0 %v6415_v42  ;;  %8741 = vmatmul.mubr.bf16.gmra.mrb[156].mxu1 %v11891_v26  ;;  %v6421_v19 = vsel %vm2014_vm10, %v6419_v11, %v6420_v3  ;;  %v6132_v13 = vrot.slane %v6130_v41, 1  ;;  %v6423_v31 = vrot.slane %v11911_v49, 1  ;;  %v6142_v63 = vshll.u32 %v11924_v57, 16  ;;  %v11925_v30 = vld [vmem:[#allocation3 + $0x98] ss:$0 sps:$4 sm:$0x11]  }
 0x280   : > { %8901 = vmatprep.mubr.bf16.mxu0 %v11890_v22  ;;  %8748 = vmatprep.mubr.bf16.mxu1 %v6102_v17  ;;  %v6126_v1 = vsel %vm1613_vm1, %v6121_v5, %v6125_v20  ;;  %v11946_v9 = vld [vmem:[%s13913_s3 + $0x198] sm:$0xff]   ;;  %v6137_v0 = vrot.slane %v6135_v23, 1  ;;  %v6140_v53 = vshrl.u32 %v11924_v57, 16  ;;  %v6147_v15 = vshll.u32 %v11925_v30, 16  ;;  %v11954_v26 = vld [vmem:[%s13913_s3 + $0x1e0] sm:$0xff]   ;;  %v11957_v52 = vld [vmem:[%s13913_s3 + $0x1e8] sm:$0xff]  }
 0x281   : > { %v6133_v48 = vor.u32 %v6132_v13, %v6128_v8  ;;  %v6424_v60 = vsel %vm2014_vm10, %v6422_v25, %v6423_v31  ;;  %11260 = vmatpush3.bf16.msra.mxu0 %v11946_v9  ;;  %v11948_v61 = vld [vmem:[%s13913_s3 + $0x178] sm:$0xff]   ;;  %v6144_v4 = vrot.slane %v6142_v63, 1  ;;  %v6425_v37 = vrot.slane %v11919_v6, 1  ;;  %v11927_v17 = vld [vmem:[#allocation3 + $0x8c] ss:$0 sps:$4 sm:$0x11]  }
 0x282   : > { %v11933_v32 = vld [vmem:[#allocation3 + $0x9c] sm:$0xff]   ;;  %11155 = vmatprep.subr.bf16.mxu1 %v11948_v61  ;;  %v6426_v22 = vrot.slane %v11920_v39, 1  ;;  %v11926_v45 = vld [vmem:[#allocation3 + $0x84] sm:$0xfe]   ;;  %11261 = vmatprep.subr.bf16.mxu0 %v11954_v26  ;;  %v6149_v44 = vrot.slane %v6147_v15, 1  ;;  %v11958_v35 = vld [vmem:[%s13913_s3 + $0x1a8] sm:$0xff]  }
 0x283   : > { %v6138_v51 = vsel %vm1613_vm1, %v6133_v48, %v6137_v0  ;;  %v11953_v27 = vld [vmem:[%s13913_s3 + $0x138] sm:$0xff]   ;;  %v6145_v40 = vor.u32 %v6144_v4, %v6140_v53  ;;  %v6154_v42 = vshll.u32 %v11933_v32, 16  ;;  %v11956_v7 = vld [vmem:[%s13913_s3 + $0x1a0] sm:$0xff]   ;;  %v11964_v18 = vld [vmem:[%s13913_s3 + $0x1f0] sm:$0xff]   ;;  %v6152_v12 = vshrl.u32 %v11933_v32, 16 }
 0x284   : > { %11156 = vmatpush3.bf16.msra.mxu1 %v11953_v27  ;;  %v11934_v14 = vld [vmem:[#allocation3 + $0xa4] ss:$0 sps:$4 sm:$0x11]   ;;  %v6427_v62 = vsel %vm2014_vm10, %v6425_v37, %v6426_v22  ;;  %v6429_v59 = vrot.slane %v11927_v17, 1  ;;  %v11965_v36 = vld [vmem:[%s13913_s3 + $0x1b0] sm:$0xff]   ;;  %v11938_v9 = vld [vmem:[#allocation3 + $0xa8] sm:$0xff]  }
 0x285   : > { %11262 = vmatpush3.bf16.msra.mxu0 %v11956_v7  ;;  %v6156_v43 = vrot.slane %v6154_v42, 1  ;;  %v6159_v58 = vshll.u32 %v11934_v14, 16  ;;  %v11928_v21 = vld [vmem:[#allocation3 + $0x9c] sm:$0xff]   ;;  %v11935_v11 = vld [vmem:[#allocation3 + $0x90] sm:$0xfe]   ;;  %v11947_v22 = vld [vmem:[#allocation3 + $0xa8] sm:$0xff]  }
 0x286   : > { %11263 = vmatprep.subr.bf16.mxu0 %v11957_v52  ;;  %v11941_v3 = vld [vmem:[#allocation3 + $0xb0] ss:$0 sps:$4 sm:$0x11]   ;;  %v11968_v41 = vld [vmem:[%s13913_s3 + $0x1f8] sm:$0xff]   ;;  %v11949_v33 = vld [vmem:[#allocation3 + $0xb4] sm:$0xff]   ;;  %v6431_v8 = vrot.slane %v11935_v11, 1 }
 0x287   : > { %8902 = vmatmul.mubr.bf16.gmra.mrb[188].mxu0 %v6418_v47  ;;  %8749 = vmatmul.mubr.bf16.gmra.mrb[160].mxu1 %v11899_v50  ;;  %v6150_v50 = vsel %vm1613_vm1, %v6145_v40, %v6149_v44  ;;  %v6428_v47 = vrot.slane %v11926_v45, 1  ;;  %v6157_v24 = vor.u32 %v6156_v43, %v6152_v12  ;;  %v6161_v5 = vrot.slane %v6159_v58, 1  ;;  %v11936_v56 = vld [vmem:[#allocation3 + $0x98] ss:$0 sps:$4 sm:$0x11]   ;;  %v11969_v20 = vld [vmem:[%s13913_s3 + $0x1b8] sm:$0xff]  }
 0x288   : > { %8909 = vmatprep.mubr.bf16.mxu0 %v11896_v29  ;;  %8756 = vmatprep.mubr.bf16.mxu1 %v6114_v10  ;;  %v11940_v29 = vld [vmem:[#allocation3 + $0xa8] sm:$0xff]   ;;  %v11931_v10 = vld [vmem:[#allocation3 + $0x90] sm:$0xff]   ;;  %v6171_v57 = vshll.u32 %v11941_v3, 16  ;;  %v6432_v23 = vrot.slane %v11936_v56, 1  ;;  %v13491_v25 = vld [vmem:[#allocation3 + $0x18] sm:$0xff]   ;;  %v6178_v63 = vshll.u32 %v11949_v33, 16 }
 0x289   : > { %11264 = vmatpush3.bf16.msra.mxu0 %v11958_v35  ;;  %v6166_v16 = vshll.u32 %v11940_v29, 16  ;;  %v6162_v49 = vsel %vm1613_vm1, %v6157_v24, %v6161_v5  ;;  %v6164_v13 = vshrl.u32 %v11940_v29, 16  ;;  %v11943_v48 = vld [vmem:[#allocation3 + $0xa4] ss:$0 sps:$4 sm:$0x11]   ;;  %v6176_v4 = vshrl.u32 %v11949_v33, 16 }
 0x28a   : > { %11265 = vmatprep.subr.bf16.mxu0 %v11964_v18  ;;  %v11942_v55 = vld [vmem:[#allocation3 + $0x9c] sm:$0xfe]   ;;  %v6173_v6 = vrot.slane %v6171_v57, 1  ;;  %v6433_v30 = vsel %vm2014_vm10, %v6431_v8, %v6432_v23  ;;  %v6180_v0 = vrot.slane %v6178_v63, 1  ;;  %v7597_v32 = vshrl.u32 %v13491_v25, 16  ;;  %v11970_v27 = vld [vmem:[#allocation3 + $0xc] sm:$0xff]  }
 0x28b   : > { %v6434_v61 = vrot.slane %v11942_v55, 1  ;;  %v11952_v15 = vld [vmem:[#allocation3 + $0xb0] ss:$0 sps:$4 sm:$0x11]   ;;  %v11960_v37 = vld [vmem:[#allocation3 + $0xb4] sm:$0xfe]  }
 0x28c   : > { %v6181_v26 = vor.u32 %v6180_v0, %v6176_v4  ;;  %v11961_v40 = vld [vmem:[#allocation3 + $0xbc] ss:$0 sps:$4 sm:$0x11]   ;;  %v11944_v42 = vld [vmem:[#allocation3 + $0xb4] sm:$0xff]   ;;  %v6438_v45 = vrot.slane %v11952_v15, 1  ;;  %v7599_v52 = vshll.u32 %v13491_v25, 16 }
 0x28d   : > { %11266 = vmatpush3.bf16.msra.mxu0 %v11965_v36  ;;  %v11963_v17 = vld [vmem:[#allocation3 + $0x14] ss:$0 sps:$4 sm:$0x11]   ;;  %v11967_v7 = vld [vmem:[#allocation3 + $0x20] ss:$0 sps:$4 sm:$0x11]  }
 0x28e   : > { %11267 = vmatprep.subr.bf16.mxu0 %v11968_v41  ;;  %v6796_v35 = vshrl.u32 %v11970_v27, 16  ;;  %v6441_v43 = vrot.slane %v11961_v40, 1  ;;  %v11971_v18 = vld [vmem:[#allocation3 + $0x14] ss:$0 sps:$4 sm:$0x11]   ;;  %v7196_v12 = vrot.slane %v11963_v17, 1 }
 0x28f   : > { %8910 = vmatmul.mubr.bf16.gmra.mrb[192].mxu0 %v6421_v19  ;;  %8757 = vmatmul.mubr.bf16.gmra.mrb[164].mxu1 %v11907_v28  ;;  %v6430_v28 = vsel %vm2014_vm10, %v6428_v47, %v6429_v59  ;;  %v6168_v19 = vrot.slane %v6166_v16, 1  ;;  %v11976_v58 = vld [vmem:[#allocation3 + $0x24] sm:$0xff]   ;;  %v11973_v47 = vld [vmem:[#allocation3 + $0x18] sm:$0xfe]   ;;  %v7604_v36 = vshll.u32 %v11967_v7, 16  ;;  %v6803_v16 = vshll.u32 %v11971_v18, 16 }
 0x290   : > { %8917 = vmatprep.mubr.bf16.mxu0 %v11906_v2  ;;  %8764 = vmatprep.mubr.bf16.mxu1 %v6126_v1  ;;  %v13483_v2 = vld [vmem:[%s13913_s3 + $0x200] sm:$0xff]   ;;  %v11950_v1 = vld [vmem:[#allocation3 + $0xbc] ss:$0 sps:$4 sm:$0x11]   ;;  %v11959_v59 = vld [vmem:[#allocation3 + $0xb4] sm:$0xff]   ;;  %v7611_v3 = vshll.u32 %v11976_v58, 16 }
 0x291   : > { %11437 = vmatprep.subr.bf16.mxu1 %v13483_v2  ;;  %11268 = vmatpush3.bf16.msra.mxu0 %v11969_v20  ;;  %v6169_v31 = vor.u32 %v6168_v19, %v6164_v13  ;;  %v6183_v39 = vshll.u32 %v11950_v1, 16  ;;  %v11955_v24 = vld [vmem:[#allocation3 + $0xc0] sm:$0xff]   ;;  %v11977_v11 = vld [vmem:[#allocation3 + $0x2c] ss:$0 sps:$4 sm:$0x11]   ;;  %v7601_v20 = vrot.slane %v7599_v52, 1 }
 0x292   : > { %v6805_v19 = vrot.slane %v6803_v16, 1  ;;  %v7198_v33 = vrot.slane %v11973_v47, 1  ;;  %v7613_v57 = vrot.slane %v7611_v3, 1  ;;  %v7616_v8 = vshll.u32 %v11977_v11, 16  ;;  %v11980_v25 = vld [vmem:[#allocation3 + $0x24] sm:$0xfe]  }
 0x293   : > { %v6185_v53 = vrot.slane %v6183_v39, 1  ;;  %v11981_v63 = vld [vmem:[#allocation3 + $0x2c] ss:$0 sps:$4 sm:$0x11]   ;;  %v11985_v39 = vld [vmem:[#allocation3 + $0x24] sm:$0xff]   ;;  %v11987_v0 = vld [vmem:[%s13913_s3 + $0x208] sm:$0xff]  }
 0x294   : > { %v7618_v4 = vrot.slane %v7616_v8, 1  ;;  %v7201_v15 = vrot.slane %v11980_v25, 1  ;;  %v12002_v40 = vld [vmem:[%s13913_s3 + $0x210] sm:$0xff]   ;;  %v11988_v17 = vld [vmem:[#allocation3 + $0x30] sm:$0xfe]   ;;  %v6820_v18 = vshrl.u32 %v11985_v39, 16 }
 0x295   : > { %v6186_v44 = vsel %vm1613_vm1, %v6181_v26, %v6185_v53  ;;  %v11989_v7 = vld [vmem:[#allocation3 + $0x38] ss:$0 sps:$4 sm:$0x11]   ;;  %v11982_v11 = vld [vmem:[#allocation3 + $0x24] sm:$0xff]  }
 0x297   : > { %8918 = vmatmul.mubr.bf16.gmra.mrb[196].mxu0 %v6424_v60  ;;  %8765 = vmatmul.mubr.bf16.gmra.mrb[168].mxu1 %v11915_v54  ;;  %v6174_v54 = vsel %vm1613_vm1, %v6169_v31, %v6173_v6  ;;  %v11951_v60 = vld [vmem:[#allocation3 + $0xa8] sm:$0xfe]   ;;  %v7602_v31 = vor.u32 %v7601_v20, %v7597_v32  ;;  %v11984_v6 = vld [vmem:[#allocation3 + $0x38] ss:$0 sps:$4 sm:$0x11]  }
 0x298   : > { %8925 = vmatprep.mubr.bf16.mxu0 %v11912_v34  ;;  %8772 = vmatprep.mubr.bf16.mxu1 %v6138_v51  ;;  %v11939_v34 = vld [vmem:[#allocation3 + $0x9c] sm:$0xff]   ;;  %v6435_v51 = vrot.slane %v11943_v48, 1  ;;  %v11998_v20 = vld [vmem:[#allocation3 + $0x48] sm:$0xff]  }
 0x29a   : > { %v6436_v14 = vsel %vm2014_vm10, %v6434_v61, %v6435_v51  ;;  %v7609_v51 = vshrl.u32 %v11976_v58, 16  ;;  %v11994_v58 = vld [vmem:[#allocation3 + $0x38] ss:$0 sps:$4 sm:$0x11]  }
 0x29f   : > { %8926 = vmatmul.mubr.bf16.gmra.mrb[200].mxu0 %v6427_v62  ;;  %8773 = vmatmul.mubr.bf16.gmra.mrb[172].mxu1 %v11923_v46  ;;  %v6437_v46 = vrot.slane %v11951_v60, 1  ;;  %v6798_v62 = vshll.u32 %v11970_v27, 16  ;;  %v7202_v27 = vrot.slane %v11981_v63, 1 }
 0x2a0   : > { %8933 = vmatprep.mubr.bf16.mxu0 %v11922_v38  ;;  %8780 = vmatprep.mubr.bf16.mxu1 %v6150_v50  ;;  %v11962_v38 = vld [vmem:[#allocation3 + $0xc] sm:$0xfe]   ;;  %v6440_v50 = vrot.slane %v11960_v37, 1  ;;  %v6822_v37 = vshll.u32 %v11985_v39, 16 }
 0x2a1   : > { %v7195_v29 = vrot.slane %v11962_v38, 1  ;;  %v6439_v41 = vsel %vm2014_vm10, %v6437_v46, %v6438_v45  ;;  %v6800_v5 = vrot.slane %v6798_v62, 1  ;;  %v7628_v38 = vshll.u32 %v11984_v6, 16  ;;  %v11993_v62 = vld [vmem:[#allocation3 + $0x30] sm:$0xff]  }
 0x2a2   : > { %v6832_v25 = vshrl.u32 %v11993_v62, 16  ;;  %v7647_v6 = vshll.u32 %v11998_v20, 16 }
 0x2a3   : > { %v7197_v56 = vsel %vm2014_vm10, %v7195_v29, %v7196_v12  ;;  %v6801_v23 = vor.u32 %v6800_v5, %v6796_v35  ;;  %v11991_v35 = vld [vmem:[#allocation3 + $0x3c] sm:$0xff]   ;;  %v7630_v29 = vrot.slane %v7628_v38, 1  ;;  %v11992_v12 = vld [vmem:[#allocation3 + $0x44] ss:$0 sps:$4 sm:$0x11]  }
 0x2a4   : > { %v7635_v16 = vshll.u32 %v11991_v35, 16  ;;  %v7640_v5 = vshll.u32 %v11992_v12, 16 }
 0x2a7   : > { %8934 = vmatmul.mubr.bf16.gmra.mrb[204].mxu0 %v6430_v28  ;;  %8781 = vmatmul.mubr.bf16.gmra.mrb[176].mxu1 %v11931_v10  ;;  %v11974_v10 = vld [vmem:[#allocation3 + $0x20] ss:$0 sps:$4 sm:$0x11]  }
 0x2a8   : > { %8941 = vmatprep.mubr.bf16.mxu0 %v11928_v21  ;;  %8788 = vmatprep.mubr.bf16.mxu1 %v6162_v49  ;;  %v11978_v21 = vld [vmem:[#allocation3 + $0x18] sm:$0xff]   ;;  %v11979_v28 = vld [vmem:[#allocation3 + $0x20] ss:$0 sps:$4 sm:$0x11]   ;;  %v7606_v49 = vrot.slane %v7604_v36, 1  ;;  %v7199_v1 = vrot.slane %v11974_v10, 1 }
 0x2a9   : > { %v6810_v13 = vshll.u32 %v11978_v21, 16  ;;  %v6815_v48 = vshll.u32 %v11979_v28, 16  ;;  %v6808_v32 = vshrl.u32 %v11978_v21, 16  ;;  %v7204_v36 = vrot.slane %v11988_v17, 1 }
 0x2aa   : > { %v7607_v60 = vsel %vm1613_vm1, %v7602_v31, %v7606_v49  ;;  %v7200_v61 = vsel %vm2014_vm10, %v7198_v33, %v7199_v1  ;;  %v7205_v10 = vrot.slane %v11989_v7, 1  ;;  %v6834_v21 = vshll.u32 %v11993_v62, 16  ;;  %v11996_v28 = vld [vmem:[#allocation3 + $0x44] ss:$0 sps:$4 sm:$0x11]   ;;  %v12000_v1 = vld [vmem:[#allocation3 + $0x3c] sm:$0xff]  }
 0x2ab   : > { %v6812_v55 = vrot.slane %v6810_v13, 1  ;;  %v6817_v53 = vrot.slane %v6815_v48, 1  ;;  %v11999_v33 = vld [vmem:[#allocation3 + $0x50] ss:$0 sps:$4 sm:$0x11]   ;;  %v12017_v13 = vld [vmem:[%s13913_s3 + $0x218] sm:$0xff]  }
 0x2ac   : > { %v7206_v8 = vsel %vm2014_vm10, %v7204_v36, %v7205_v10  ;;  %v7642_v31 = vrot.slane %v7640_v5, 1  ;;  %v12001_v48 = vld [vmem:[#allocation3 + $0x44] ss:$0 sps:$4 sm:$0x11]   ;;  %v11997_v62 = vld [vmem:[#allocation3 + $0x3c] sm:$0xff]   ;;  %v12015_v10 = vld [vmem:[#allocation3 + $0x54] sm:$0xff]  }
 0x2ad   : > { %v6813_v26 = vor.u32 %v6812_v55, %v6808_v32  ;;  %v12006_v32 = vld [vmem:[#allocation3 + $0x54] sm:$0xff]   ;;  %v12014_v36 = vld [vmem:[#allocation3 + $0x68] ss:$0 sps:$4 sm:$0x11]  }
 0x2ae   : > { %v7657_v7 = vshrl.u32 %v12006_v32, 16  ;;  %v12016_v5 = vld [vmem:[#allocation3 + $0x5c] ss:$0 sps:$4 sm:$0x11]  }
 0x2af   : > { %8942 = vmatmul.mubr.bf16.gmra.mrb[208].mxu0 %v6433_v30  ;;  %8789 = vmatmul.mubr.bf16.gmra.mrb[180].mxu1 %v11939_v34  ;;  %v11983_v34 = vld [vmem:[#allocation3 + $0x30] sm:$0xff]   ;;  %v6442_v30 = vsel %vm2014_vm10, %v6440_v50, %v6441_v43  ;;  %v7203_v50 = vsel %vm2014_vm10, %v7201_v15, %v7202_v27  ;;  %v7649_v15 = vrot.slane %v7647_v6, 1 }
 0x2b0   : > { %8949 = vmatprep.mubr.bf16.mxu0 %v11938_v9  ;;  %8796 = vmatprep.mubr.bf16.mxu1 %v6174_v54  ;;  %v6806_v9 = vsel %vm1613_vm1, %v6801_v23, %v6805_v19  ;;  %v11986_v54 = vld [vmem:[#allocation3 + $0x2c] ss:$0 sps:$4 sm:$0x11]   ;;  %v7623_v46 = vshll.u32 %v11983_v34, 16  ;;  %v6836_v19 = vrot.slane %v6834_v21, 1  ;;  %v7637_v23 = vrot.slane %v7635_v16, 1 }
 0x2b1   : > { %v6827_v45 = vshll.u32 %v11986_v54, 16  ;;  %v11990_v54 = vld [vmem:[#allocation3 + $0x30] sm:$0xff]  }
 0x2b2   : > { %v7625_v43 = vrot.slane %v7623_v46, 1  ;;  %v6837_v39 = vor.u32 %v6836_v19, %v6832_v25  ;;  %v12019_v25 = vld [vmem:[#allocation3 + $0x68] ss:$0 sps:$4 sm:$0x11]  }
 0x2b3   : > { %v12022_v6 = vld [vmem:[#allocation3 + $0x74] ss:$0 sps:$4 sm:$0x11]  }
 0x2b7   : > { %8950 = vmatmul.mubr.bf16.gmra.mrb[212].mxu0 %v6436_v14  ;;  %8797 = vmatmul.mubr.bf16.gmra.mrb[184].mxu1 %v11947_v22  ;;  %v7614_v22 = vor.u32 %v7613_v57, %v7609_v51  ;;  %v6824_v14 = vrot.slane %v6822_v37, 1  ;;  %v12004_v51 = vld [vmem:[#allocation3 + $0x50] ss:$0 sps:$4 sm:$0x11]  }
 0x2b8   : > { %8957 = vmatprep.mubr.bf16.mxu0 %v11944_v42  ;;  %8804 = vmatprep.mubr.bf16.mxu1 %v6186_v44  ;;  %v11975_v42 = vld [vmem:[#allocation3 + $0x18] sm:$0xff]   ;;  %v7621_v44 = vshrl.u32 %v11983_v34, 16  ;;  %v7208_v34 = vrot.slane %v11996_v28, 1 }
 0x2b9   : > { %v7619_v52 = vsel %vm1613_vm1, %v7614_v22, %v7618_v4  ;;  %v6825_v47 = vor.u32 %v6824_v14, %v6820_v18  ;;  %v7645_v4 = vshrl.u32 %v11998_v20, 16  ;;  %v12007_v37 = vld [vmem:[#allocation3 + $0x5c] ss:$0 sps:$4 sm:$0x11]   ;;  %v12008_v22 = vld [vmem:[#allocation3 + $0x48] sm:$0xff]   ;;  %v7211_v14 = vrot.slane %v12004_v51, 1 }
 0x2ba   : > { %v7626_v3 = vor.u32 %v7625_v43, %v7621_v44  ;;  %v7664_v44 = vshll.u32 %v12007_v37, 16  ;;  %v12010_v43 = vld [vmem:[#allocation3 + $0x54] sm:$0xfe]   ;;  %v12011_v18 = vld [vmem:[#allocation3 + $0x5c] ss:$0 sps:$4 sm:$0x11]  }
 0x2bb   : > { %v7213_v28 = vrot.slane %v12010_v43, 1  ;;  %v13533_v37 = vld [vmem:[#allocation3 + $0x78] sm:$0xff]  }
 0x2bc   : > { %v7631_v57 = vsel %vm1613_vm1, %v7626_v3, %v7630_v29  ;;  %v6856_v3 = vshrl.u32 %v12008_v22, 16 }
 0x2bf   : > { %8958 = vmatmul.mubr.bf16.gmra.mrb[216].mxu0 %v6439_v41  ;;  %8805 = vmatmul.mubr.bf16.gmra.mrb[188].mxu1 %v11959_v59  ;;  %v6829_v59 = vrot.slane %v6827_v45, 1  ;;  %v11995_v41 = vld [vmem:[#allocation3 + $0x3c] sm:$0xfe]   ;;  %v12009_v45 = vld [vmem:[#allocation3 + $0x50] ss:$0 sps:$4 sm:$0x11]  }
 0x2c0   : > { %8965 = vmatprep.mubr.bf16.mxu0 %v11955_v24  ;;  %9006 = vmatprep.mubr.bf16.mxu1 %v7197_v56  ;;  %v7633_v24 = vshrl.u32 %v11991_v35, 16  ;;  %v6839_v56 = vshll.u32 %v11994_v58, 16  ;;  %v7207_v55 = vrot.slane %v11995_v41, 1  ;;  %v6858_v35 = vshll.u32 %v12008_v22, 16  ;;  %v12013_v58 = vld [vmem:[#allocation3 + $0x60] sm:$0xff]   ;;  %v12012_v22 = vld [vmem:[#allocation3 + $0x54] sm:$0xff]  }
 0x2c1   : > { %v6830_v49 = vsel %vm1613_vm1, %v6825_v47, %v6829_v59  ;;  %v6863_v29 = vshll.u32 %v12009_v45, 16  ;;  %v7671_v20 = vshll.u32 %v12013_v58, 16  ;;  %v12025_v45 = vld [vmem:[#allocation3 + $0x6c] sm:$0xfe]  }
 0x2c2   : > { %v6841_v63 = vrot.slane %v6839_v56, 1  ;;  %v7209_v46 = vsel %vm2014_vm10, %v7207_v55, %v7208_v34  ;;  %v6860_v59 = vrot.slane %v6858_v35, 1  ;;  %v7214_v56 = vrot.slane %v12011_v18, 1  ;;  %v12031_v18 = vld [vmem:[#allocation3 + $0x74] ss:$0 sps:$4 sm:$0x11]  }
 0x2c3   : > { %v6865_v41 = vrot.slane %v6863_v29, 1  ;;  %v7669_v55 = vshrl.u32 %v12013_v58, 16 }
 0x2c4   : > { %v6861_v19 = vor.u32 %v6860_v59, %v6856_v3 }
 0x2c7   : > { %8966 = vmatmul.mubr.bf16.gmra.mrb[220].mxu0 %v6442_v30  ;;  %9007 = vmatmul.mubr.bf16.vlgmr.msra.gmra.mrb[192].mxu1 %v6806_v9  ;;  %v7652_v30 = vshll.u32 %v11999_v33, 16  ;;  %v6846_v9 = vshll.u32 %v12000_v1, 16  ;;  %v7676_v33 = vshll.u32 %v12014_v36, 16 }
 0x2c8   : > { %9167 = vmatprep.mubr.bf16.mxu0 %v7607_v60  ;;  %9014 = vmatprep.mubr.bf16.mxu1 %v7200_v61  ;;  %v12003_v60 = vld [vmem:[#allocation3 + $0x48] sm:$0xfe]   ;;  %v6851_v61 = vshll.u32 %v12001_v48, 16  ;;  %v10933_v48 = vpop.f32.mrb[128].mxu1 }
 0x2c9   : > { %11438 = vmatpush3.bf16.msra.mxu1 %v13483_v2  ;;  %v6818_v2 = vsel %vm1613_vm1, %v6813_v26, %v6817_v53  ;;  %v6842_v53 = vsel %vm1613_vm1, %v6837_v39, %v6841_v63  ;;  %v6848_v27 = vrot.slane %v6846_v9, 1  ;;  %v7210_v17 = vrot.slane %v12003_v60, 1  ;;  %v12023_v39 = vld [vmem:[#allocation3 + $0x60] sm:$0xff]   ;;  %v10934_v36 = vpop.f32.mrb[129].mxu1 }
 0x2ca   : > { %11439 = vmatprep.subr.bf16.mxu1 %v11987_v0  ;;  %v6853_v38 = vrot.slane %v6851_v61, 1  ;;  %v6866_v63 = vsel %vm1613_vm1, %v6861_v19, %v6865_v41  ;;  %v7215_v9 = vsel %vm2014_vm10, %v7213_v28, %v7214_v56  ;;  %v7678_v60 = vrot.slane %v7676_v33, 1  ;;  %v12024_v61 = vld [vmem:[#allocation3 + $0x68] ss:$0 sps:$4 sm:$0x11]  }
 0x2cb   : > { %v7212_v21 = vsel %vm2014_vm10, %v7210_v17, %v7211_v14  ;;  %v6880_v29 = vshrl.u32 %v12023_v39, 16  ;;  %v13542_v41 = vld [vmem:[#allocation3 + $0x84] sm:$0xff]   ;;  %v12034_v28 = vld [vmem:[#allocation3 + $0x80] ss:$0 sps:$4 sm:$0x11]  }
 0x2cc   : > { %v12033_v56 = vld [vmem:[#allocation3 + $0x78] sm:$0xfe]  }
 0x2cd   : > { %11440 = vmatpush3.bf16.msra.mxu1 %v11987_v0  ;;  %v7638_v0 = vor.u32 %v7637_v23, %v7633_v24  ;;  %v12032_v24 = vld [vmem:[%s13913_s3 + $0x220] sm:$0xff]   ;;  %v6875_v23 = vshll.u32 %v12016_v5, 16  ;;  %v6899_v5 = vshll.u32 %v12031_v18, 16 }
 0x2ce   : > { %11441 = vmatprep.subr.bf16.mxu1 %v12002_v40 }
 0x2cf   : > { %9168 = vmatmul.mubr.bf16.vlgmr.msra.gmra.mrb[224].mxu0 %v11975_v42  ;;  %9015 = vmatmul.mubr.bf16.gmra.mrb[196].mxu1 %v6818_v2  ;;  %v7643_v26 = vsel %vm1613_vm1, %v7638_v0, %v7642_v31  ;;  %v6844_v42 = vshrl.u32 %v12000_v1, 16  ;;  %v6870_v1 = vshll.u32 %v12015_v10, 16  ;;  %v6868_v0 = vshrl.u32 %v12015_v10, 16 }
 0x2d0   : > { %9175 = vmatprep.mubr.bf16.mxu0 %v7619_v52  ;;  %9022 = vmatprep.mubr.bf16.mxu1 %v7203_v50  ;;  %v7659_v52 = vshll.u32 %v12006_v32, 16  ;;  %v7650_v50 = vor.u32 %v7649_v15, %v7645_v4  ;;  %v6877_v51 = vrot.slane %v6875_v23, 1  ;;  %v7217_v32 = vrot.slane %v12019_v25, 1 }
 0x2d1   : > { %11442 = vmatpush3.bf16.msra.mxu1 %v12002_v40  ;;  %v7654_v40 = vrot.slane %v7652_v30, 1  ;;  %v6849_v2 = vor.u32 %v6848_v27, %v6844_v42  ;;  %v6872_v34 = vrot.slane %v6870_v1, 1  ;;  %v6882_v27 = vshll.u32 %v12023_v39, 16 }
 0x2d2   : > { %11443 = vmatprep.subr.bf16.mxu1 %v12017_v13  ;;  %v7661_v12 = vrot.slane %v7659_v52, 1  ;;  %v6887_v42 = vshll.u32 %v12024_v61, 16  ;;  %v12029_v52 = vld [vmem:[#allocation3 + $0x80] ss:$0 sps:$4 sm:$0x11]   ;;  %v6901_v39 = vrot.slane %v6899_v5, 1 }
 0x2d3   : > { %v6854_v47 = vsel %vm1613_vm1, %v6849_v2, %v6853_v38  ;;  %v7655_v16 = vsel %vm1613_vm1, %v7650_v50, %v7654_v40  ;;  %v6873_v15 = vor.u32 %v6872_v34, %v6868_v0  ;;  %v12030_v40 = vld [vmem:[#allocation3 + $0x6c] sm:$0xff]   ;;  %v12026_v38 = vld [vmem:[#allocation3 + $0x74] ss:$0 sps:$4 sm:$0x11]   ;;  %v7695_v2 = vshll.u32 %v13533_v37, 16 }
 0x2d4   : > { %v12047_v50 = vld [vmem:[%s13913_s3 + $0x228] sm:$0xff]   ;;  %v6889_v58 = vrot.slane %v6887_v42, 1  ;;  %v7220_v59 = vrot.slane %v12026_v38, 1  ;;  %v12041_v38 = vld [vmem:[#allocation3 + $0x8c] ss:$0 sps:$4 sm:$0x11]  }
 0x2d5   : > { %11444 = vmatpush3.bf16.msra.mxu1 %v12017_v13  ;;  %v12005_v13 = vld [vmem:[#allocation3 + $0x48] sm:$0xff]   ;;  %v6878_v17 = vsel %vm1613_vm1, %v6873_v15, %v6877_v51  ;;  %v7222_v51 = vrot.slane %v12033_v56, 1 }
 0x2d6   : > { %11445 = vmatprep.subr.bf16.mxu1 %v12032_v24  ;;  %v12027_v15 = vld [vmem:[#allocation3 + $0x6c] sm:$0xff]  }
 0x2d7   : > { %9176 = vmatmul.mubr.bf16.gmra.mrb[228].mxu0 %v11982_v11  ;;  %9023 = vmatmul.mubr.bf16.gmra.mrb[200].mxu1 %v6830_v49  ;;  %v7666_v11 = vrot.slane %v7664_v44, 1  ;;  %v12021_v49 = vld [vmem:[#allocation3 + $0x6c] sm:$0xff]  }
 0x2d8   : > { %9183 = vmatprep.mubr.bf16.mxu0 %v7631_v57  ;;  %9030 = vmatprep.mubr.bf16.mxu1 %v7206_v8  ;;  %v7662_v57 = vor.u32 %v7661_v12, %v7657_v7  ;;  %v12018_v8 = vld [vmem:[#allocation3 + $0x60] sm:$0xfe]   ;;  %v7683_v31 = vshll.u32 %v12021_v49, 16  ;;  %v7681_v14 = vshrl.u32 %v12021_v49, 16  ;;  %v6884_v7 = vrot.slane %v6882_v27, 1  ;;  %v10936_v49 = vpop.f32.mrb[130].mxu1 }
 0x2d9   : > { %11446 = vmatpush3.bf16.msra.mxu1 %v12032_v24  ;;  %v7216_v4 = vrot.slane %v12018_v8, 1  ;;  %v7697_v24 = vrot.slane %v7695_v2, 1  ;;  %v12038_v8 = vld [vmem:[#allocation3 + $0x78] sm:$0xff]   ;;  %v10937_v23 = vpop.f32.mrb[131].mxu1 }
 0x2da   : > { %v7667_v30 = vsel %vm1613_vm1, %v7662_v57, %v7666_v11  ;;  %11447 = vmatprep.subr.bf16.mxu1 %v12047_v50  ;;  %v6885_v10 = vor.u32 %v6884_v7, %v6880_v29  ;;  %v12020_v11 = vld [vmem:[#allocation3 + $0x60] sm:$0xff]   ;;  %v7693_v57 = vshrl.u32 %v13533_v37, 16  ;;  %v12044_v2 = vld [vmem:[#allocation3 + $0x98] ss:$0 sps:$4 sm:$0x11]  }
 0x2db   : > { %v7218_v35 = vsel %vm2014_vm10, %v7216_v4, %v7217_v32  ;;  %v7223_v4 = vrot.slane %v12034_v28, 1  ;;  %v7705_v32 = vshrl.u32 %v13542_v41, 16 }
 0x2dc   : > { %v6890_v1 = vsel %vm1613_vm1, %v6885_v10, %v6889_v58 }
 0x2dd   : > { %11448 = vmatpush3.bf16.msra.mxu1 %v12047_v50 }
 0x2df   : > { %9184 = vmatmul.mubr.bf16.gmra.mrb[232].mxu0 %v11990_v54  ;;  %9031 = vmatmul.mubr.bf16.gmra.mrb[204].mxu1 %v6842_v53  ;;  %v7673_v54 = vrot.slane %v7671_v20, 1  ;;  %v7685_v53 = vrot.slane %v7683_v31, 1  ;;  %v12037_v20 = vld [vmem:[#allocation3 + $0x8c] ss:$0 sps:$4 sm:$0x11]   ;;  %v6892_v31 = vshrl.u32 %v12030_v40, 16 }
 0x2e0   : > { %9191 = vmatprep.mubr.bf16.mxu0 %v7643_v26  ;;  %9038 = vmatprep.mubr.bf16.mxu1 %v7209_v46  ;;  %v7688_v46 = vshll.u32 %v12022_v6, 16  ;;  %v7712_v37 = vshll.u32 %v12037_v20, 16  ;;  %v12052_v20 = vld [vmem:[#allocation3 + $0xa4] ss:$0 sps:$4 sm:$0x11]  }
 0x2e1   : > { %v7674_v26 = vor.u32 %v7673_v54, %v7669_v55  ;;  %v7686_v43 = vor.u32 %v7685_v53, %v7681_v14  ;;  %v7698_v54 = vor.u32 %v7697_v24, %v7693_v57  ;;  %v6906_v53 = vshll.u32 %v12038_v8, 16  ;;  %v12043_v14 = vld [vmem:[#allocation3 + $0x90] sm:$0xff]  }
 0x2e2   : > { %v7690_v12 = vrot.slane %v7688_v46, 1  ;;  %v7714_v50 = vrot.slane %v7712_v37, 1  ;;  %v7719_v58 = vshll.u32 %v12043_v14, 16 }
 0x2e3   : > { %v7679_v44 = vsel %vm1613_vm1, %v7674_v26, %v7678_v60  ;;  %v12045_v26 = vld [vmem:[#allocation3 + $0x84] sm:$0xff]  }
 0x2e4   : > { %v7691_v33 = vsel %vm1613_vm1, %v7686_v43, %v7690_v12  ;;  %v7226_v12 = vrot.slane %v12041_v38, 1  ;;  %v7721_v56 = vrot.slane %v7719_v58, 1 }
 0x2e7   : > { %9192 = vmatmul.mubr.bf16.gmra.mrb[236].mxu0 %v11997_v62  ;;  %9039 = vmatmul.mubr.bf16.gmra.mrb[208].mxu1 %v6854_v47  ;;  %v6894_v62 = vshll.u32 %v12030_v40, 16  ;;  %v7219_v47 = vrot.slane %v12025_v45, 1  ;;  %v12040_v40 = vld [vmem:[#allocation3 + $0x84] sm:$0xfe]  }
 0x2e8   : > { %9199 = vmatprep.mubr.bf16.mxu0 %v7655_v16  ;;  %9046 = vmatprep.mubr.bf16.mxu1 %v7212_v21  ;;  %v7700_v16 = vshll.u32 %v12029_v52, 16  ;;  %v10935_v21 = vadd.f32 %v10934_v36, %v10933_v48  ;;  %v7707_v48 = vshll.u32 %v13542_v41, 16  ;;  %v7224_v52 = vsel %vm2014_vm10, %v7222_v51, %v7223_v4  ;;  %v12061_v4 = vld [vmem:[#allocation3 + $0xa4] ss:$0 sps:$4 sm:$0x11]  }
 0x2e9   : > { %v6896_v3 = vrot.slane %v6894_v62, 1  ;;  %v12062_v62 = vld [vmem:[%s13913_s3 + $0x230] sm:$0xff]   ;;  %v7225_v18 = vrot.slane %v12040_v40, 1  ;;  %v7724_v36 = vshll.u32 %v12044_v2, 16 }
 0x2ea   : > { %v7702_v6 = vrot.slane %v7700_v16, 1  ;;  %v7709_v27 = vrot.slane %v7707_v48, 1  ;;  %11449 = vmatprep.subr.bf16.mxu1 %v12062_v62  ;;  %v12048_v16 = vld [vmem:[#allocation3 + $0x90] sm:$0xfe]   ;;  %v12042_v48 = vld [vmem:[#allocation3 + $0x84] sm:$0xff]  }
 0x2eb   : > { %v6897_v0 = vor.u32 %v6896_v3, %v6892_v31  ;;  %11450 = vmatpush3.bf16.msra.mxu1 %v12062_v62  ;;  %v12053_v3 = vld [vmem:[#allocation3 + $0x90] sm:$0xff]   ;;  %v7227_v28 = vsel %vm2014_vm10, %v7225_v18, %v7226_v12  ;;  %v12054_v31 = vld [vmem:[#allocation3 + $0x98] ss:$0 sps:$4 sm:$0x11]   ;;  %v6947_v62 = vshll.u32 %v12061_v4, 16 }
 0x2ec   : > { %v7703_v7 = vsel %vm1613_vm1, %v7698_v54, %v7702_v6  ;;  %v12059_v54 = vld [vmem:[#allocation3 + $0xb0] ss:$0 sps:$4 sm:$0x11]   ;;  %v6935_v51 = vshll.u32 %v12054_v31, 16 }
 0x2ed   : > { %v6902_v45 = vsel %vm1613_vm1, %v6897_v0, %v6901_v39  ;;  %v12055_v39 = vld [vmem:[#allocation3 + $0x9c] sm:$0xfe]  }
 0x2ee   : > { %v12060_v0 = vld [vmem:[#allocation3 + $0x9c] sm:$0xff]  }
 0x2ef   : > { %9200 = vmatmul.mubr.bf16.gmra.mrb[240].mxu0 %v12005_v13  ;;  %9047 = vmatmul.mubr.bf16.gmra.mrb[212].mxu1 %v6866_v63  ;;  %v7221_v13 = vsel %vm2014_vm10, %v7219_v47, %v7220_v59  ;;  %v10938_v63 = vadd.f32 %v10937_v23, %v10936_v49  ;;  %v12035_v47 = vld [vmem:[#allocation3 + $0x78] sm:$0xff]   ;;  %v7710_v59 = vor.u32 %v7709_v27, %v7705_v32  ;;  %v6916_v49 = vshrl.u32 %v12045_v26, 16 }
 0x2f0   : > { %9207 = vmatprep.mubr.bf16.mxu0 %v7667_v30  ;;  %9054 = vmatprep.mubr.bf16.mxu1 %v7215_v9  ;;  %v12039_v30 = vld [vmem:[#allocation3 + $0x80] ss:$0 sps:$4 sm:$0x11]   ;;  %v7228_v23 = vrot.slane %v12048_v16, 1  ;;  %v6942_v38 = vshll.u32 %v12060_v0, 16 }
 0x2f1   : > { %v6911_v42 = vshll.u32 %v12039_v30, 16  ;;  %v7715_v5 = vsel %vm1613_vm1, %v7710_v59, %v7714_v50  ;;  %v12056_v30 = vld [vmem:[#allocation3 + $0xa4] ss:$0 sps:$4 sm:$0x11]   ;;  %v12063_v50 = vld [vmem:[#allocation3 + $0xa8] sm:$0xfe]  }
 0x2f2   : > { %v6944_v18 = vrot.slane %v6942_v38, 1  ;;  %v12067_v59 = vld [vmem:[#allocation3 + $0xbc] ss:$0 sps:$4 sm:$0x11]  }
 0x2f3   : > { %v6913_v43 = vrot.slane %v6911_v42, 1 }
 0x2f6   : > { %v11045_v19 = vpop.f32.mrb[160].mxu0 }
 0x2f7   : > { %9208 = vmatmul.mubr.bf16.gmra.mrb[244].mxu0 %v12012_v22  ;;  %9055 = vmatmul.mubr.bf16.gmra.mrb[216].mxu1 %v6878_v17  ;;  %v11046_v25 = vpop.f32.mrb[161].mxu0  ;;  %v6904_v22 = vshrl.u32 %v12038_v8, 16  ;;  %v6908_v17 = vrot.slane %v6906_v53, 1 }
 0x2f8   : > { %9215 = vmatprep.mubr.bf16.mxu0 %v7679_v44  ;;  %9062 = vmatprep.mubr.bf16.mxu1 %v7218_v35  ;;  %v11047_v55 = vadd.f32 %v11046_v25, %v11045_v19  ;;  %v11048_v34 = vpop.f32.mrb[162].mxu0  ;;  %v6918_v44 = vshll.u32 %v12045_v26, 16  ;;  %v12046_v35 = vld [vmem:[#allocation3 + $0x8c] ss:$0 sps:$4 sm:$0x11]   ;;  %v12077_v26 = vld [vmem:[%s13913_s3 + $0x238] sm:$0xff]  }
 0x2f9   : > { %v11049_v9 = vpop.f32.mrb[163].mxu0  ;;  %v6909_v29 = vor.u32 %v6908_v17, %v6904_v22  ;;  %v6923_v24 = vshll.u32 %v12046_v35, 16  ;;  %v6928_v22 = vshrl.u32 %v12053_v3, 16  ;;  %v6937_v17 = vrot.slane %v6935_v51, 1  ;;  %11451 = vmatprep.subr.bf16.mxu1 %v12077_v26 }
 0x2fa   : > { %v13549_v60 = vadd.f32 %v11047_v55, %v10935_v21  ;;  %v11050_v61 = vadd.f32 %v11049_v9, %v11048_v34  ;;  %v6920_v10 = vrot.slane %v6918_v44, 1  ;;  %v12051_v21 = vld [vmem:[#allocation3 + $0x9c] sm:$0xff]   ;;  %v7736_v55 = vshll.u32 %v12052_v20, 16  ;;  %v12058_v34 = vld [vmem:[#allocation3 + $0xa8] sm:$0xff]   ;;  %11452 = vmatpush3.bf16.msra.mxu1 %v12077_v26 }
 0x2fb   : > { %v6914_v41 = vsel %vm1613_vm1, %v6909_v29, %v6913_v43  ;;  %v7731_v19 = vshll.u32 %v12051_v21, 16  ;;  %v6925_v8 = vrot.slane %v6923_v24, 1  ;;  %v7743_v27 = vshll.u32 %v12058_v34, 16  ;;  %v12064_v43 = vld [vmem:[#allocation3 + $0xb0] ss:$0 sps:$4 sm:$0x11]  }
 0x2fc   : > { %v13552_v46 = vadd.f32 %v11050_v61, %v10938_v63  ;;  %v6921_v57 = vor.u32 %v6920_v10, %v6916_v49  ;;  %v7738_v37 = vrot.slane %v7736_v55, 1  ;;  %v7741_v42 = vshrl.u32 %v12058_v34, 16 }
 0x2fd   : > { %v7733_v6 = vrot.slane %v7731_v19, 1  ;;  %v7745_v2 = vrot.slane %v7743_v27, 1  ;;  %v7748_v44 = vshll.u32 %v12059_v54, 16  ;;  %v6940_v35 = vshrl.u32 %v12060_v0, 16  ;;  %v13581_v54 = vld [vmem:[#allocation3 + $0xb4] sm:$0xff]  }
 0x2fe   : > { %v6926_v61 = vsel %vm1613_vm1, %v6921_v57, %v6925_v8  ;;  %v7234_v57 = vrot.slane %v12063_v50, 1  ;;  %v7760_v34 = vshll.u32 %v12067_v59, 16  ;;  %v12074_v27 = vld [vmem:[#allocation3 + $0xc8] ss:$0 sps:$4 sm:$0x11]  }
 0x2ff   : > { %9216 = vmatmul.mubr.bf16.gmra.mrb[248].mxu0 %v12020_v11  ;;  %9063 = vmatmul.mubr.bf16.gmra.mrb[220].mxu1 %v6890_v1  ;;  %v12049_v11 = vld [vmem:[#allocation3 + $0x98] ss:$0 sps:$4 sm:$0x11]   ;;  %v7726_v1 = vrot.slane %v7724_v36, 1  ;;  %v13570_v36 = vld [vmem:[#allocation3 + $0xa8] sm:$0xff]  }
 0x300   : > { %9223 = vmatprep.mubr.bf16.mxu0 %v7691_v33  ;;  %9070 = vmatprep.mubr.bf16.mxu1 %v7221_v13  ;;  %v7717_v33 = vshrl.u32 %v12043_v14, 16  ;;  %v6930_v13 = vshll.u32 %v12053_v3, 16  ;;  %v7229_v25 = vrot.slane %v12049_v11, 1  ;;  %v7231_v14 = vrot.slane %v12055_v39, 1  ;;  %v12066_v3 = vld [vmem:[#allocation3 + $0xb4] sm:$0xff]   ;;  %v13577_v39 = vld [vmem:[#allocation3 + $0xc0] sm:$0xff]  }
 0x301   : > { %v6954_v31 = vshll.u32 %v13570_v36, 16  ;;  %v7755_v55 = vshll.u32 %v12066_v3, 16  ;;  %v7765_v59 = vshrl.u32 %v13577_v39, 16 }
 0x302   : > { %v7722_v63 = vor.u32 %v7721_v56, %v7717_v33  ;;  %v6932_v9 = vrot.slane %v6930_v13, 1  ;;  %v7230_v53 = vsel %vm2014_vm10, %v7228_v23, %v7229_v25  ;;  %v6949_v13 = vrot.slane %v6947_v62, 1 }
 0x303   : > { %v7235_v25 = vrot.slane %v12064_v43, 1  ;;  %v7757_v26 = vrot.slane %v7755_v55, 1 }
 0x304   : > { %v7727_v32 = vsel %vm1613_vm1, %v7722_v63, %v7726_v1  ;;  %v6945_v1 = vor.u32 %v6944_v18, %v6940_v35  ;;  %v7753_v63 = vshrl.u32 %v12066_v3, 16  ;;  %v12081_v3 = vld [vmem:[#allocation3 + $0xc0] sm:$0xff]  }
 0x306   : > { %v6950_v4 = vsel %vm1613_vm1, %v6945_v1, %v6949_v13  ;;  %v12084_v1 = vld [vmem:[#allocation3 + $0xd4] ss:$0 sps:$4 sm:$0x11]  }
 0x307   : > { %9224 = vmatmul.mubr.bf16.gmra.mrb[252].mxu0 %v12027_v15  ;;  %9071 = vmatmul.mubr.bf16.gmra.mrb[224].mxu1 %v6902_v45  ;;  %v7729_v15 = vshrl.u32 %v12051_v21, 16  ;;  %v6933_v45 = vor.u32 %v6932_v9, %v6928_v22  ;;  %v7236_v22 = vsel %vm2014_vm10, %v7234_v57, %v7235_v25 }
 0x308   : > { %9231 = vmatprep.mubr.bf16.mxu0 %v7703_v7  ;;  %9078 = vmatprep.mubr.bf16.mxu1 %v7224_v52  ;;  %v7232_v7 = vrot.slane %v12056_v30, 1  ;;  %v12050_v52 = vld [vmem:[#allocation3 + $0x90] sm:$0xff]  }
 0x309   : > { %v7734_v40 = vor.u32 %v7733_v6, %v7729_v15  ;;  %v6938_v12 = vsel %vm1613_vm1, %v6933_v45, %v6937_v17  ;;  %v12070_v6 = vld [vmem:[#allocation3 + $0xb4] sm:$0xfe]   ;;  %v6956_v15 = vrot.slane %v6954_v31, 1  ;;  %v7767_v45 = vshll.u32 %v13577_v39, 16 }
 0x30a   : > { %v7233_v24 = vsel %vm2014_vm10, %v7231_v14, %v7232_v7  ;;  %v7237_v43 = vrot.slane %v12070_v6, 1  ;;  %v12072_v6 = vld [vmem:[#allocation3 + $0xb4] sm:$0xff]  }
 0x30b   : > { %v7739_v10 = vsel %vm1613_vm1, %v7734_v40, %v7738_v37  ;;  %v12076_v37 = vld [vmem:[#allocation3 + $0xbc] ss:$0 sps:$4 sm:$0x11]  }
 0x30f   : > { %9232 = vmatmul.mubr.bf16.gmra.mrb[0].mxu0 %v12035_v47  ;;  %9079 = vmatmul.mubr.bf16.gmra.mrb[228].mxu1 %v6914_v41  ;;  %v12069_v41 = vld [vmem:[#allocation3 + $0xb0] ss:$0 sps:$4 sm:$0x11]  }
 0x310   : > { %9239 = vmatprep.mubr.bf16.mxu0 %v7715_v5  ;;  %9086 = vmatprep.mubr.bf16.mxu1 %v7227_v28  ;;  %v7746_v5 = vor.u32 %v7745_v2, %v7741_v42  ;;  %v7750_v28 = vrot.slane %v7748_v44, 1  ;;  %v6959_v9 = vshll.u32 %v12069_v41, 16  ;;  %v6966_v2 = vshll.u32 %v13581_v54, 16  ;;  %v12083_v41 = vld [vmem:[#allocation3 + $0xcc] sm:$0xff]  }
 0x311   : > { %v7762_v44 = vrot.slane %v7760_v34, 1  ;;  %v7779_v31 = vshll.u32 %v12083_v41, 16  ;;  %v6978_v34 = vshll.u32 %v12081_v3, 16 }
 0x312   : > { %v7751_v51 = vsel %vm1613_vm1, %v7746_v5, %v7750_v28  ;;  %v6961_v50 = vrot.slane %v6959_v9, 1 }
 0x317   : > { %9240 = vmatmul.mubr.bf16.gmra.mrb[4].mxu0 %v12042_v48  ;;  %9087 = vmatmul.mubr.bf16.gmra.mrb[232].mxu1 %v6926_v61  ;;  %v12057_v48 = vld [vmem:[#allocation3 + $0x9c] sm:$0xff]  }
 0x318   : > { %9247 = vmatprep.mubr.bf16.mxu0 %v7727_v32  ;;  %9094 = vmatprep.mubr.bf16.mxu1 %v7230_v53  ;;  %v12071_v61 = vld [vmem:[#allocation3 + $0xbc] ss:$0 sps:$4 sm:$0x11]  }
 0x31d   : > { %v11051_v29 = vpop.f32.mrb[164].mxu0  ;;  %v10939_v58 = vpop.f32.mrb[132].mxu1 }
 0x31e   : > { %v11052_v47 = vpop.f32.mrb[165].mxu0  ;;  %v10940_v16 = vpop.f32.mrb[133].mxu1 }
 0x31f   : > { %9248 = vmatmul.mubr.bf16.gmra.mrb[8].mxu0 %v12050_v52  ;;  %9095 = vmatmul.mubr.bf16.gmra.mrb[236].mxu1 %v6938_v12  ;;  %v11053_v21 = vadd.f32 %v11052_v47, %v11051_v29  ;;  %v11054_v11 = vpop.f32.mrb[166].mxu0  ;;  %v10941_v56 = vadd.f32 %v10940_v16, %v10939_v58  ;;  %v10942_v20 = vpop.f32.mrb[134].mxu1  ;;  %v6952_v52 = vshrl.u32 %v13570_v36, 16  ;;  %v7238_v58 = vrot.slane %v12071_v61, 1 }
 0x320   : > { %9255 = vmatprep.mubr.bf16.mxu0 %v7739_v10  ;;  %9102 = vmatprep.mubr.bf16.mxu1 %v7233_v24  ;;  %v11055_v49 = vpop.f32.mrb[167].mxu0  ;;  %v10943_v19 = vpop.f32.mrb[135].mxu1  ;;  %v7758_v47 = vor.u32 %v7757_v26, %v7753_v63  ;;  %v7769_v10 = vrot.slane %v7767_v45, 1  ;;  %v12065_v24 = vld [vmem:[#allocation3 + $0xa8] sm:$0xff]   ;;  %v7772_v36 = vshll.u32 %v12074_v27, 16  ;;  %v6980_v27 = vrot.slane %v6978_v34, 1 }
 0x321   : > { %v11056_v33 = vadd.f32 %v11055_v49, %v11054_v11  ;;  %v13574_v8 = vadd.f32 %v11053_v21, %v10941_v56  ;;  %v10944_v23 = vadd.f32 %v10943_v19, %v10942_v20  ;;  %v6957_v12 = vor.u32 %v6956_v15, %v6952_v52  ;;  %v12078_v56 = vld [vmem:[#allocation3 + $0xc0] sm:$0xfe]   ;;  %v12079_v20 = vld [vmem:[#allocation3 + $0xc8] ss:$0 sps:$4 sm:$0x11]  }
 0x322   : > { %v6968_v21 = vrot.slane %v6966_v2, 1  ;;  %v6971_v11 = vshll.u32 %v12076_v37, 16  ;;  %v7763_v49 = vsel %vm1613_vm1, %v7758_v47, %v7762_v44  ;;  %v7239_v19 = vsel %vm2014_vm10, %v7237_v43, %v7238_v58  ;;  %v12085_v37 = vld [vmem:[#allocation3 + $0x18] sm:$0xfe]  }
 0x323   : > { %v13579_v30 = vadd.f32 %v11056_v33, %v10944_v23  ;;  %v6962_v5 = vsel %vm1613_vm1, %v6957_v12, %v6961_v50  ;;  %v6964_v23 = vshrl.u32 %v13581_v54, 16  ;;  %v7774_v39 = vrot.slane %v7772_v36, 1  ;;  %v12086_v54 = vld [vmem:[#allocation3 + $0x20] ss:$0 sps:$4 sm:$0x11]  }
 0x324   : > { %v6973_v9 = vrot.slane %v6971_v11, 1  ;;  %v7241_v61 = vrot.slane %v12079_v20, 1  ;;  %v7996_v12 = vrot.slane %v12085_v37, 1  ;;  %v12091_v20 = vld [vmem:[#allocation3 + $0x38] ss:$0 sps:$4 sm:$0x11]  }
 0x325   : > { %v11057_v0 = vpop.f32.mrb[168].mxu0  ;;  %v10945_v32 = vpop.f32.mrb[136].mxu1  ;;  %v6969_v55 = vor.u32 %v6968_v21, %v6964_v23  ;;  %v12089_v21 = vld [vmem:[#allocation3 + $0x2c] ss:$0 sps:$4 sm:$0x11]  }
 0x326   : > { %v11058_v53 = vpop.f32.mrb[169].mxu0  ;;  %v10946_v40 = vpop.f32.mrb[137].mxu1  ;;  %v12095_v37 = vld [vmem:[#allocation3 + $0x50] ss:$0 sps:$4 sm:$0x11]  }
 0x327   : > { %9256 = vmatmul.mubr.bf16.gmra.mrb[12].mxu0 %v12057_v48  ;;  %9103 = vmatmul.mubr.bf16.gmra.mrb[240].mxu1 %v6950_v4  ;;  %v11059_v42 = vadd.f32 %v11058_v53, %v11057_v0  ;;  %v11060_v38 = vpop.f32.mrb[170].mxu0  ;;  %v10947_v17 = vadd.f32 %v10946_v40, %v10945_v32  ;;  %v10948_v14 = vpop.f32.mrb[138].mxu1  ;;  %v7770_v48 = vor.u32 %v7769_v10, %v7765_v59  ;;  %v7240_v0 = vrot.slane %v12078_v56, 1 }
 0x328   : > { %9263 = vmatprep.mubr.bf16.mxu0 %v7751_v51  ;;  %9110 = vmatprep.mubr.bf16.mxu1 %v7236_v22  ;;  %v11061_v7 = vpop.f32.mrb[171].mxu0  ;;  %v10949_v35 = vpop.f32.mrb[139].mxu1  ;;  %v12082_v51 = vld [vmem:[#allocation3 + $0xc8] ss:$0 sps:$4 sm:$0x11]   ;;  %v7777_v4 = vshrl.u32 %v12083_v41, 16  ;;  %v6974_v15 = vsel %vm1613_vm1, %v6969_v55, %v6973_v9 }
 0x329   : > { %v11062_v62 = vadd.f32 %v11061_v7, %v11060_v38  ;;  %v13589_v29 = vadd.f32 %v11059_v42, %v10947_v17  ;;  %v10950_v18 = vadd.f32 %v10949_v35, %v10948_v14  ;;  %v7781_v32 = vrot.slane %v7779_v31, 1 }
 0x32a   : > { %v7784_v53 = vshll.u32 %v12084_v1, 16  ;;  %v7775_v22 = vsel %vm1613_vm1, %v7770_v48, %v7774_v39  ;;  %v7242_v40 = vsel %vm2014_vm10, %v7240_v0, %v7241_v61  ;;  %v6976_v17 = vshrl.u32 %v12081_v3, 16 }
 0x32b   : > { %v13592_v16 = vadd.f32 %v11062_v62, %v10950_v18  ;;  %v6983_v14 = vshll.u32 %v12082_v51, 16  ;;  %v7782_v35 = vor.u32 %v7781_v32, %v7777_v4  ;;  %v7997_v10 = vrot.slane %v12086_v54, 1  ;;  %v12093_v51 = vld [vmem:[#allocation3 + $0x44] ss:$0 sps:$4 sm:$0x11]  }
 0x32c   : > { %v7786_v62 = vrot.slane %v7784_v53, 1  ;;  %v6981_v18 = vor.u32 %v6980_v27, %v6976_v17  ;;  %v8000_v31 = vrot.slane %v12089_v21, 1  ;;  %v12092_v32 = vld [vmem:[#allocation3 + $0x3c] sm:$0xfe]   ;;  %v12094_v27 = vld [vmem:[#allocation3 + $0x48] sm:$0xfe]  }
 0x32d   : > { %v10951_v28 = vpop.f32.mrb[140].mxu1  ;;  %v6985_v36 = vrot.slane %v6983_v14, 1  ;;  %v7998_v56 = vsel %vm2014_vm10, %v7996_v12, %v7997_v10  ;;  %v8009_v17 = vrot.slane %v12095_v37, 1  ;;  %v12096_v12 = vld [vmem:[#allocation3 + $0x54] sm:$0xfe]  }
 0x32e   : > { %v10952_v33 = vpop.f32.mrb[141].mxu1  ;;  %v7787_v3 = vsel %vm1613_vm1, %v7782_v35, %v7786_v62  ;;  %v12098_v10 = vld [vmem:[#allocation3 + $0x60] sm:$0xfe]  }
 0x32f   : > { %9264 = vmatmul.mubr.bf16.gmra.mrb[16].mxu0 %v12065_v24  ;;  %9111 = vmatmul.mubr.bf16.gmra.mrb[244].mxu1 %v6962_v5  ;;  %v10953_v13 = vadd.f32 %v10952_v33, %v10951_v28  ;;  %v10954_v57 = vpop.f32.mrb[142].mxu1  ;;  %v12080_v24 = vld [vmem:[#allocation3 + $0xc0] sm:$0xff]   ;;  %v6986_v41 = vsel %vm1613_vm1, %v6981_v18, %v6985_v36  ;;  %v12090_v28 = vld [vmem:[#allocation3 + $0x30] sm:$0xfe]  }
 0x330   : > { %9271 = vmatprep.mubr.bf16.mxu0 %v7763_v49  ;;  %9118 = vmatprep.mubr.bf16.mxu1 %v7239_v19  ;;  %v10955_v25 = vpop.f32.mrb[143].mxu1  ;;  %v12088_v5 = vld [vmem:[#allocation3 + $0x24] sm:$0xfe]   ;;  %v12087_v33 = vld [vmem:[#allocation3 + $0xcc] sm:$0xff]   ;;  %v8002_v34 = vrot.slane %v12090_v28, 1 }
 0x331   : > { %v10956_v63 = vadd.f32 %v10955_v25, %v10954_v57  ;;  %v7999_v25 = vrot.slane %v12088_v5, 1 }
 0x333   : > { %v8001_v4 = vsel %vm2014_vm10, %v7999_v25, %v8000_v31 }
 0x336   : > { %v11063_v26 = vpop.f32.mrb[172].mxu0 }
 0x337   : > { %9272 = vmatmul.mubr.bf16.gmra.mrb[20].mxu0 %v12072_v6  ;;  %9119 = vmatmul.mubr.bf16.gmra.mrb[248].mxu1 %v6974_v15  ;;  %v10957_v42 = vpop.f32.mrb[144].mxu1  ;;  %v11064_v38 = vpop.f32.mrb[173].mxu0  ;;  %v8003_v6 = vrot.slane %v12091_v20, 1  ;;  %v8014_v20 = vrot.slane %v12098_v10, 1 }
 0x338   : > { %9279 = vmatprep.mubr.bf16.mxu0 %v7775_v22  ;;  %9126 = vmatprep.mubr.bf16.mxu1 %v7242_v40  ;;  %v10958_v45 = vpop.f32.mrb[145].mxu1  ;;  %v11065_v7 = vadd.f32 %v11064_v38, %v11063_v26  ;;  %v11066_v52 = vpop.f32.mrb[174].mxu0  ;;  %v8005_v26 = vrot.slane %v12092_v32, 1  ;;  %v8006_v40 = vrot.slane %v12093_v51, 1 }
 0x339   : > { %v10959_v2 = vadd.f32 %v10958_v45, %v10957_v42  ;;  %v10960_v44 = vpop.f32.mrb[146].mxu1  ;;  %v11067_v50 = vpop.f32.mrb[175].mxu0  ;;  %v8004_v15 = vsel %vm2014_vm10, %v8002_v34, %v8003_v6  ;;  %v8008_v45 = vrot.slane %v12094_v27, 1  ;;  %v12101_v34 = vld [vmem:[#allocation3 + $0x74] ss:$0 sps:$4 sm:$0x11]  }
 0x33a   : > { %v10961_v43 = vpop.f32.mrb[147].mxu1  ;;  %v13601_v58 = vadd.f32 %v11065_v7, %v10953_v13  ;;  %v11068_v47 = vadd.f32 %v11067_v50, %v11066_v52  ;;  %v8007_v18 = vsel %vm2014_vm10, %v8005_v26, %v8006_v40 }
 0x33b   : > { %v10962_v59 = vadd.f32 %v10961_v43, %v10960_v44 }
 0x33c   : > { %v13603_v11 = vadd.f32 %v11068_v47, %v10956_v63  ;;  %v12097_v47 = vld [vmem:[#allocation3 + $0x5c] ss:$0 sps:$4 sm:$0x11]  }
 0x33d   : > { %v8012_v5 = vrot.slane %v12097_v47, 1 }
 0x33f   : > { %9280 = vmatmul.mubr.bf16.gmra.mrb[24].mxu0 %v12080_v24  ;;  %9127 = vmatmul.mubr.bf16.gmra.mrb[252].mxu1 %v6986_v41  ;;  %v12099_v24 = vld [vmem:[#allocation3 + $0x68] ss:$0 sps:$4 sm:$0x11]   ;;  %v8011_v41 = vrot.slane %v12096_v12, 1 }
 0x340   : > { %9287 = vmatprep.mubr.bf16.mxu0 %v7787_v3  ;;  %11453 = vmatprep.mubr.bf16.mxu1 %v7998_v56  ;;  %v10963_v49 = vpop.f32.mrb[148].mxu1 }
 0x341   : > { %v11069_v19 = vpop.f32.mrb[176].mxu0  ;;  %v10964_v1 = vpop.f32.mrb[149].mxu1 }
 0x342   : > { %v11070_v13 = vpop.f32.mrb[177].mxu0  ;;  %v10965_v57 = vadd.f32 %v10964_v1, %v10963_v49  ;;  %v10966_v23 = vpop.f32.mrb[150].mxu1  ;;  %v8015_v49 = vrot.slane %v12099_v24, 1 }
 0x343   : > { %v11071_v48 = vadd.f32 %v11070_v13, %v11069_v19  ;;  %v11072_v63 = vpop.f32.mrb[178].mxu0  ;;  %v10967_v55 = vpop.f32.mrb[151].mxu1 }
 0x344   : > { %v11073_v39 = vpop.f32.mrb[179].mxu0  ;;  %v10968_v9 = vadd.f32 %v10967_v55, %v10966_v23  ;;  %v12100_v55 = vld [vmem:[#allocation3 + $0x6c] sm:$0xfe]   ;;  %v8016_v6 = vsel %vm2014_vm10, %v8014_v20, %v8015_v49 }
 0x345   : > { %v13608_v0 = vadd.f32 %v11071_v48, %v10959_v2  ;;  %v11074_v61 = vadd.f32 %v11073_v39, %v11072_v63  ;;  %v8013_v63 = vsel %vm2014_vm10, %v8011_v41, %v8012_v5  ;;  %v12102_v39 = vld [vmem:[#allocation3 + $0x78] sm:$0xfe]   ;;  %v8017_v32 = vrot.slane %v12100_v55, 1  ;;  %v12110_v55 = vld [vmem:[#allocation3 + $0xa8] sm:$0xfe]  }
 0x347   : > { %v13611_v53 = vadd.f32 %v11074_v61, %v10962_v59  ;;  %9288 = vmatmul.mubr.bf16.gmra.mrb[28].mxu0 %v12087_v33  ;;  %11454 = vmatmul.mubr.bf16.vlgmr.msra.gmra.mrb[0].mxu1 %v8001_v4  ;;  %v8010_v59 = vsel %vm2014_vm10, %v8008_v45, %v8009_v17 }
 0x348   : > { %11457 = vmatprep.mubr.bf16.mxu1 %v8004_v15  ;;  %v8018_v15 = vrot.slane %v12101_v34, 1  ;;  %v12111_v34 = vld [vmem:[#allocation3 + $0xb0] ss:$0 sps:$4 sm:$0x11]  }
 0x34a   : > { %v11075_v54 = vpop.f32.mrb[180].mxu0  ;;  %v10969_v22 = vpop.f32.mrb[152].mxu1 }
 0x34b   : > { %v11076_v42 = vpop.f32.mrb[181].mxu0  ;;  %v10970_v38 = vpop.f32.mrb[153].mxu1 }
 0x34c   : > { %v11077_v14 = vadd.f32 %v11076_v42, %v11075_v54  ;;  %v11078_v7 = vpop.f32.mrb[182].mxu0  ;;  %v10971_v52 = vadd.f32 %v10970_v38, %v10969_v22  ;;  %v10972_v2 = vpop.f32.mrb[154].mxu1  ;;  %v8020_v54 = vrot.slane %v12102_v39, 1 }
 0x34d   : > { %v11079_v44 = vpop.f32.mrb[183].mxu0  ;;  %v10973_v35 = vpop.f32.mrb[155].mxu1 }
 0x34e   : > { %v13614_v62 = vadd.f32 %v11077_v14, %v10965_v57  ;;  %v11080_v50 = vadd.f32 %v11079_v44, %v11078_v7  ;;  %v10974_v43 = vadd.f32 %v10973_v35, %v10972_v2  ;;  %v8019_v2 = vsel %vm2014_vm10, %v8017_v32, %v8018_v15  ;;  %v12104_v44 = vld [vmem:[#allocation3 + $0x84] sm:$0xfe]   ;;  %v12105_v35 = vld [vmem:[#allocation3 + $0x8c] ss:$0 sps:$4 sm:$0x11]  }
 0x34f   : > { %11458 = vmatmul.mubr.bf16.gmra.mrb[4].mxu1 %v8007_v18  ;;  %v12107_v18 = vld [vmem:[#allocation3 + $0x98] ss:$0 sps:$4 sm:$0x11]   ;;  %v8023_v10 = vrot.slane %v12104_v44, 1  ;;  %v8024_v24 = vrot.slane %v12105_v35, 1 }
 0x350   : > { %v13618_v36 = vadd.f32 %v11080_v50, %v10968_v9  ;;  %11461 = vmatprep.mubr.bf16.mxu1 %v8010_v59  ;;  %v12103_v9 = vld [vmem:[#allocation3 + $0x80] ss:$0 sps:$4 sm:$0x11]   ;;  %v8027_v5 = vrot.slane %v12107_v18, 1 }
 0x351   : > { %v8021_v22 = vrot.slane %v12103_v9, 1  ;;  %v12113_v44 = vld [vmem:[#allocation3 + $0xbc] ss:$0 sps:$4 sm:$0x11]  }
 0x352   : > { %v11081_v21 = vpop.f32.mrb[184].mxu0  ;;  %v10975_v3 = vpop.f32.mrb[156].mxu1 }
 0x353   : > { %v11082_v28 = vpop.f32.mrb[185].mxu0  ;;  %v10976_v56 = vpop.f32.mrb[157].mxu1  ;;  %v8022_v50 = vsel %vm2014_vm10, %v8020_v54, %v8021_v22 }
 0x354   : > { %v11083_v19 = vadd.f32 %v11082_v28, %v11081_v21  ;;  %v11084_v33 = vpop.f32.mrb[186].mxu0  ;;  %v10977_v1 = vadd.f32 %v10976_v56, %v10975_v3  ;;  %v10978_v13 = vpop.f32.mrb[158].mxu1 }
 0x355   : > { %v11085_v57 = vpop.f32.mrb[187].mxu0  ;;  %v10979_v23 = vpop.f32.mrb[159].mxu1 }
 0x356   : > { %v13620_v25 = vadd.f32 %v11083_v19, %v10971_v52  ;;  %v11086_v31 = vadd.f32 %v11085_v57, %v11084_v33  ;;  %v10980_v48 = vadd.f32 %v10979_v23, %v10978_v13  ;;  %v8025_v23 = vsel %vm2014_vm10, %v8023_v10, %v8024_v24 }
 0x357   : > { %11462 = vmatmul.mubr.bf16.gmra.mrb[8].mxu1 %v8013_v63  ;;  %v8036_v24 = vrot.slane %v12113_v44, 1 }
 0x358   : > { %v13624_v61 = vadd.f32 %v11086_v31, %v10974_v43  ;;  %11465 = vmatprep.mubr.bf16.mxu1 %v8016_v6  ;;  %v12106_v43 = vld [vmem:[#allocation3 + $0x90] sm:$0xfe]   ;;  %v12108_v31 = vld [vmem:[#allocation3 + $0x9c] sm:$0xfe]  }
 0x359   : > { %v8026_v41 = vrot.slane %v12106_v43, 1  ;;  %v12115_v43 = vld [vmem:[#allocation3 + $0xc8] ss:$0 sps:$4 sm:$0x11]  }
 0x35a   : > { %v11087_v51 = vpop.f32.mrb[188].mxu0  ;;  %v10981_v4 = vpop.f32.mrb[160].mxu1 }
 0x35b   : > { %v11088_v27 = vpop.f32.mrb[189].mxu0  ;;  %v10982_v37 = vpop.f32.mrb[161].mxu1  ;;  %v8028_v63 = vsel %vm2014_vm10, %v8026_v41, %v8027_v5  ;;  %v8039_v5 = vrot.slane %v12115_v43, 1 }
 0x35c   : > { %v11089_v26 = vadd.f32 %v11088_v27, %v11087_v51  ;;  %v11090_v40 = vpop.f32.mrb[190].mxu0  ;;  %v10983_v42 = vadd.f32 %v10982_v37, %v10981_v4  ;;  %v10984_v38 = vpop.f32.mrb[162].mxu1  ;;  %v8029_v51 = vrot.slane %v12108_v31, 1  ;;  %v8032_v27 = vrot.slane %v12110_v55, 1 }
 0x35d   : > { %v11091_v45 = vpop.f32.mrb[191].mxu0  ;;  %v10985_v17 = vpop.f32.mrb[163].mxu1  ;;  %v8033_v37 = vrot.slane %v12111_v34, 1 }
 0x35e   : > { %v13626_v14 = vadd.f32 %v11089_v26, %v10977_v1  ;;  %v11092_v7 = vadd.f32 %v11091_v45, %v11090_v40  ;;  %v10986_v52 = vadd.f32 %v10985_v17, %v10984_v38 }
 0x35f   : > { %11466 = vmatmul.mubr.bf16.gmra.mrb[12].mxu1 %v8019_v2  ;;  %v12112_v2 = vld [vmem:[#allocation3 + $0xb4] sm:$0xfe]   ;;  %v8034_v35 = vsel %vm2014_vm10, %v8032_v27, %v8033_v37 }
 0x360   : > { %v13630_v12 = vadd.f32 %v11092_v7, %v10980_v48  ;;  %11469 = vmatprep.mubr.bf16.mxu1 %v8022_v50  ;;  %v12109_v48 = vld [vmem:[#allocation3 + $0xa4] ss:$0 sps:$4 sm:$0x11]   ;;  %v8035_v10 = vrot.slane %v12112_v2, 1 }
 0x361   : > { %v8030_v4 = vrot.slane %v12109_v48, 1  ;;  %v12114_v50 = vld [vmem:[#allocation3 + $0xc0] sm:$0xfe]  }
 0x362   : > { %v11093_v47 = vpop.f32.mrb[192].mxu0  ;;  %v10987_v59 = vpop.f32.mrb[164].mxu1  ;;  %v8038_v41 = vrot.slane %v12114_v50, 1 }
 0x363   : > { %v11094_v21 = vpop.f32.mrb[193].mxu0  ;;  %v10988_v3 = vpop.f32.mrb[165].mxu1 }
 0x364   : > { %v11095_v28 = vadd.f32 %v11094_v21, %v11093_v47  ;;  %v11096_v56 = vpop.f32.mrb[194].mxu0  ;;  %v10989_v20 = vadd.f32 %v10988_v3, %v10987_v59  ;;  %v10990_v49 = vpop.f32.mrb[166].mxu1  ;;  %v8040_v55 = vsel %vm2014_vm10, %v8038_v41, %v8039_v5 }
 0x365   : > { %v11097_v19 = vpop.f32.mrb[195].mxu0  ;;  %v10991_v33 = vpop.f32.mrb[167].mxu1 }
 0x366   : > { %v13632_v1 = vadd.f32 %v11095_v28, %v10983_v42  ;;  %v11098_v13 = vadd.f32 %v11097_v19, %v11096_v56  ;;  %v10992_v57 = vadd.f32 %v10991_v33, %v10990_v49  ;;  %v12116_v28 = vld [vmem:[#allocation3 + $0xcc] sm:$0xfe]   ;;  %v12117_v33 = vld [vmem:[#allocation3 + $0xd4] ss:$0 sps:$4 sm:$0x11]  }
 0x367   : > { %11470 = vmatmul.mubr.bf16.gmra.mrb[16].mxu1 %v8025_v23 }
 0x368   : > { %v13636_v6 = vadd.f32 %v11098_v13, %v10986_v52  ;;  %11473 = vmatprep.mubr.bf16.mxu1 %v8028_v63  ;;  %v8031_v52 = vsel %vm2014_vm10, %v8029_v51, %v8030_v4  ;;  %v8037_v63 = vsel %vm2014_vm10, %v8035_v10, %v8036_v24 }
 0x36a   : > { %v11099_v39 = vpop.f32.mrb[196].mxu0  ;;  %v10993_v9 = vpop.f32.mrb[168].mxu1 }
 0x36b   : > { %v11100_v32 = vpop.f32.mrb[197].mxu0  ;;  %v10994_v15 = vpop.f32.mrb[169].mxu1 }
 0x36c   : > { %v11101_v54 = vadd.f32 %v11100_v32, %v11099_v39  ;;  %v11102_v22 = vpop.f32.mrb[198].mxu0  ;;  %v10995_v26 = vadd.f32 %v10994_v15, %v10993_v9  ;;  %v10996_v40 = vpop.f32.mrb[170].mxu1  ;;  %v8041_v39 = vrot.slane %v12116_v28, 1  ;;  %v8042_v9 = vrot.slane %v12117_v33, 1 }
 0x36d   : > { %v11103_v42 = vpop.f32.mrb[199].mxu0  ;;  %v10997_v38 = vpop.f32.mrb[171].mxu1 }
 0x36e   : > { %v13638_v45 = vadd.f32 %v11101_v54, %v10989_v20  ;;  %v11104_v17 = vadd.f32 %v11103_v42, %v11102_v22  ;;  %v10998_v7 = vadd.f32 %v10997_v38, %v10996_v40 }
 0x36f   : > { %11474 = vmatmul.mubr.bf16.gmra.mrb[20].mxu1 %v8031_v52 }
 0x370   : > { %v13642_v18 = vadd.f32 %v11104_v17, %v10992_v57  ;;  %11477 = vmatprep.mubr.bf16.mxu1 %v8034_v35 }
 0x372   : > { %v11105_v47 = vpop.f32.mrb[200].mxu0  ;;  %v10999_v59 = vpop.f32.mrb[172].mxu1 }
 0x373   : > { %v11106_v21 = vpop.f32.mrb[201].mxu0  ;;  %v11000_v3 = vpop.f32.mrb[173].mxu1 }
 0x374   : > { %v11107_v56 = vadd.f32 %v11106_v21, %v11105_v47  ;;  %v11108_v20 = vpop.f32.mrb[202].mxu0  ;;  %v11001_v49 = vadd.f32 %v11000_v3, %v10999_v59  ;;  %v11002_v19 = vpop.f32.mrb[174].mxu1 }
 0x375   : > { %v11109_v13 = vpop.f32.mrb[203].mxu0  ;;  %v11003_v23 = vpop.f32.mrb[175].mxu1 }
 0x376   : > { %v13644_v31 = vadd.f32 %v11107_v56, %v10995_v26  ;;  %v11110_v57 = vadd.f32 %v11109_v13, %v11108_v20  ;;  %v11004_v48 = vadd.f32 %v11003_v23, %v11002_v19  ;;  %v8043_v26 = vsel %vm2014_vm10, %v8041_v39, %v8042_v9 }
 0x377   : > { %11478 = vmatmul.mubr.bf16.gmra.mrb[24].mxu1 %v8037_v63 }
 0x378   : > { %v13648_v34 = vadd.f32 %v11110_v57, %v10998_v7  ;;  %11481 = vmatprep.mubr.bf16.mxu1 %v8040_v55 }
 0x37a   : > { %v11111_v51 = vpop.f32.mrb[204].mxu0  ;;  %v11005_v4 = vpop.f32.mrb[176].mxu1 }
 0x37b   : > { %v11112_v32 = vpop.f32.mrb[205].mxu0  ;;  %v11006_v15 = vpop.f32.mrb[177].mxu1 }
 0x37c   : > { %v11113_v27 = vadd.f32 %v11112_v32, %v11111_v51  ;;  %v11114_v37 = vpop.f32.mrb[206].mxu0  ;;  %v11007_v54 = vadd.f32 %v11006_v15, %v11005_v4  ;;  %v11008_v22 = vpop.f32.mrb[178].mxu1 }
 0x37d   : > { %v11115_v40 = vpop.f32.mrb[207].mxu0  ;;  %v11009_v42 = vpop.f32.mrb[179].mxu1 }
 0x37e   : > { %v13651_v38 = vadd.f32 %v11113_v27, %v11001_v49  ;;  %v11116_v17 = vadd.f32 %v11115_v40, %v11114_v37  ;;  %v11010_v7 = vadd.f32 %v11009_v42, %v11008_v22 }
 0x37f   : > { %11482 = vmatmul.mubr.bf16.gmra.mrb[28].mxu1 %v8043_v26 }
 0x380   : > { %v13653_v52 = vadd.f32 %v11116_v17, %v11004_v48 }
 0x382   : > { %v11117_v2 = vpop.f32.mrb[208].mxu0  ;;  %v11011_v44 = vpop.f32.mrb[180].mxu1 }
 0x383   : > { %v11118_v35 = vpop.f32.mrb[209].mxu0  ;;  %v11012_v50 = vpop.f32.mrb[181].mxu1 }
 0x384   : > { %v11119_v43 = vadd.f32 %v11118_v35, %v11117_v2  ;;  %v11120_v47 = vpop.f32.mrb[210].mxu0  ;;  %v11013_v59 = vadd.f32 %v11012_v50, %v11011_v44  ;;  %v11014_v10 = vpop.f32.mrb[182].mxu1 }
 0x385   : > { %v11121_v24 = vpop.f32.mrb[211].mxu0  ;;  %v11015_v21 = vpop.f32.mrb[183].mxu1 }
 0x386   : > { %v13655_v3 = vadd.f32 %v11119_v43, %v11007_v54  ;;  %v11122_v41 = vadd.f32 %v11121_v24, %v11120_v47  ;;  %v11016_v5 = vadd.f32 %v11015_v21, %v11014_v10 }
 0x388   : > { %v13657_v28 = vadd.f32 %v11122_v41, %v11010_v7 }
 0x38a   : > { %v11123_v56 = vpop.f32.mrb[212].mxu0  ;;  %v11017_v20 = vpop.f32.mrb[184].mxu1 }
 0x38b   : > { %v11124_v49 = vpop.f32.mrb[213].mxu0  ;;  %v11018_v19 = vpop.f32.mrb[185].mxu1 }
 0x38c   : > { %v11125_v33 = vadd.f32 %v11124_v49, %v11123_v56  ;;  %v11126_v13 = vpop.f32.mrb[214].mxu0  ;;  %v11019_v23 = vadd.f32 %v11018_v19, %v11017_v20  ;;  %v11020_v57 = vpop.f32.mrb[186].mxu1 }
 0x38d   : > { %v11127_v48 = vpop.f32.mrb[215].mxu0  ;;  %v11021_v63 = vpop.f32.mrb[187].mxu1 }
 0x38e   : > { %v13659_v55 = vadd.f32 %v11125_v33, %v11013_v59  ;;  %v11128_v39 = vadd.f32 %v11127_v48, %v11126_v13  ;;  %v11022_v9 = vadd.f32 %v11021_v63, %v11020_v57 }
 0x390   : > { %v13661_v51 = vadd.f32 %v11128_v39, %v11016_v5 }
 0x392   : > { %v11129_v4 = vpop.f32.mrb[216].mxu0  ;;  %v11023_v32 = vpop.f32.mrb[188].mxu1 }
 0x393   : > { %v11130_v15 = vpop.f32.mrb[217].mxu0  ;;  %v11024_v27 = vpop.f32.mrb[189].mxu1 }
 0x394   : > { %v11131_v37 = vadd.f32 %v11130_v15, %v11129_v4  ;;  %v11132_v54 = vpop.f32.mrb[218].mxu0  ;;  %v11025_v22 = vadd.f32 %v11024_v27, %v11023_v32  ;;  %v11026_v26 = vpop.f32.mrb[190].mxu1 }
 0x395   : > { %v11133_v40 = vpop.f32.mrb[219].mxu0  ;;  %v11027_v42 = vpop.f32.mrb[191].mxu1 }
 0x396   : > { %v13663_v17 = vadd.f32 %v11131_v37, %v11019_v23  ;;  %v11134_v7 = vadd.f32 %v11133_v40, %v11132_v54  ;;  %v11028_v2 = vadd.f32 %v11027_v42, %v11026_v26 }
 0x398   : > { %v13665_v44 = vadd.f32 %v11134_v7, %v11022_v9 }
 0x39a   : > { %v11135_v35 = vpop.f32.mrb[220].mxu0  ;;  %v11157_v50 = vpop.f32.mrb[192].mxu1 }
 0x39b   : > { %v11136_v43 = vpop.f32.mrb[221].mxu0  ;;  %v11158_v47 = vpop.f32.mrb[193].mxu1 }
 0x39c   : > { %v11137_v59 = vadd.f32 %v11136_v43, %v11135_v35  ;;  %v11138_v10 = vpop.f32.mrb[222].mxu0  ;;  %v11159_v24 = vadd.f32 %v11158_v47, %v11157_v50  ;;  %v11160_v21 = vpop.f32.mrb[194].mxu1 }
 0x39d   : > { %v11139_v41 = vpop.f32.mrb[223].mxu0  ;;  %v11161_v5 = vpop.f32.mrb[195].mxu1 }
 0x39e   : > { %v13667_v56 = vadd.f32 %v11137_v59, %v11025_v22  ;;  %v11140_v20 = vadd.f32 %v11139_v41, %v11138_v10  ;;  %v9009_v49 = vadd.f32 %v11159_v24, %v13549_v60  ;;  %v11162_v19 = vadd.f32 %v11161_v5, %v11160_v21 }
 0x3a0   : > { %v13670_v33 = vadd.f32 %v11140_v20, %v11028_v2  ;;  %v9012_v13 = vadd.f32 %v11162_v19, %v13552_v46 }
 0x3a2   : > { %v11269_v23 = vpop.f32.mrb[224].mxu0  ;;  %v11163_v57 = vpop.f32.mrb[196].mxu1 }
 0x3a3   : > { %v11270_v48 = vpop.f32.mrb[225].mxu0  ;;  %v11164_v63 = vpop.f32.mrb[197].mxu1 }
 0x3a4   : > { %v11271_v39 = vadd.f32 %v11270_v48, %v11269_v23  ;;  %v11272_v9 = vpop.f32.mrb[226].mxu0  ;;  %v11165_v4 = vadd.f32 %v11164_v63, %v11163_v57  ;;  %v11166_v32 = vpop.f32.mrb[198].mxu1 }
 0x3a5   : > { %v11273_v15 = vpop.f32.mrb[227].mxu0  ;;  %v11167_v27 = vpop.f32.mrb[199].mxu1 }
 0x3a6   : > { %v11274_v37 = vadd.f32 %v11273_v15, %v11272_v9  ;;  %v9017_v54 = vadd.f32 %v11165_v4, %v13574_v8  ;;  %v11168_v22 = vadd.f32 %v11167_v27, %v11166_v32  ;;  %v13674_v60 = vadd.f32 %v11271_v39, %v9009_v49 }
 0x3a8   : > { %v9020_v26 = vadd.f32 %v11168_v22, %v13579_v30  ;;  %v13677_v40 = vadd.f32 %v11274_v37, %v9012_v13 }
 0x3aa   : > { %v11275_v46 = vpop.f32.mrb[228].mxu0  ;;  %v11169_v42 = vpop.f32.mrb[200].mxu1 }
 0x3ab   : > { %v11276_v7 = vpop.f32.mrb[229].mxu0  ;;  %v11170_v2 = vpop.f32.mrb[201].mxu1 }
 0x3ac   : > { %v11277_v35 = vadd.f32 %v11276_v7, %v11275_v46  ;;  %v11278_v50 = vpop.f32.mrb[230].mxu0  ;;  %v11171_v43 = vadd.f32 %v11170_v2, %v11169_v42  ;;  %v11172_v47 = vpop.f32.mrb[202].mxu1 }
 0x3ad   : > { %v11279_v59 = vpop.f32.mrb[231].mxu0  ;;  %v11173_v10 = vpop.f32.mrb[203].mxu1 }
 0x3ae   : > { %v11280_v24 = vadd.f32 %v11279_v59, %v11278_v50  ;;  %v9025_v8 = vadd.f32 %v11171_v43, %v13589_v29  ;;  %v11174_v21 = vadd.f32 %v11173_v10, %v11172_v47  ;;  %v13680_v41 = vadd.f32 %v11277_v35, %v9017_v54 }
 0x3b0   : > { %v9028_v30 = vadd.f32 %v11174_v21, %v13592_v16  ;;  %v13683_v5 = vadd.f32 %v11280_v24, %v9020_v26 }
 0x3b2   : > { %v11281_v20 = vpop.f32.mrb[232].mxu0  ;;  %v11175_v49 = vpop.f32.mrb[204].mxu1 }
 0x3b3   : > { %v11282_v19 = vpop.f32.mrb[233].mxu0  ;;  %v11176_v13 = vpop.f32.mrb[205].mxu1 }
 0x3b4   : > { %v11283_v23 = vadd.f32 %v11282_v19, %v11281_v20  ;;  %v11284_v57 = vpop.f32.mrb[234].mxu0  ;;  %v11177_v48 = vadd.f32 %v11176_v13, %v11175_v49  ;;  %v11178_v63 = vpop.f32.mrb[206].mxu1 }
 0x3b5   : > { %v11285_v39 = vpop.f32.mrb[235].mxu0  ;;  %v11179_v9 = vpop.f32.mrb[207].mxu1 }
 0x3b6   : > { %v11286_v4 = vadd.f32 %v11285_v39, %v11284_v57  ;;  %v9033_v29 = vadd.f32 %v11177_v48, %v13601_v58  ;;  %v11180_v32 = vadd.f32 %v11179_v9, %v11178_v63  ;;  %v13686_v15 = vadd.f32 %v11283_v23, %v9025_v8 }
 0x3b8   : > { %v9036_v16 = vadd.f32 %v11180_v32, %v13603_v11  ;;  %v13689_v27 = vadd.f32 %v11286_v4, %v9028_v30 }
 0x3ba   : > { %v11287_v37 = vpop.f32.mrb[236].mxu0  ;;  %v11181_v54 = vpop.f32.mrb[208].mxu1 }
 0x3bb   : > { %v11288_v22 = vpop.f32.mrb[237].mxu0  ;;  %v11182_v26 = vpop.f32.mrb[209].mxu1 }
 0x3bc   : > { %v11289_v46 = vadd.f32 %v11288_v22, %v11287_v37  ;;  %v11290_v42 = vpop.f32.mrb[238].mxu0  ;;  %v11183_v7 = vadd.f32 %v11182_v26, %v11181_v54  ;;  %v11184_v2 = vpop.f32.mrb[210].mxu1 }
 0x3bd   : > { %v11291_v35 = vpop.f32.mrb[239].mxu0  ;;  %v11185_v50 = vpop.f32.mrb[211].mxu1 }
 0x3be   : > { %v11292_v43 = vadd.f32 %v11291_v35, %v11290_v42  ;;  %v9041_v58 = vadd.f32 %v11183_v7, %v13608_v0  ;;  %v11186_v47 = vadd.f32 %v11185_v50, %v11184_v2  ;;  %v13692_v59 = vadd.f32 %v11289_v46, %v9033_v29 }
 0x3c0   : > { %v9044_v11 = vadd.f32 %v11186_v47, %v13611_v53  ;;  %v13695_v10 = vadd.f32 %v11292_v43, %v9036_v16 }
 0x3c2   : > { %v11293_v24 = vpop.f32.mrb[240].mxu0  ;;  %v11187_v8 = vpop.f32.mrb[212].mxu1 }
 0x3c3   : > { %v11294_v21 = vpop.f32.mrb[241].mxu0  ;;  %v11188_v30 = vpop.f32.mrb[213].mxu1 }
 0x3c4   : > { %v11295_v20 = vadd.f32 %v11294_v21, %v11293_v24  ;;  %v11296_v49 = vpop.f32.mrb[242].mxu0  ;;  %v11189_v19 = vadd.f32 %v11188_v30, %v11187_v8  ;;  %v11190_v13 = vpop.f32.mrb[214].mxu1 }
 0x3c5   : > { %v11297_v23 = vpop.f32.mrb[243].mxu0  ;;  %v11191_v57 = vpop.f32.mrb[215].mxu1 }
 0x3c6   : > { %v11298_v48 = vadd.f32 %v11297_v23, %v11296_v49  ;;  %v9049_v0 = vadd.f32 %v11189_v19, %v13614_v62  ;;  %v11192_v63 = vadd.f32 %v11191_v57, %v11190_v13  ;;  %v13698_v39 = vadd.f32 %v11295_v20, %v9041_v58 }
 0x3c8   : > { %v9052_v53 = vadd.f32 %v11192_v63, %v13618_v36  ;;  %v13701_v9 = vadd.f32 %v11298_v48, %v9044_v11 }
 0x3ca   : > { %v11299_v4 = vpop.f32.mrb[244].mxu0  ;;  %v11193_v29 = vpop.f32.mrb[216].mxu1 }
 0x3cb   : > { %v11300_v32 = vpop.f32.mrb[245].mxu0  ;;  %v11194_v16 = vpop.f32.mrb[217].mxu1 }
 0x3cc   : > { %v11301_v37 = vadd.f32 %v11300_v32, %v11299_v4  ;;  %v11302_v54 = vpop.f32.mrb[246].mxu0  ;;  %v11195_v22 = vadd.f32 %v11194_v16, %v11193_v29  ;;  %v11196_v26 = vpop.f32.mrb[218].mxu1 }
 0x3cd   : > { %v11303_v46 = vpop.f32.mrb[247].mxu0  ;;  %v11197_v42 = vpop.f32.mrb[219].mxu1 }
 0x3ce   : > { %v11304_v7 = vadd.f32 %v11303_v46, %v11302_v54  ;;  %v9057_v62 = vadd.f32 %v11195_v22, %v13620_v25  ;;  %v11198_v2 = vadd.f32 %v11197_v42, %v11196_v26  ;;  %v13704_v35 = vadd.f32 %v11301_v37, %v9049_v0 }
 0x3d0   : > { %v9060_v36 = vadd.f32 %v11198_v2, %v13624_v61  ;;  %v13707_v50 = vadd.f32 %v11304_v7, %v9052_v53 }
 0x3d2   : > { %v11305_v43 = vpop.f32.mrb[248].mxu0  ;;  %v11199_v58 = vpop.f32.mrb[220].mxu1 }
 0x3d3   : > { %v11306_v47 = vpop.f32.mrb[249].mxu0  ;;  %v11200_v11 = vpop.f32.mrb[221].mxu1 }
 0x3d4   : > { %v11307_v24 = vadd.f32 %v11306_v47, %v11305_v43  ;;  %v11308_v8 = vpop.f32.mrb[250].mxu0  ;;  %v11201_v21 = vadd.f32 %v11200_v11, %v11199_v58  ;;  %v11202_v30 = vpop.f32.mrb[222].mxu1 }
 0x3d5   : > { %v11309_v20 = vpop.f32.mrb[251].mxu0  ;;  %v11203_v49 = vpop.f32.mrb[223].mxu1 }
 0x3d6   : > { %v11310_v19 = vadd.f32 %v11309_v20, %v11308_v8  ;;  %v9065_v25 = vadd.f32 %v11201_v21, %v13626_v14  ;;  %v11204_v13 = vadd.f32 %v11203_v49, %v11202_v30  ;;  %v13710_v23 = vadd.f32 %v11307_v24, %v9057_v62 }
 0x3d8   : > { %v9068_v61 = vadd.f32 %v11204_v13, %v13630_v12  ;;  %v13713_v57 = vadd.f32 %v11310_v19, %v9060_v36 }
 0x3da   : > { %v11311_v48 = vpop.f32.mrb[252].mxu0  ;;  %v11205_v0 = vpop.f32.mrb[224].mxu1 }
 0x3db   : > { %v11312_v63 = vpop.f32.mrb[253].mxu0  ;;  %v11206_v53 = vpop.f32.mrb[225].mxu1 }
 0x3dc   : > { %v11313_v4 = vadd.f32 %v11312_v63, %v11311_v48  ;;  %v11314_v29 = vpop.f32.mrb[254].mxu0  ;;  %v11207_v32 = vadd.f32 %v11206_v53, %v11205_v0  ;;  %v11208_v16 = vpop.f32.mrb[226].mxu1 }
 0x3dd   : > { %v11315_v37 = vpop.f32.mrb[255].mxu0  ;;  %v11209_v54 = vpop.f32.mrb[227].mxu1 }
 0x3de   : > { %v11316_v22 = vadd.f32 %v11315_v37, %v11314_v29  ;;  %v9073_v14 = vadd.f32 %v11207_v32, %v13632_v1  ;;  %v11210_v26 = vadd.f32 %v11209_v54, %v11208_v16  ;;  %v13716_v46 = vadd.f32 %v11313_v4, %v9065_v25 }
 0x3e0   : > { %v9076_v12 = vadd.f32 %v11210_v26, %v13636_v6  ;;  %v13719_v42 = vadd.f32 %v11316_v22, %v9068_v61 }
 0x3e2   : > { %v11317_v7 = vpop.f32.mrb[0].mxu0  ;;  %v11211_v62 = vpop.f32.mrb[228].mxu1 }
 0x3e3   : > { %v11318_v2 = vpop.f32.mrb[1].mxu0  ;;  %v11212_v36 = vpop.f32.mrb[229].mxu1 }
 0x3e4   : > { %v11319_v43 = vadd.f32 %v11318_v2, %v11317_v7  ;;  %v11320_v58 = vpop.f32.mrb[2].mxu0  ;;  %v11213_v47 = vadd.f32 %v11212_v36, %v11211_v62  ;;  %v11214_v11 = vpop.f32.mrb[230].mxu1 }
 0x3e5   : > { %v11321_v24 = vpop.f32.mrb[3].mxu0  ;;  %v11215_v8 = vpop.f32.mrb[231].mxu1 }
 0x3e6   : > { %v11322_v21 = vadd.f32 %v11321_v24, %v11320_v58  ;;  %v9081_v1 = vadd.f32 %v11213_v47, %v13638_v45  ;;  %v11216_v30 = vadd.f32 %v11215_v8, %v11214_v11  ;;  %v13722_v20 = vadd.f32 %v11319_v43, %v9073_v14 }
 0x3e8   : > { %v9084_v6 = vadd.f32 %v11216_v30, %v13642_v18  ;;  %v13725_v49 = vadd.f32 %v11322_v21, %v9076_v12 }
 0x3ea   : > { %v11323_v19 = vpop.f32.mrb[4].mxu0  ;;  %v11217_v25 = vpop.f32.mrb[232].mxu1 }
 0x3eb   : > { %v11324_v13 = vpop.f32.mrb[5].mxu0  ;;  %v11218_v61 = vpop.f32.mrb[233].mxu1 }
 0x3ec   : > { %v11325_v48 = vadd.f32 %v11324_v13, %v11323_v19  ;;  %v11326_v0 = vpop.f32.mrb[6].mxu0  ;;  %v11219_v63 = vadd.f32 %v11218_v61, %v11217_v25  ;;  %v11220_v53 = vpop.f32.mrb[234].mxu1 }
 0x3ed   : > { %v11327_v4 = vpop.f32.mrb[7].mxu0  ;;  %v11221_v29 = vpop.f32.mrb[235].mxu1 }
 0x3ee   : > { %v11328_v32 = vadd.f32 %v11327_v4, %v11326_v0  ;;  %v9089_v45 = vadd.f32 %v11219_v63, %v13644_v31  ;;  %v11222_v16 = vadd.f32 %v11221_v29, %v11220_v53  ;;  %v13728_v37 = vadd.f32 %v11325_v48, %v9081_v1 }
 0x3f0   : > { %v9092_v18 = vadd.f32 %v11222_v16, %v13648_v34  ;;  %v13731_v54 = vadd.f32 %v11328_v32, %v9084_v6 }
 0x3f2   : > { %v11329_v22 = vpop.f32.mrb[8].mxu0  ;;  %v11223_v14 = vpop.f32.mrb[236].mxu1 }
 0x3f3   : > { %v11330_v26 = vpop.f32.mrb[9].mxu0  ;;  %v11224_v12 = vpop.f32.mrb[237].mxu1 }
 0x3f4   : > { %v11331_v7 = vadd.f32 %v11330_v26, %v11329_v22  ;;  %v11332_v62 = vpop.f32.mrb[10].mxu0  ;;  %v11225_v2 = vadd.f32 %v11224_v12, %v11223_v14  ;;  %v11226_v36 = vpop.f32.mrb[238].mxu1 }
 0x3f5   : > { %v11333_v43 = vpop.f32.mrb[11].mxu0  ;;  %v11227_v58 = vpop.f32.mrb[239].mxu1 }
 0x3f6   : > { %v11334_v47 = vadd.f32 %v11333_v43, %v11332_v62  ;;  %v9097_v31 = vadd.f32 %v11225_v2, %v13651_v38  ;;  %v11228_v11 = vadd.f32 %v11227_v58, %v11226_v36  ;;  %v13734_v24 = vadd.f32 %v11331_v7, %v9089_v45 }
 0x3f8   : > { %v9100_v34 = vadd.f32 %v11228_v11, %v13653_v52  ;;  %v13737_v8 = vadd.f32 %v11334_v47, %v9092_v18 }
 0x3fa   : > { %v11335_v21 = vpop.f32.mrb[12].mxu0  ;;  %v11229_v1 = vpop.f32.mrb[240].mxu1 }
 0x3fb   : > { %v11336_v30 = vpop.f32.mrb[13].mxu0  ;;  %v11230_v6 = vpop.f32.mrb[241].mxu1 }
 0x3fc   : > { %v11337_v19 = vadd.f32 %v11336_v30, %v11335_v21  ;;  %v11338_v25 = vpop.f32.mrb[14].mxu0  ;;  %v11231_v13 = vadd.f32 %v11230_v6, %v11229_v1  ;;  %v11232_v61 = vpop.f32.mrb[242].mxu1 }
 0x3fd   : > { %v11339_v48 = vpop.f32.mrb[15].mxu0  ;;  %v11233_v0 = vpop.f32.mrb[243].mxu1 }
 0x3fe   : > { %v11340_v63 = vadd.f32 %v11339_v48, %v11338_v25  ;;  %v9105_v38 = vadd.f32 %v11231_v13, %v13655_v3  ;;  %v11234_v53 = vadd.f32 %v11233_v0, %v11232_v61  ;;  %v13740_v4 = vadd.f32 %v11337_v19, %v9097_v31 }
 0x400   : > { %v9108_v52 = vadd.f32 %v11234_v53, %v13657_v28  ;;  %v13743_v29 = vadd.f32 %v11340_v63, %v9100_v34 }
 0x402   : > { %v11341_v32 = vpop.f32.mrb[16].mxu0  ;;  %v11235_v45 = vpop.f32.mrb[244].mxu1 }
 0x403   : > { %v11342_v16 = vpop.f32.mrb[17].mxu0  ;;  %v11236_v18 = vpop.f32.mrb[245].mxu1 }
 0x404   : > { %v11343_v22 = vadd.f32 %v11342_v16, %v11341_v32  ;;  %v11344_v14 = vpop.f32.mrb[18].mxu0  ;;  %v11237_v26 = vadd.f32 %v11236_v18, %v11235_v45  ;;  %v11238_v12 = vpop.f32.mrb[246].mxu1 }
 0x405   : > { %v11345_v7 = vpop.f32.mrb[19].mxu0  ;;  %v11239_v62 = vpop.f32.mrb[247].mxu1 }
 0x406   : > { %v11346_v2 = vadd.f32 %v11345_v7, %v11344_v14  ;;  %v9113_v3 = vadd.f32 %v11237_v26, %v13659_v55  ;;  %v11240_v36 = vadd.f32 %v11239_v62, %v11238_v12  ;;  %v13746_v43 = vadd.f32 %v11343_v22, %v9105_v38 }
 0x408   : > { %v9116_v28 = vadd.f32 %v11240_v36, %v13661_v51  ;;  %v13749_v58 = vadd.f32 %v11346_v2, %v9108_v52 }
 0x40a   : > { %v11347_v47 = vpop.f32.mrb[20].mxu0  ;;  %v11241_v31 = vpop.f32.mrb[248].mxu1 }
 0x40b   : > { %v11348_v11 = vpop.f32.mrb[21].mxu0  ;;  %v11242_v34 = vpop.f32.mrb[249].mxu1 }
 0x40c   : > { %v11349_v21 = vadd.f32 %v11348_v11, %v11347_v47  ;;  %v11350_v1 = vpop.f32.mrb[22].mxu0  ;;  %v11243_v30 = vadd.f32 %v11242_v34, %v11241_v31  ;;  %v11244_v6 = vpop.f32.mrb[250].mxu1  ;;  %v9459_v34 = vld [vmem:[%s12274_s16 + $0x10] sm:$0xff] }
 0x40d   : > { %v11351_v19 = vpop.f32.mrb[23].mxu0  ;;  %v11245_v25 = vpop.f32.mrb[251].mxu1 }
 0x40e   : > { %v11352_v13 = vadd.f32 %v11351_v19, %v11350_v1  ;;  %v9121_v55 = vadd.f32 %v11243_v30, %v13663_v17  ;;  %v11246_v61 = vadd.f32 %v11245_v25, %v11244_v6  ;;  %v13752_v48 = vadd.f32 %v11349_v21, %v9113_v3  ;;  %v13766_v3 = vld [vmem:[%s13914_s4] ss:$0 sm:$0xff] }
 0x40f   : > { %v9457_v6 = vld [vmem:[%s12274_s16] sm:$0xff] }
 0x410   : > { %v9124_v51 = vadd.f32 %v11246_v61, %v13665_v44  ;;  %v13755_v0 = vadd.f32 %v11352_v13, %v9116_v28 }
 0x412   : > { %v11353_v63 = vpop.f32.mrb[24].mxu0  ;;  %v11247_v38 = vpop.f32.mrb[252].mxu1 }
 0x413   : > { %v11354_v53 = vpop.f32.mrb[25].mxu0  ;;  %v11248_v52 = vpop.f32.mrb[253].mxu1 }
 0x414   : > { %v11355_v32 = vadd.f32 %v11354_v53, %v11353_v63  ;;  %v11356_v45 = vpop.f32.mrb[26].mxu0  ;;  %v11249_v16 = vadd.f32 %v11248_v52, %v11247_v38  ;;  %v11250_v18 = vpop.f32.mrb[254].mxu1 }
 0x415   : > { %v11357_v22 = vpop.f32.mrb[27].mxu0  ;;  %v11251_v14 = vpop.f32.mrb[255].mxu1 }
 0x416   : > { %v11358_v26 = vadd.f32 %v11357_v22, %v11356_v45  ;;  %v9129_v17 = vadd.f32 %v11249_v16, %v13667_v56  ;;  %v11252_v12 = vadd.f32 %v11251_v14, %v11250_v18  ;;  %v13758_v7 = vadd.f32 %v11355_v32, %v9121_v55 }
 0x418   : > { %v9132_v44 = vadd.f32 %v11252_v12, %v13670_v33  ;;  %v13761_v62 = vadd.f32 %v11358_v26, %v9124_v51  ;;  %v9463_v12 = vld [vmem:[%s12274_s16 + $0x30] sm:$0xff] }
 0x41a   : > { %v11359_v2 = vpop.f32.mrb[28].mxu0  ;;  %v11455_v36 = vpop.f32.mrb[0].mxu1 }
 0x41b   : > { %v11360_v28 = vpop.f32.mrb[29].mxu0  ;;  %v9339_v47 = vadd.f32 %v11455_v36, %v13680_v41  ;;  %v9330_v56 = vpop.f32.mrb[1].mxu1  ;;  %v9460_v41 = vld [vmem:[%s12274_s16 + $0x18] sm:$0xff] }
 0x41c   : > { %v11361_v31 = vadd.f32 %v11360_v28, %v11359_v2  ;;  %v11362_v11 = vpop.f32.mrb[30].mxu0  ;;  %v9331_v33 = vadd.f32 %v9330_v56, %v13674_v60  ;;  %v11456_v21 = vpop.f32.mrb[2].mxu1  ;;  %v9458_v60 = vld [vmem:[%s12274_s16 + $0x8] sm:$0xff]  ;;  %v9461_v28 = vld [vmem:[%s12274_s16 + $0x20] sm:$0xff] }
 0x41d   : > { %v11363_v1 = vpop.f32.mrb[31].mxu0  ;;  %v9497_v30 = vadd.f32 %v13766_v3, %v9339_v47  ;;  %v9342_v19 = vadd.f32 %v11456_v21, %v13683_v5  ;;  %v9333_v25 = vpop.f32.mrb[3].mxu1 }
 0x41e   : > { %v11364_v13 = vadd.f32 %v11363_v1, %v11362_v11  ;;  %v9495_v55 = vadd.f32 %v13766_v3, %v9331_v33  ;;  %v9334_v61 = vadd.f32 %v9333_v25, %v13677_v40  ;;  %v13777_v51 = vadd.f32 %v11361_v31, %v9129_v17  ;;  %v9462_v33 = vld [vmem:[%s12274_s16 + $0x28] sm:$0xff] }
 0x41f   : > { %v9529_v63 = vadd.f32 %v9497_v30, %v9459_v34  ;;  %v9498_v38 = vadd.f32 %v13766_v3, %v9342_v19 }
 0x420   : > { %v9527_v5 = vadd.f32 %v9495_v55, %v9457_v6  ;;  %v9496_v53 = vadd.f32 %v13766_v3, %v9334_v61  ;;  %v13789_v40 = vadd.f32 %v11364_v13, %v9132_v44  ;;  %v9467_v61 = vld [vmem:[%s12274_s16 + $0x50] sm:$0xff] }
 0x421   : > { %v9561_v52 = vmax.f32 %v9529_v63, 0.0  ;;  %v9530_v32 = vadd.f32 %v9498_v38, %v9460_v41 }
 0x422   : > { %v9559_v45 = vmax.f32 %v9527_v5, 0.0  ;;  %v9528_v16 = vadd.f32 %v9496_v53, %v9458_v60  ;;  %v11459_v18 = vpop.f32.mrb[4].mxu1  ;;  %v9465_v5 = vld [vmem:[%s12274_s16 + $0x40] sm:$0xff] }
 0x423   : > { %9593 = vst [vmem:[%s13786_s20 + $0x10] sm:$0xff] %v9561_v52  ;;  %v9562_v22 = vmax.f32 %v9530_v32, 0.0  ;;  %v9355_v14 = vadd.f32 %v11459_v18, %v13692_v59  ;;  %v9346_v26 = vpop.f32.mrb[5].mxu1  ;;  %v9464_v59 = vld [vmem:[%s12274_s16 + $0x38] sm:$0xff]  ;;  %v9466_v18 = vld [vmem:[%s12274_s16 + $0x48] sm:$0xff] }
 0x424   : > { %9591 = vst [vmem:[%s13786_s20] sm:$0xff] %v9559_v45  ;;  %v9560_v17 = vmax.f32 %v9528_v16, 0.0  ;;  %v9347_v44 = vadd.f32 %v9346_v26, %v13686_v15  ;;  %v11460_v2 = vpop.f32.mrb[6].mxu1 }
 0x425   : > { %9594 = vst [vmem:[%s13786_s20 + $0x18] sm:$0xff] %v9562_v22  ;;  %v9501_v36 = vadd.f32 %v13766_v3, %v9355_v14  ;;  %v9358_v47 = vadd.f32 %v11460_v2, %v13695_v10  ;;  %v9349_v56 = vpop.f32.mrb[7].mxu1 }
 0x426   : > { %9592 = vst [vmem:[%s13786_s20 + $0x8] sm:$0xff] %v9560_v17  ;;  %v9499_v31 = vadd.f32 %v13766_v3, %v9347_v44  ;;  %v9350_v11 = vadd.f32 %v9349_v56, %v13689_v27 }
 0x427   : > { %v9533_v34 = vadd.f32 %v9501_v36, %v9463_v12  ;;  %v9502_v15 = vadd.f32 %v13766_v3, %v9358_v47  ;;  %v9471_v47 = vld [vmem:[%s12274_s16 + $0x70] sm:$0xff] }
 0x428   : > { %v9531_v21 = vadd.f32 %v9499_v31, %v9461_v28  ;;  %v9500_v1 = vadd.f32 %v13766_v3, %v9350_v11  ;;  %v9469_v11 = vld [vmem:[%s12274_s16 + $0x60] sm:$0xff] }
 0x429   : > { %v9565_v30 = vmax.f32 %v9533_v34, 0.0  ;;  %v9534_v10 = vadd.f32 %v9502_v15, %v9464_v59 }
 0x42a   : > { %v9563_v6 = vmax.f32 %v9531_v21, 0.0  ;;  %v9532_v19 = vadd.f32 %v9500_v1, %v9462_v33  ;;  %v11463_v25 = vpop.f32.mrb[8].mxu1 }
 0x42b   : > { %9597 = vst [vmem:[%s13786_s20 + $0x30] sm:$0xff] %v9565_v30  ;;  %v9566_v13 = vmax.f32 %v9534_v10, 0.0  ;;  %v9371_v27 = vadd.f32 %v11463_v25, %v13704_v35  ;;  %v9362_v55 = vpop.f32.mrb[9].mxu1  ;;  %v9468_v35 = vld [vmem:[%s12274_s16 + $0x58] sm:$0xff]  ;;  %v9470_v30 = vld [vmem:[%s12274_s16 + $0x68] sm:$0xff] }
 0x42c   : > { %9595 = vst [vmem:[%s13786_s20 + $0x20] sm:$0xff] %v9563_v6  ;;  %v9564_v41 = vmax.f32 %v9532_v19, 0.0  ;;  %v9363_v63 = vadd.f32 %v9362_v55, %v13698_v39  ;;  %v11464_v38 = vpop.f32.mrb[10].mxu1 }
 0x42d   : > { %9598 = vst [vmem:[%s13786_s20 + $0x38] sm:$0xff] %v9566_v13  ;;  %v9505_v60 = vadd.f32 %v13766_v3, %v9371_v27  ;;  %v9374_v53 = vadd.f32 %v11464_v38, %v13707_v50  ;;  %v9365_v52 = vpop.f32.mrb[11].mxu1 }
 0x42e   : > { %9596 = vst [vmem:[%s13786_s20 + $0x28] sm:$0xff] %v9564_v41  ;;  %v9503_v32 = vadd.f32 %v13766_v3, %v9363_v63  ;;  %v9366_v45 = vadd.f32 %v9365_v52, %v13701_v9  ;;  %v9475_v63 = vld [vmem:[%s12274_s16 + $0x90] sm:$0xff] }
 0x42f   : > { %v9537_v16 = vadd.f32 %v9505_v60, %v9467_v61  ;;  %v9506_v39 = vadd.f32 %v13766_v3, %v9374_v53  ;;  %v9473_v53 = vld [vmem:[%s12274_s16 + $0x80] sm:$0xff] }
 0x430   : > { %v9535_v22 = vadd.f32 %v9503_v32, %v9465_v5  ;;  %v9504_v14 = vadd.f32 %v13766_v3, %v9366_v45 }
 0x431   : > { %v9569_v26 = vmax.f32 %v9537_v16, 0.0  ;;  %v9538_v50 = vadd.f32 %v9506_v39, %v9468_v35  ;;  %v9474_v39 = vld [vmem:[%s12274_s16 + $0x88] sm:$0xff] }
 0x432   : > { %v9567_v17 = vmax.f32 %v9535_v22, 0.0  ;;  %v9536_v12 = vadd.f32 %v9504_v14, %v9466_v18  ;;  %v11467_v44 = vpop.f32.mrb[12].mxu1 }
 0x433   : > { %9601 = vst [vmem:[%s13786_s20 + $0x50] sm:$0xff] %v9569_v26  ;;  %v9570_v2 = vmax.f32 %v9538_v50, 0.0  ;;  %v9387_v9 = vadd.f32 %v11467_v44, %v13716_v46  ;;  %v9378_v36 = vpop.f32.mrb[13].mxu1  ;;  %v9472_v46 = vld [vmem:[%s12274_s16 + $0x78] sm:$0xff] }
 0x434   : > { %9599 = vst [vmem:[%s13786_s20 + $0x40] sm:$0xff] %v9567_v17  ;;  %v9568_v28 = vmax.f32 %v9536_v12, 0.0  ;;  %v9379_v56 = vadd.f32 %v9378_v36, %v13710_v23  ;;  %v11468_v31 = vpop.f32.mrb[14].mxu1 }
 0x435   : > { %9602 = vst [vmem:[%s13786_s20 + $0x58] sm:$0xff] %v9570_v2  ;;  %v9509_v59 = vadd.f32 %v13766_v3, %v9387_v9  ;;  %v9390_v34 = vadd.f32 %v11468_v31, %v13719_v42  ;;  %v9381_v15 = vpop.f32.mrb[15].mxu1  ;;  %v9479_v9 = vld [vmem:[%s12274_s16 + $0xb0] sm:$0xff] }
 0x436   : > { %9600 = vst [vmem:[%s13786_s20 + $0x48] sm:$0xff] %v9568_v28  ;;  %v9507_v33 = vadd.f32 %v13766_v3, %v9379_v56  ;;  %v9382_v21 = vadd.f32 %v9381_v15, %v13713_v57  ;;  %v9477_v56 = vld [vmem:[%s12274_s16 + $0xa0] sm:$0xff] }
 0x437   : > { %v9541_v1 = vadd.f32 %v9509_v59, %v9471_v47  ;;  %v9510_v23 = vadd.f32 %v13766_v3, %v9390_v34 }
 0x438   : > { %v9539_v10 = vadd.f32 %v9507_v33, %v9469_v11  ;;  %v9508_v6 = vadd.f32 %v13766_v3, %v9382_v21  ;;  %v9478_v33 = vld [vmem:[%s12274_s16 + $0xa8] sm:$0xff] }
 0x439   : > { %v9573_v19 = vmax.f32 %v9541_v1, 0.0  ;;  %v9542_v42 = vadd.f32 %v9510_v23, %v9472_v46 }
 0x43a   : > { %v9571_v25 = vmax.f32 %v9539_v10, 0.0  ;;  %v9540_v13 = vadd.f32 %v9508_v6, %v9470_v30  ;;  %v11471_v27 = vpop.f32.mrb[16].mxu1 }
 0x43b   : > { %9605 = vst [vmem:[%s13786_s20 + $0x70] sm:$0xff] %v9573_v19  ;;  %v9574_v55 = vmax.f32 %v9542_v42, 0.0  ;;  %v9403_v57 = vadd.f32 %v11471_v27, %v13728_v37  ;;  %v9394_v41 = vpop.f32.mrb[17].mxu1  ;;  %v9476_v37 = vld [vmem:[%s12274_s16 + $0x98] sm:$0xff] }
 0x43c   : > { %9603 = vst [vmem:[%s13786_s20 + $0x60] sm:$0xff] %v9571_v25  ;;  %v9572_v61 = vmax.f32 %v9540_v13, 0.0  ;;  %v9395_v38 = vadd.f32 %v9394_v41, %v13722_v20  ;;  %v11472_v60 = vpop.f32.mrb[18].mxu1  ;;  %v9483_v25 = vld [vmem:[%s12274_s16 + $0xd0] sm:$0xff] }
 0x43d   : > { %9606 = vst [vmem:[%s13786_s20 + $0x78] sm:$0xff] %v9574_v55  ;;  %v9513_v5 = vadd.f32 %v13766_v3, %v9403_v57  ;;  %v9406_v52 = vadd.f32 %v11472_v60, %v13731_v54  ;;  %v9397_v32 = vpop.f32.mrb[19].mxu1  ;;  %v9481_v57 = vld [vmem:[%s12274_s16 + $0xc0] sm:$0xff] }
 0x43e   : > { %9604 = vst [vmem:[%s13786_s20 + $0x68] sm:$0xff] %v9572_v61  ;;  %v9511_v35 = vadd.f32 %v13766_v3, %v9395_v38  ;;  %v9398_v45 = vadd.f32 %v9397_v32, %v13725_v49 }
 0x43f   : > { %v9545_v16 = vadd.f32 %v9513_v5, %v9475_v63  ;;  %v9514_v20 = vadd.f32 %v13766_v3, %v9406_v52  ;;  %v9482_v5 = vld [vmem:[%s12274_s16 + $0xc8] sm:$0xff] }
 0x440   : > { %v9543_v18 = vadd.f32 %v9511_v35, %v9473_v53  ;;  %v9512_v22 = vadd.f32 %v13766_v3, %v9398_v45 }
 0x441   : > { %v9577_v14 = vmax.f32 %v9545_v16, 0.0  ;;  %v9546_v54 = vadd.f32 %v9514_v20, %v9476_v37 }
 0x442   : > { %v9575_v26 = vmax.f32 %v9543_v18, 0.0  ;;  %v9544_v50 = vadd.f32 %v9512_v22, %v9474_v39  ;;  %v11475_v17 = vpop.f32.mrb[20].mxu1  ;;  %v9487_v18 = vld [vmem:[%s12274_s16 + $0xf0] sm:$0xff] }
 0x443   : > { %9609 = vst [vmem:[%s13786_s20 + $0x90] sm:$0xff] %v9577_v14  ;;  %v9578_v12 = vmax.f32 %v9546_v54, 0.0  ;;  %v9419_v49 = vadd.f32 %v11475_v17, %v13740_v4  ;;  %v9410_v44 = vpop.f32.mrb[21].mxu1  ;;  %v9480_v4 = vld [vmem:[%s12274_s16 + $0xb8] sm:$0xff] }
 0x444   : > { %9607 = vst [vmem:[%s13786_s20 + $0x80] sm:$0xff] %v9575_v26  ;;  %v9576_v2 = vmax.f32 %v9544_v50, 0.0  ;;  %v9411_v36 = vadd.f32 %v9410_v44, %v13734_v24  ;;  %v11476_v28 = vpop.f32.mrb[22].mxu1  ;;  %v9485_v26 = vld [vmem:[%s12274_s16 + $0xe0] sm:$0xff] }
 0x445   : > { %9610 = vst [vmem:[%s13786_s20 + $0x98] sm:$0xff] %v9578_v12  ;;  %v9517_v47 = vadd.f32 %v13766_v3, %v9419_v49  ;;  %v9422_v31 = vadd.f32 %v11476_v28, %v13743_v29  ;;  %v9413_v59 = vpop.f32.mrb[23].mxu1  ;;  %v9488_v12 = vld [vmem:[%s12274_s16 + $0xf8] sm:$0xff] }
 0x446   : > { %9608 = vst [vmem:[%s13786_s20 + $0x88] sm:$0xff] %v9576_v2  ;;  %v9515_v11 = vadd.f32 %v13766_v3, %v9411_v36  ;;  %v9414_v34 = vadd.f32 %v9413_v59, %v13737_v8  ;;  %v9486_v2 = vld [vmem:[%s12274_s16 + $0xe8] sm:$0xff] }
 0x447   : > { %v9549_v15 = vadd.f32 %v9517_v47, %v9479_v9  ;;  %v9518_v24 = vadd.f32 %v13766_v3, %v9422_v31 }
 0x448   : > { %v9547_v46 = vadd.f32 %v9515_v11, %v9477_v56  ;;  %v9516_v21 = vadd.f32 %v13766_v3, %v9414_v34 }
 0x449   : > { %v9581_v1 = vmax.f32 %v9549_v15, 0.0  ;;  %v9550_v29 = vadd.f32 %v9518_v24, %v9480_v4 }
 0x44a   : > { %v9579_v23 = vmax.f32 %v9547_v46, 0.0  ;;  %v9548_v30 = vadd.f32 %v9516_v21, %v9478_v33  ;;  %v11479_v10 = vpop.f32.mrb[24].mxu1 }
 0x44b   : > { %9613 = vst [vmem:[%s13786_s20 + $0xb0] sm:$0xff] %v9581_v1  ;;  %v9582_v6 = vmax.f32 %v9550_v29, 0.0  ;;  %v9435_v8 = vadd.f32 %v11479_v10, %v13752_v48  ;;  %v9426_v19 = vpop.f32.mrb[25].mxu1  ;;  %v9484_v48 = vld [vmem:[%s12274_s16 + $0xd8] sm:$0xff] }
 0x44c   : > { %9611 = vst [vmem:[%s13786_s20 + $0xa0] sm:$0xff] %v9579_v23  ;;  %v9580_v42 = vmax.f32 %v9548_v30, 0.0  ;;  %v9427_v13 = vadd.f32 %v9426_v19, %v13746_v43  ;;  %v11480_v27 = vpop.f32.mrb[26].mxu1 }
 0x44d   : > { %9614 = vst [vmem:[%s13786_s20 + $0xb8] sm:$0xff] %v9582_v6  ;;  %v9521_v55 = vadd.f32 %v13766_v3, %v9435_v8  ;;  %v9438_v41 = vadd.f32 %v11480_v27, %v13755_v0  ;;  %v9429_v61 = vpop.f32.mrb[27].mxu1 }
 0x44e   : > { %9612 = vst [vmem:[%s13786_s20 + $0xa8] sm:$0xff] %v9580_v42  ;;  %v9519_v63 = vadd.f32 %v13766_v3, %v9427_v13  ;;  %v9430_v38 = vadd.f32 %v9429_v61, %v13749_v58 }
 0x44f   : > { %v9553_v60 = vadd.f32 %v9521_v55, %v9483_v25  ;;  %v9522_v43 = vadd.f32 %v13766_v3, %v9438_v41 }
 0x450   : > { %v9551_v53 = vadd.f32 %v9519_v63, %v9481_v57  ;;  %v9520_v52 = vadd.f32 %v13766_v3, %v9430_v38 }
 0x451   : > { %v9585_v32 = vmax.f32 %v9553_v60, 0.0  ;;  %v9554_v0 = vadd.f32 %v9522_v43, %v9484_v48 }
 0x452   : > { %v9583_v35 = vmax.f32 %v9551_v53, 0.0  ;;  %v9552_v37 = vadd.f32 %v9520_v52, %v9482_v5  ;;  %v11483_v45 = vpop.f32.mrb[28].mxu1 }
 0x453   : > { %9617 = vst [vmem:[%s13786_s20 + $0xd0] sm:$0xff] %v9585_v32  ;;  %v9586_v16 = vmax.f32 %v9554_v0, 0.0  ;;  %v9451_v58 = vadd.f32 %v11483_v45, %v13777_v51  ;;  %v9442_v20 = vpop.f32.mrb[29].mxu1 }
 0x454   : > { %9615 = vst [vmem:[%s13786_s20 + $0xc0] sm:$0xff] %v9583_v35  ;;  %v9584_v39 = vmax.f32 %v9552_v37, 0.0  ;;  %v9443_v22 = vadd.f32 %v9442_v20, %v13758_v7  ;;  %v11484_v14 = vpop.f32.mrb[30].mxu1 }
 0x455   : > { %9618 = vst [vmem:[%s13786_s20 + $0xd8] sm:$0xff] %v9586_v16  ;;  %v9525_v54 = vadd.f32 %v13766_v3, %v9451_v58  ;;  %v9454_v50 = vadd.f32 %v11484_v14, %v13789_v40  ;;  %v9445_v17 = vpop.f32.mrb[31].mxu1 }
 0x456   : > { %9616 = vst [vmem:[%s13786_s20 + $0xc8] sm:$0xff] %v9584_v39  ;;  %v9523_v51 = vadd.f32 %v13766_v3, %v9443_v22  ;;  %v9446_v49 = vadd.f32 %v9445_v17, %v13761_v62 }
 0x457   : > { %v9557_v44 = vadd.f32 %v9525_v54, %v9487_v18  ;;  %v9526_v7 = vadd.f32 %v13766_v3, %v9454_v50 }
 0x458   : > { %v9555_v9 = vadd.f32 %v9523_v51, %v9485_v26  ;;  %v9524_v36 = vadd.f32 %v13766_v3, %v9446_v49 }
 0x459   : > { %v9589_v28 = vmax.f32 %v9557_v44, 0.0  ;;  %v9558_v47 = vadd.f32 %v9526_v7, %v9488_v12 }
 0x45a   : > { %v9587_v40 = vmax.f32 %v9555_v9, 0.0  ;;  %v9556_v56 = vadd.f32 %v9524_v36, %v9486_v2 }
 0x45b   : > { %9621 = vst [vmem:[%s13786_s20 + $0xf0] sm:$0xff] %v9589_v28  ;;  %v9590_v31 = vmax.f32 %v9558_v47, 0.0 }
 0x45c   : > { %9619 = vst [vmem:[%s13786_s20 + $0xe0] sm:$0xff] %v9587_v40  ;;  %v9588_v59 = vmax.f32 %v9556_v56, 0.0 }
 0x45d   : > { %9622 = vst [vmem:[%s13786_s20 + $0xf8] sm:$0xff] %v9590_v31 }
 0x45e   : > { %9620 = vst [vmem:[%s13786_s20 + $0xe8] sm:$0xff] %v9588_v59 }
 0x45f PF: > { %s15_s18 = sadd.s32 1, %s12125_s18  }
 0x460   : > { %p12_p4 = scmp.ge.s32.totalorder %s15_s18, 4  }
 0x462   :  { %14 = sbr.rel (!%p12_p4) target bundleno = 1 (0x1), region = 76 }

</bundles_post_ra>
